<compile_context>
chip_gen: v7x
topology: tpu7x:2x2x1
jax: 0.10.0
libtpu: 0.0.40
codegen_flags: <defaults>
</compile_context>

<pallas_src>
import jax
import jax.numpy as jnp
from jax.experimental import pallas as pl
from jax.experimental.pallas import tpu as pltpu

V = 4    # vocabulary size  (nn.Embedding(4, 100))
D = 100  # embedding dim


def _embedding_kernel(idx_ref, table_ref, out_ref):
    # idx_ref:   (TILE_N, 1) int32   — token indices for this tile
    # table_ref: (V, D)      float32 — full embedding table (VMEM-resident)
    # out_ref:   (TILE_N, D) float32 — gathered rows, written once at D=100
    idx = idx_ref[...]                        # (TILE_N, 1)
    table = table_ref[...]                    # (V, D)

    # Pure-VPU gather: chain of V=4 selects, one per vocabulary row.
    # Bit-exact vs table[x]; zeros-init keeps out-of-range rows all-zero.
    out = jnp.zeros(out_ref.shape, dtype=out_ref.dtype)
    for v in range(V):                        # V == 4, unrolled at trace time
        row = table[v:v + 1, :]               # (1, D); broadcast inside the select
        out = jnp.where(idx == v, row, out)   # (TILE_N,1) mask broadcasts over lanes
    out_ref[...] = out


def _round_up(a, b):
    return ((a + b - 1) // b) * b


def embedding_forward(x, table, *, max_tile_n=2048, min_pallas_n=1024):
    """x: integer indices of shape (B, S); table: (V, D) float32 -> (B, S, D)."""
    B, S = x.shape
    Vt, Dt = table.shape
    assert (Vt, Dt) == (V, D), (Vt, Dt)
    N = B * S

    if N < min_pallas_n:
        # Small-N fallback: launch + per-step overhead dominates; a plain XLA
        # gather is strictly cheaper at this size (or fuse into the consumer).
        return table[x.astype(jnp.int32)]

    # >= 2 tiles so v7x's two TensorCores both get work; tiles aligned to 8 sublanes.
    tile_n = min(max_tile_n, max(8, _round_up(pl.cdiv(N, 2), 8)))
    n_pad = _round_up(N, tile_n)

    # Flatten indices; pad N to a multiple of the tile size. Padded entries use
    # index 0 (valid row) and the padding rows are sliced off below.
    idx = jnp.pad(x.reshape(N).astype(jnp.int32), (0, n_pad - N)).reshape(n_pad, 1)
    # TODO(synk): for very large N (or V >> 4), move indices to scalar-prefetch/SMEM
    # and do a data-dependent row-DMA gather (pl.Element index map) instead of the
    # lane-padded (N, 1) VMEM load + select chain.

    grid = (n_pad // tile_n,)
    out = pl.pallas_call(
        _embedding_kernel,
        out_shape=jax.ShapeDtypeStruct((n_pad, D), table.dtype),
        grid_spec=pltpu.PrefetchScalarGridSpec(
            num_scalar_prefetch=0,
            grid=grid,
            in_specs=[
                pl.BlockSpec((tile_n, 1), lambda i: (i, 0)),  # per-tile indices
                pl.BlockSpec((V, D), lambda i: (0, 0)),       # table resident across tiles
            ],
            out_specs=pl.BlockSpec((tile_n, D), lambda i: (i, 0)),
        ),
        compiler_params=pltpu.CompilerParams(
            dimension_semantics=("parallel",),  # v7x: shard tiles over both TCs
            vmem_limit_bytes=32 * 1024 * 1024,  # headroom over v5e's 16 MiB scoped default
        ),
    )(idx, table)

    if n_pad != N:
        out = out[:N]
    return out.reshape(B, S, D)


if __name__ == "__main__":
    key = jax.random.PRNGKey(0)
    k_w, k_x1, k_x2 = jax.random.split(key, 3)

    # Deterministic parameter init (PyTorch default for nn.Embedding is N(0,1)).
    table = jax.random.normal(k_w, (V, D), dtype=jnp.float32)

    # Module-spec-sized input (B=2, S=8 -> N=16): takes the small-N fallback path.
    x_small = jax.random.randint(k_x1, (2, 8), 0, V, dtype=jnp.int32)
    out_small = jax.block_until_ready(embedding_forward(x_small, table))
    assert out_small.shape == (2, 8, D), out_small.shape
    assert jnp.array_equal(out_small, table[x_small]), "fallback mismatch vs reference"

    # Larger input that exercises the Pallas kernel path (N=2048 -> 2 tiles).
    x_large = jax.random.randint(k_x2, (8, 256), 0, V, dtype=jnp.int32)
    out_large = jax.block_until_ready(embedding_forward(x_large, table))
    assert out_large.shape == (8, 256, D), out_large.shape
    assert jnp.array_equal(out_large, table[x_large]), "kernel mismatch vs reference"

    print("KERNEL_OK")
</pallas_src>

<mosaic_0001>
module attributes {stable_mosaic.version = 11 : i64} {
  func.func @_embedding_kernel(%arg0: i32, %arg1: memref<1024x1xi32, #tpu.memory_space<vmem>>, %arg2: memref<4x100xf32, #tpu.memory_space<vmem>>, %arg3: memref<1024x100xf32, #tpu.memory_space<vmem>>) attributes {dimension_semantics = [#tpu.dimension_semantics<parallel>], iteration_bounds = array<i64: 2>, scalar_prefetch = 0 : i64, scratch_operands = 0 : i64, tpu.core_type = #tpu.core_type<tc>, window_params = [{transform_indices = @transform_0, window_bounds = array<i64: 1024, 1>}, {pipeline_mode = #tpu.pipeline_mode<synchronous>, transform_indices = @transform_1, window_bounds = array<i64: 4, 100>}, {transform_indices = @transform_2, window_bounds = array<i64: 1024, 100>}]} {
    %c0 = arith.constant 0 : index
    %c0_0 = arith.constant 0 : index
    %0 = vector.load %arg1[%c0, %c0_0] : memref<1024x1xi32, #tpu.memory_space<vmem>>, vector<1024x1xi32>
    %c0_1 = arith.constant 0 : index
    %c0_2 = arith.constant 0 : index
    %1 = vector.load %arg2[%c0_1, %c0_2] : memref<4x100xf32, #tpu.memory_space<vmem>>, vector<4x100xf32>
    %cst = arith.constant 0.000000e+00 : f32
    %2 = vector.broadcast %cst : f32 to vector<1024x100xf32>
    %3 = vector.extract_strided_slice %1 {offsets = [0, 0], sizes = [1, 100], strides = [1, 1]} : vector<4x100xf32> to vector<1x100xf32>
    %c0_i32 = arith.constant 0 : i32
    %4 = vector.broadcast %c0_i32 : i32 to vector<1024x1xi32>
    %5 = arith.cmpi eq, %0, %4 : vector<1024x1xi32>
    %6 = vector.shape_cast %5 : vector<1024x1xi1> to vector<1024x1xi1>
    %7 = vector.broadcast %6 : vector<1024x1xi1> to vector<1024x100xi1>
    %8 = vector.shape_cast %3 : vector<1x100xf32> to vector<1x100xf32>
    %9 = vector.broadcast %8 : vector<1x100xf32> to vector<1024x100xf32>
    %10 = arith.select %7, %9, %2 : vector<1024x100xi1>, vector<1024x100xf32>
    %11 = vector.extract_strided_slice %1 {offsets = [1, 0], sizes = [1, 100], strides = [1, 1]} : vector<4x100xf32> to vector<1x100xf32>
    %c1_i32 = arith.constant 1 : i32
    %12 = vector.broadcast %c1_i32 : i32 to vector<1024x1xi32>
    %13 = arith.cmpi eq, %0, %12 : vector<1024x1xi32>
    %14 = vector.shape_cast %13 : vector<1024x1xi1> to vector<1024x1xi1>
    %15 = vector.broadcast %14 : vector<1024x1xi1> to vector<1024x100xi1>
    %16 = vector.shape_cast %11 : vector<1x100xf32> to vector<1x100xf32>
    %17 = vector.broadcast %16 : vector<1x100xf32> to vector<1024x100xf32>
    %18 = arith.select %15, %17, %10 : vector<1024x100xi1>, vector<1024x100xf32>
    %19 = vector.extract_strided_slice %1 {offsets = [2, 0], sizes = [1, 100], strides = [1, 1]} : vector<4x100xf32> to vector<1x100xf32>
    %c2_i32 = arith.constant 2 : i32
    %20 = vector.broadcast %c2_i32 : i32 to vector<1024x1xi32>
    %21 = arith.cmpi eq, %0, %20 : vector<1024x1xi32>
    %22 = vector.shape_cast %21 : vector<1024x1xi1> to vector<1024x1xi1>
    %23 = vector.broadcast %22 : vector<1024x1xi1> to vector<1024x100xi1>
    %24 = vector.shape_cast %19 : vector<1x100xf32> to vector<1x100xf32>
    %25 = vector.broadcast %24 : vector<1x100xf32> to vector<1024x100xf32>
    %26 = arith.select %23, %25, %18 : vector<1024x100xi1>, vector<1024x100xf32>
    %27 = vector.extract_strided_slice %1 {offsets = [3, 0], sizes = [1, 100], strides = [1, 1]} : vector<4x100xf32> to vector<1x100xf32>
    %c3_i32 = arith.constant 3 : i32
    %28 = vector.broadcast %c3_i32 : i32 to vector<1024x1xi32>
    %29 = arith.cmpi eq, %0, %28 : vector<1024x1xi32>
    %30 = vector.shape_cast %29 : vector<1024x1xi1> to vector<1024x1xi1>
    %31 = vector.broadcast %30 : vector<1024x1xi1> to vector<1024x100xi1>
    %32 = vector.shape_cast %27 : vector<1x100xf32> to vector<1x100xf32>
    %33 = vector.broadcast %32 : vector<1x100xf32> to vector<1024x100xf32>
    %34 = arith.select %31, %33, %26 : vector<1024x100xi1>, vector<1024x100xf32>
    %c0_3 = arith.constant 0 : index
    %c0_4 = arith.constant 0 : index
    %35 = vector.load %arg3[%c0_3, %c0_4] : memref<1024x100xf32, #tpu.memory_space<vmem>>, vector<1024x100xf32>
    tpu.vector_store %arg3[%c0_3, %c0_4], %34 {strides = array<i32>} : memref<1024x100xf32, #tpu.memory_space<vmem>>, vector<1024x100xf32>,
    return
  }
  func.func @transform_0(%arg0: i32) -> (i32, i32) {
    %c0_i32 = arith.constant 0 : i32
    %c0_i32_0 = arith.constant 0 : i32
    return %arg0, %c0_i32 : i32, i32
  }
  func.func @transform_1(%arg0: i32) -> (i32, i32) {
    %c0_i32 = arith.constant 0 : i32
    %c0_i32_0 = arith.constant 0 : i32
    %c0_i32_1 = arith.constant 0 : i32
    return %c0_i32, %c0_i32_0 : i32, i32
  }
  func.func @transform_2(%arg0: i32) -> (i32, i32) {
    %c0_i32 = arith.constant 0 : i32
    %c0_i32_0 = arith.constant 0 : i32
    return %arg0, %c0_i32 : i32, i32
  }
}

</mosaic_0001>

<bundles_post_ra>
// kernel: tpu_custom_call.1
= control target key start
LH: loop header
LB: loop body
LE: loop exit
PB: predicated region body
PF: predicated region fallthrough
CT: control target
= control target key end

     0   :  { %s4491_s9 = smov 0   ;;  %s8429_s0 = inlined_call_operand.vmem [shape: s32[2048,1], index: 0, kind: input, shape index: {}]   ;;  %s8430_s1 = inlined_call_operand.vmem [shape: f32[4,100], index: 1, kind: input, shape index: {}]   ;;  %s8431_s2 = inlined_call_operand.vmem [shape: f32[2048,100], index: 2, kind: output, shape index: {}]  }
   0x1 LB: > { %s4061_s10 = sadd.s32 4294967295, %s4473_s9   ;;  %p4065_p0 = scmp.ge.s32.totalorder %s4473_s9, 1  ;;  %s4473_s9 = sphi %s4491_s9, %s12_s9  }
   0x2   : > { %p113_p1 = scmp.lt.s32.totalorder %s4473_s9, 3 }
   0x4   : > { %p114_p2 = pnand %p4065_p0, %p113_p1 }
   0x6   : > { %117 = sbr.rel (%p114_p2) target bundleno = 1173 (0x495), region = 28 }
   0xd   : > { %s4066_s11 = sshll.u32 %s4061_s10, 7  ;;  %v8733_v0 = vmov 0  }
   0xe   : > { %4082 = vset.pattern.permute.xlu1 %v8733_v0  ;;  %4081 = vset.pattern.permute.xlu0 %v8733_v0  ;;  %p136_p3 = scmp.lt.s32.totalorder %s4066_s11, 255 }
  0x10   : > { %s9463_s11 = smov (!%p136_p3, %s4066_s11), 255 }
  0x11   : > { %s4067_s12 = sshll.u32 %s9463_s11, 3 }
  0x12   : > { %s4509_s15 = scalar_lea.vmem %s8429_s0, %s4067_s12  ;;  %s6530_s20 = scalar_lea.vmem %s8431_s2, %s4067_s12 }
  0x13   : > { %v149_v1 = vld [vmem:[%s4509_s15 + $0x10] sm:$0xff]  ;;  %v147_v2 = vld [vmem:[%s4509_s15] sm:$0xff]  ;;  %v150_v3 = vld [vmem:[%s4509_s15 + $0x18] sm:$0xff] }
  0x14   : > { %vm278_vm0 = vcmp.eq.s32.totalorder %v149_v1, 0  ;;  %vm276_vm1 = vcmp.eq.s32.totalorder %v147_v2, 0  ;;  %vm279_vm2 = vcmp.eq.s32.totalorder %v150_v3, 0  ;;  %v148_v4 = vld [vmem:[%s4509_s15 + $0x8] sm:$0xff]  ;;  %v151_v8 = vld [vmem:[%s4509_s15 + $0x20] sm:$0xff]  ;;  %v154_v11 = vld [vmem:[%s4509_s15 + $0x38] sm:$0xff] }
  0x15   : > { %v406_v5 = vsel %vm278_vm0, 1, %v8733_v0  ;;  %v404_v6 = vsel %vm276_vm1, 1, %v8733_v0  ;;  %vm277_vm3 = vcmp.eq.s32.totalorder %v148_v4, 0  ;;  %v152_v7 = vld [vmem:[%s4509_s15 + $0x28] sm:$0xff]  ;;  %v407_v9 = vsel %vm279_vm2, 1, %v8733_v0  ;;  %v153_v12 = vld [vmem:[%s4509_s15 + $0x30] sm:$0xff] }
  0x16   : > { %539 = vperm.xlu1 %4082, %v406_v5   ;;  %533 = vperm.xlu0 %4081, %v404_v6   ;;  %v405_v10 = vsel %vm277_vm3, 1, %v8733_v0  ;;  %vm281_vm4 = vcmp.eq.s32.totalorder %v152_v7, 0  ;;  %vm280_vm5 = vcmp.eq.s32.totalorder %v151_v8, 0  ;;  %vm283_vm6 = vcmp.eq.s32.totalorder %v154_v11, 0  ;;  %v156_v15 = vld [vmem:[%s4509_s15 + $0x48] sm:$0xff]  ;;  %v155_v16 = vld [vmem:[%s4509_s15 + $0x40] sm:$0xff] }
  0x17   : > { %v409_v13 = vsel %vm281_vm4, 1, %v8733_v0  ;;  %v408_v14 = vsel %vm280_vm5, 1, %v8733_v0  ;;  %vm282_vm7 = vcmp.eq.s32.totalorder %v153_v12, 0  ;;  %v411_v17 = vsel %vm283_vm6, 1, %v8733_v0  ;;  %v158_v19 = vld [vmem:[%s4509_s15 + $0x58] sm:$0xff]  ;;  %v157_v20 = vld [vmem:[%s4509_s15 + $0x50] sm:$0xff] }
  0x18   : > { %v410_v18 = vsel %vm282_vm7, 1, %v8733_v0  ;;  %vm285_vm8 = vcmp.eq.s32.totalorder %v156_v15, 0  ;;  %vm284_vm9 = vcmp.eq.s32.totalorder %v155_v16, 0  ;;  %vm287_vm10 = vcmp.eq.s32.totalorder %v158_v19, 0  ;;  %v160_v23 = vld [vmem:[%s4509_s15 + $0x68] sm:$0xff]  ;;  %v159_v24 = vld [vmem:[%s4509_s15 + $0x60] sm:$0xff] }
  0x19   : > { %v413_v21 = vsel %vm285_vm8, 1, %v8733_v0  ;;  %v412_v22 = vsel %vm284_vm9, 1, %v8733_v0  ;;  %vm286_vm11 = vcmp.eq.s32.totalorder %v157_v20, 0  ;;  %v415_v25 = vsel %vm287_vm10, 1, %v8733_v0  ;;  %v162_v27 = vld [vmem:[%s4509_s15 + $0x78] sm:$0xff]  ;;  %v161_v28 = vld [vmem:[%s4509_s15 + $0x70] sm:$0xff] }
  0x1a   : > { %542 = vperm.xlu1 %4082, %v407_v9   ;;  %536 = vperm.xlu0 %4081, %v405_v10   ;;  %v414_v26 = vsel %vm286_vm11, 1, %v8733_v0  ;;  %vm289_vm12 = vcmp.eq.s32.totalorder %v160_v23, 0  ;;  %vm288_vm13 = vcmp.eq.s32.totalorder %v159_v24, 0  ;;  %vm291_vm14 = vcmp.eq.s32.totalorder %v162_v27, 0  ;;  %v164_v31 = vld [vmem:[%s4509_s15 + $0x88] sm:$0xff]  ;;  %v163_v32 = vld [vmem:[%s4509_s15 + $0x80] sm:$0xff] }
  0x1b   : > { %v417_v29 = vsel %vm289_vm12, 1, %v8733_v0  ;;  %v416_v30 = vsel %vm288_vm13, 1, %v8733_v0  ;;  %vm290_vm15 = vcmp.eq.s32.totalorder %v161_v28, 0  ;;  %v419_v33 = vsel %vm291_vm14, 1, %v8733_v0  ;;  %v166_v35 = vld [vmem:[%s4509_s15 + $0x98] sm:$0xff]  ;;  %v165_v36 = vld [vmem:[%s4509_s15 + $0x90] sm:$0xff] }
  0x1c   : > { %v418_v34 = vsel %vm290_vm15, 1, %v8733_v0  ;;  %vm293_vm0 = vcmp.eq.s32.totalorder %v164_v31, 0  ;;  %vm292_vm1 = vcmp.eq.s32.totalorder %v163_v32, 0  ;;  %vm295_vm2 = vcmp.eq.s32.totalorder %v166_v35, 0  ;;  %v168_v39 = vld [vmem:[%s4509_s15 + $0xa8] sm:$0xff]  ;;  %v167_v40 = vld [vmem:[%s4509_s15 + $0xa0] sm:$0xff] }
  0x1d   : > { %v421_v37 = vsel %vm293_vm0, 1, %v8733_v0  ;;  %v420_v38 = vsel %vm292_vm1, 1, %v8733_v0  ;;  %vm294_vm3 = vcmp.eq.s32.totalorder %v165_v36, 0  ;;  %v423_v41 = vsel %vm295_vm2, 1, %v8733_v0  ;;  %v170_v43 = vld [vmem:[%s4509_s15 + $0xb8] sm:$0xff]  ;;  %v169_v44 = vld [vmem:[%s4509_s15 + $0xb0] sm:$0xff] }
  0x1e   : > { %548 = vperm.xlu1 %4082, %v409_v13   ;;  %545 = vperm.xlu0 %4081, %v408_v14   ;;  %v422_v42 = vsel %vm294_vm3, 1, %v8733_v0  ;;  %vm297_vm4 = vcmp.eq.s32.totalorder %v168_v39, 0  ;;  %vm296_vm5 = vcmp.eq.s32.totalorder %v167_v40, 0  ;;  %vm299_vm6 = vcmp.eq.s32.totalorder %v170_v43, 0  ;;  %v172_v47 = vld [vmem:[%s4509_s15 + $0xc8] sm:$0xff]  ;;  %v171_v48 = vld [vmem:[%s4509_s15 + $0xc0] sm:$0xff] }
  0x1f   : > { %v425_v45 = vsel %vm297_vm4, 1, %v8733_v0  ;;  %v424_v46 = vsel %vm296_vm5, 1, %v8733_v0  ;;  %vm298_vm7 = vcmp.eq.s32.totalorder %v169_v44, 0  ;;  %v427_v49 = vsel %vm299_vm6, 1, %v8733_v0  ;;  %v174_v51 = vld [vmem:[%s4509_s15 + $0xd8] sm:$0xff]  ;;  %v173_v52 = vld [vmem:[%s4509_s15 + $0xd0] sm:$0xff] }
  0x20   : > { %v426_v50 = vsel %vm298_vm7, 1, %v8733_v0  ;;  %vm301_vm8 = vcmp.eq.s32.totalorder %v172_v47, 0  ;;  %vm300_vm9 = vcmp.eq.s32.totalorder %v171_v48, 0  ;;  %vm303_vm10 = vcmp.eq.s32.totalorder %v174_v51, 0  ;;  %v176_v55 = vld [vmem:[%s4509_s15 + $0xe8] sm:$0xff]  ;;  %v175_v56 = vld [vmem:[%s4509_s15 + $0xe0] sm:$0xff] }
  0x21   : > { %v429_v53 = vsel %vm301_vm8, 1, %v8733_v0  ;;  %v428_v54 = vsel %vm300_vm9, 1, %v8733_v0  ;;  %vm302_vm11 = vcmp.eq.s32.totalorder %v173_v52, 0  ;;  %v431_v57 = vsel %vm303_vm10, 1, %v8733_v0  ;;  %v178_v59 = vld [vmem:[%s4509_s15 + $0xf8] sm:$0xff]  ;;  %v177_v60 = vld [vmem:[%s4509_s15 + $0xf0] sm:$0xff] }
  0x22   : > { %554 = vperm.xlu1 %4082, %v411_v17   ;;  %551 = vperm.xlu0 %4081, %v410_v18   ;;  %v430_v58 = vsel %vm302_vm11, 1, %v8733_v0  ;;  %vm305_vm12 = vcmp.eq.s32.totalorder %v176_v55, 0  ;;  %vm304_vm13 = vcmp.eq.s32.totalorder %v175_v56, 0  ;;  %vm307_vm14 = vcmp.eq.s32.totalorder %v178_v59, 0  ;;  %v180_v63 = vld [vmem:[%s4509_s15 + $0x108] sm:$0xff]  ;;  %v179_v1 = vld [vmem:[%s4509_s15 + $0x100] sm:$0xff] }
  0x23   : > { %v433_v61 = vsel %vm305_vm12, 1, %v8733_v0  ;;  %v432_v62 = vsel %vm304_vm13, 1, %v8733_v0  ;;  %vm306_vm15 = vcmp.eq.s32.totalorder %v177_v60, 0  ;;  %v435_v2 = vsel %vm307_vm14, 1, %v8733_v0  ;;  %v182_v4 = vld [vmem:[%s4509_s15 + $0x118] sm:$0xff]  ;;  %v181_v5 = vld [vmem:[%s4509_s15 + $0x110] sm:$0xff] }
  0x24   : > { %v434_v3 = vsel %vm306_vm15, 1, %v8733_v0  ;;  %vm309_vm0 = vcmp.eq.s32.totalorder %v180_v63, 0  ;;  %vm308_vm1 = vcmp.eq.s32.totalorder %v179_v1, 0  ;;  %vm311_vm2 = vcmp.eq.s32.totalorder %v182_v4, 0  ;;  %v184_v8 = vld [vmem:[%s4509_s15 + $0x128] sm:$0xff]  ;;  %v183_v9 = vld [vmem:[%s4509_s15 + $0x120] sm:$0xff] }
  0x25   : > { %v437_v6 = vsel %vm309_vm0, 1, %v8733_v0  ;;  %v436_v7 = vsel %vm308_vm1, 1, %v8733_v0  ;;  %vm310_vm3 = vcmp.eq.s32.totalorder %v181_v5, 0  ;;  %v439_v10 = vsel %vm311_vm2, 1, %v8733_v0  ;;  %v186_v12 = vld [vmem:[%s4509_s15 + $0x138] sm:$0xff]  ;;  %v185_v13 = vld [vmem:[%s4509_s15 + $0x130] sm:$0xff] }
  0x26   : > { %560 = vperm.xlu1 %4082, %v413_v21   ;;  %557 = vperm.xlu0 %4081, %v412_v22   ;;  %v438_v11 = vsel %vm310_vm3, 1, %v8733_v0  ;;  %vm313_vm4 = vcmp.eq.s32.totalorder %v184_v8, 0  ;;  %vm312_vm5 = vcmp.eq.s32.totalorder %v183_v9, 0  ;;  %vm315_vm6 = vcmp.eq.s32.totalorder %v186_v12, 0  ;;  %v188_v16 = vld [vmem:[%s4509_s15 + $0x148] sm:$0xff]  ;;  %v187_v17 = vld [vmem:[%s4509_s15 + $0x140] sm:$0xff] }
  0x27   : > { %v441_v14 = vsel %vm313_vm4, 1, %v8733_v0  ;;  %v440_v15 = vsel %vm312_vm5, 1, %v8733_v0  ;;  %vm314_vm7 = vcmp.eq.s32.totalorder %v185_v13, 0  ;;  %v443_v18 = vsel %vm315_vm6, 1, %v8733_v0  ;;  %v190_v20 = vld [vmem:[%s4509_s15 + $0x158] sm:$0xff]  ;;  %v189_v21 = vld [vmem:[%s4509_s15 + $0x150] sm:$0xff] }
  0x28   : > { %v442_v19 = vsel %vm314_vm7, 1, %v8733_v0  ;;  %vm317_vm8 = vcmp.eq.s32.totalorder %v188_v16, 0  ;;  %vm316_vm9 = vcmp.eq.s32.totalorder %v187_v17, 0  ;;  %vm319_vm10 = vcmp.eq.s32.totalorder %v190_v20, 0  ;;  %v192_v24 = vld [vmem:[%s4509_s15 + $0x168] sm:$0xff]  ;;  %v194_v28 = vld [vmem:[%s4509_s15 + $0x178] sm:$0xff] }
  0x29   : > { %v445_v22 = vsel %vm317_vm8, 1, %v8733_v0  ;;  %v444_v23 = vsel %vm316_vm9, 1, %v8733_v0  ;;  %vm318_vm11 = vcmp.eq.s32.totalorder %v189_v21, 0  ;;  %vm321_vm12 = vcmp.eq.s32.totalorder %v192_v24, 0  ;;  %v196_v32 = vld [vmem:[%s4509_s15 + $0x188] sm:$0xff]  ;;  %v198_v36 = vld [vmem:[%s4509_s15 + $0x198] sm:$0xff] }
  0x2a   : > { %566 = vperm.xlu1 %4082, %v415_v25   ;;  %563 = vperm.xlu0 %4081, %v414_v26   ;;  %v191_v25 = vld [vmem:[%s4509_s15 + $0x160] sm:$0xff]  ;;  %v447_v26 = vsel %vm319_vm10, 1, %v8733_v0  ;;  %v446_v27 = vsel %vm318_vm11, 1, %v8733_v0  ;;  %vm323_vm14 = vcmp.eq.s32.totalorder %v194_v28, 0  ;;  %vm325_vm0 = vcmp.eq.s32.totalorder %v196_v32, 0  ;;  %v200_v40 = vld [vmem:[%s4509_s15 + $0x1a8] sm:$0xff] }
  0x2b   : > { %vm320_vm13 = vcmp.eq.s32.totalorder %v191_v25, 0  ;;  %vm327_vm2 = vcmp.eq.s32.totalorder %v198_v36, 0  ;;  %vm329_vm4 = vcmp.eq.s32.totalorder %v200_v40, 0  ;;  %v202_v44 = vld [vmem:[%s4509_s15 + $0x1b8] sm:$0xff]  ;;  %v204_v48 = vld [vmem:[%s4509_s15 + $0x1c8] sm:$0xff]  ;;  %v215_v12 = vld [vmem:[%s4509_s15 + $0x220] sm:$0xff] }
  0x2c   : > { %v448_v31 = vsel %vm320_vm13, 1, %v8733_v0  ;;  %vm331_vm6 = vcmp.eq.s32.totalorder %v202_v44, 0  ;;  %vm333_vm8 = vcmp.eq.s32.totalorder %v204_v48, 0  ;;  %v206_v52 = vld [vmem:[%s4509_s15 + $0x1d8] sm:$0xff]  ;;  %v208_v56 = vld [vmem:[%s4509_s15 + $0x1e8] sm:$0xff]  ;;  %v219_v24 = vld [vmem:[%s4509_s15 + $0x240] sm:$0xff] }
  0x2d   : > { %vm335_vm10 = vcmp.eq.s32.totalorder %v206_v52, 0  ;;  %v210_v60 = vld [vmem:[%s4509_s15 + $0x1f8] sm:$0xff]  ;;  %v212_v1 = vld [vmem:[%s4509_s15 + $0x208] sm:$0xff]  ;;  %v223_v36 = vld [vmem:[%s4509_s15 + $0x260] sm:$0xff] }
  0x2e   : > { %572 = vperm.xlu1 %4082, %v417_v29   ;;  %569 = vperm.xlu0 %4081, %v416_v30   ;;  %v193_v29 = vld [vmem:[%s4509_s15 + $0x170] sm:$0xff]  ;;  %v449_v30 = vsel %vm321_vm12, 1, %v8733_v0  ;;  %vm337_vm12 = vcmp.eq.s32.totalorder %v208_v56, 0  ;;  %v214_v5 = vld [vmem:[%s4509_s15 + $0x218] sm:$0xff]  ;;  %v227_v48 = vld [vmem:[%s4509_s15 + $0x280] sm:$0xff] }
  0x2f   : > { %vm322_vm15 = vcmp.eq.s32.totalorder %v193_v29, 0  ;;  %v218_v17 = vld [vmem:[%s4509_s15 + $0x238] sm:$0xff] }
  0x30   : > { %v450_v35 = vsel %vm322_vm15, 1, %v8733_v0  ;;  %v222_v29 = vld [vmem:[%s4509_s15 + $0x258] sm:$0xff] }
  0x32   : > { %578 = vperm.xlu1 %4082, %v419_v33   ;;  %575 = vperm.xlu0 %4081, %v418_v34   ;;  %v195_v33 = vld [vmem:[%s4509_s15 + $0x180] sm:$0xff]  ;;  %v451_v34 = vsel %vm323_vm14, 1, %v8733_v0  ;;  %vm339_vm14 = vcmp.eq.s32.totalorder %v210_v60, 0 }
  0x33   : > { %vm324_vm1 = vcmp.eq.s32.totalorder %v195_v33, 0  ;;  %v231_v60 = vld [vmem:[%s4509_s15 + $0x2a0] sm:$0xff] }
  0x34   : > { %v452_v39 = vsel %vm324_vm1, 1, %v8733_v0 }
  0x36   : > { %584 = vperm.xlu1 %4082, %v421_v37   ;;  %581 = vperm.xlu0 %4081, %v420_v38   ;;  %v197_v37 = vld [vmem:[%s4509_s15 + $0x190] sm:$0xff]  ;;  %v453_v38 = vsel %vm325_vm0, 1, %v8733_v0  ;;  %vm341_vm0 = vcmp.eq.s32.totalorder %v212_v1, 0 }
  0x37   : > { %vm326_vm3 = vcmp.eq.s32.totalorder %v197_v37, 0 }
  0x38   : > { %v454_v43 = vsel %vm326_vm3, 1, %v8733_v0 }
  0x3a   : > { %590 = vperm.xlu1 %4082, %v423_v41   ;;  %587 = vperm.xlu0 %4081, %v422_v42   ;;  %v199_v41 = vld [vmem:[%s4509_s15 + $0x1a0] sm:$0xff]  ;;  %v455_v42 = vsel %vm327_vm2, 1, %v8733_v0  ;;  %vm343_vm2 = vcmp.eq.s32.totalorder %v214_v5, 0 }
  0x3b   : > { %vm328_vm5 = vcmp.eq.s32.totalorder %v199_v41, 0  ;;  %v471_v13 = vsel %vm343_vm2, 1, %v8733_v0  ;;  %v226_v41 = vld [vmem:[%s4509_s15 + $0x278] sm:$0xff] }
  0x3c   : > { %v456_v47 = vsel %vm328_vm5, 1, %v8733_v0  ;;  %vm344_vm5 = vcmp.eq.s32.totalorder %v215_v12, 0 }
  0x3d   : > { %v472_v20 = vsel %vm344_vm5, 1, %v8733_v0  ;;  %vm360_vm5 = vcmp.eq.s32.totalorder %v231_v60, 0 }
  0x3e   : > { %596 = vperm.xlu1 %4082, %v425_v45   ;;  %593 = vperm.xlu0 %4081, %v424_v46   ;;  %v201_v45 = vld [vmem:[%s4509_s15 + $0x1b0] sm:$0xff]  ;;  %v457_v46 = vsel %vm329_vm4, 1, %v8733_v0  ;;  %v488_v5 = vsel %vm360_vm5, 1, %v8733_v0 }
  0x3f   : > { %vm330_vm7 = vcmp.eq.s32.totalorder %v201_v45, 0 }
  0x40   : > { %v458_v51 = vsel %vm330_vm7, 1, %v8733_v0 }
  0x42   : > { %602 = vperm.xlu1 %4082, %v427_v49   ;;  %599 = vperm.xlu0 %4081, %v426_v50   ;;  %v203_v49 = vld [vmem:[%s4509_s15 + $0x1c0] sm:$0xff]  ;;  %v459_v50 = vsel %vm331_vm6, 1, %v8733_v0  ;;  %vm347_vm6 = vcmp.eq.s32.totalorder %v218_v17, 0 }
  0x43   : > { %vm332_vm9 = vcmp.eq.s32.totalorder %v203_v49, 0  ;;  %v475_v25 = vsel %vm347_vm6, 1, %v8733_v0 }
  0x44   : > { %v460_v55 = vsel %vm332_vm9, 1, %v8733_v0  ;;  %vm348_vm9 = vcmp.eq.s32.totalorder %v219_v24, 0 }
  0x45   : > { %v476_v32 = vsel %vm348_vm9, 1, %v8733_v0 }
  0x46   : > { %608 = vperm.xlu1 %4082, %v429_v53   ;;  %605 = vperm.xlu0 %4081, %v428_v54   ;;  %v205_v53 = vld [vmem:[%s4509_s15 + $0x1d0] sm:$0xff]  ;;  %v461_v54 = vsel %vm333_vm8, 1, %v8733_v0 }
  0x47   : > { %vm334_vm11 = vcmp.eq.s32.totalorder %v205_v53, 0  ;;  %v230_v53 = vld [vmem:[%s4509_s15 + $0x298] sm:$0xff] }
  0x48   : > { %v462_v59 = vsel %vm334_vm11, 1, %v8733_v0  ;;  %vm359_vm2 = vcmp.eq.s32.totalorder %v230_v53, 0 }
  0x4a   : > { %614 = vperm.xlu1 %4082, %v431_v57   ;;  %611 = vperm.xlu0 %4081, %v430_v58   ;;  %v207_v57 = vld [vmem:[%s4509_s15 + $0x1e0] sm:$0xff]  ;;  %v463_v58 = vsel %vm335_vm10, 1, %v8733_v0  ;;  %vm351_vm10 = vcmp.eq.s32.totalorder %v222_v29, 0 }
  0x4b   : > { %vm336_vm13 = vcmp.eq.s32.totalorder %v207_v57, 0  ;;  %v479_v37 = vsel %vm351_vm10, 1, %v8733_v0  ;;  %v239_v29 = vld [vmem:[%s4509_s15 + $0x2e0] sm:$0xff] }
  0x4c   : > { %v464_v63 = vsel %vm336_vm13, 1, %v8733_v0  ;;  %vm352_vm13 = vcmp.eq.s32.totalorder %v223_v36, 0  ;;  %v242_v36 = vld [vmem:[%s4509_s15 + $0x2f8] sm:$0xff] }
  0x4d   : > { %v480_v44 = vsel %vm352_vm13, 1, %v8733_v0  ;;  %vm368_vm13 = vcmp.eq.s32.totalorder %v239_v29, 0 }
  0x4e   : > { %620 = vperm.xlu1 %4082, %v433_v61   ;;  %617 = vperm.xlu0 %4081, %v432_v62   ;;  %v209_v61 = vld [vmem:[%s4509_s15 + $0x1f0] sm:$0xff]  ;;  %v465_v62 = vsel %vm337_vm12, 1, %v8733_v0 }
  0x4f   : > { %vm338_vm15 = vcmp.eq.s32.totalorder %v209_v61, 0  ;;  %v487_v61 = vsel %vm359_vm2, 1, %v8733_v0 }
  0x50   : > { %v466_v4 = vsel %vm338_vm15, 1, %v8733_v0 }
  0x52   : > { %626 = vperm.xlu1 %4082, %v435_v2   ;;  %623 = vperm.xlu0 %4081, %v434_v3   ;;  %v211_v2 = vld [vmem:[%s4509_s15 + $0x200] sm:$0xff]  ;;  %v467_v3 = vsel %vm339_vm14, 1, %v8733_v0  ;;  %vm355_vm14 = vcmp.eq.s32.totalorder %v226_v41, 0  ;;  %v496_v41 = vsel %vm368_vm13, 1, %v8733_v0 }
  0x53   : > { %vm340_vm1 = vcmp.eq.s32.totalorder %v211_v2, 0  ;;  %v483_v49 = vsel %vm355_vm14, 1, %v8733_v0  ;;  %v234_v2 = vld [vmem:[%s4509_s15 + $0x2b8] sm:$0xff]  ;;  %vm371_vm14 = vcmp.eq.s32.totalorder %v242_v36, 0 }
  0x54   : > { %v468_v8 = vsel %vm340_vm1, 1, %v8733_v0  ;;  %vm356_vm1 = vcmp.eq.s32.totalorder %v227_v48, 0  ;;  %vm363_vm6 = vcmp.eq.s32.totalorder %v234_v2, 0  ;;  %v499_v48 = vsel %vm371_vm14, 1, %v8733_v0  ;;  %v247_v2 = vld [vmem:[%s4509_s15 + $0x320] sm:$0xff] }
  0x55   : > { %v484_v56 = vsel %vm356_vm1, 1, %v8733_v0  ;;  %v491_v12 = vsel %vm363_vm6, 1, %v8733_v0  ;;  %vm376_vm5 = vcmp.eq.s32.totalorder %v247_v2, 0  ;;  %v258_v2 = vld [vmem:[%s4509_s15 + $0x378] sm:$0xff] }
  0x56   : > { %632 = vperm.xlu1 %4082, %v437_v6   ;;  %629 = vperm.xlu0 %4081, %v436_v7   ;;  %v213_v6 = vld [vmem:[%s4509_s15 + $0x210] sm:$0xff]  ;;  %v469_v7 = vsel %vm341_vm0, 1, %v8733_v0  ;;  %vm387_vm14 = vcmp.eq.s32.totalorder %v258_v2, 0  ;;  %v263_v2 = vld [vmem:[%s4509_s15 + $0x3a0] sm:$0xff] }
  0x57   : > { %vm342_vm3 = vcmp.eq.s32.totalorder %v213_v6, 0 }
  0x5a   : > { %638 = vperm.xlu1 %4082, %v439_v10   ;;  %635 = vperm.xlu0 %4081, %v438_v11   ;;  %v216_v11 = vld [vmem:[%s4509_s15 + $0x228] sm:$0xff] }
  0x5b   : > { %vm345_vm4 = vcmp.eq.s32.totalorder %v216_v11, 0  ;;  %v235_v11 = vld [vmem:[%s4509_s15 + $0x2c0] sm:$0xff] }
  0x5c   : > { %vm364_vm9 = vcmp.eq.s32.totalorder %v235_v11, 0  ;;  %v250_v11 = vld [vmem:[%s4509_s15 + $0x338] sm:$0xff] }
  0x5d   : > { %vm379_vm6 = vcmp.eq.s32.totalorder %v250_v11, 0 }
  0x5e   : > { %644 = vperm.xlu1 %4082, %v441_v14   ;;  %641 = vperm.xlu0 %4081, %v440_v15   ;;  %v470_v14 = vsel %vm342_vm3, 1, %v8733_v0  ;;  %v507_v29 = vsel %vm379_vm6, 1, %v8733_v0 }
  0x62   : > { %650 = vperm.xlu1 %4082, %v443_v18   ;;  %647 = vperm.xlu0 %4081, %v442_v19   ;;  %v217_v18 = vld [vmem:[%s4509_s15 + $0x230] sm:$0xff]  ;;  %v473_v19 = vsel %vm345_vm4, 1, %v8733_v0 }
  0x63   : > { %vm346_vm7 = vcmp.eq.s32.totalorder %v217_v18, 0  ;;  %v238_v18 = vld [vmem:[%s4509_s15 + $0x2d8] sm:$0xff] }
  0x64   : > { %vm367_vm10 = vcmp.eq.s32.totalorder %v238_v18, 0  ;;  %v504_v18 = vsel %vm376_vm5, 1, %v8733_v0  ;;  %vm392_vm5 = vcmp.eq.s32.totalorder %v263_v2, 0 }
  0x66   : > { %656 = vperm.xlu1 %4082, %v445_v22   ;;  %653 = vperm.xlu0 %4081, %v444_v23   ;;  %v220_v23 = vld [vmem:[%s4509_s15 + $0x248] sm:$0xff] }
  0x67   : > { %vm349_vm8 = vcmp.eq.s32.totalorder %v220_v23, 0  ;;  %v492_v23 = vsel %vm364_vm9, 1, %v8733_v0 }
  0x6a   : > { %662 = vperm.xlu1 %4082, %v447_v26   ;;  %659 = vperm.xlu0 %4081, %v446_v27   ;;  %v474_v26 = vsel %vm346_vm7, 1, %v8733_v0 }
  0x6e   : > { %668 = vperm.xlu1 %4082, %v449_v30   ;;  %665 = vperm.xlu0 %4081, %v448_v31   ;;  %v221_v30 = vld [vmem:[%s4509_s15 + $0x250] sm:$0xff]  ;;  %v477_v31 = vsel %vm349_vm8, 1, %v8733_v0 }
  0x6f   : > { %vm350_vm11 = vcmp.eq.s32.totalorder %v221_v30, 0  ;;  %v495_v30 = vsel %vm367_vm10, 1, %v8733_v0 }
  0x72   : > { %674 = vperm.xlu1 %4082, %v451_v34   ;;  %671 = vperm.xlu0 %4081, %v450_v35   ;;  %v224_v35 = vld [vmem:[%s4509_s15 + $0x268] sm:$0xff] }
  0x73   : > { %vm353_vm12 = vcmp.eq.s32.totalorder %v224_v35, 0 }
  0x76   : > { %680 = vperm.xlu1 %4082, %v453_v38   ;;  %677 = vperm.xlu0 %4081, %v452_v39   ;;  %v478_v38 = vsel %vm350_vm11, 1, %v8733_v0 }
  0x7a   : > { %686 = vperm.xlu1 %4082, %v455_v42   ;;  %683 = vperm.xlu0 %4081, %v454_v43   ;;  %v225_v42 = vld [vmem:[%s4509_s15 + $0x270] sm:$0xff]  ;;  %v481_v43 = vsel %vm353_vm12, 1, %v8733_v0 }
  0x7b   : > { %vm354_vm15 = vcmp.eq.s32.totalorder %v225_v42, 0 }
  0x7e   : > { %692 = vperm.xlu1 %4082, %v457_v46   ;;  %689 = vperm.xlu0 %4081, %v456_v47   ;;  %v228_v47 = vld [vmem:[%s4509_s15 + $0x288] sm:$0xff] }
  0x7f   : > { %vm357_vm0 = vcmp.eq.s32.totalorder %v228_v47, 0  ;;  %v243_v47 = vld [vmem:[%s4509_s15 + $0x300] sm:$0xff] }
  0x80   : > { %vm372_vm1 = vcmp.eq.s32.totalorder %v243_v47, 0 }
  0x82   : > { %698 = vperm.xlu1 %4082, %v459_v50   ;;  %695 = vperm.xlu0 %4081, %v458_v51   ;;  %v482_v50 = vsel %vm354_vm15, 1, %v8733_v0 }
  0x86   : > { %704 = vperm.xlu1 %4082, %v461_v54   ;;  %701 = vperm.xlu0 %4081, %v460_v55   ;;  %v229_v54 = vld [vmem:[%s4509_s15 + $0x290] sm:$0xff]  ;;  %v485_v55 = vsel %vm357_vm0, 1, %v8733_v0 }
  0x87   : > { %vm358_vm3 = vcmp.eq.s32.totalorder %v229_v54, 0  ;;  %v246_v54 = vld [vmem:[%s4509_s15 + $0x318] sm:$0xff] }
  0x88   : > { %vm375_vm2 = vcmp.eq.s32.totalorder %v246_v54, 0  ;;  %v255_v54 = vld [vmem:[%s4509_s15 + $0x360] sm:$0xff] }
  0x89   : > { %vm384_vm13 = vcmp.eq.s32.totalorder %v255_v54, 0 }
  0x8a   : > { %710 = vperm.xlu1 %4082, %v463_v58   ;;  %707 = vperm.xlu0 %4081, %v462_v59   ;;  %v232_v59 = vld [vmem:[%s4509_s15 + $0x2a8] sm:$0xff]  ;;  %v512_v11 = vsel %vm384_vm13, 1, %v8733_v0 }
  0x8b   : > { %vm361_vm4 = vcmp.eq.s32.totalorder %v232_v59, 0  ;;  %v500_v59 = vsel %vm372_vm1, 1, %v8733_v0 }
  0x8e   : > { %716 = vperm.xlu1 %4082, %v465_v62   ;;  %713 = vperm.xlu0 %4081, %v464_v63   ;;  %v486_v62 = vsel %vm358_vm3, 1, %v8733_v0 }
  0x92   : > { %722 = vperm.xlu1 %4082, %v467_v3   ;;  %719 = vperm.xlu0 %4081, %v466_v4   ;;  %v233_v3 = vld [vmem:[%s4509_s15 + $0x2b0] sm:$0xff]  ;;  %v489_v4 = vsel %vm361_vm4, 1, %v8733_v0 }
  0x93   : > { %vm362_vm7 = vcmp.eq.s32.totalorder %v233_v3, 0  ;;  %v503_v3 = vsel %vm375_vm2, 1, %v8733_v0 }
  0x95   : > { %v4645_v9 = vpop.permute.xlu1 %539  ;;  %v4647_v10 = vpop.permute.xlu0 %533 }
  0x96   : > { %728 = vperm.xlu1 %4082, %v469_v7   ;;  %725 = vperm.xlu0 %4081, %v468_v8   ;;  %v236_v8 = vld [vmem:[%s4509_s15 + $0x2c8] sm:$0xff] }
  0x97   : > { %vm365_vm8 = vcmp.eq.s32.totalorder %v236_v8, 0 }
  0x99   : > { %v4653_v15 = vpop.permute.xlu1 %542  ;;  %v4655_v16 = vpop.permute.xlu0 %536 }
  0x9a   : > { %734 = vperm.xlu1 %4082, %v471_v13   ;;  %731 = vperm.xlu0 %4081, %v470_v14   ;;  %v490_v13 = vsel %vm362_vm7, 1, %v8733_v0 }
  0x9d   : > { %v4661_v21 = vpop.permute.xlu1 %548  ;;  %v4663_v22 = vpop.permute.xlu0 %545 }
  0x9e   : > { %740 = vperm.xlu1 %4082, %v473_v19   ;;  %737 = vperm.xlu0 %4081, %v472_v20   ;;  %v237_v19 = vld [vmem:[%s4509_s15 + $0x2d0] sm:$0xff]  ;;  %v493_v20 = vsel %vm365_vm8, 1, %v8733_v0 }
  0x9f   : > { %vm366_vm11 = vcmp.eq.s32.totalorder %v237_v19, 0 }
  0xa1   : > { %v4669_v27 = vpop.permute.xlu1 %554  ;;  %v4671_v28 = vpop.permute.xlu0 %551 }
  0xa2   : > { %746 = vperm.xlu1 %4082, %v475_v25   ;;  %743 = vperm.xlu0 %4081, %v474_v26   ;;  %v240_v26 = vld [vmem:[%s4509_s15 + $0x2e8] sm:$0xff] }
  0xa3   : > { %vm369_vm12 = vcmp.eq.s32.totalorder %v240_v26, 0  ;;  %v251_v26 = vld [vmem:[%s4509_s15 + $0x340] sm:$0xff] }
  0xa4   : > { %vm380_vm9 = vcmp.eq.s32.totalorder %v251_v26, 0  ;;  %v515_v26 = vsel %vm387_vm14, 1, %v8733_v0 }
  0xa5   : > { %v4677_v33 = vpop.permute.xlu1 %560  ;;  %v4679_v34 = vpop.permute.xlu0 %557 }
  0xa6   : > { %752 = vperm.xlu1 %4082, %v477_v31   ;;  %749 = vperm.xlu0 %4081, %v476_v32   ;;  %v494_v31 = vsel %vm366_vm11, 1, %v8733_v0 }
  0xa9   : > { %v4685_v39 = vpop.permute.xlu1 %566  ;;  %v4687_v40 = vpop.permute.xlu0 %563 }
  0xaa   : > { %758 = vperm.xlu1 %4082, %v479_v37   ;;  %755 = vperm.xlu0 %4081, %v478_v38   ;;  %v241_v37 = vld [vmem:[%s4509_s15 + $0x2f0] sm:$0xff]  ;;  %v497_v38 = vsel %vm369_vm12, 1, %v8733_v0 }
  0xab   : > { %vm370_vm15 = vcmp.eq.s32.totalorder %v241_v37, 0  ;;  %v254_v37 = vld [vmem:[%s4509_s15 + $0x358] sm:$0xff] }
  0xac   : > { %vm383_vm10 = vcmp.eq.s32.totalorder %v254_v37, 0 }
  0xad   : > { %v4693_v45 = vpop.permute.xlu1 %572  ;;  %v4695_v46 = vpop.permute.xlu0 %569 }
  0xae   : > { %764 = vperm.xlu1 %4082, %v481_v43   ;;  %761 = vperm.xlu0 %4081, %v480_v44   ;;  %v244_v44 = vld [vmem:[%s4509_s15 + $0x308] sm:$0xff] }
  0xaf   : > { %vm373_vm0 = vcmp.eq.s32.totalorder %v244_v44, 0  ;;  %v508_v44 = vsel %vm380_vm9, 1, %v8733_v0 }
  0xb1   : > { %v4701_v51 = vpop.permute.xlu1 %578  ;;  %v4703_v52 = vpop.permute.xlu0 %575 }
  0xb2   : > { %770 = vperm.xlu1 %4082, %v483_v49   ;;  %767 = vperm.xlu0 %4081, %v482_v50   ;;  %v498_v49 = vsel %vm370_vm15, 1, %v8733_v0 }
  0xb5   : > { %v4709_v57 = vpop.permute.xlu1 %584  ;;  %v4711_v58 = vpop.permute.xlu0 %581 }
  0xb6   : > { %776 = vperm.xlu1 %4082, %v485_v55   ;;  %773 = vperm.xlu0 %4081, %v484_v56   ;;  %v245_v55 = vld [vmem:[%s4509_s15 + $0x310] sm:$0xff]  ;;  %v501_v56 = vsel %vm373_vm0, 1, %v8733_v0 }
  0xb7   : > { %vm374_vm3 = vcmp.eq.s32.totalorder %v245_v55, 0  ;;  %v511_v55 = vsel %vm383_vm10, 1, %v8733_v0 }
  0xb9   : > { %v4717_v63 = vpop.permute.xlu1 %590  ;;  %v4719_v1 = vpop.permute.xlu0 %587 }
  0xba   : > { %782 = vperm.xlu1 %4082, %v487_v61   ;;  %779 = vperm.xlu0 %4081, %v486_v62   ;;  %v248_v62 = vld [vmem:[%s4509_s15 + $0x328] sm:$0xff] }
  0xbb   : > { %vm377_vm4 = vcmp.eq.s32.totalorder %v248_v62, 0 }
  0xbd   : > { %v4725_v6 = vpop.permute.xlu1 %596  ;;  %v4727_v7 = vpop.permute.xlu0 %593 }
  0xbe   : > { %788 = vperm.xlu1 %4082, %v489_v4   ;;  %785 = vperm.xlu0 %4081, %v488_v5   ;;  %v502_v4 = vsel %vm374_vm3, 1, %v8733_v0 }
  0xc1   : > { %v4733_v14 = vpop.permute.xlu1 %602  ;;  %v4735_v17 = vpop.permute.xlu0 %599 }
  0xc2   : > { %794 = vperm.xlu1 %4082, %v491_v12   ;;  %791 = vperm.xlu0 %4081, %v490_v13   ;;  %v249_v12 = vld [vmem:[%s4509_s15 + $0x330] sm:$0xff]  ;;  %v505_v13 = vsel %vm377_vm4, 1, %v8733_v0 }
  0xc3   : > { %vm378_vm7 = vcmp.eq.s32.totalorder %v249_v12, 0 }
  0xc5   : > { %v4741_v24 = vpop.permute.xlu1 %608  ;;  %v4743_v25 = vpop.permute.xlu0 %605 }
  0xc6   : > { %800 = vperm.xlu1 %4082, %v493_v20   ;;  %797 = vperm.xlu0 %4081, %v492_v23   ;;  %v252_v23 = vld [vmem:[%s4509_s15 + $0x348] sm:$0xff] }
  0xc7   : > { %vm381_vm8 = vcmp.eq.s32.totalorder %v252_v23, 0  ;;  %v259_v23 = vld [vmem:[%s4509_s15 + $0x380] sm:$0xff] }
  0xc8   : > { %vm388_vm1 = vcmp.eq.s32.totalorder %v259_v23, 0  ;;  %v266_v23 = vld [vmem:[%s4509_s15 + $0x3b8] sm:$0xff] }
  0xc9   : > { %v4749_v32 = vpop.permute.xlu1 %614  ;;  %v4751_v35 = vpop.permute.xlu0 %611  ;;  %vm395_vm6 = vcmp.eq.s32.totalorder %v266_v23, 0 }
  0xca   : > { %806 = vperm.xlu1 %4082, %v495_v30   ;;  %803 = vperm.xlu0 %4081, %v494_v31   ;;  %v506_v30 = vsel %vm378_vm7, 1, %v8733_v0  ;;  %v523_v2 = vsel %vm395_vm6, 1, %v8733_v0 }
  0xcd   : > { %v4757_v42 = vpop.permute.xlu1 %620  ;;  %v4759_v43 = vpop.permute.xlu0 %617 }
  0xce   : > { %812 = vperm.xlu1 %4082, %v497_v38   ;;  %809 = vperm.xlu0 %4081, %v496_v41   ;;  %v253_v38 = vld [vmem:[%s4509_s15 + $0x350] sm:$0xff]  ;;  %v509_v41 = vsel %vm381_vm8, 1, %v8733_v0 }
  0xcf   : > { %vm382_vm11 = vcmp.eq.s32.totalorder %v253_v38, 0  ;;  %v262_v38 = vld [vmem:[%s4509_s15 + $0x398] sm:$0xff] }
  0xd0   : > { %vm391_vm2 = vcmp.eq.s32.totalorder %v262_v38, 0  ;;  %v520_v38 = vsel %vm392_vm5, 1, %v8733_v0 }
  0xd1   : > { %v4765_v50 = vpop.permute.xlu1 %626  ;;  %v4767_v53 = vpop.permute.xlu0 %623 }
  0xd2   : > { %818 = vperm.xlu1 %4082, %v499_v48   ;;  %815 = vperm.xlu0 %4081, %v498_v49   ;;  %v256_v49 = vld [vmem:[%s4509_s15 + $0x368] sm:$0xff] }
  0xd3   : > { %vm385_vm12 = vcmp.eq.s32.totalorder %v256_v49, 0  ;;  %v516_v49 = vsel %vm388_vm1, 1, %v8733_v0 }
  0xd5   : > { %v4773_v60 = vpop.permute.xlu1 %632  ;;  %v4775_v61 = vpop.permute.xlu0 %629 }
  0xd6   : > { %824 = vperm.xlu1 %4082, %v501_v56   ;;  %821 = vperm.xlu0 %4081, %v500_v59   ;;  %v510_v56 = vsel %vm382_vm11, 1, %v8733_v0 }
  0xd9   : > { %v4781_v5 = vpop.permute.xlu1 %638  ;;  %v4783_v8 = vpop.permute.xlu0 %635 }
  0xda   : > { %830 = vperm.xlu1 %4082, %v503_v3   ;;  %827 = vperm.xlu0 %4081, %v502_v4   ;;  %v257_v3 = vld [vmem:[%s4509_s15 + $0x370] sm:$0xff]  ;;  %v513_v4 = vsel %vm385_vm12, 1, %v8733_v0 }
  0xdb   : > { %vm386_vm15 = vcmp.eq.s32.totalorder %v257_v3, 0  ;;  %v519_v3 = vsel %vm391_vm2, 1, %v8733_v0 }
  0xdd   : > { %v4789_v19 = vpop.permute.xlu1 %644  ;;  %v4791_v20 = vpop.permute.xlu0 %641 }
  0xde   : > { %836 = vperm.xlu1 %4082, %v505_v13   ;;  %833 = vperm.xlu0 %4081, %v504_v18   ;;  %v260_v18 = vld [vmem:[%s4509_s15 + $0x388] sm:$0xff] }
  0xdf   : > { %vm389_vm0 = vcmp.eq.s32.totalorder %v260_v18, 0 }
  0xe1   : > { %v4797_v31 = vpop.permute.xlu1 %650  ;;  %v4799_v36 = vpop.permute.xlu0 %647 }
  0xe2   : > { %842 = vperm.xlu1 %4082, %v507_v29   ;;  %839 = vperm.xlu0 %4081, %v506_v30   ;;  %v514_v29 = vsel %vm386_vm15, 1, %v8733_v0 }
  0xe5   : > { %v4805_v47 = vpop.permute.xlu1 %656  ;;  %v4807_v48 = vpop.permute.xlu0 %653 }
  0xe6   : > { %848 = vperm.xlu1 %4082, %v509_v41   ;;  %845 = vperm.xlu0 %4081, %v508_v44   ;;  %v261_v41 = vld [vmem:[%s4509_s15 + $0x390] sm:$0xff]  ;;  %v517_v44 = vsel %vm389_vm0, 1, %v8733_v0 }
  0xe7   : > { %vm390_vm3 = vcmp.eq.s32.totalorder %v261_v41, 0 }
  0xe9   : > { %v4813_v59 = vpop.permute.xlu1 %662  ;;  %v4815_v62 = vpop.permute.xlu0 %659 }
  0xea   : > { %854 = vperm.xlu1 %4082, %v511_v55   ;;  %851 = vperm.xlu0 %4081, %v510_v56   ;;  %v264_v56 = vld [vmem:[%s4509_s15 + $0x3a8] sm:$0xff] }
  0xeb   : > { %vm393_vm4 = vcmp.eq.s32.totalorder %v264_v56, 0  ;;  %v267_v56 = vld [vmem:[%s4509_s15 + $0x3c0] sm:$0xff] }
  0xec   : > { %vm396_vm9 = vcmp.eq.s32.totalorder %v267_v56, 0  ;;  %v272_v56 = vld [vmem:[%s4509_s15 + $0x3e8] sm:$0xff] }
  0xed   : > { %v4821_v12 = vpop.permute.xlu1 %668  ;;  %v4823_v13 = vpop.permute.xlu0 %665  ;;  %vm401_vm12 = vcmp.eq.s32.totalorder %v272_v56, 0 }
  0xee   : > { %860 = vperm.xlu1 %4082, %v513_v4   ;;  %857 = vperm.xlu0 %4081, %v512_v11   ;;  %v518_v4 = vsel %vm390_vm3, 1, %v8733_v0 }
  0xf1   : > { %v4829_v30 = vpop.permute.xlu1 %674  ;;  %v4831_v37 = vpop.permute.xlu0 %671 }
  0xf2   : > { %866 = vperm.xlu1 %4082, %v515_v26   ;;  %863 = vperm.xlu0 %4081, %v514_v29   ;;  %v265_v26 = vld [vmem:[%s4509_s15 + $0x3b0] sm:$0xff]  ;;  %v521_v29 = vsel %vm393_vm4, 1, %v8733_v0 }
  0xf3   : > { %vm394_vm7 = vcmp.eq.s32.totalorder %v265_v26, 0  ;;  %v270_v26 = vld [vmem:[%s4509_s15 + $0x3d8] sm:$0xff] }
  0xf4   : > { %vm399_vm10 = vcmp.eq.s32.totalorder %v270_v26, 0  ;;  %v273_v26 = vld [vmem:[%s4509_s15 + $0x3f0] sm:$0xff] }
  0xf5   : > { %v4837_v54 = vpop.permute.xlu1 %680  ;;  %v4839_v55 = vpop.permute.xlu0 %677  ;;  %vm402_vm15 = vcmp.eq.s32.totalorder %v273_v26, 0 }
  0xf6   : > { %872 = vperm.xlu1 %4082, %v517_v44   ;;  %869 = vperm.xlu0 %4081, %v516_v49   ;;  %v268_v49 = vld [vmem:[%s4509_s15 + $0x3c8] sm:$0xff] }
  0xf7   : > { %vm397_vm8 = vcmp.eq.s32.totalorder %v268_v49, 0 }
  0xf9   : > { %v4845_v11 = vpop.permute.xlu1 %686  ;;  %v4847_v18 = vpop.permute.xlu0 %683 }
  0xfa   : > { %8759 = vst [vmem:[#allocation2_spill] sm:$0xff] %v4847_v18  ;;  %878 = vperm.xlu1 %4082, %v519_v3   ;;  %875 = vperm.xlu0 %4081, %v518_v4   ;;  %v522_v3 = vsel %vm394_vm7, 1, %v8733_v0 }
  0xfd   : > { %v4853_v41 = vpop.permute.xlu1 %692  ;;  %v4855_v44 = vpop.permute.xlu0 %689 }
  0xfe   : > { %8760 = vst [vmem:[#allocation3_spill] sm:$0xff] %v4853_v41  ;;  %8761 = vst [vmem:[#allocation4_spill] sm:$0xff] %v4855_v44  ;;  %884 = vperm.xlu1 %4082, %v521_v29   ;;  %881 = vperm.xlu0 %4081, %v520_v38   ;;  %v269_v41 = vld [vmem:[%s4509_s15 + $0x3d0] sm:$0xff]  ;;  %v525_v44 = vsel %vm397_vm8, 1, %v8733_v0  ;;  %v524_v29 = vsel %vm396_vm9, 1, %v8733_v0 }
  0xff   : > { %vm398_vm11 = vcmp.eq.s32.totalorder %v269_v41, 0  ;;  %v274_v41 = vld [vmem:[%s4509_s15 + $0x3f8] sm:$0xff] }
 0x100   : > { %vm403_vm14 = vcmp.eq.s32.totalorder %v274_v41, 0 }
 0x101   : > { %v4861_v4 = vpop.permute.xlu1 %698  ;;  %v4863_v23 = vpop.permute.xlu0 %695  ;;  %v531_v56 = vsel %vm403_vm14, 1, %v8733_v0 }
 0x102   : > { %8762 = vst [vmem:[#allocation5_spill] sm:$0xff] %v4861_v4  ;;  %8763 = vst [vmem:[#allocation6_spill] sm:$0xff] %v4863_v23  ;;  %890 = vperm.xlu1 %4082, %v523_v2   ;;  %887 = vperm.xlu0 %4081, %v522_v3   ;;  %v271_v4 = vld [vmem:[%s4509_s15 + $0x3e0] sm:$0xff]  ;;  %v527_v23 = vsel %vm399_vm10, 1, %v8733_v0  ;;  %v526_v2 = vsel %vm398_vm11, 1, %v8733_v0 }
 0x103   : > { %vm400_vm13 = vcmp.eq.s32.totalorder %v271_v4, 0 }
 0x105   : > { %v4869_v38 = vpop.permute.xlu1 %704  ;;  %v4871_v49 = vpop.permute.xlu0 %701 }
 0x106   : > { %8764 = vst [vmem:[#allocation7_spill] sm:$0xff] %v4869_v38  ;;  %8765 = vst [vmem:[#allocation8_spill] sm:$0xff] %v4871_v49  ;;  %896 = vperm.xlu1 %4082, %v525_v44   ;;  %893 = vperm.xlu0 %4081, %v524_v29   ;;  %v529_v49 = vsel %vm401_vm12, 1, %v8733_v0  ;;  %v528_v44 = vsel %vm400_vm13, 1, %v8733_v0  ;;  %v4378_v38 = vld [vmem:[%s4509_s15 + $0x130] sm:$0xff] }
 0x109   : > { %v4877_v3 = vpop.permute.xlu1 %710  ;;  %v4879_v18 = vpop.permute.xlu0 %707 }
 0x10a   : > { %8766 = vst [vmem:[#allocation9_spill] sm:$0xff] %v4877_v3  ;;  %8767 = vst [vmem:[#allocation10_spill] sm:$0xff] %v4879_v18  ;;  %902 = vperm.xlu1 %4082, %v527_v23   ;;  %899 = vperm.xlu0 %4081, %v526_v2   ;;  %v530_v18 = vsel %vm402_vm15, 1, %v8733_v0  ;;  %v4083_v23 = vld [vmem:[%s4509_s15 + $0x8] sm:$0xff]  ;;  %v4084_v2 = vld [vmem:[%s4509_s15] sm:$0xff] }
 0x10b   : > { %vm1177_vm0 = vcmp.eq.s32.totalorder %v4083_v23, 1  ;;  %vm1176_vm1 = vcmp.eq.s32.totalorder %v4084_v2, 1  ;;  %v4087_v2 = vld [vmem:[%s4509_s15 + $0x28] sm:$0xff] }
 0x10c   : > { %v1304_v26 = vsel %vm1176_vm1, 1, %v8733_v0  ;;  %vm1181_vm4 = vcmp.eq.s32.totalorder %v4087_v2, 1  ;;  %v4091_v2 = vld [vmem:[%s4509_s15 + $0x48] sm:$0xff] }
 0x10d   : > { %v4885_v29 = vpop.permute.xlu1 %716  ;;  %v4887_v4 = vpop.permute.xlu0 %713  ;;  %vm1185_vm8 = vcmp.eq.s32.totalorder %v4091_v2, 1  ;;  %v4095_v2 = vld [vmem:[%s4509_s15 + $0x68] sm:$0xff] }
 0x10e   : > { %8768 = vst [vmem:[#allocation11_spill] sm:$0xff] %v4885_v29  ;;  %8769 = vst [vmem:[#allocation12_spill] sm:$0xff] %v4887_v4  ;;  %908 = vperm.xlu1 %4082, %v529_v49   ;;  %905 = vperm.xlu0 %4081, %v528_v44   ;;  %v1305_v49 = vsel %vm1177_vm0, 1, %v8733_v0  ;;  %v4085_v44 = vld [vmem:[%s4509_s15 + $0x18] sm:$0xff]  ;;  %v4086_v4 = vld [vmem:[%s4509_s15 + $0x10] sm:$0xff]  ;;  %vm1189_vm12 = vcmp.eq.s32.totalorder %v4095_v2, 1 }
 0x10f   : > { %vm1179_vm2 = vcmp.eq.s32.totalorder %v4085_v44, 1  ;;  %vm1178_vm3 = vcmp.eq.s32.totalorder %v4086_v4, 1  ;;  %v4089_v44 = vld [vmem:[%s4509_s15 + $0x38] sm:$0xff]  ;;  %v4099_v2 = vld [vmem:[%s4509_s15 + $0x88] sm:$0xff] }
 0x110   : > { %vm1183_vm6 = vcmp.eq.s32.totalorder %v4089_v44, 1  ;;  %v4093_v44 = vld [vmem:[%s4509_s15 + $0x58] sm:$0xff]  ;;  %vm1193_vm0 = vcmp.eq.s32.totalorder %v4099_v2, 1  ;;  %v4103_v2 = vld [vmem:[%s4509_s15 + $0xa8] sm:$0xff] }
 0x111   : > { %v4893_v3 = vpop.permute.xlu1 %722  ;;  %v4895_v41 = vpop.permute.xlu0 %719  ;;  %vm1187_vm10 = vcmp.eq.s32.totalorder %v4093_v44, 1  ;;  %v4097_v44 = vld [vmem:[%s4509_s15 + $0x78] sm:$0xff] }
 0x112   : > { %8770 = vst [vmem:[#allocation13_spill] sm:$0xff] %v4893_v3  ;;  %8771 = vst [vmem:[#allocation14_spill] sm:$0xff] %v4895_v41  ;;  %914 = vperm.xlu1 %4082, %v531_v56   ;;  %911 = vperm.xlu0 %4081, %v530_v18   ;;  %v1307_v56 = vsel %vm1179_vm2, 1, %v8733_v0  ;;  %v1306_v18 = vsel %vm1178_vm3, 1, %v8733_v0  ;;  %v4088_v41 = vld [vmem:[%s4509_s15 + $0x20] sm:$0xff]  ;;  %vm1191_vm14 = vcmp.eq.s32.totalorder %v4097_v44, 1 }
 0x113   : > { %vm1180_vm5 = vcmp.eq.s32.totalorder %v4088_v41, 1  ;;  %v4101_v44 = vld [vmem:[%s4509_s15 + $0x98] sm:$0xff] }
 0x114   : > { %vm1195_vm2 = vcmp.eq.s32.totalorder %v4101_v44, 1  ;;  %v4105_v44 = vld [vmem:[%s4509_s15 + $0xb8] sm:$0xff] }
 0x115   : > { %v4901_v29 = vpop.permute.xlu1 %728  ;;  %v4903_v23 = vpop.permute.xlu0 %725 }
 0x116   : > { %8772 = vst [vmem:[#allocation15_spill] sm:$0xff] %v4901_v29  ;;  %8773 = vst [vmem:[#allocation16_spill] sm:$0xff] %v4903_v23  ;;  %1436 = vperm.xlu1 %4082, %v1305_v49   ;;  %1433 = vperm.xlu0 %4081, %v1304_v26   ;;  %v1309_v49 = vsel %vm1181_vm4, 1, %v8733_v0  ;;  %v1308_v26 = vsel %vm1180_vm5, 1, %v8733_v0  ;;  %v4090_v23 = vld [vmem:[%s4509_s15 + $0x30] sm:$0xff]  ;;  %vm1197_vm4 = vcmp.eq.s32.totalorder %v4103_v2, 1 }
 0x117   : > { %vm1182_vm7 = vcmp.eq.s32.totalorder %v4090_v23, 1  ;;  %v4107_v2 = vld [vmem:[%s4509_s15 + $0xc8] sm:$0xff] }
 0x119   : > { %v4909_v3 = vpop.permute.xlu1 %734  ;;  %v4911_v4 = vpop.permute.xlu0 %731 }
 0x11a   : > { %8774 = vst [vmem:[#allocation17_spill] sm:$0xff] %v4909_v3  ;;  %8775 = vst [vmem:[#allocation18_spill] sm:$0xff] %v4911_v4  ;;  %1442 = vperm.xlu1 %4082, %v1307_v56   ;;  %1439 = vperm.xlu0 %4081, %v1306_v18   ;;  %v1311_v56 = vsel %vm1183_vm6, 1, %v8733_v0  ;;  %v1310_v18 = vsel %vm1182_vm7, 1, %v8733_v0  ;;  %v4092_v4 = vld [vmem:[%s4509_s15 + $0x40] sm:$0xff]  ;;  %vm1199_vm6 = vcmp.eq.s32.totalorder %v4105_v44, 1 }
 0x11b   : > { %vm1184_vm9 = vcmp.eq.s32.totalorder %v4092_v4, 1  ;;  %v4109_v44 = vld [vmem:[%s4509_s15 + $0xd8] sm:$0xff] }
 0x11d   : > { %v4917_v29 = vpop.permute.xlu1 %740  ;;  %v4919_v41 = vpop.permute.xlu0 %737 }
 0x11e   : > { %8776 = vst [vmem:[#allocation19_spill] sm:$0xff] %v4917_v29  ;;  %8777 = vst [vmem:[#allocation20_spill] sm:$0xff] %v4919_v41  ;;  %1448 = vperm.xlu1 %4082, %v1309_v49   ;;  %1445 = vperm.xlu0 %4081, %v1308_v26   ;;  %v1313_v49 = vsel %vm1185_vm8, 1, %v8733_v0  ;;  %v1312_v26 = vsel %vm1184_vm9, 1, %v8733_v0  ;;  %v4094_v41 = vld [vmem:[%s4509_s15 + $0x50] sm:$0xff]  ;;  %vm1201_vm8 = vcmp.eq.s32.totalorder %v4107_v2, 1 }
 0x11f   : > { %vm1186_vm11 = vcmp.eq.s32.totalorder %v4094_v41, 1  ;;  %v4111_v2 = vld [vmem:[%s4509_s15 + $0xe8] sm:$0xff] }
 0x121   : > { %v4925_v3 = vpop.permute.xlu1 %746  ;;  %v4927_v23 = vpop.permute.xlu0 %743 }
 0x122   : > { %8778 = vst [vmem:[#allocation21_spill] sm:$0xff] %v4925_v3  ;;  %8779 = vst [vmem:[#allocation22_spill] sm:$0xff] %v4927_v23  ;;  %1454 = vperm.xlu1 %4082, %v1311_v56   ;;  %1451 = vperm.xlu0 %4081, %v1310_v18   ;;  %v1315_v56 = vsel %vm1187_vm10, 1, %v8733_v0  ;;  %v1314_v18 = vsel %vm1186_vm11, 1, %v8733_v0  ;;  %v4096_v23 = vld [vmem:[%s4509_s15 + $0x60] sm:$0xff]  ;;  %vm1203_vm10 = vcmp.eq.s32.totalorder %v4109_v44, 1 }
 0x123   : > { %vm1188_vm13 = vcmp.eq.s32.totalorder %v4096_v23, 1  ;;  %v4113_v44 = vld [vmem:[%s4509_s15 + $0xf8] sm:$0xff] }
 0x125   : > { %v4933_v29 = vpop.permute.xlu1 %752  ;;  %v4935_v4 = vpop.permute.xlu0 %749 }
 0x126   : > { %8780 = vst [vmem:[#allocation23_spill] sm:$0xff] %v4933_v29  ;;  %8781 = vst [vmem:[#allocation24_spill] sm:$0xff] %v4935_v4  ;;  %1460 = vperm.xlu1 %4082, %v1313_v49   ;;  %1457 = vperm.xlu0 %4081, %v1312_v26   ;;  %v1317_v49 = vsel %vm1189_vm12, 1, %v8733_v0  ;;  %v1316_v26 = vsel %vm1188_vm13, 1, %v8733_v0  ;;  %v4098_v4 = vld [vmem:[%s4509_s15 + $0x70] sm:$0xff]  ;;  %vm1205_vm12 = vcmp.eq.s32.totalorder %v4111_v2, 1 }
 0x127   : > { %vm1190_vm15 = vcmp.eq.s32.totalorder %v4098_v4, 1  ;;  %v4115_v2 = vld [vmem:[%s4509_s15 + $0x108] sm:$0xff] }
 0x129   : > { %v4941_v3 = vpop.permute.xlu1 %758  ;;  %v4943_v41 = vpop.permute.xlu0 %755 }
 0x12a   : > { %8782 = vst [vmem:[#allocation25_spill] sm:$0xff] %v4941_v3  ;;  %8783 = vst [vmem:[#allocation26_spill] sm:$0xff] %v4943_v41  ;;  %1466 = vperm.xlu1 %4082, %v1315_v56   ;;  %1463 = vperm.xlu0 %4081, %v1314_v18   ;;  %v1319_v56 = vsel %vm1191_vm14, 1, %v8733_v0  ;;  %v1318_v18 = vsel %vm1190_vm15, 1, %v8733_v0  ;;  %v4100_v41 = vld [vmem:[%s4509_s15 + $0x80] sm:$0xff]  ;;  %vm1207_vm14 = vcmp.eq.s32.totalorder %v4113_v44, 1 }
 0x12b   : > { %vm1192_vm1 = vcmp.eq.s32.totalorder %v4100_v41, 1  ;;  %v4117_v44 = vld [vmem:[%s4509_s15 + $0x118] sm:$0xff] }
 0x12d   : > { %v4949_v29 = vpop.permute.xlu1 %764  ;;  %v4951_v23 = vpop.permute.xlu0 %761 }
 0x12e   : > { %8784 = vst [vmem:[#allocation27_spill] sm:$0xff] %v4949_v29  ;;  %8785 = vst [vmem:[#allocation28_spill] sm:$0xff] %v4951_v23  ;;  %1472 = vperm.xlu1 %4082, %v1317_v49   ;;  %1469 = vperm.xlu0 %4081, %v1316_v26   ;;  %v1321_v49 = vsel %vm1193_vm0, 1, %v8733_v0  ;;  %v1320_v26 = vsel %vm1192_vm1, 1, %v8733_v0  ;;  %v4102_v23 = vld [vmem:[%s4509_s15 + $0x90] sm:$0xff]  ;;  %vm1209_vm0 = vcmp.eq.s32.totalorder %v4115_v2, 1 }
 0x12f   : > { %vm1194_vm3 = vcmp.eq.s32.totalorder %v4102_v23, 1  ;;  %v4119_v2 = vld [vmem:[%s4509_s15 + $0x128] sm:$0xff] }
 0x131   : > { %v4957_v3 = vpop.permute.xlu1 %770  ;;  %v4959_v4 = vpop.permute.xlu0 %767 }
 0x132   : > { %8786 = vst [vmem:[#allocation29_spill] sm:$0xff] %v4957_v3  ;;  %8787 = vst [vmem:[#allocation30_spill] sm:$0xff] %v4959_v4  ;;  %1478 = vperm.xlu1 %4082, %v1319_v56   ;;  %1475 = vperm.xlu0 %4081, %v1318_v18   ;;  %v1323_v56 = vsel %vm1195_vm2, 1, %v8733_v0  ;;  %v1322_v18 = vsel %vm1194_vm3, 1, %v8733_v0  ;;  %v4104_v4 = vld [vmem:[%s4509_s15 + $0xa0] sm:$0xff]  ;;  %vm1211_vm2 = vcmp.eq.s32.totalorder %v4117_v44, 1 }
 0x133   : > { %vm1196_vm5 = vcmp.eq.s32.totalorder %v4104_v4, 1  ;;  %v4121_v44 = vld [vmem:[%s4509_s15 + $0x138] sm:$0xff] }
 0x135   : > { %v4965_v29 = vpop.permute.xlu1 %776  ;;  %v4967_v41 = vpop.permute.xlu0 %773 }
 0x136   : > { %8788 = vst [vmem:[#allocation31_spill] sm:$0xff] %v4965_v29  ;;  %8789 = vst [vmem:[#allocation32_spill] sm:$0xff] %v4967_v41  ;;  %1484 = vperm.xlu1 %4082, %v1321_v49   ;;  %1481 = vperm.xlu0 %4081, %v1320_v26   ;;  %v1325_v49 = vsel %vm1197_vm4, 1, %v8733_v0  ;;  %v1324_v26 = vsel %vm1196_vm5, 1, %v8733_v0  ;;  %v4106_v41 = vld [vmem:[%s4509_s15 + $0xb0] sm:$0xff]  ;;  %vm1213_vm4 = vcmp.eq.s32.totalorder %v4119_v2, 1 }
 0x137   : > { %vm1198_vm7 = vcmp.eq.s32.totalorder %v4106_v41, 1  ;;  %v4123_v2 = vld [vmem:[%s4509_s15 + $0x148] sm:$0xff] }
 0x139   : > { %v4973_v3 = vpop.permute.xlu1 %782  ;;  %v4975_v23 = vpop.permute.xlu0 %779 }
 0x13a   : > { %8790 = vst [vmem:[#allocation33_spill] sm:$0xff] %v4973_v3  ;;  %8791 = vst [vmem:[#allocation34_spill] sm:$0xff] %v4975_v23  ;;  %1490 = vperm.xlu1 %4082, %v1323_v56   ;;  %1487 = vperm.xlu0 %4081, %v1322_v18   ;;  %v1327_v56 = vsel %vm1199_vm6, 1, %v8733_v0  ;;  %v1326_v18 = vsel %vm1198_vm7, 1, %v8733_v0  ;;  %v4108_v23 = vld [vmem:[%s4509_s15 + $0xc0] sm:$0xff]  ;;  %vm1215_vm6 = vcmp.eq.s32.totalorder %v4121_v44, 1 }
 0x13b   : > { %vm1200_vm9 = vcmp.eq.s32.totalorder %v4108_v23, 1  ;;  %v4125_v44 = vld [vmem:[%s4509_s15 + $0x158] sm:$0xff] }
 0x13d   : > { %v4981_v29 = vpop.permute.xlu1 %788  ;;  %v4983_v4 = vpop.permute.xlu0 %785 }
 0x13e   : > { %8792 = vst [vmem:[#allocation35_spill] sm:$0xff] %v4981_v29  ;;  %8793 = vst [vmem:[#allocation36_spill] sm:$0xff] %v4983_v4  ;;  %1496 = vperm.xlu1 %4082, %v1325_v49   ;;  %1493 = vperm.xlu0 %4081, %v1324_v26   ;;  %v1329_v49 = vsel %vm1201_vm8, 1, %v8733_v0  ;;  %v1328_v26 = vsel %vm1200_vm9, 1, %v8733_v0  ;;  %v4110_v4 = vld [vmem:[%s4509_s15 + $0xd0] sm:$0xff]  ;;  %vm1217_vm8 = vcmp.eq.s32.totalorder %v4123_v2, 1 }
 0x13f   : > { %vm1202_vm11 = vcmp.eq.s32.totalorder %v4110_v4, 1  ;;  %v4127_v2 = vld [vmem:[%s4509_s15 + $0x168] sm:$0xff] }
 0x141   : > { %v4989_v3 = vpop.permute.xlu1 %794  ;;  %v4991_v41 = vpop.permute.xlu0 %791 }
 0x142   : > { %8794 = vst [vmem:[#allocation37_spill] sm:$0xff] %v4989_v3  ;;  %8795 = vst [vmem:[#allocation38_spill] sm:$0xff] %v4991_v41  ;;  %1502 = vperm.xlu1 %4082, %v1327_v56   ;;  %1499 = vperm.xlu0 %4081, %v1326_v18   ;;  %v1331_v56 = vsel %vm1203_vm10, 1, %v8733_v0  ;;  %v1330_v18 = vsel %vm1202_vm11, 1, %v8733_v0  ;;  %v4112_v41 = vld [vmem:[%s4509_s15 + $0xe0] sm:$0xff]  ;;  %vm1219_vm10 = vcmp.eq.s32.totalorder %v4125_v44, 1 }
 0x143   : > { %vm1204_vm13 = vcmp.eq.s32.totalorder %v4112_v41, 1  ;;  %v4129_v44 = vld [vmem:[%s4509_s15 + $0x178] sm:$0xff] }
 0x145   : > { %v4997_v29 = vpop.permute.xlu1 %800  ;;  %v4999_v23 = vpop.permute.xlu0 %797 }
 0x146   : > { %8796 = vst [vmem:[#allocation39_spill] sm:$0xff] %v4997_v29  ;;  %8797 = vst [vmem:[#allocation40_spill] sm:$0xff] %v4999_v23  ;;  %1508 = vperm.xlu1 %4082, %v1329_v49   ;;  %1505 = vperm.xlu0 %4081, %v1328_v26   ;;  %v1333_v49 = vsel %vm1205_vm12, 1, %v8733_v0  ;;  %v1332_v26 = vsel %vm1204_vm13, 1, %v8733_v0  ;;  %v4114_v23 = vld [vmem:[%s4509_s15 + $0xf0] sm:$0xff]  ;;  %vm1221_vm12 = vcmp.eq.s32.totalorder %v4127_v2, 1 }
 0x147   : > { %vm1206_vm15 = vcmp.eq.s32.totalorder %v4114_v23, 1  ;;  %v4131_v2 = vld [vmem:[%s4509_s15 + $0x188] sm:$0xff] }
 0x149   : > { %v5005_v3 = vpop.permute.xlu1 %806  ;;  %v5007_v4 = vpop.permute.xlu0 %803 }
 0x14a   : > { %8798 = vst [vmem:[#allocation41_spill] sm:$0xff] %v5005_v3  ;;  %8799 = vst [vmem:[#allocation42_spill] sm:$0xff] %v5007_v4  ;;  %1514 = vperm.xlu1 %4082, %v1331_v56   ;;  %1511 = vperm.xlu0 %4081, %v1330_v18   ;;  %v1335_v56 = vsel %vm1207_vm14, 1, %v8733_v0  ;;  %v1334_v18 = vsel %vm1206_vm15, 1, %v8733_v0  ;;  %v4116_v4 = vld [vmem:[%s4509_s15 + $0x100] sm:$0xff]  ;;  %vm1223_vm14 = vcmp.eq.s32.totalorder %v4129_v44, 1 }
 0x14b   : > { %vm1208_vm1 = vcmp.eq.s32.totalorder %v4116_v4, 1  ;;  %v4133_v44 = vld [vmem:[%s4509_s15 + $0x198] sm:$0xff] }
 0x14d   : > { %v5013_v29 = vpop.permute.xlu1 %812  ;;  %v5015_v41 = vpop.permute.xlu0 %809 }
 0x14e   : > { %8800 = vst [vmem:[#allocation43_spill] sm:$0xff] %v5013_v29  ;;  %8801 = vst [vmem:[#allocation44_spill] sm:$0xff] %v5015_v41  ;;  %1520 = vperm.xlu1 %4082, %v1333_v49   ;;  %1517 = vperm.xlu0 %4081, %v1332_v26   ;;  %v1337_v49 = vsel %vm1209_vm0, 1, %v8733_v0  ;;  %v1336_v26 = vsel %vm1208_vm1, 1, %v8733_v0  ;;  %v4118_v41 = vld [vmem:[%s4509_s15 + $0x110] sm:$0xff]  ;;  %vm1225_vm0 = vcmp.eq.s32.totalorder %v4131_v2, 1 }
 0x14f   : > { %vm1210_vm3 = vcmp.eq.s32.totalorder %v4118_v41, 1  ;;  %v4135_v2 = vld [vmem:[%s4509_s15 + $0x1a8] sm:$0xff] }
 0x151   : > { %v5021_v3 = vpop.permute.xlu1 %818  ;;  %v5023_v23 = vpop.permute.xlu0 %815 }
 0x152   : > { %8802 = vst [vmem:[#allocation45_spill] sm:$0xff] %v5021_v3  ;;  %8803 = vst [vmem:[#allocation46_spill] sm:$0xff] %v5023_v23  ;;  %1526 = vperm.xlu1 %4082, %v1335_v56   ;;  %1523 = vperm.xlu0 %4081, %v1334_v18   ;;  %v1339_v56 = vsel %vm1211_vm2, 1, %v8733_v0  ;;  %v1338_v18 = vsel %vm1210_vm3, 1, %v8733_v0  ;;  %v4120_v23 = vld [vmem:[%s4509_s15 + $0x120] sm:$0xff]  ;;  %vm1227_vm2 = vcmp.eq.s32.totalorder %v4133_v44, 1 }
 0x153   : > { %vm1212_vm5 = vcmp.eq.s32.totalorder %v4120_v23, 1  ;;  %v4137_v44 = vld [vmem:[%s4509_s15 + $0x1b8] sm:$0xff] }
 0x155   : > { %v5029_v29 = vpop.permute.xlu1 %824  ;;  %v5031_v4 = vpop.permute.xlu0 %821 }
 0x156   : > { %8804 = vst [vmem:[#allocation47_spill] sm:$0xff] %v5029_v29  ;;  %8805 = vst [vmem:[#allocation48_spill] sm:$0xff] %v5031_v4  ;;  %1532 = vperm.xlu1 %4082, %v1337_v49   ;;  %1529 = vperm.xlu0 %4081, %v1336_v26   ;;  %v1341_v49 = vsel %vm1213_vm4, 1, %v8733_v0  ;;  %v1340_v26 = vsel %vm1212_vm5, 1, %v8733_v0  ;;  %v4122_v4 = vld [vmem:[%s4509_s15 + $0x130] sm:$0xff]  ;;  %vm1229_vm4 = vcmp.eq.s32.totalorder %v4135_v2, 1 }
 0x157   : > { %vm1214_vm7 = vcmp.eq.s32.totalorder %v4122_v4, 1  ;;  %v4139_v2 = vld [vmem:[%s4509_s15 + $0x1c8] sm:$0xff] }
 0x159   : > { %v5037_v3 = vpop.permute.xlu1 %830  ;;  %v5039_v41 = vpop.permute.xlu0 %827 }
 0x15a   : > { %8806 = vst [vmem:[#allocation49_spill] sm:$0xff] %v5037_v3  ;;  %8807 = vst [vmem:[#allocation50_spill] sm:$0xff] %v5039_v41  ;;  %1538 = vperm.xlu1 %4082, %v1339_v56   ;;  %1535 = vperm.xlu0 %4081, %v1338_v18   ;;  %v1343_v56 = vsel %vm1215_vm6, 1, %v8733_v0  ;;  %v1342_v18 = vsel %vm1214_vm7, 1, %v8733_v0  ;;  %v4124_v41 = vld [vmem:[%s4509_s15 + $0x140] sm:$0xff]  ;;  %vm1231_vm6 = vcmp.eq.s32.totalorder %v4137_v44, 1 }
 0x15b   : > { %vm1216_vm9 = vcmp.eq.s32.totalorder %v4124_v41, 1  ;;  %v4141_v44 = vld [vmem:[%s4509_s15 + $0x1d8] sm:$0xff] }
 0x15d   : > { %v5045_v29 = vpop.permute.xlu1 %836  ;;  %v5047_v23 = vpop.permute.xlu0 %833 }
 0x15e   : > { %8808 = vst [vmem:[#allocation51_spill] sm:$0xff] %v5045_v29  ;;  %8809 = vst [vmem:[#allocation52_spill] sm:$0xff] %v5047_v23  ;;  %1544 = vperm.xlu1 %4082, %v1341_v49   ;;  %1541 = vperm.xlu0 %4081, %v1340_v26   ;;  %v1345_v49 = vsel %vm1217_vm8, 1, %v8733_v0  ;;  %v1344_v26 = vsel %vm1216_vm9, 1, %v8733_v0  ;;  %v4126_v23 = vld [vmem:[%s4509_s15 + $0x150] sm:$0xff]  ;;  %vm1233_vm8 = vcmp.eq.s32.totalorder %v4139_v2, 1 }
 0x15f   : > { %vm1218_vm11 = vcmp.eq.s32.totalorder %v4126_v23, 1  ;;  %v4143_v2 = vld [vmem:[%s4509_s15 + $0x1e8] sm:$0xff] }
 0x161   : > { %v5053_v3 = vpop.permute.xlu1 %842  ;;  %v5055_v4 = vpop.permute.xlu0 %839 }
 0x162   : > { %8810 = vst [vmem:[#allocation53_spill] sm:$0xff] %v5053_v3  ;;  %8811 = vst [vmem:[#allocation54_spill] sm:$0xff] %v5055_v4  ;;  %1550 = vperm.xlu1 %4082, %v1343_v56   ;;  %1547 = vperm.xlu0 %4081, %v1342_v18   ;;  %v1347_v56 = vsel %vm1219_vm10, 1, %v8733_v0  ;;  %v1346_v18 = vsel %vm1218_vm11, 1, %v8733_v0  ;;  %v4128_v4 = vld [vmem:[%s4509_s15 + $0x160] sm:$0xff]  ;;  %vm1235_vm10 = vcmp.eq.s32.totalorder %v4141_v44, 1 }
 0x163   : > { %vm1220_vm13 = vcmp.eq.s32.totalorder %v4128_v4, 1  ;;  %v4145_v44 = vld [vmem:[%s4509_s15 + $0x1f8] sm:$0xff] }
 0x165   : > { %v5061_v29 = vpop.permute.xlu1 %848  ;;  %v5063_v41 = vpop.permute.xlu0 %845 }
 0x166   : > { %8812 = vst [vmem:[#allocation55_spill] sm:$0xff] %v5061_v29  ;;  %8813 = vst [vmem:[#allocation56_spill] sm:$0xff] %v5063_v41  ;;  %1556 = vperm.xlu1 %4082, %v1345_v49   ;;  %1553 = vperm.xlu0 %4081, %v1344_v26   ;;  %v1349_v49 = vsel %vm1221_vm12, 1, %v8733_v0  ;;  %v1348_v26 = vsel %vm1220_vm13, 1, %v8733_v0  ;;  %v4130_v41 = vld [vmem:[%s4509_s15 + $0x170] sm:$0xff]  ;;  %vm1237_vm12 = vcmp.eq.s32.totalorder %v4143_v2, 1 }
 0x167   : > { %vm1222_vm15 = vcmp.eq.s32.totalorder %v4130_v41, 1  ;;  %v4147_v2 = vld [vmem:[%s4509_s15 + $0x208] sm:$0xff] }
 0x169   : > { %v5069_v3 = vpop.permute.xlu1 %854  ;;  %v5071_v23 = vpop.permute.xlu0 %851 }
 0x16a   : > { %8814 = vst [vmem:[#allocation57_spill] sm:$0xff] %v5069_v3  ;;  %8815 = vst [vmem:[#allocation58_spill] sm:$0xff] %v5071_v23  ;;  %1562 = vperm.xlu1 %4082, %v1347_v56   ;;  %1559 = vperm.xlu0 %4081, %v1346_v18   ;;  %v1351_v56 = vsel %vm1223_vm14, 1, %v8733_v0  ;;  %v1350_v18 = vsel %vm1222_vm15, 1, %v8733_v0  ;;  %v4132_v23 = vld [vmem:[%s4509_s15 + $0x180] sm:$0xff]  ;;  %vm1239_vm14 = vcmp.eq.s32.totalorder %v4145_v44, 1 }
 0x16b   : > { %vm1224_vm1 = vcmp.eq.s32.totalorder %v4132_v23, 1  ;;  %v4149_v44 = vld [vmem:[%s4509_s15 + $0x218] sm:$0xff] }
 0x16d   : > { %v5077_v29 = vpop.permute.xlu1 %860  ;;  %v5079_v4 = vpop.permute.xlu0 %857 }
 0x16e   : > { %8816 = vst [vmem:[#allocation59_spill] sm:$0xff] %v5077_v29  ;;  %8817 = vst [vmem:[#allocation60_spill] sm:$0xff] %v5079_v4  ;;  %1568 = vperm.xlu1 %4082, %v1349_v49   ;;  %1565 = vperm.xlu0 %4081, %v1348_v26   ;;  %v1353_v49 = vsel %vm1225_vm0, 1, %v8733_v0  ;;  %v1352_v26 = vsel %vm1224_vm1, 1, %v8733_v0  ;;  %v4134_v4 = vld [vmem:[%s4509_s15 + $0x190] sm:$0xff]  ;;  %vm1241_vm0 = vcmp.eq.s32.totalorder %v4147_v2, 1 }
 0x16f   : > { %vm1226_vm3 = vcmp.eq.s32.totalorder %v4134_v4, 1  ;;  %v4151_v2 = vld [vmem:[%s4509_s15 + $0x228] sm:$0xff] }
 0x171   : > { %v5085_v3 = vpop.permute.xlu1 %866  ;;  %v5087_v41 = vpop.permute.xlu0 %863 }
 0x172   : > { %8818 = vst [vmem:[#allocation61_spill] sm:$0xff] %v5085_v3  ;;  %8819 = vst [vmem:[#allocation62_spill] sm:$0xff] %v5087_v41  ;;  %1574 = vperm.xlu1 %4082, %v1351_v56   ;;  %1571 = vperm.xlu0 %4081, %v1350_v18   ;;  %v1355_v56 = vsel %vm1227_vm2, 1, %v8733_v0  ;;  %v1354_v18 = vsel %vm1226_vm3, 1, %v8733_v0  ;;  %v4136_v41 = vld [vmem:[%s4509_s15 + $0x1a0] sm:$0xff]  ;;  %vm1243_vm2 = vcmp.eq.s32.totalorder %v4149_v44, 1 }
 0x173   : > { %vm1228_vm5 = vcmp.eq.s32.totalorder %v4136_v41, 1  ;;  %v4153_v44 = vld [vmem:[%s4509_s15 + $0x238] sm:$0xff] }
 0x175   : > { %v5093_v29 = vpop.permute.xlu1 %872  ;;  %v5095_v23 = vpop.permute.xlu0 %869 }
 0x176   : > { %8820 = vst [vmem:[#allocation63_spill] sm:$0xff] %v5093_v29  ;;  %8821 = vst [vmem:[#allocation64_spill] sm:$0xff] %v5095_v23  ;;  %1580 = vperm.xlu1 %4082, %v1353_v49   ;;  %1577 = vperm.xlu0 %4081, %v1352_v26   ;;  %v1357_v49 = vsel %vm1229_vm4, 1, %v8733_v0  ;;  %v1356_v26 = vsel %vm1228_vm5, 1, %v8733_v0  ;;  %v4138_v23 = vld [vmem:[%s4509_s15 + $0x1b0] sm:$0xff]  ;;  %vm1245_vm4 = vcmp.eq.s32.totalorder %v4151_v2, 1 }
 0x177   : > { %vm1230_vm7 = vcmp.eq.s32.totalorder %v4138_v23, 1  ;;  %v4155_v2 = vld [vmem:[%s4509_s15 + $0x248] sm:$0xff] }
 0x179   : > { %v5101_v3 = vpop.permute.xlu1 %878  ;;  %v5103_v4 = vpop.permute.xlu0 %875 }
 0x17a   : > { %8822 = vst [vmem:[#allocation65_spill] sm:$0xff] %v5101_v3  ;;  %8823 = vst [vmem:[#allocation66_spill] sm:$0xff] %v5103_v4  ;;  %1586 = vperm.xlu1 %4082, %v1355_v56   ;;  %1583 = vperm.xlu0 %4081, %v1354_v18   ;;  %v1359_v56 = vsel %vm1231_vm6, 1, %v8733_v0  ;;  %v1358_v18 = vsel %vm1230_vm7, 1, %v8733_v0  ;;  %v4140_v4 = vld [vmem:[%s4509_s15 + $0x1c0] sm:$0xff]  ;;  %vm1247_vm6 = vcmp.eq.s32.totalorder %v4153_v44, 1 }
 0x17b   : > { %vm1232_vm9 = vcmp.eq.s32.totalorder %v4140_v4, 1  ;;  %v4157_v44 = vld [vmem:[%s4509_s15 + $0x258] sm:$0xff] }
 0x17d   : > { %v5109_v29 = vpop.permute.xlu1 %884  ;;  %v5111_v41 = vpop.permute.xlu0 %881 }
 0x17e   : > { %8824 = vst [vmem:[#allocation67_spill] sm:$0xff] %v5109_v29  ;;  %8825 = vst [vmem:[#allocation68_spill] sm:$0xff] %v5111_v41  ;;  %1592 = vperm.xlu1 %4082, %v1357_v49   ;;  %1589 = vperm.xlu0 %4081, %v1356_v26   ;;  %v1361_v49 = vsel %vm1233_vm8, 1, %v8733_v0  ;;  %v1360_v26 = vsel %vm1232_vm9, 1, %v8733_v0  ;;  %v4142_v41 = vld [vmem:[%s4509_s15 + $0x1d0] sm:$0xff]  ;;  %vm1249_vm8 = vcmp.eq.s32.totalorder %v4155_v2, 1 }
 0x17f   : > { %vm1234_vm11 = vcmp.eq.s32.totalorder %v4142_v41, 1  ;;  %v4159_v2 = vld [vmem:[%s4509_s15 + $0x268] sm:$0xff] }
 0x181   : > { %v5117_v3 = vpop.permute.xlu1 %890  ;;  %v5119_v23 = vpop.permute.xlu0 %887 }
 0x182   : > { %8826 = vst [vmem:[#allocation69_spill] sm:$0xff] %v5117_v3  ;;  %8827 = vst [vmem:[#allocation70_spill] sm:$0xff] %v5119_v23  ;;  %1598 = vperm.xlu1 %4082, %v1359_v56   ;;  %1595 = vperm.xlu0 %4081, %v1358_v18   ;;  %v1363_v56 = vsel %vm1235_vm10, 1, %v8733_v0  ;;  %v1362_v18 = vsel %vm1234_vm11, 1, %v8733_v0  ;;  %v4144_v23 = vld [vmem:[%s4509_s15 + $0x1e0] sm:$0xff]  ;;  %vm1251_vm10 = vcmp.eq.s32.totalorder %v4157_v44, 1 }
 0x183   : > { %vm1236_vm13 = vcmp.eq.s32.totalorder %v4144_v23, 1  ;;  %v4161_v44 = vld [vmem:[%s4509_s15 + $0x278] sm:$0xff] }
 0x185   : > { %v5125_v29 = vpop.permute.xlu1 %896  ;;  %v5127_v4 = vpop.permute.xlu0 %893 }
 0x186   : > { %8828 = vst [vmem:[#allocation71_spill] sm:$0xff] %v5125_v29  ;;  %8829 = vst [vmem:[#allocation72_spill] sm:$0xff] %v5127_v4  ;;  %1604 = vperm.xlu1 %4082, %v1361_v49   ;;  %1601 = vperm.xlu0 %4081, %v1360_v26   ;;  %v1365_v49 = vsel %vm1237_vm12, 1, %v8733_v0  ;;  %v1364_v26 = vsel %vm1236_vm13, 1, %v8733_v0  ;;  %v4146_v4 = vld [vmem:[%s4509_s15 + $0x1f0] sm:$0xff]  ;;  %vm1253_vm12 = vcmp.eq.s32.totalorder %v4159_v2, 1 }
 0x187   : > { %vm1238_vm15 = vcmp.eq.s32.totalorder %v4146_v4, 1  ;;  %v4163_v2 = vld [vmem:[%s4509_s15 + $0x288] sm:$0xff] }
 0x189   : > { %v5133_v3 = vpop.permute.xlu1 %902  ;;  %v5135_v41 = vpop.permute.xlu0 %899 }
 0x18a   : > { %8830 = vst [vmem:[#allocation73_spill] sm:$0xff] %v5133_v3  ;;  %8831 = vst [vmem:[#allocation74_spill] sm:$0xff] %v5135_v41  ;;  %1610 = vperm.xlu1 %4082, %v1363_v56   ;;  %1607 = vperm.xlu0 %4081, %v1362_v18   ;;  %v1367_v56 = vsel %vm1239_vm14, 1, %v8733_v0  ;;  %v1366_v18 = vsel %vm1238_vm15, 1, %v8733_v0  ;;  %v4148_v41 = vld [vmem:[%s4509_s15 + $0x200] sm:$0xff]  ;;  %vm1255_vm14 = vcmp.eq.s32.totalorder %v4161_v44, 1 }
 0x18b   : > { %vm1240_vm1 = vcmp.eq.s32.totalorder %v4148_v41, 1  ;;  %v4165_v44 = vld [vmem:[%s4509_s15 + $0x298] sm:$0xff] }
 0x18d   : > { %v5141_v29 = vpop.permute.xlu1 %908  ;;  %v5143_v23 = vpop.permute.xlu0 %905 }
 0x18e   : > { %8832 = vst [vmem:[#allocation75_spill] sm:$0xff] %v5141_v29  ;;  %8833 = vst [vmem:[#allocation76_spill] sm:$0xff] %v5143_v23  ;;  %1616 = vperm.xlu1 %4082, %v1365_v49   ;;  %1613 = vperm.xlu0 %4081, %v1364_v26   ;;  %v1369_v49 = vsel %vm1241_vm0, 1, %v8733_v0  ;;  %v1368_v26 = vsel %vm1240_vm1, 1, %v8733_v0  ;;  %v4150_v23 = vld [vmem:[%s4509_s15 + $0x210] sm:$0xff]  ;;  %vm1257_vm0 = vcmp.eq.s32.totalorder %v4163_v2, 1 }
 0x18f   : > { %vm1242_vm3 = vcmp.eq.s32.totalorder %v4150_v23, 1  ;;  %v4167_v2 = vld [vmem:[%s4509_s15 + $0x2a8] sm:$0xff] }
 0x191   : > { %v5149_v3 = vpop.permute.xlu1 %914  ;;  %v5151_v4 = vpop.permute.xlu0 %911 }
 0x192   : > { %8834 = vst [vmem:[#allocation77_spill] sm:$0xff] %v5149_v3  ;;  %8835 = vst [vmem:[#allocation78_spill] sm:$0xff] %v5151_v4  ;;  %1622 = vperm.xlu1 %4082, %v1367_v56   ;;  %1619 = vperm.xlu0 %4081, %v1366_v18   ;;  %v1371_v56 = vsel %vm1243_vm2, 1, %v8733_v0  ;;  %v1370_v18 = vsel %vm1242_vm3, 1, %v8733_v0  ;;  %v4152_v4 = vld [vmem:[%s4509_s15 + $0x220] sm:$0xff]  ;;  %vm1259_vm2 = vcmp.eq.s32.totalorder %v4165_v44, 1 }
 0x193   : > { %vm1244_vm5 = vcmp.eq.s32.totalorder %v4152_v4, 1  ;;  %v4169_v44 = vld [vmem:[%s4509_s15 + $0x2b8] sm:$0xff] }
 0x195   : > { %v5157_v29 = vpop.permute.xlu1 %1436  ;;  %v5159_v41 = vpop.permute.xlu0 %1433 }
 0x196   : > { %8836 = vst [vmem:[#allocation79_spill] sm:$0xff] %v5157_v29  ;;  %8837 = vst [vmem:[#allocation80_spill] sm:$0xff] %v5159_v41  ;;  %1628 = vperm.xlu1 %4082, %v1369_v49   ;;  %1625 = vperm.xlu0 %4081, %v1368_v26   ;;  %v1373_v49 = vsel %vm1245_vm4, 1, %v8733_v0  ;;  %v1372_v26 = vsel %vm1244_vm5, 1, %v8733_v0  ;;  %v4154_v41 = vld [vmem:[%s4509_s15 + $0x230] sm:$0xff]  ;;  %vm1261_vm4 = vcmp.eq.s32.totalorder %v4167_v2, 1 }
 0x197   : > { %vm1246_vm7 = vcmp.eq.s32.totalorder %v4154_v41, 1  ;;  %v4171_v2 = vld [vmem:[%s4509_s15 + $0x2c8] sm:$0xff] }
 0x199   : > { %v5165_v3 = vpop.permute.xlu1 %1442  ;;  %v5167_v23 = vpop.permute.xlu0 %1439 }
 0x19a   : > { %8838 = vst [vmem:[#allocation81_spill] sm:$0xff] %v5165_v3  ;;  %8839 = vst [vmem:[#allocation82_spill] sm:$0xff] %v5167_v23  ;;  %1634 = vperm.xlu1 %4082, %v1371_v56   ;;  %1631 = vperm.xlu0 %4081, %v1370_v18   ;;  %v1375_v56 = vsel %vm1247_vm6, 1, %v8733_v0  ;;  %v1374_v18 = vsel %vm1246_vm7, 1, %v8733_v0  ;;  %v4156_v23 = vld [vmem:[%s4509_s15 + $0x240] sm:$0xff]  ;;  %vm1263_vm6 = vcmp.eq.s32.totalorder %v4169_v44, 1 }
 0x19b   : > { %vm1248_vm9 = vcmp.eq.s32.totalorder %v4156_v23, 1  ;;  %v4173_v44 = vld [vmem:[%s4509_s15 + $0x2d8] sm:$0xff] }
 0x19d   : > { %v5173_v29 = vpop.permute.xlu1 %1448  ;;  %v5175_v4 = vpop.permute.xlu0 %1445 }
 0x19e   : > { %8840 = vst [vmem:[#allocation83_spill] sm:$0xff] %v5173_v29  ;;  %8841 = vst [vmem:[#allocation84_spill] sm:$0xff] %v5175_v4  ;;  %1640 = vperm.xlu1 %4082, %v1373_v49   ;;  %1637 = vperm.xlu0 %4081, %v1372_v26   ;;  %v1377_v49 = vsel %vm1249_vm8, 1, %v8733_v0  ;;  %v1376_v26 = vsel %vm1248_vm9, 1, %v8733_v0  ;;  %v4158_v4 = vld [vmem:[%s4509_s15 + $0x250] sm:$0xff]  ;;  %vm1265_vm8 = vcmp.eq.s32.totalorder %v4171_v2, 1 }
 0x19f   : > { %vm1250_vm11 = vcmp.eq.s32.totalorder %v4158_v4, 1  ;;  %v4175_v2 = vld [vmem:[%s4509_s15 + $0x2e8] sm:$0xff] }
 0x1a1   : > { %v5181_v3 = vpop.permute.xlu1 %1454  ;;  %v5183_v41 = vpop.permute.xlu0 %1451 }
 0x1a2   : > { %8842 = vst [vmem:[#allocation85_spill] sm:$0xff] %v5181_v3  ;;  %8843 = vst [vmem:[#allocation86_spill] sm:$0xff] %v5183_v41  ;;  %1646 = vperm.xlu1 %4082, %v1375_v56   ;;  %1643 = vperm.xlu0 %4081, %v1374_v18   ;;  %v1379_v56 = vsel %vm1251_vm10, 1, %v8733_v0  ;;  %v1378_v18 = vsel %vm1250_vm11, 1, %v8733_v0  ;;  %v4160_v41 = vld [vmem:[%s4509_s15 + $0x260] sm:$0xff]  ;;  %vm1267_vm10 = vcmp.eq.s32.totalorder %v4173_v44, 1 }
 0x1a3   : > { %vm1252_vm13 = vcmp.eq.s32.totalorder %v4160_v41, 1  ;;  %v4177_v44 = vld [vmem:[%s4509_s15 + $0x2f8] sm:$0xff] }
 0x1a5   : > { %v5189_v29 = vpop.permute.xlu1 %1460  ;;  %v5191_v23 = vpop.permute.xlu0 %1457 }
 0x1a6   : > { %8844 = vst [vmem:[#allocation87_spill] sm:$0xff] %v5189_v29  ;;  %8845 = vst [vmem:[#allocation88_spill] sm:$0xff] %v5191_v23  ;;  %1652 = vperm.xlu1 %4082, %v1377_v49   ;;  %1649 = vperm.xlu0 %4081, %v1376_v26   ;;  %v1381_v49 = vsel %vm1253_vm12, 1, %v8733_v0  ;;  %v1380_v26 = vsel %vm1252_vm13, 1, %v8733_v0  ;;  %v4162_v23 = vld [vmem:[%s4509_s15 + $0x270] sm:$0xff]  ;;  %vm1269_vm12 = vcmp.eq.s32.totalorder %v4175_v2, 1 }
 0x1a7   : > { %vm1254_vm15 = vcmp.eq.s32.totalorder %v4162_v23, 1  ;;  %v4179_v2 = vld [vmem:[%s4509_s15 + $0x308] sm:$0xff] }
 0x1a9   : > { %v5197_v3 = vpop.permute.xlu1 %1466  ;;  %v5199_v4 = vpop.permute.xlu0 %1463 }
 0x1aa   : > { %8846 = vst [vmem:[#allocation89_spill] sm:$0xff] %v5197_v3  ;;  %8847 = vst [vmem:[#allocation90_spill] sm:$0xff] %v5199_v4  ;;  %1658 = vperm.xlu1 %4082, %v1379_v56   ;;  %1655 = vperm.xlu0 %4081, %v1378_v18   ;;  %v1383_v56 = vsel %vm1255_vm14, 1, %v8733_v0  ;;  %v1382_v18 = vsel %vm1254_vm15, 1, %v8733_v0  ;;  %v4164_v4 = vld [vmem:[%s4509_s15 + $0x280] sm:$0xff]  ;;  %vm1271_vm14 = vcmp.eq.s32.totalorder %v4177_v44, 1 }
 0x1ab   : > { %vm1256_vm1 = vcmp.eq.s32.totalorder %v4164_v4, 1  ;;  %v4181_v44 = vld [vmem:[%s4509_s15 + $0x318] sm:$0xff] }
 0x1ad   : > { %v5205_v29 = vpop.permute.xlu1 %1472  ;;  %v5207_v41 = vpop.permute.xlu0 %1469 }
 0x1ae   : > { %8848 = vst [vmem:[#allocation91_spill] sm:$0xff] %v5205_v29  ;;  %8849 = vst [vmem:[#allocation92_spill] sm:$0xff] %v5207_v41  ;;  %1664 = vperm.xlu1 %4082, %v1381_v49   ;;  %1661 = vperm.xlu0 %4081, %v1380_v26   ;;  %v1385_v49 = vsel %vm1257_vm0, 1, %v8733_v0  ;;  %v1384_v26 = vsel %vm1256_vm1, 1, %v8733_v0  ;;  %v4166_v41 = vld [vmem:[%s4509_s15 + $0x290] sm:$0xff]  ;;  %vm1273_vm0 = vcmp.eq.s32.totalorder %v4179_v2, 1 }
 0x1af   : > { %vm1258_vm3 = vcmp.eq.s32.totalorder %v4166_v41, 1  ;;  %v4183_v2 = vld [vmem:[%s4509_s15 + $0x328] sm:$0xff] }
 0x1b1   : > { %v5213_v3 = vpop.permute.xlu1 %1478  ;;  %v5215_v23 = vpop.permute.xlu0 %1475 }
 0x1b2   : > { %8850 = vst [vmem:[#allocation93_spill] sm:$0xff] %v5213_v3  ;;  %8851 = vst [vmem:[#allocation94_spill] sm:$0xff] %v5215_v23  ;;  %1670 = vperm.xlu1 %4082, %v1383_v56   ;;  %1667 = vperm.xlu0 %4081, %v1382_v18   ;;  %v1387_v56 = vsel %vm1259_vm2, 1, %v8733_v0  ;;  %v1386_v18 = vsel %vm1258_vm3, 1, %v8733_v0  ;;  %v4168_v23 = vld [vmem:[%s4509_s15 + $0x2a0] sm:$0xff]  ;;  %vm1275_vm2 = vcmp.eq.s32.totalorder %v4181_v44, 1 }
 0x1b3   : > { %vm1260_vm5 = vcmp.eq.s32.totalorder %v4168_v23, 1  ;;  %v4185_v44 = vld [vmem:[%s4509_s15 + $0x338] sm:$0xff] }
 0x1b5   : > { %v5221_v29 = vpop.permute.xlu1 %1484  ;;  %v5223_v4 = vpop.permute.xlu0 %1481 }
 0x1b6   : > { %8852 = vst [vmem:[#allocation95_spill] sm:$0xff] %v5221_v29  ;;  %8853 = vst [vmem:[#allocation96_spill] sm:$0xff] %v5223_v4  ;;  %1676 = vperm.xlu1 %4082, %v1385_v49   ;;  %1673 = vperm.xlu0 %4081, %v1384_v26   ;;  %v1389_v49 = vsel %vm1261_vm4, 1, %v8733_v0  ;;  %v1388_v26 = vsel %vm1260_vm5, 1, %v8733_v0  ;;  %v4170_v4 = vld [vmem:[%s4509_s15 + $0x2b0] sm:$0xff]  ;;  %vm1277_vm4 = vcmp.eq.s32.totalorder %v4183_v2, 1 }
 0x1b7   : > { %vm1262_vm7 = vcmp.eq.s32.totalorder %v4170_v4, 1  ;;  %v4187_v2 = vld [vmem:[%s4509_s15 + $0x348] sm:$0xff] }
 0x1b9   : > { %v5229_v3 = vpop.permute.xlu1 %1490  ;;  %v5231_v41 = vpop.permute.xlu0 %1487 }
 0x1ba   : > { %8854 = vst [vmem:[#allocation97_spill] sm:$0xff] %v5229_v3  ;;  %8855 = vst [vmem:[#allocation98_spill] sm:$0xff] %v5231_v41  ;;  %1682 = vperm.xlu1 %4082, %v1387_v56   ;;  %1679 = vperm.xlu0 %4081, %v1386_v18   ;;  %v1391_v56 = vsel %vm1263_vm6, 1, %v8733_v0  ;;  %v1390_v18 = vsel %vm1262_vm7, 1, %v8733_v0  ;;  %v4172_v41 = vld [vmem:[%s4509_s15 + $0x2c0] sm:$0xff]  ;;  %vm1279_vm6 = vcmp.eq.s32.totalorder %v4185_v44, 1 }
 0x1bb   : > { %vm1264_vm9 = vcmp.eq.s32.totalorder %v4172_v41, 1  ;;  %v4189_v44 = vld [vmem:[%s4509_s15 + $0x358] sm:$0xff] }
 0x1bd   : > { %v5237_v29 = vpop.permute.xlu1 %1496  ;;  %v5239_v23 = vpop.permute.xlu0 %1493 }
 0x1be   : > { %8856 = vst [vmem:[#allocation99_spill] sm:$0xff] %v5237_v29  ;;  %8857 = vst [vmem:[#allocation100_spill] sm:$0xff] %v5239_v23  ;;  %1688 = vperm.xlu1 %4082, %v1389_v49   ;;  %1685 = vperm.xlu0 %4081, %v1388_v26   ;;  %v1393_v49 = vsel %vm1265_vm8, 1, %v8733_v0  ;;  %v1392_v26 = vsel %vm1264_vm9, 1, %v8733_v0  ;;  %v4174_v23 = vld [vmem:[%s4509_s15 + $0x2d0] sm:$0xff]  ;;  %vm1281_vm8 = vcmp.eq.s32.totalorder %v4187_v2, 1 }
 0x1bf   : > { %vm1266_vm11 = vcmp.eq.s32.totalorder %v4174_v23, 1  ;;  %v4191_v2 = vld [vmem:[%s4509_s15 + $0x368] sm:$0xff] }
 0x1c1   : > { %v5245_v3 = vpop.permute.xlu1 %1502  ;;  %v5247_v4 = vpop.permute.xlu0 %1499 }
 0x1c2   : > { %8858 = vst [vmem:[#allocation101_spill] sm:$0xff] %v5245_v3  ;;  %8859 = vst [vmem:[#allocation102_spill] sm:$0xff] %v5247_v4  ;;  %1694 = vperm.xlu1 %4082, %v1391_v56   ;;  %1691 = vperm.xlu0 %4081, %v1390_v18   ;;  %v1395_v56 = vsel %vm1267_vm10, 1, %v8733_v0  ;;  %v1394_v18 = vsel %vm1266_vm11, 1, %v8733_v0  ;;  %v4176_v4 = vld [vmem:[%s4509_s15 + $0x2e0] sm:$0xff]  ;;  %vm1283_vm10 = vcmp.eq.s32.totalorder %v4189_v44, 1 }
 0x1c3   : > { %vm1268_vm13 = vcmp.eq.s32.totalorder %v4176_v4, 1  ;;  %v4193_v44 = vld [vmem:[%s4509_s15 + $0x378] sm:$0xff] }
 0x1c5   : > { %v5253_v29 = vpop.permute.xlu1 %1508  ;;  %v5255_v41 = vpop.permute.xlu0 %1505 }
 0x1c6   : > { %8860 = vst [vmem:[#allocation103_spill] sm:$0xff] %v5253_v29  ;;  %8861 = vst [vmem:[#allocation104_spill] sm:$0xff] %v5255_v41  ;;  %1700 = vperm.xlu1 %4082, %v1393_v49   ;;  %1697 = vperm.xlu0 %4081, %v1392_v26   ;;  %v1397_v49 = vsel %vm1269_vm12, 1, %v8733_v0  ;;  %v1396_v26 = vsel %vm1268_vm13, 1, %v8733_v0  ;;  %v4178_v41 = vld [vmem:[%s4509_s15 + $0x2f0] sm:$0xff]  ;;  %vm1285_vm12 = vcmp.eq.s32.totalorder %v4191_v2, 1 }
 0x1c7   : > { %vm1270_vm15 = vcmp.eq.s32.totalorder %v4178_v41, 1  ;;  %v4195_v2 = vld [vmem:[%s4509_s15 + $0x388] sm:$0xff] }
 0x1c9   : > { %v5261_v3 = vpop.permute.xlu1 %1514  ;;  %v5263_v23 = vpop.permute.xlu0 %1511 }
 0x1ca   : > { %8862 = vst [vmem:[#allocation105_spill] sm:$0xff] %v5261_v3  ;;  %8863 = vst [vmem:[#allocation106_spill] sm:$0xff] %v5263_v23  ;;  %1706 = vperm.xlu1 %4082, %v1395_v56   ;;  %1703 = vperm.xlu0 %4081, %v1394_v18   ;;  %v1399_v56 = vsel %vm1271_vm14, 1, %v8733_v0  ;;  %v1398_v18 = vsel %vm1270_vm15, 1, %v8733_v0  ;;  %v4180_v23 = vld [vmem:[%s4509_s15 + $0x300] sm:$0xff]  ;;  %vm1287_vm14 = vcmp.eq.s32.totalorder %v4193_v44, 1 }
 0x1cb   : > { %vm1272_vm1 = vcmp.eq.s32.totalorder %v4180_v23, 1  ;;  %v4197_v44 = vld [vmem:[%s4509_s15 + $0x398] sm:$0xff] }
 0x1cd   : > { %v5269_v29 = vpop.permute.xlu1 %1520  ;;  %v5271_v4 = vpop.permute.xlu0 %1517 }
 0x1ce   : > { %8864 = vst [vmem:[#allocation107_spill] sm:$0xff] %v5269_v29  ;;  %8865 = vst [vmem:[#allocation108_spill] sm:$0xff] %v5271_v4  ;;  %1712 = vperm.xlu1 %4082, %v1397_v49   ;;  %1709 = vperm.xlu0 %4081, %v1396_v26   ;;  %v1401_v49 = vsel %vm1273_vm0, 1, %v8733_v0  ;;  %v1400_v26 = vsel %vm1272_vm1, 1, %v8733_v0  ;;  %v4182_v4 = vld [vmem:[%s4509_s15 + $0x310] sm:$0xff]  ;;  %vm1289_vm0 = vcmp.eq.s32.totalorder %v4195_v2, 1 }
 0x1cf   : > { %vm1274_vm3 = vcmp.eq.s32.totalorder %v4182_v4, 1  ;;  %v4199_v2 = vld [vmem:[%s4509_s15 + $0x3a8] sm:$0xff] }
 0x1d1   : > { %v5277_v3 = vpop.permute.xlu1 %1526  ;;  %v5279_v41 = vpop.permute.xlu0 %1523 }
 0x1d2   : > { %8866 = vst [vmem:[#allocation109_spill] sm:$0xff] %v5277_v3  ;;  %8867 = vst [vmem:[#allocation110_spill] sm:$0xff] %v5279_v41  ;;  %1718 = vperm.xlu1 %4082, %v1399_v56   ;;  %1715 = vperm.xlu0 %4081, %v1398_v18   ;;  %v1403_v56 = vsel %vm1275_vm2, 1, %v8733_v0  ;;  %v1402_v18 = vsel %vm1274_vm3, 1, %v8733_v0  ;;  %v4184_v41 = vld [vmem:[%s4509_s15 + $0x320] sm:$0xff]  ;;  %vm1291_vm2 = vcmp.eq.s32.totalorder %v4197_v44, 1 }
 0x1d3   : > { %vm1276_vm5 = vcmp.eq.s32.totalorder %v4184_v41, 1  ;;  %v4201_v44 = vld [vmem:[%s4509_s15 + $0x3b8] sm:$0xff] }
 0x1d5   : > { %v5285_v29 = vpop.permute.xlu1 %1532  ;;  %v5287_v23 = vpop.permute.xlu0 %1529 }
 0x1d6   : > { %8868 = vst [vmem:[#allocation111_spill] sm:$0xff] %v5285_v29  ;;  %8869 = vst [vmem:[#allocation112_spill] sm:$0xff] %v5287_v23  ;;  %1724 = vperm.xlu1 %4082, %v1401_v49   ;;  %1721 = vperm.xlu0 %4081, %v1400_v26   ;;  %v1405_v49 = vsel %vm1277_vm4, 1, %v8733_v0  ;;  %v1404_v26 = vsel %vm1276_vm5, 1, %v8733_v0  ;;  %v4186_v23 = vld [vmem:[%s4509_s15 + $0x330] sm:$0xff]  ;;  %vm1293_vm4 = vcmp.eq.s32.totalorder %v4199_v2, 1 }
 0x1d7   : > { %vm1278_vm7 = vcmp.eq.s32.totalorder %v4186_v23, 1  ;;  %v4203_v2 = vld [vmem:[%s4509_s15 + $0x3c8] sm:$0xff] }
 0x1d9   : > { %v5293_v3 = vpop.permute.xlu1 %1538  ;;  %v5295_v4 = vpop.permute.xlu0 %1535 }
 0x1da   : > { %8870 = vst [vmem:[#allocation113_spill] sm:$0xff] %v5293_v3  ;;  %8871 = vst [vmem:[#allocation114_spill] sm:$0xff] %v5295_v4  ;;  %1730 = vperm.xlu1 %4082, %v1403_v56   ;;  %1727 = vperm.xlu0 %4081, %v1402_v18   ;;  %v1407_v56 = vsel %vm1279_vm6, 1, %v8733_v0  ;;  %v1406_v18 = vsel %vm1278_vm7, 1, %v8733_v0  ;;  %v4188_v4 = vld [vmem:[%s4509_s15 + $0x340] sm:$0xff]  ;;  %vm1295_vm6 = vcmp.eq.s32.totalorder %v4201_v44, 1 }
 0x1db   : > { %vm1280_vm9 = vcmp.eq.s32.totalorder %v4188_v4, 1  ;;  %v4205_v44 = vld [vmem:[%s4509_s15 + $0x3d8] sm:$0xff] }
 0x1dd   : > { %v5301_v29 = vpop.permute.xlu1 %1544  ;;  %v5303_v41 = vpop.permute.xlu0 %1541 }
 0x1de   : > { %8872 = vst [vmem:[#allocation115_spill] sm:$0xff] %v5301_v29  ;;  %8873 = vst [vmem:[#allocation116_spill] sm:$0xff] %v5303_v41  ;;  %1736 = vperm.xlu1 %4082, %v1405_v49   ;;  %1733 = vperm.xlu0 %4081, %v1404_v26   ;;  %v1409_v49 = vsel %vm1281_vm8, 1, %v8733_v0  ;;  %v1408_v26 = vsel %vm1280_vm9, 1, %v8733_v0  ;;  %v4190_v41 = vld [vmem:[%s4509_s15 + $0x350] sm:$0xff]  ;;  %vm1297_vm8 = vcmp.eq.s32.totalorder %v4203_v2, 1 }
 0x1df   : > { %vm1282_vm11 = vcmp.eq.s32.totalorder %v4190_v41, 1  ;;  %v4207_v2 = vld [vmem:[%s4509_s15 + $0x3e8] sm:$0xff] }
 0x1e1   : > { %v5309_v3 = vpop.permute.xlu1 %1550  ;;  %v5311_v23 = vpop.permute.xlu0 %1547 }
 0x1e2   : > { %8874 = vst [vmem:[#allocation117_spill] sm:$0xff] %v5309_v3  ;;  %8875 = vst [vmem:[#allocation118_spill] sm:$0xff] %v5311_v23  ;;  %1742 = vperm.xlu1 %4082, %v1407_v56   ;;  %1739 = vperm.xlu0 %4081, %v1406_v18   ;;  %v1411_v56 = vsel %vm1283_vm10, 1, %v8733_v0  ;;  %v1410_v18 = vsel %vm1282_vm11, 1, %v8733_v0  ;;  %v4192_v23 = vld [vmem:[%s4509_s15 + $0x360] sm:$0xff]  ;;  %vm1299_vm10 = vcmp.eq.s32.totalorder %v4205_v44, 1 }
 0x1e3   : > { %vm1284_vm13 = vcmp.eq.s32.totalorder %v4192_v23, 1  ;;  %v4209_v44 = vld [vmem:[%s4509_s15 + $0x3f8] sm:$0xff] }
 0x1e5   : > { %v5317_v29 = vpop.permute.xlu1 %1556  ;;  %v5319_v4 = vpop.permute.xlu0 %1553 }
 0x1e6   : > { %8876 = vst [vmem:[#allocation119_spill] sm:$0xff] %v5317_v29  ;;  %8877 = vst [vmem:[#allocation120_spill] sm:$0xff] %v5319_v4  ;;  %1748 = vperm.xlu1 %4082, %v1409_v49   ;;  %1745 = vperm.xlu0 %4081, %v1408_v26   ;;  %v1413_v49 = vsel %vm1285_vm12, 1, %v8733_v0  ;;  %v1412_v26 = vsel %vm1284_vm13, 1, %v8733_v0  ;;  %v4194_v4 = vld [vmem:[%s4509_s15 + $0x370] sm:$0xff]  ;;  %vm1301_vm12 = vcmp.eq.s32.totalorder %v4207_v2, 1 }
 0x1e7   : > { %vm1286_vm15 = vcmp.eq.s32.totalorder %v4194_v4, 1  ;;  %v4211_v2 = vld [vmem:[%s4509_s15 + $0x8] sm:$0xff] }
 0x1e9   : > { %v5325_v3 = vpop.permute.xlu1 %1562  ;;  %v5327_v41 = vpop.permute.xlu0 %1559 }
 0x1ea   : > { %8878 = vst [vmem:[#allocation121_spill] sm:$0xff] %v5325_v3  ;;  %8879 = vst [vmem:[#allocation122_spill] sm:$0xff] %v5327_v41  ;;  %1754 = vperm.xlu1 %4082, %v1411_v56   ;;  %1751 = vperm.xlu0 %4081, %v1410_v18   ;;  %v1415_v56 = vsel %vm1287_vm14, 1, %v8733_v0  ;;  %v1414_v18 = vsel %vm1286_vm15, 1, %v8733_v0  ;;  %v4196_v41 = vld [vmem:[%s4509_s15 + $0x380] sm:$0xff]  ;;  %vm1303_vm14 = vcmp.eq.s32.totalorder %v4209_v44, 1 }
 0x1eb   : > { %vm1288_vm1 = vcmp.eq.s32.totalorder %v4196_v41, 1  ;;  %v4213_v44 = vld [vmem:[%s4509_s15 + $0x18] sm:$0xff] }
 0x1ed   : > { %v5333_v29 = vpop.permute.xlu1 %1568  ;;  %v5335_v23 = vpop.permute.xlu0 %1565 }
 0x1ee   : > { %8880 = vst [vmem:[#allocation123_spill] sm:$0xff] %v5333_v29  ;;  %8881 = vst [vmem:[#allocation124_spill] sm:$0xff] %v5335_v23  ;;  %1760 = vperm.xlu1 %4082, %v1413_v49   ;;  %1757 = vperm.xlu0 %4081, %v1412_v26   ;;  %v1417_v49 = vsel %vm1289_vm0, 1, %v8733_v0  ;;  %v1416_v26 = vsel %vm1288_vm1, 1, %v8733_v0  ;;  %v4198_v23 = vld [vmem:[%s4509_s15 + $0x390] sm:$0xff]  ;;  %vm2077_vm0 = vcmp.eq.s32.totalorder %v4211_v2, 2 }
 0x1ef   : > { %vm1290_vm3 = vcmp.eq.s32.totalorder %v4198_v23, 1  ;;  %v4215_v2 = vld [vmem:[%s4509_s15 + $0x28] sm:$0xff] }
 0x1f1   : > { %v5341_v3 = vpop.permute.xlu1 %1574  ;;  %v5343_v4 = vpop.permute.xlu0 %1571 }
 0x1f2   : > { %8882 = vst [vmem:[#allocation125_spill] sm:$0xff] %v5341_v3  ;;  %8883 = vst [vmem:[#allocation126_spill] sm:$0xff] %v5343_v4  ;;  %1766 = vperm.xlu1 %4082, %v1415_v56   ;;  %1763 = vperm.xlu0 %4081, %v1414_v18   ;;  %v1419_v56 = vsel %vm1291_vm2, 1, %v8733_v0  ;;  %v1418_v18 = vsel %vm1290_vm3, 1, %v8733_v0  ;;  %v4200_v4 = vld [vmem:[%s4509_s15 + $0x3a0] sm:$0xff]  ;;  %vm2079_vm2 = vcmp.eq.s32.totalorder %v4213_v44, 2 }
 0x1f3   : > { %vm1292_vm5 = vcmp.eq.s32.totalorder %v4200_v4, 1  ;;  %v4217_v44 = vld [vmem:[%s4509_s15 + $0x38] sm:$0xff] }
 0x1f5   : > { %v5349_v29 = vpop.permute.xlu1 %1580  ;;  %v5351_v41 = vpop.permute.xlu0 %1577 }
 0x1f6   : > { %8884 = vst [vmem:[#allocation127_spill] sm:$0xff] %v5349_v29  ;;  %8885 = vst [vmem:[#allocation128_spill] sm:$0xff] %v5351_v41  ;;  %1772 = vperm.xlu1 %4082, %v1417_v49   ;;  %1769 = vperm.xlu0 %4081, %v1416_v26   ;;  %v1421_v49 = vsel %vm1293_vm4, 1, %v8733_v0  ;;  %v1420_v26 = vsel %vm1292_vm5, 1, %v8733_v0  ;;  %v4202_v41 = vld [vmem:[%s4509_s15 + $0x3b0] sm:$0xff]  ;;  %vm2081_vm4 = vcmp.eq.s32.totalorder %v4215_v2, 2 }
 0x1f7   : > { %vm1294_vm7 = vcmp.eq.s32.totalorder %v4202_v41, 1  ;;  %v4219_v2 = vld [vmem:[%s4509_s15 + $0x48] sm:$0xff] }
 0x1f9   : > { %v5357_v3 = vpop.permute.xlu1 %1586  ;;  %v5359_v23 = vpop.permute.xlu0 %1583 }
 0x1fa   : > { %8886 = vst [vmem:[#allocation129_spill] sm:$0xff] %v5357_v3  ;;  %8887 = vst [vmem:[#allocation130_spill] sm:$0xff] %v5359_v23  ;;  %1778 = vperm.xlu1 %4082, %v1419_v56   ;;  %1775 = vperm.xlu0 %4081, %v1418_v18   ;;  %v1423_v56 = vsel %vm1295_vm6, 1, %v8733_v0  ;;  %v1422_v18 = vsel %vm1294_vm7, 1, %v8733_v0  ;;  %v4204_v23 = vld [vmem:[%s4509_s15 + $0x3c0] sm:$0xff]  ;;  %vm2083_vm6 = vcmp.eq.s32.totalorder %v4217_v44, 2 }
 0x1fb   : > { %vm1296_vm9 = vcmp.eq.s32.totalorder %v4204_v23, 1  ;;  %v4221_v44 = vld [vmem:[%s4509_s15 + $0x58] sm:$0xff] }
 0x1fd   : > { %v5365_v29 = vpop.permute.xlu1 %1592  ;;  %v5367_v4 = vpop.permute.xlu0 %1589 }
 0x1fe   : > { %8888 = vst [vmem:[#allocation131_spill] sm:$0xff] %v5365_v29  ;;  %8889 = vst [vmem:[#allocation132_spill] sm:$0xff] %v5367_v4  ;;  %1784 = vperm.xlu1 %4082, %v1421_v49   ;;  %1781 = vperm.xlu0 %4081, %v1420_v26   ;;  %v1425_v49 = vsel %vm1297_vm8, 1, %v8733_v0  ;;  %v1424_v26 = vsel %vm1296_vm9, 1, %v8733_v0  ;;  %v4206_v4 = vld [vmem:[%s4509_s15 + $0x3d0] sm:$0xff]  ;;  %vm2085_vm8 = vcmp.eq.s32.totalorder %v4219_v2, 2 }
 0x1ff   : > { %vm1298_vm11 = vcmp.eq.s32.totalorder %v4206_v4, 1  ;;  %v4223_v2 = vld [vmem:[%s4509_s15 + $0x68] sm:$0xff] }
 0x201   : > { %v5373_v3 = vpop.permute.xlu1 %1598  ;;  %v5375_v41 = vpop.permute.xlu0 %1595 }
 0x202   : > { %8890 = vst [vmem:[#allocation133_spill] sm:$0xff] %v5373_v3  ;;  %8891 = vst [vmem:[#allocation134_spill] sm:$0xff] %v5375_v41  ;;  %1790 = vperm.xlu1 %4082, %v1423_v56   ;;  %1787 = vperm.xlu0 %4081, %v1422_v18   ;;  %v1427_v56 = vsel %vm1299_vm10, 1, %v8733_v0  ;;  %v1426_v18 = vsel %vm1298_vm11, 1, %v8733_v0  ;;  %v4208_v41 = vld [vmem:[%s4509_s15 + $0x3e0] sm:$0xff]  ;;  %vm2087_vm10 = vcmp.eq.s32.totalorder %v4221_v44, 2 }
 0x203   : > { %vm1300_vm13 = vcmp.eq.s32.totalorder %v4208_v41, 1  ;;  %v4225_v44 = vld [vmem:[%s4509_s15 + $0x78] sm:$0xff] }
 0x205   : > { %v5381_v29 = vpop.permute.xlu1 %1604  ;;  %v5383_v23 = vpop.permute.xlu0 %1601 }
 0x206   : > { %8892 = vst [vmem:[#allocation135_spill] sm:$0xff] %v5381_v29  ;;  %8893 = vst [vmem:[#allocation136_spill] sm:$0xff] %v5383_v23  ;;  %1796 = vperm.xlu1 %4082, %v1425_v49   ;;  %1793 = vperm.xlu0 %4081, %v1424_v26   ;;  %v1429_v49 = vsel %vm1301_vm12, 1, %v8733_v0  ;;  %v1428_v26 = vsel %vm1300_vm13, 1, %v8733_v0  ;;  %v4210_v23 = vld [vmem:[%s4509_s15 + $0x3f0] sm:$0xff]  ;;  %vm2089_vm12 = vcmp.eq.s32.totalorder %v4223_v2, 2 }
 0x207   : > { %vm1302_vm15 = vcmp.eq.s32.totalorder %v4210_v23, 1  ;;  %v4227_v2 = vld [vmem:[%s4509_s15 + $0x88] sm:$0xff] }
 0x209   : > { %v5389_v3 = vpop.permute.xlu1 %1610  ;;  %v5391_v4 = vpop.permute.xlu0 %1607 }
 0x20a   : > { %8894 = vst [vmem:[#allocation137_spill] sm:$0xff] %v5389_v3  ;;  %8895 = vst [vmem:[#allocation138_spill] sm:$0xff] %v5391_v4  ;;  %1802 = vperm.xlu1 %4082, %v1427_v56   ;;  %1799 = vperm.xlu0 %4081, %v1426_v18   ;;  %v1431_v56 = vsel %vm1303_vm14, 1, %v8733_v0  ;;  %v1430_v18 = vsel %vm1302_vm15, 1, %v8733_v0  ;;  %v4212_v4 = vld [vmem:[%s4509_s15] sm:$0xff]  ;;  %vm2091_vm14 = vcmp.eq.s32.totalorder %v4225_v44, 2 }
 0x20b   : > { %vm2076_vm1 = vcmp.eq.s32.totalorder %v4212_v4, 2  ;;  %v4229_v44 = vld [vmem:[%s4509_s15 + $0x98] sm:$0xff] }
 0x20d   : > { %v5397_v29 = vpop.permute.xlu1 %1616  ;;  %v5399_v41 = vpop.permute.xlu0 %1613 }
 0x20e   : > { %8896 = vst [vmem:[#allocation139_spill] sm:$0xff] %v5397_v29  ;;  %8897 = vst [vmem:[#allocation140_spill] sm:$0xff] %v5399_v41  ;;  %1808 = vperm.xlu1 %4082, %v1429_v49   ;;  %1805 = vperm.xlu0 %4081, %v1428_v26   ;;  %v2205_v49 = vsel %vm2077_vm0, 1, %v8733_v0  ;;  %v2204_v26 = vsel %vm2076_vm1, 1, %v8733_v0  ;;  %v4214_v41 = vld [vmem:[%s4509_s15 + $0x10] sm:$0xff]  ;;  %vm2093_vm0 = vcmp.eq.s32.totalorder %v4227_v2, 2 }
 0x20f   : > { %vm2078_vm3 = vcmp.eq.s32.totalorder %v4214_v41, 2  ;;  %v4231_v2 = vld [vmem:[%s4509_s15 + $0xa8] sm:$0xff] }
 0x211   : > { %v5405_v3 = vpop.permute.xlu1 %1622  ;;  %v5407_v23 = vpop.permute.xlu0 %1619 }
 0x212   : > { %8898 = vst [vmem:[#allocation141_spill] sm:$0xff] %v5405_v3  ;;  %8899 = vst [vmem:[#allocation142_spill] sm:$0xff] %v5407_v23  ;;  %1814 = vperm.xlu1 %4082, %v1431_v56   ;;  %1811 = vperm.xlu0 %4081, %v1430_v18   ;;  %v2207_v56 = vsel %vm2079_vm2, 1, %v8733_v0  ;;  %v2206_v18 = vsel %vm2078_vm3, 1, %v8733_v0  ;;  %v4216_v23 = vld [vmem:[%s4509_s15 + $0x20] sm:$0xff]  ;;  %vm2095_vm2 = vcmp.eq.s32.totalorder %v4229_v44, 2 }
 0x213   : > { %vm2080_vm5 = vcmp.eq.s32.totalorder %v4216_v23, 2  ;;  %v4233_v44 = vld [vmem:[%s4509_s15 + $0xb8] sm:$0xff] }
 0x215   : > { %v5413_v29 = vpop.permute.xlu1 %1628  ;;  %v5415_v4 = vpop.permute.xlu0 %1625 }
 0x216   : > { %8900 = vst [vmem:[#allocation143_spill] sm:$0xff] %v5413_v29  ;;  %8901 = vst [vmem:[#allocation144_spill] sm:$0xff] %v5415_v4  ;;  %2336 = vperm.xlu1 %4082, %v2205_v49   ;;  %2333 = vperm.xlu0 %4081, %v2204_v26   ;;  %v2209_v49 = vsel %vm2081_vm4, 1, %v8733_v0  ;;  %v2208_v26 = vsel %vm2080_vm5, 1, %v8733_v0  ;;  %v4218_v4 = vld [vmem:[%s4509_s15 + $0x30] sm:$0xff]  ;;  %vm2097_vm4 = vcmp.eq.s32.totalorder %v4231_v2, 2 }
 0x217   : > { %vm2082_vm7 = vcmp.eq.s32.totalorder %v4218_v4, 2  ;;  %v4235_v2 = vld [vmem:[%s4509_s15 + $0xc8] sm:$0xff] }
 0x219   : > { %v5421_v3 = vpop.permute.xlu1 %1634  ;;  %v5423_v41 = vpop.permute.xlu0 %1631 }
 0x21a   : > { %8902 = vst [vmem:[#allocation145_spill] sm:$0xff] %v5421_v3  ;;  %8903 = vst [vmem:[#allocation146_spill] sm:$0xff] %v5423_v41  ;;  %2342 = vperm.xlu1 %4082, %v2207_v56   ;;  %2339 = vperm.xlu0 %4081, %v2206_v18   ;;  %v2211_v56 = vsel %vm2083_vm6, 1, %v8733_v0  ;;  %v2210_v18 = vsel %vm2082_vm7, 1, %v8733_v0  ;;  %v4220_v41 = vld [vmem:[%s4509_s15 + $0x40] sm:$0xff]  ;;  %vm2099_vm6 = vcmp.eq.s32.totalorder %v4233_v44, 2 }
 0x21b   : > { %vm2084_vm9 = vcmp.eq.s32.totalorder %v4220_v41, 2  ;;  %v4237_v44 = vld [vmem:[%s4509_s15 + $0xd8] sm:$0xff] }
 0x21d   : > { %v5429_v29 = vpop.permute.xlu1 %1640  ;;  %v5431_v23 = vpop.permute.xlu0 %1637 }
 0x21e   : > { %8904 = vst [vmem:[#allocation147_spill] sm:$0xff] %v5429_v29  ;;  %8905 = vst [vmem:[#allocation148_spill] sm:$0xff] %v5431_v23  ;;  %2348 = vperm.xlu1 %4082, %v2209_v49   ;;  %2345 = vperm.xlu0 %4081, %v2208_v26   ;;  %v2213_v49 = vsel %vm2085_vm8, 1, %v8733_v0  ;;  %v2212_v26 = vsel %vm2084_vm9, 1, %v8733_v0  ;;  %v4222_v23 = vld [vmem:[%s4509_s15 + $0x50] sm:$0xff]  ;;  %vm2101_vm8 = vcmp.eq.s32.totalorder %v4235_v2, 2 }
 0x21f   : > { %vm2086_vm11 = vcmp.eq.s32.totalorder %v4222_v23, 2  ;;  %v4239_v2 = vld [vmem:[%s4509_s15 + $0xe8] sm:$0xff] }
 0x221   : > { %v5437_v3 = vpop.permute.xlu1 %1646  ;;  %v5439_v4 = vpop.permute.xlu0 %1643 }
 0x222   : > { %8906 = vst [vmem:[#allocation149_spill] sm:$0xff] %v5437_v3  ;;  %8907 = vst [vmem:[#allocation150_spill] sm:$0xff] %v5439_v4  ;;  %2354 = vperm.xlu1 %4082, %v2211_v56   ;;  %2351 = vperm.xlu0 %4081, %v2210_v18   ;;  %v2215_v56 = vsel %vm2087_vm10, 1, %v8733_v0  ;;  %v2214_v18 = vsel %vm2086_vm11, 1, %v8733_v0  ;;  %v4224_v4 = vld [vmem:[%s4509_s15 + $0x60] sm:$0xff]  ;;  %vm2103_vm10 = vcmp.eq.s32.totalorder %v4237_v44, 2 }
 0x223   : > { %vm2088_vm13 = vcmp.eq.s32.totalorder %v4224_v4, 2  ;;  %v4241_v44 = vld [vmem:[%s4509_s15 + $0xf8] sm:$0xff] }
 0x225   : > { %v5445_v29 = vpop.permute.xlu1 %1652  ;;  %v5447_v41 = vpop.permute.xlu0 %1649 }
 0x226   : > { %8908 = vst [vmem:[#allocation151_spill] sm:$0xff] %v5445_v29  ;;  %8909 = vst [vmem:[#allocation152_spill] sm:$0xff] %v5447_v41  ;;  %2360 = vperm.xlu1 %4082, %v2213_v49   ;;  %2357 = vperm.xlu0 %4081, %v2212_v26   ;;  %v2217_v49 = vsel %vm2089_vm12, 1, %v8733_v0  ;;  %v2216_v26 = vsel %vm2088_vm13, 1, %v8733_v0  ;;  %v4226_v41 = vld [vmem:[%s4509_s15 + $0x70] sm:$0xff]  ;;  %vm2105_vm12 = vcmp.eq.s32.totalorder %v4239_v2, 2 }
 0x227   : > { %vm2090_vm15 = vcmp.eq.s32.totalorder %v4226_v41, 2  ;;  %v4243_v2 = vld [vmem:[%s4509_s15 + $0x108] sm:$0xff] }
 0x229   : > { %v5453_v3 = vpop.permute.xlu1 %1658  ;;  %v5455_v23 = vpop.permute.xlu0 %1655 }
 0x22a   : > { %8910 = vst [vmem:[#allocation153_spill] sm:$0xff] %v5453_v3  ;;  %8911 = vst [vmem:[#allocation154_spill] sm:$0xff] %v5455_v23  ;;  %2366 = vperm.xlu1 %4082, %v2215_v56   ;;  %2363 = vperm.xlu0 %4081, %v2214_v18   ;;  %v2219_v56 = vsel %vm2091_vm14, 1, %v8733_v0  ;;  %v2218_v18 = vsel %vm2090_vm15, 1, %v8733_v0  ;;  %v4228_v23 = vld [vmem:[%s4509_s15 + $0x80] sm:$0xff]  ;;  %vm2107_vm14 = vcmp.eq.s32.totalorder %v4241_v44, 2 }
 0x22b   : > { %vm2092_vm1 = vcmp.eq.s32.totalorder %v4228_v23, 2  ;;  %v4245_v44 = vld [vmem:[%s4509_s15 + $0x118] sm:$0xff] }
 0x22d   : > { %v5461_v29 = vpop.permute.xlu1 %1664  ;;  %v5463_v4 = vpop.permute.xlu0 %1661 }
 0x22e   : > { %8912 = vst [vmem:[#allocation155_spill] sm:$0xff] %v5461_v29  ;;  %8913 = vst [vmem:[#allocation156_spill] sm:$0xff] %v5463_v4  ;;  %2372 = vperm.xlu1 %4082, %v2217_v49   ;;  %2369 = vperm.xlu0 %4081, %v2216_v26   ;;  %v2221_v49 = vsel %vm2093_vm0, 1, %v8733_v0  ;;  %v2220_v26 = vsel %vm2092_vm1, 1, %v8733_v0  ;;  %v4230_v4 = vld [vmem:[%s4509_s15 + $0x90] sm:$0xff]  ;;  %vm2109_vm0 = vcmp.eq.s32.totalorder %v4243_v2, 2 }
 0x22f   : > { %vm2094_vm3 = vcmp.eq.s32.totalorder %v4230_v4, 2  ;;  %v4247_v2 = vld [vmem:[%s4509_s15 + $0x128] sm:$0xff] }
 0x231   : > { %v5469_v3 = vpop.permute.xlu1 %1670  ;;  %v5471_v41 = vpop.permute.xlu0 %1667 }
 0x232   : > { %8914 = vst [vmem:[#allocation157_spill] sm:$0xff] %v5469_v3  ;;  %8915 = vst [vmem:[#allocation158_spill] sm:$0xff] %v5471_v41  ;;  %2378 = vperm.xlu1 %4082, %v2219_v56   ;;  %2375 = vperm.xlu0 %4081, %v2218_v18   ;;  %v2223_v56 = vsel %vm2095_vm2, 1, %v8733_v0  ;;  %v2222_v18 = vsel %vm2094_vm3, 1, %v8733_v0  ;;  %v4232_v41 = vld [vmem:[%s4509_s15 + $0xa0] sm:$0xff]  ;;  %vm2111_vm2 = vcmp.eq.s32.totalorder %v4245_v44, 2 }
 0x233   : > { %vm2096_vm5 = vcmp.eq.s32.totalorder %v4232_v41, 2  ;;  %v4249_v44 = vld [vmem:[%s4509_s15 + $0x138] sm:$0xff] }
 0x235   : > { %v5477_v29 = vpop.permute.xlu1 %1676  ;;  %v5479_v23 = vpop.permute.xlu0 %1673 }
 0x236   : > { %8916 = vst [vmem:[#allocation159_spill] sm:$0xff] %v5477_v29  ;;  %8917 = vst [vmem:[#allocation160_spill] sm:$0xff] %v5479_v23  ;;  %2384 = vperm.xlu1 %4082, %v2221_v49   ;;  %2381 = vperm.xlu0 %4081, %v2220_v26   ;;  %v2225_v49 = vsel %vm2097_vm4, 1, %v8733_v0  ;;  %v2224_v26 = vsel %vm2096_vm5, 1, %v8733_v0  ;;  %v4234_v23 = vld [vmem:[%s4509_s15 + $0xb0] sm:$0xff]  ;;  %vm2113_vm4 = vcmp.eq.s32.totalorder %v4247_v2, 2 }
 0x237   : > { %vm2098_vm7 = vcmp.eq.s32.totalorder %v4234_v23, 2  ;;  %v4251_v2 = vld [vmem:[%s4509_s15 + $0x148] sm:$0xff] }
 0x239   : > { %v5485_v3 = vpop.permute.xlu1 %1682  ;;  %v5487_v4 = vpop.permute.xlu0 %1679 }
 0x23a   : > { %8918 = vst [vmem:[#allocation161_spill] sm:$0xff] %v5485_v3  ;;  %8919 = vst [vmem:[#allocation162_spill] sm:$0xff] %v5487_v4  ;;  %2390 = vperm.xlu1 %4082, %v2223_v56   ;;  %2387 = vperm.xlu0 %4081, %v2222_v18   ;;  %v2227_v56 = vsel %vm2099_vm6, 1, %v8733_v0  ;;  %v2226_v18 = vsel %vm2098_vm7, 1, %v8733_v0  ;;  %v4236_v4 = vld [vmem:[%s4509_s15 + $0xc0] sm:$0xff]  ;;  %vm2115_vm6 = vcmp.eq.s32.totalorder %v4249_v44, 2 }
 0x23b   : > { %vm2100_vm9 = vcmp.eq.s32.totalorder %v4236_v4, 2  ;;  %v4253_v44 = vld [vmem:[%s4509_s15 + $0x158] sm:$0xff] }
 0x23d   : > { %v5493_v29 = vpop.permute.xlu1 %1688  ;;  %v5495_v41 = vpop.permute.xlu0 %1685 }
 0x23e   : > { %8920 = vst [vmem:[#allocation163_spill] sm:$0xff] %v5493_v29  ;;  %8921 = vst [vmem:[#allocation164_spill] sm:$0xff] %v5495_v41  ;;  %2396 = vperm.xlu1 %4082, %v2225_v49   ;;  %2393 = vperm.xlu0 %4081, %v2224_v26   ;;  %v2229_v49 = vsel %vm2101_vm8, 1, %v8733_v0  ;;  %v2228_v26 = vsel %vm2100_vm9, 1, %v8733_v0  ;;  %v4238_v41 = vld [vmem:[%s4509_s15 + $0xd0] sm:$0xff]  ;;  %vm2117_vm8 = vcmp.eq.s32.totalorder %v4251_v2, 2 }
 0x23f   : > { %vm2102_vm11 = vcmp.eq.s32.totalorder %v4238_v41, 2  ;;  %v4255_v2 = vld [vmem:[%s4509_s15 + $0x168] sm:$0xff] }
 0x241   : > { %v5501_v3 = vpop.permute.xlu1 %1694  ;;  %v5503_v23 = vpop.permute.xlu0 %1691 }
 0x242   : > { %8922 = vst [vmem:[#allocation165_spill] sm:$0xff] %v5501_v3  ;;  %8923 = vst [vmem:[#allocation166_spill] sm:$0xff] %v5503_v23  ;;  %2402 = vperm.xlu1 %4082, %v2227_v56   ;;  %2399 = vperm.xlu0 %4081, %v2226_v18   ;;  %v2231_v56 = vsel %vm2103_vm10, 1, %v8733_v0  ;;  %v2230_v18 = vsel %vm2102_vm11, 1, %v8733_v0  ;;  %v4240_v23 = vld [vmem:[%s4509_s15 + $0xe0] sm:$0xff]  ;;  %vm2119_vm10 = vcmp.eq.s32.totalorder %v4253_v44, 2 }
 0x243   : > { %vm2104_vm13 = vcmp.eq.s32.totalorder %v4240_v23, 2  ;;  %v4257_v44 = vld [vmem:[%s4509_s15 + $0x178] sm:$0xff] }
 0x245   : > { %v5509_v29 = vpop.permute.xlu1 %1700  ;;  %v5511_v4 = vpop.permute.xlu0 %1697 }
 0x246   : > { %8924 = vst [vmem:[#allocation167_spill] sm:$0xff] %v5509_v29  ;;  %8925 = vst [vmem:[#allocation168_spill] sm:$0xff] %v5511_v4  ;;  %2408 = vperm.xlu1 %4082, %v2229_v49   ;;  %2405 = vperm.xlu0 %4081, %v2228_v26   ;;  %v2233_v49 = vsel %vm2105_vm12, 1, %v8733_v0  ;;  %v2232_v26 = vsel %vm2104_vm13, 1, %v8733_v0  ;;  %v4242_v4 = vld [vmem:[%s4509_s15 + $0xf0] sm:$0xff]  ;;  %vm2121_vm12 = vcmp.eq.s32.totalorder %v4255_v2, 2 }
 0x247   : > { %vm2106_vm15 = vcmp.eq.s32.totalorder %v4242_v4, 2  ;;  %v4259_v2 = vld [vmem:[%s4509_s15 + $0x188] sm:$0xff] }
 0x249   : > { %v5517_v3 = vpop.permute.xlu1 %1706  ;;  %v5519_v41 = vpop.permute.xlu0 %1703 }
 0x24a   : > { %8926 = vst [vmem:[#allocation169_spill] sm:$0xff] %v5517_v3  ;;  %8927 = vst [vmem:[#allocation170_spill] sm:$0xff] %v5519_v41  ;;  %2414 = vperm.xlu1 %4082, %v2231_v56   ;;  %2411 = vperm.xlu0 %4081, %v2230_v18   ;;  %v2235_v56 = vsel %vm2107_vm14, 1, %v8733_v0  ;;  %v2234_v18 = vsel %vm2106_vm15, 1, %v8733_v0  ;;  %v4244_v41 = vld [vmem:[%s4509_s15 + $0x100] sm:$0xff]  ;;  %vm2123_vm14 = vcmp.eq.s32.totalorder %v4257_v44, 2 }
 0x24b   : > { %vm2108_vm1 = vcmp.eq.s32.totalorder %v4244_v41, 2  ;;  %v4261_v44 = vld [vmem:[%s4509_s15 + $0x198] sm:$0xff] }
 0x24d   : > { %v5525_v29 = vpop.permute.xlu1 %1712  ;;  %v5527_v23 = vpop.permute.xlu0 %1709 }
 0x24e   : > { %8928 = vst [vmem:[#allocation171_spill] sm:$0xff] %v5525_v29  ;;  %8929 = vst [vmem:[#allocation172_spill] sm:$0xff] %v5527_v23  ;;  %2420 = vperm.xlu1 %4082, %v2233_v49   ;;  %2417 = vperm.xlu0 %4081, %v2232_v26   ;;  %v2237_v49 = vsel %vm2109_vm0, 1, %v8733_v0  ;;  %v2236_v26 = vsel %vm2108_vm1, 1, %v8733_v0  ;;  %v4246_v23 = vld [vmem:[%s4509_s15 + $0x110] sm:$0xff]  ;;  %vm2125_vm0 = vcmp.eq.s32.totalorder %v4259_v2, 2 }
 0x24f   : > { %vm2110_vm3 = vcmp.eq.s32.totalorder %v4246_v23, 2  ;;  %v4263_v2 = vld [vmem:[%s4509_s15 + $0x1a8] sm:$0xff] }
 0x251   : > { %v5533_v3 = vpop.permute.xlu1 %1718  ;;  %v5535_v4 = vpop.permute.xlu0 %1715 }
 0x252   : > { %8930 = vst [vmem:[#allocation173_spill] sm:$0xff] %v5533_v3  ;;  %8931 = vst [vmem:[#allocation174_spill] sm:$0xff] %v5535_v4  ;;  %2426 = vperm.xlu1 %4082, %v2235_v56   ;;  %2423 = vperm.xlu0 %4081, %v2234_v18   ;;  %v2239_v56 = vsel %vm2111_vm2, 1, %v8733_v0  ;;  %v2238_v18 = vsel %vm2110_vm3, 1, %v8733_v0  ;;  %v4248_v4 = vld [vmem:[%s4509_s15 + $0x120] sm:$0xff]  ;;  %vm2127_vm2 = vcmp.eq.s32.totalorder %v4261_v44, 2 }
 0x253   : > { %vm2112_vm5 = vcmp.eq.s32.totalorder %v4248_v4, 2  ;;  %v4265_v44 = vld [vmem:[%s4509_s15 + $0x1b8] sm:$0xff] }
 0x255   : > { %v5541_v29 = vpop.permute.xlu1 %1724  ;;  %v5543_v41 = vpop.permute.xlu0 %1721 }
 0x256   : > { %8932 = vst [vmem:[#allocation175_spill] sm:$0xff] %v5541_v29  ;;  %8933 = vst [vmem:[#allocation176_spill] sm:$0xff] %v5543_v41  ;;  %2432 = vperm.xlu1 %4082, %v2237_v49   ;;  %2429 = vperm.xlu0 %4081, %v2236_v26   ;;  %v2241_v49 = vsel %vm2113_vm4, 1, %v8733_v0  ;;  %v2240_v26 = vsel %vm2112_vm5, 1, %v8733_v0  ;;  %v4250_v41 = vld [vmem:[%s4509_s15 + $0x130] sm:$0xff]  ;;  %vm2129_vm4 = vcmp.eq.s32.totalorder %v4263_v2, 2 }
 0x257   : > { %vm2114_vm7 = vcmp.eq.s32.totalorder %v4250_v41, 2  ;;  %v4267_v2 = vld [vmem:[%s4509_s15 + $0x1c8] sm:$0xff] }
 0x259   : > { %v5549_v3 = vpop.permute.xlu1 %1730  ;;  %v5551_v23 = vpop.permute.xlu0 %1727 }
 0x25a   : > { %8934 = vst [vmem:[#allocation177_spill] sm:$0xff] %v5549_v3  ;;  %8935 = vst [vmem:[#allocation178_spill] sm:$0xff] %v5551_v23  ;;  %2438 = vperm.xlu1 %4082, %v2239_v56   ;;  %2435 = vperm.xlu0 %4081, %v2238_v18   ;;  %v2243_v56 = vsel %vm2115_vm6, 1, %v8733_v0  ;;  %v2242_v18 = vsel %vm2114_vm7, 1, %v8733_v0  ;;  %v4252_v23 = vld [vmem:[%s4509_s15 + $0x140] sm:$0xff]  ;;  %vm2131_vm6 = vcmp.eq.s32.totalorder %v4265_v44, 2 }
 0x25b   : > { %vm2116_vm9 = vcmp.eq.s32.totalorder %v4252_v23, 2  ;;  %v4269_v44 = vld [vmem:[%s4509_s15 + $0x1d8] sm:$0xff] }
 0x25d   : > { %v5557_v29 = vpop.permute.xlu1 %1736  ;;  %v5559_v4 = vpop.permute.xlu0 %1733 }
 0x25e   : > { %8936 = vst [vmem:[#allocation179_spill] sm:$0xff] %v5557_v29  ;;  %8937 = vst [vmem:[#allocation180_spill] sm:$0xff] %v5559_v4  ;;  %2444 = vperm.xlu1 %4082, %v2241_v49   ;;  %2441 = vperm.xlu0 %4081, %v2240_v26   ;;  %v2245_v49 = vsel %vm2117_vm8, 1, %v8733_v0  ;;  %v2244_v26 = vsel %vm2116_vm9, 1, %v8733_v0  ;;  %v4254_v4 = vld [vmem:[%s4509_s15 + $0x150] sm:$0xff]  ;;  %vm2133_vm8 = vcmp.eq.s32.totalorder %v4267_v2, 2 }
 0x25f   : > { %vm2118_vm11 = vcmp.eq.s32.totalorder %v4254_v4, 2  ;;  %v4271_v2 = vld [vmem:[%s4509_s15 + $0x1e8] sm:$0xff] }
 0x261   : > { %v5565_v3 = vpop.permute.xlu1 %1742  ;;  %v5567_v41 = vpop.permute.xlu0 %1739 }
 0x262   : > { %8938 = vst [vmem:[#allocation181_spill] sm:$0xff] %v5565_v3  ;;  %8939 = vst [vmem:[#allocation182_spill] sm:$0xff] %v5567_v41  ;;  %2450 = vperm.xlu1 %4082, %v2243_v56   ;;  %2447 = vperm.xlu0 %4081, %v2242_v18   ;;  %v2247_v56 = vsel %vm2119_vm10, 1, %v8733_v0  ;;  %v2246_v18 = vsel %vm2118_vm11, 1, %v8733_v0  ;;  %v4256_v41 = vld [vmem:[%s4509_s15 + $0x160] sm:$0xff]  ;;  %vm2135_vm10 = vcmp.eq.s32.totalorder %v4269_v44, 2 }
 0x263   : > { %vm2120_vm13 = vcmp.eq.s32.totalorder %v4256_v41, 2  ;;  %v4273_v44 = vld [vmem:[%s4509_s15 + $0x1f8] sm:$0xff] }
 0x265   : > { %v5573_v29 = vpop.permute.xlu1 %1748  ;;  %v5575_v23 = vpop.permute.xlu0 %1745 }
 0x266   : > { %8940 = vst [vmem:[#allocation183_spill] sm:$0xff] %v5573_v29  ;;  %8941 = vst [vmem:[#allocation184_spill] sm:$0xff] %v5575_v23  ;;  %2456 = vperm.xlu1 %4082, %v2245_v49   ;;  %2453 = vperm.xlu0 %4081, %v2244_v26   ;;  %v2249_v49 = vsel %vm2121_vm12, 1, %v8733_v0  ;;  %v2248_v26 = vsel %vm2120_vm13, 1, %v8733_v0  ;;  %v4258_v23 = vld [vmem:[%s4509_s15 + $0x170] sm:$0xff]  ;;  %vm2137_vm12 = vcmp.eq.s32.totalorder %v4271_v2, 2 }
 0x267   : > { %vm2122_vm15 = vcmp.eq.s32.totalorder %v4258_v23, 2  ;;  %v4275_v2 = vld [vmem:[%s4509_s15 + $0x208] sm:$0xff] }
 0x269   : > { %v5581_v3 = vpop.permute.xlu1 %1754  ;;  %v5583_v4 = vpop.permute.xlu0 %1751 }
 0x26a   : > { %8942 = vst [vmem:[#allocation185_spill] sm:$0xff] %v5581_v3  ;;  %8943 = vst [vmem:[#allocation186_spill] sm:$0xff] %v5583_v4  ;;  %2462 = vperm.xlu1 %4082, %v2247_v56   ;;  %2459 = vperm.xlu0 %4081, %v2246_v18   ;;  %v2251_v56 = vsel %vm2123_vm14, 1, %v8733_v0  ;;  %v2250_v18 = vsel %vm2122_vm15, 1, %v8733_v0  ;;  %v4260_v4 = vld [vmem:[%s4509_s15 + $0x180] sm:$0xff]  ;;  %vm2139_vm14 = vcmp.eq.s32.totalorder %v4273_v44, 2 }
 0x26b   : > { %vm2124_vm1 = vcmp.eq.s32.totalorder %v4260_v4, 2  ;;  %v4277_v44 = vld [vmem:[%s4509_s15 + $0x218] sm:$0xff] }
 0x26d   : > { %v5589_v29 = vpop.permute.xlu1 %1760  ;;  %v5591_v41 = vpop.permute.xlu0 %1757 }
 0x26e   : > { %8944 = vst [vmem:[#allocation187_spill] sm:$0xff] %v5589_v29  ;;  %8945 = vst [vmem:[#allocation188_spill] sm:$0xff] %v5591_v41  ;;  %2468 = vperm.xlu1 %4082, %v2249_v49   ;;  %2465 = vperm.xlu0 %4081, %v2248_v26   ;;  %v2253_v49 = vsel %vm2125_vm0, 1, %v8733_v0  ;;  %v2252_v26 = vsel %vm2124_vm1, 1, %v8733_v0  ;;  %v4262_v41 = vld [vmem:[%s4509_s15 + $0x190] sm:$0xff]  ;;  %vm2141_vm0 = vcmp.eq.s32.totalorder %v4275_v2, 2 }
 0x26f   : > { %vm2126_vm3 = vcmp.eq.s32.totalorder %v4262_v41, 2  ;;  %v4279_v2 = vld [vmem:[%s4509_s15 + $0x228] sm:$0xff] }
 0x271   : > { %v5597_v3 = vpop.permute.xlu1 %1766  ;;  %v5599_v23 = vpop.permute.xlu0 %1763 }
 0x272   : > { %8946 = vst [vmem:[#allocation189_spill] sm:$0xff] %v5597_v3  ;;  %8947 = vst [vmem:[#allocation190_spill] sm:$0xff] %v5599_v23  ;;  %2474 = vperm.xlu1 %4082, %v2251_v56   ;;  %2471 = vperm.xlu0 %4081, %v2250_v18   ;;  %v2255_v56 = vsel %vm2127_vm2, 1, %v8733_v0  ;;  %v2254_v18 = vsel %vm2126_vm3, 1, %v8733_v0  ;;  %v4264_v23 = vld [vmem:[%s4509_s15 + $0x1a0] sm:$0xff]  ;;  %vm2143_vm2 = vcmp.eq.s32.totalorder %v4277_v44, 2 }
 0x273   : > { %vm2128_vm5 = vcmp.eq.s32.totalorder %v4264_v23, 2  ;;  %v4281_v44 = vld [vmem:[%s4509_s15 + $0x238] sm:$0xff] }
 0x275   : > { %v5605_v29 = vpop.permute.xlu1 %1772  ;;  %v5607_v4 = vpop.permute.xlu0 %1769 }
 0x276   : > { %8948 = vst [vmem:[#allocation191_spill] sm:$0xff] %v5605_v29  ;;  %8949 = vst [vmem:[#allocation192_spill] sm:$0xff] %v5607_v4  ;;  %2480 = vperm.xlu1 %4082, %v2253_v49   ;;  %2477 = vperm.xlu0 %4081, %v2252_v26   ;;  %v2257_v49 = vsel %vm2129_vm4, 1, %v8733_v0  ;;  %v2256_v26 = vsel %vm2128_vm5, 1, %v8733_v0  ;;  %v4266_v4 = vld [vmem:[%s4509_s15 + $0x1b0] sm:$0xff]  ;;  %vm2145_vm4 = vcmp.eq.s32.totalorder %v4279_v2, 2 }
 0x277   : > { %vm2130_vm7 = vcmp.eq.s32.totalorder %v4266_v4, 2  ;;  %v4283_v2 = vld [vmem:[%s4509_s15 + $0x248] sm:$0xff] }
 0x279   : > { %v5613_v3 = vpop.permute.xlu1 %1778  ;;  %v5615_v41 = vpop.permute.xlu0 %1775 }
 0x27a   : > { %8950 = vst [vmem:[#allocation193_spill] sm:$0xff] %v5613_v3  ;;  %8951 = vst [vmem:[#allocation194_spill] sm:$0xff] %v5615_v41  ;;  %2486 = vperm.xlu1 %4082, %v2255_v56   ;;  %2483 = vperm.xlu0 %4081, %v2254_v18   ;;  %v2259_v56 = vsel %vm2131_vm6, 1, %v8733_v0  ;;  %v2258_v18 = vsel %vm2130_vm7, 1, %v8733_v0  ;;  %v4268_v41 = vld [vmem:[%s4509_s15 + $0x1c0] sm:$0xff]  ;;  %vm2147_vm6 = vcmp.eq.s32.totalorder %v4281_v44, 2 }
 0x27b   : > { %vm2132_vm9 = vcmp.eq.s32.totalorder %v4268_v41, 2  ;;  %v4285_v44 = vld [vmem:[%s4509_s15 + $0x258] sm:$0xff] }
 0x27d   : > { %v5621_v29 = vpop.permute.xlu1 %1784  ;;  %v5623_v23 = vpop.permute.xlu0 %1781 }
 0x27e   : > { %8952 = vst [vmem:[#allocation195_spill] sm:$0xff] %v5621_v29  ;;  %8953 = vst [vmem:[#allocation196_spill] sm:$0xff] %v5623_v23  ;;  %2492 = vperm.xlu1 %4082, %v2257_v49   ;;  %2489 = vperm.xlu0 %4081, %v2256_v26   ;;  %v2261_v49 = vsel %vm2133_vm8, 1, %v8733_v0  ;;  %v2260_v26 = vsel %vm2132_vm9, 1, %v8733_v0  ;;  %v4270_v23 = vld [vmem:[%s4509_s15 + $0x1d0] sm:$0xff]  ;;  %vm2149_vm8 = vcmp.eq.s32.totalorder %v4283_v2, 2 }
 0x27f   : > { %vm2134_vm11 = vcmp.eq.s32.totalorder %v4270_v23, 2  ;;  %v4287_v2 = vld [vmem:[%s4509_s15 + $0x268] sm:$0xff] }
 0x281   : > { %v5629_v3 = vpop.permute.xlu1 %1790  ;;  %v5631_v4 = vpop.permute.xlu0 %1787 }
 0x282   : > { %8954 = vst [vmem:[#allocation197_spill] sm:$0xff] %v5629_v3  ;;  %8955 = vst [vmem:[#allocation198_spill] sm:$0xff] %v5631_v4  ;;  %2498 = vperm.xlu1 %4082, %v2259_v56   ;;  %2495 = vperm.xlu0 %4081, %v2258_v18   ;;  %v2263_v56 = vsel %vm2135_vm10, 1, %v8733_v0  ;;  %v2262_v18 = vsel %vm2134_vm11, 1, %v8733_v0  ;;  %v4272_v4 = vld [vmem:[%s4509_s15 + $0x1e0] sm:$0xff]  ;;  %vm2151_vm10 = vcmp.eq.s32.totalorder %v4285_v44, 2 }
 0x283   : > { %vm2136_vm13 = vcmp.eq.s32.totalorder %v4272_v4, 2  ;;  %v4289_v44 = vld [vmem:[%s4509_s15 + $0x278] sm:$0xff] }
 0x285   : > { %v5637_v29 = vpop.permute.xlu1 %1796  ;;  %v5639_v41 = vpop.permute.xlu0 %1793 }
 0x286   : > { %8956 = vst [vmem:[#allocation199_spill] sm:$0xff] %v5637_v29  ;;  %8957 = vst [vmem:[#allocation200_spill] sm:$0xff] %v5639_v41  ;;  %2504 = vperm.xlu1 %4082, %v2261_v49   ;;  %2501 = vperm.xlu0 %4081, %v2260_v26   ;;  %v2265_v49 = vsel %vm2137_vm12, 1, %v8733_v0  ;;  %v2264_v26 = vsel %vm2136_vm13, 1, %v8733_v0  ;;  %v4274_v41 = vld [vmem:[%s4509_s15 + $0x1f0] sm:$0xff]  ;;  %vm2153_vm12 = vcmp.eq.s32.totalorder %v4287_v2, 2 }
 0x287   : > { %vm2138_vm15 = vcmp.eq.s32.totalorder %v4274_v41, 2  ;;  %v4291_v2 = vld [vmem:[%s4509_s15 + $0x288] sm:$0xff] }
 0x289   : > { %v5645_v3 = vpop.permute.xlu1 %1802  ;;  %v5647_v23 = vpop.permute.xlu0 %1799 }
 0x28a   : > { %8958 = vst [vmem:[#allocation201_spill] sm:$0xff] %v5645_v3  ;;  %8959 = vst [vmem:[#allocation202_spill] sm:$0xff] %v5647_v23  ;;  %2510 = vperm.xlu1 %4082, %v2263_v56   ;;  %2507 = vperm.xlu0 %4081, %v2262_v18   ;;  %v2267_v56 = vsel %vm2139_vm14, 1, %v8733_v0  ;;  %v2266_v18 = vsel %vm2138_vm15, 1, %v8733_v0  ;;  %v4276_v23 = vld [vmem:[%s4509_s15 + $0x200] sm:$0xff]  ;;  %vm2155_vm14 = vcmp.eq.s32.totalorder %v4289_v44, 2 }
 0x28b   : > { %vm2140_vm1 = vcmp.eq.s32.totalorder %v4276_v23, 2  ;;  %v4293_v44 = vld [vmem:[%s4509_s15 + $0x298] sm:$0xff] }
 0x28d   : > { %v5653_v29 = vpop.permute.xlu1 %1808  ;;  %v5655_v4 = vpop.permute.xlu0 %1805 }
 0x28e   : > { %8960 = vst [vmem:[#allocation203_spill] sm:$0xff] %v5653_v29  ;;  %8961 = vst [vmem:[#allocation204_spill] sm:$0xff] %v5655_v4  ;;  %2516 = vperm.xlu1 %4082, %v2265_v49   ;;  %2513 = vperm.xlu0 %4081, %v2264_v26   ;;  %v2269_v49 = vsel %vm2141_vm0, 1, %v8733_v0  ;;  %v2268_v26 = vsel %vm2140_vm1, 1, %v8733_v0  ;;  %v4278_v4 = vld [vmem:[%s4509_s15 + $0x210] sm:$0xff]  ;;  %vm2157_vm0 = vcmp.eq.s32.totalorder %v4291_v2, 2 }
 0x28f   : > { %vm2142_vm3 = vcmp.eq.s32.totalorder %v4278_v4, 2  ;;  %v4295_v2 = vld [vmem:[%s4509_s15 + $0x2a8] sm:$0xff] }
 0x291   : > { %v5661_v3 = vpop.permute.xlu1 %1814  ;;  %v5663_v41 = vpop.permute.xlu0 %1811 }
 0x292   : > { %8962 = vst [vmem:[#allocation205_spill] sm:$0xff] %v5661_v3  ;;  %8963 = vst [vmem:[#allocation206_spill] sm:$0xff] %v5663_v41  ;;  %2522 = vperm.xlu1 %4082, %v2267_v56   ;;  %2519 = vperm.xlu0 %4081, %v2266_v18   ;;  %v2271_v56 = vsel %vm2143_vm2, 1, %v8733_v0  ;;  %v2270_v18 = vsel %vm2142_vm3, 1, %v8733_v0  ;;  %v4280_v41 = vld [vmem:[%s4509_s15 + $0x220] sm:$0xff]  ;;  %vm2159_vm2 = vcmp.eq.s32.totalorder %v4293_v44, 2 }
 0x293   : > { %vm2144_vm5 = vcmp.eq.s32.totalorder %v4280_v41, 2  ;;  %v4297_v44 = vld [vmem:[%s4509_s15 + $0x2b8] sm:$0xff] }
 0x295   : > { %v5669_v29 = vpop.permute.xlu1 %2336  ;;  %v5671_v23 = vpop.permute.xlu0 %2333 }
 0x296   : > { %8964 = vst [vmem:[#allocation207_spill] sm:$0xff] %v5669_v29  ;;  %8965 = vst [vmem:[#allocation208_spill] sm:$0xff] %v5671_v23  ;;  %2528 = vperm.xlu1 %4082, %v2269_v49   ;;  %2525 = vperm.xlu0 %4081, %v2268_v26   ;;  %v2273_v49 = vsel %vm2145_vm4, 1, %v8733_v0  ;;  %v2272_v26 = vsel %vm2144_vm5, 1, %v8733_v0  ;;  %v4282_v23 = vld [vmem:[%s4509_s15 + $0x230] sm:$0xff]  ;;  %vm2161_vm4 = vcmp.eq.s32.totalorder %v4295_v2, 2 }
 0x297   : > { %vm2146_vm7 = vcmp.eq.s32.totalorder %v4282_v23, 2  ;;  %v4299_v2 = vld [vmem:[%s4509_s15 + $0x2c8] sm:$0xff] }
 0x299   : > { %v5677_v3 = vpop.permute.xlu1 %2342  ;;  %v5679_v4 = vpop.permute.xlu0 %2339 }
 0x29a   : > { %8966 = vst [vmem:[#allocation209_spill] sm:$0xff] %v5677_v3  ;;  %8967 = vst [vmem:[#allocation210_spill] sm:$0xff] %v5679_v4  ;;  %2534 = vperm.xlu1 %4082, %v2271_v56   ;;  %2531 = vperm.xlu0 %4081, %v2270_v18   ;;  %v2275_v56 = vsel %vm2147_vm6, 1, %v8733_v0  ;;  %v2274_v18 = vsel %vm2146_vm7, 1, %v8733_v0  ;;  %v4284_v4 = vld [vmem:[%s4509_s15 + $0x240] sm:$0xff]  ;;  %vm2163_vm6 = vcmp.eq.s32.totalorder %v4297_v44, 2 }
 0x29b   : > { %vm2148_vm9 = vcmp.eq.s32.totalorder %v4284_v4, 2  ;;  %v4301_v44 = vld [vmem:[%s4509_s15 + $0x2d8] sm:$0xff] }
 0x29d   : > { %v5685_v29 = vpop.permute.xlu1 %2348  ;;  %v5687_v41 = vpop.permute.xlu0 %2345 }
 0x29e   : > { %8968 = vst [vmem:[#allocation211_spill] sm:$0xff] %v5685_v29  ;;  %8969 = vst [vmem:[#allocation212_spill] sm:$0xff] %v5687_v41  ;;  %2540 = vperm.xlu1 %4082, %v2273_v49   ;;  %2537 = vperm.xlu0 %4081, %v2272_v26   ;;  %v2277_v49 = vsel %vm2149_vm8, 1, %v8733_v0  ;;  %v2276_v26 = vsel %vm2148_vm9, 1, %v8733_v0  ;;  %v4286_v41 = vld [vmem:[%s4509_s15 + $0x250] sm:$0xff]  ;;  %vm2165_vm8 = vcmp.eq.s32.totalorder %v4299_v2, 2 }
 0x29f   : > { %vm2150_vm11 = vcmp.eq.s32.totalorder %v4286_v41, 2  ;;  %v4303_v2 = vld [vmem:[%s4509_s15 + $0x2e8] sm:$0xff] }
 0x2a1   : > { %v5693_v3 = vpop.permute.xlu1 %2354  ;;  %v5695_v23 = vpop.permute.xlu0 %2351 }
 0x2a2   : > { %8970 = vst [vmem:[#allocation213_spill] sm:$0xff] %v5693_v3  ;;  %8971 = vst [vmem:[#allocation214_spill] sm:$0xff] %v5695_v23  ;;  %2546 = vperm.xlu1 %4082, %v2275_v56   ;;  %2543 = vperm.xlu0 %4081, %v2274_v18   ;;  %v2279_v56 = vsel %vm2151_vm10, 1, %v8733_v0  ;;  %v2278_v18 = vsel %vm2150_vm11, 1, %v8733_v0  ;;  %v4288_v23 = vld [vmem:[%s4509_s15 + $0x260] sm:$0xff]  ;;  %vm2167_vm10 = vcmp.eq.s32.totalorder %v4301_v44, 2 }
 0x2a3   : > { %vm2152_vm13 = vcmp.eq.s32.totalorder %v4288_v23, 2  ;;  %v4305_v44 = vld [vmem:[%s4509_s15 + $0x2f8] sm:$0xff] }
 0x2a5   : > { %v5701_v29 = vpop.permute.xlu1 %2360  ;;  %v5703_v4 = vpop.permute.xlu0 %2357 }
 0x2a6   : > { %8972 = vst [vmem:[#allocation215_spill] sm:$0xff] %v5701_v29  ;;  %8973 = vst [vmem:[#allocation216_spill] sm:$0xff] %v5703_v4  ;;  %2552 = vperm.xlu1 %4082, %v2277_v49   ;;  %2549 = vperm.xlu0 %4081, %v2276_v26   ;;  %v2281_v49 = vsel %vm2153_vm12, 1, %v8733_v0  ;;  %v2280_v26 = vsel %vm2152_vm13, 1, %v8733_v0  ;;  %v4290_v4 = vld [vmem:[%s4509_s15 + $0x270] sm:$0xff]  ;;  %vm2169_vm12 = vcmp.eq.s32.totalorder %v4303_v2, 2 }
 0x2a7   : > { %vm2154_vm15 = vcmp.eq.s32.totalorder %v4290_v4, 2  ;;  %v4307_v2 = vld [vmem:[%s4509_s15 + $0x308] sm:$0xff] }
 0x2a9   : > { %v5709_v3 = vpop.permute.xlu1 %2366  ;;  %v5711_v41 = vpop.permute.xlu0 %2363 }
 0x2aa   : > { %8974 = vst [vmem:[#allocation217_spill] sm:$0xff] %v5709_v3  ;;  %8975 = vst [vmem:[#allocation218_spill] sm:$0xff] %v5711_v41  ;;  %2558 = vperm.xlu1 %4082, %v2279_v56   ;;  %2555 = vperm.xlu0 %4081, %v2278_v18   ;;  %v2283_v56 = vsel %vm2155_vm14, 1, %v8733_v0  ;;  %v2282_v18 = vsel %vm2154_vm15, 1, %v8733_v0  ;;  %v4292_v41 = vld [vmem:[%s4509_s15 + $0x280] sm:$0xff]  ;;  %vm2171_vm14 = vcmp.eq.s32.totalorder %v4305_v44, 2 }
 0x2ab   : > { %vm2156_vm1 = vcmp.eq.s32.totalorder %v4292_v41, 2  ;;  %v4309_v44 = vld [vmem:[%s4509_s15 + $0x318] sm:$0xff] }
 0x2ad   : > { %v5717_v29 = vpop.permute.xlu1 %2372  ;;  %v5719_v23 = vpop.permute.xlu0 %2369 }
 0x2ae   : > { %8976 = vst [vmem:[#allocation219_spill] sm:$0xff] %v5717_v29  ;;  %8977 = vst [vmem:[#allocation220_spill] sm:$0xff] %v5719_v23  ;;  %2564 = vperm.xlu1 %4082, %v2281_v49   ;;  %2561 = vperm.xlu0 %4081, %v2280_v26   ;;  %v2285_v49 = vsel %vm2157_vm0, 1, %v8733_v0  ;;  %v2284_v26 = vsel %vm2156_vm1, 1, %v8733_v0  ;;  %v4294_v23 = vld [vmem:[%s4509_s15 + $0x290] sm:$0xff]  ;;  %vm2173_vm0 = vcmp.eq.s32.totalorder %v4307_v2, 2 }
 0x2af   : > { %vm2158_vm3 = vcmp.eq.s32.totalorder %v4294_v23, 2  ;;  %v4311_v2 = vld [vmem:[%s4509_s15 + $0x328] sm:$0xff] }
 0x2b1   : > { %v5725_v3 = vpop.permute.xlu1 %2378  ;;  %v5727_v4 = vpop.permute.xlu0 %2375 }
 0x2b2   : > { %8978 = vst [vmem:[#allocation221_spill] sm:$0xff] %v5725_v3  ;;  %8979 = vst [vmem:[#allocation222_spill] sm:$0xff] %v5727_v4  ;;  %2570 = vperm.xlu1 %4082, %v2283_v56   ;;  %2567 = vperm.xlu0 %4081, %v2282_v18   ;;  %v2287_v56 = vsel %vm2159_vm2, 1, %v8733_v0  ;;  %v2286_v18 = vsel %vm2158_vm3, 1, %v8733_v0  ;;  %v4296_v4 = vld [vmem:[%s4509_s15 + $0x2a0] sm:$0xff]  ;;  %vm2175_vm2 = vcmp.eq.s32.totalorder %v4309_v44, 2 }
 0x2b3   : > { %vm2160_vm5 = vcmp.eq.s32.totalorder %v4296_v4, 2  ;;  %v4313_v44 = vld [vmem:[%s4509_s15 + $0x338] sm:$0xff] }
 0x2b5   : > { %v5733_v29 = vpop.permute.xlu1 %2384  ;;  %v5735_v41 = vpop.permute.xlu0 %2381 }
 0x2b6   : > { %8980 = vst [vmem:[#allocation223_spill] sm:$0xff] %v5733_v29  ;;  %8981 = vst [vmem:[#allocation224_spill] sm:$0xff] %v5735_v41  ;;  %2576 = vperm.xlu1 %4082, %v2285_v49   ;;  %2573 = vperm.xlu0 %4081, %v2284_v26   ;;  %v2289_v49 = vsel %vm2161_vm4, 1, %v8733_v0  ;;  %v2288_v26 = vsel %vm2160_vm5, 1, %v8733_v0  ;;  %v4298_v41 = vld [vmem:[%s4509_s15 + $0x2b0] sm:$0xff]  ;;  %vm2177_vm4 = vcmp.eq.s32.totalorder %v4311_v2, 2 }
 0x2b7   : > { %vm2162_vm7 = vcmp.eq.s32.totalorder %v4298_v41, 2  ;;  %v4315_v2 = vld [vmem:[%s4509_s15 + $0x348] sm:$0xff] }
 0x2b9   : > { %v5741_v3 = vpop.permute.xlu1 %2390  ;;  %v5743_v23 = vpop.permute.xlu0 %2387 }
 0x2ba   : > { %8982 = vst [vmem:[#allocation225_spill] sm:$0xff] %v5741_v3  ;;  %8983 = vst [vmem:[#allocation226_spill] sm:$0xff] %v5743_v23  ;;  %2582 = vperm.xlu1 %4082, %v2287_v56   ;;  %2579 = vperm.xlu0 %4081, %v2286_v18   ;;  %v2291_v56 = vsel %vm2163_vm6, 1, %v8733_v0  ;;  %v2290_v18 = vsel %vm2162_vm7, 1, %v8733_v0  ;;  %v4300_v23 = vld [vmem:[%s4509_s15 + $0x2c0] sm:$0xff]  ;;  %vm2179_vm6 = vcmp.eq.s32.totalorder %v4313_v44, 2 }
 0x2bb   : > { %vm2164_vm9 = vcmp.eq.s32.totalorder %v4300_v23, 2  ;;  %v4317_v44 = vld [vmem:[%s4509_s15 + $0x358] sm:$0xff] }
 0x2bd   : > { %v5749_v29 = vpop.permute.xlu1 %2396  ;;  %v5751_v4 = vpop.permute.xlu0 %2393 }
 0x2be   : > { %8984 = vst [vmem:[#allocation227_spill] sm:$0xff] %v5749_v29  ;;  %8985 = vst [vmem:[#allocation228_spill] sm:$0xff] %v5751_v4  ;;  %2588 = vperm.xlu1 %4082, %v2289_v49   ;;  %2585 = vperm.xlu0 %4081, %v2288_v26   ;;  %v2293_v49 = vsel %vm2165_vm8, 1, %v8733_v0  ;;  %v2292_v26 = vsel %vm2164_vm9, 1, %v8733_v0  ;;  %v4302_v4 = vld [vmem:[%s4509_s15 + $0x2d0] sm:$0xff]  ;;  %vm2181_vm8 = vcmp.eq.s32.totalorder %v4315_v2, 2 }
 0x2bf   : > { %vm2166_vm11 = vcmp.eq.s32.totalorder %v4302_v4, 2  ;;  %v4319_v2 = vld [vmem:[%s4509_s15 + $0x368] sm:$0xff] }
 0x2c1   : > { %v5757_v3 = vpop.permute.xlu1 %2402  ;;  %v5759_v41 = vpop.permute.xlu0 %2399 }
 0x2c2   : > { %8986 = vst [vmem:[#allocation229_spill] sm:$0xff] %v5757_v3  ;;  %8987 = vst [vmem:[#allocation230_spill] sm:$0xff] %v5759_v41  ;;  %2594 = vperm.xlu1 %4082, %v2291_v56   ;;  %2591 = vperm.xlu0 %4081, %v2290_v18   ;;  %v2295_v56 = vsel %vm2167_vm10, 1, %v8733_v0  ;;  %v2294_v18 = vsel %vm2166_vm11, 1, %v8733_v0  ;;  %v4304_v41 = vld [vmem:[%s4509_s15 + $0x2e0] sm:$0xff]  ;;  %vm2183_vm10 = vcmp.eq.s32.totalorder %v4317_v44, 2 }
 0x2c3   : > { %vm2168_vm13 = vcmp.eq.s32.totalorder %v4304_v41, 2  ;;  %v4321_v44 = vld [vmem:[%s4509_s15 + $0x378] sm:$0xff] }
 0x2c5   : > { %v5765_v29 = vpop.permute.xlu1 %2408  ;;  %v5767_v23 = vpop.permute.xlu0 %2405 }
 0x2c6   : > { %8988 = vst [vmem:[#allocation231_spill] sm:$0xff] %v5765_v29  ;;  %8989 = vst [vmem:[#allocation232_spill] sm:$0xff] %v5767_v23  ;;  %2600 = vperm.xlu1 %4082, %v2293_v49   ;;  %2597 = vperm.xlu0 %4081, %v2292_v26   ;;  %v2297_v49 = vsel %vm2169_vm12, 1, %v8733_v0  ;;  %v2296_v26 = vsel %vm2168_vm13, 1, %v8733_v0  ;;  %v4306_v23 = vld [vmem:[%s4509_s15 + $0x2f0] sm:$0xff]  ;;  %vm2185_vm12 = vcmp.eq.s32.totalorder %v4319_v2, 2 }
 0x2c7   : > { %vm2170_vm15 = vcmp.eq.s32.totalorder %v4306_v23, 2  ;;  %v4323_v2 = vld [vmem:[%s4509_s15 + $0x388] sm:$0xff] }
 0x2c9   : > { %v5773_v3 = vpop.permute.xlu1 %2414  ;;  %v5775_v4 = vpop.permute.xlu0 %2411 }
 0x2ca   : > { %8990 = vst [vmem:[#allocation233_spill] sm:$0xff] %v5773_v3  ;;  %8991 = vst [vmem:[#allocation234_spill] sm:$0xff] %v5775_v4  ;;  %2606 = vperm.xlu1 %4082, %v2295_v56   ;;  %2603 = vperm.xlu0 %4081, %v2294_v18   ;;  %v2299_v56 = vsel %vm2171_vm14, 1, %v8733_v0  ;;  %v2298_v18 = vsel %vm2170_vm15, 1, %v8733_v0  ;;  %v4308_v4 = vld [vmem:[%s4509_s15 + $0x300] sm:$0xff]  ;;  %vm2187_vm14 = vcmp.eq.s32.totalorder %v4321_v44, 2 }
 0x2cb   : > { %vm2172_vm1 = vcmp.eq.s32.totalorder %v4308_v4, 2  ;;  %v4325_v44 = vld [vmem:[%s4509_s15 + $0x398] sm:$0xff] }
 0x2cd   : > { %v5781_v29 = vpop.permute.xlu1 %2420  ;;  %v5783_v41 = vpop.permute.xlu0 %2417 }
 0x2ce   : > { %8992 = vst [vmem:[#allocation235_spill] sm:$0xff] %v5781_v29  ;;  %8993 = vst [vmem:[#allocation236_spill] sm:$0xff] %v5783_v41  ;;  %2612 = vperm.xlu1 %4082, %v2297_v49   ;;  %2609 = vperm.xlu0 %4081, %v2296_v26   ;;  %v2301_v49 = vsel %vm2173_vm0, 1, %v8733_v0  ;;  %v2300_v26 = vsel %vm2172_vm1, 1, %v8733_v0  ;;  %v4310_v41 = vld [vmem:[%s4509_s15 + $0x310] sm:$0xff]  ;;  %vm2189_vm0 = vcmp.eq.s32.totalorder %v4323_v2, 2 }
 0x2cf   : > { %vm2174_vm3 = vcmp.eq.s32.totalorder %v4310_v41, 2  ;;  %v4327_v2 = vld [vmem:[%s4509_s15 + $0x3a8] sm:$0xff] }
 0x2d1   : > { %v5789_v3 = vpop.permute.xlu1 %2426  ;;  %v5791_v23 = vpop.permute.xlu0 %2423 }
 0x2d2   : > { %8994 = vst [vmem:[#allocation237_spill] sm:$0xff] %v5789_v3  ;;  %8995 = vst [vmem:[#allocation238_spill] sm:$0xff] %v5791_v23  ;;  %2618 = vperm.xlu1 %4082, %v2299_v56   ;;  %2615 = vperm.xlu0 %4081, %v2298_v18   ;;  %v2303_v56 = vsel %vm2175_vm2, 1, %v8733_v0  ;;  %v2302_v18 = vsel %vm2174_vm3, 1, %v8733_v0  ;;  %v4312_v23 = vld [vmem:[%s4509_s15 + $0x320] sm:$0xff]  ;;  %vm2191_vm2 = vcmp.eq.s32.totalorder %v4325_v44, 2 }
 0x2d3   : > { %vm2176_vm5 = vcmp.eq.s32.totalorder %v4312_v23, 2  ;;  %v4329_v44 = vld [vmem:[%s4509_s15 + $0x3b8] sm:$0xff] }
 0x2d5   : > { %v5797_v29 = vpop.permute.xlu1 %2432  ;;  %v5799_v4 = vpop.permute.xlu0 %2429 }
 0x2d6   : > { %8996 = vst [vmem:[#allocation239_spill] sm:$0xff] %v5797_v29  ;;  %8997 = vst [vmem:[#allocation240_spill] sm:$0xff] %v5799_v4  ;;  %2624 = vperm.xlu1 %4082, %v2301_v49   ;;  %2621 = vperm.xlu0 %4081, %v2300_v26   ;;  %v2305_v49 = vsel %vm2177_vm4, 1, %v8733_v0  ;;  %v2304_v26 = vsel %vm2176_vm5, 1, %v8733_v0  ;;  %v4314_v4 = vld [vmem:[%s4509_s15 + $0x330] sm:$0xff]  ;;  %vm2193_vm4 = vcmp.eq.s32.totalorder %v4327_v2, 2 }
 0x2d7   : > { %vm2178_vm7 = vcmp.eq.s32.totalorder %v4314_v4, 2  ;;  %v4331_v2 = vld [vmem:[%s4509_s15 + $0x3c8] sm:$0xff] }
 0x2d9   : > { %v5805_v3 = vpop.permute.xlu1 %2438  ;;  %v5807_v41 = vpop.permute.xlu0 %2435 }
 0x2da   : > { %8998 = vst [vmem:[#allocation241_spill] sm:$0xff] %v5805_v3  ;;  %8999 = vst [vmem:[#allocation242_spill] sm:$0xff] %v5807_v41  ;;  %2630 = vperm.xlu1 %4082, %v2303_v56   ;;  %2627 = vperm.xlu0 %4081, %v2302_v18   ;;  %v2307_v56 = vsel %vm2179_vm6, 1, %v8733_v0  ;;  %v2306_v18 = vsel %vm2178_vm7, 1, %v8733_v0  ;;  %v4316_v41 = vld [vmem:[%s4509_s15 + $0x340] sm:$0xff]  ;;  %vm2195_vm6 = vcmp.eq.s32.totalorder %v4329_v44, 2 }
 0x2db   : > { %vm2180_vm9 = vcmp.eq.s32.totalorder %v4316_v41, 2  ;;  %v4333_v44 = vld [vmem:[%s4509_s15 + $0x3d8] sm:$0xff] }
 0x2dd   : > { %v5813_v29 = vpop.permute.xlu1 %2444  ;;  %v5815_v23 = vpop.permute.xlu0 %2441 }
 0x2de   : > { %9000 = vst [vmem:[#allocation243_spill] sm:$0xff] %v5813_v29  ;;  %9001 = vst [vmem:[#allocation244_spill] sm:$0xff] %v5815_v23  ;;  %2636 = vperm.xlu1 %4082, %v2305_v49   ;;  %2633 = vperm.xlu0 %4081, %v2304_v26   ;;  %v2309_v49 = vsel %vm2181_vm8, 1, %v8733_v0  ;;  %v2308_v26 = vsel %vm2180_vm9, 1, %v8733_v0  ;;  %v4318_v23 = vld [vmem:[%s4509_s15 + $0x350] sm:$0xff]  ;;  %vm2197_vm8 = vcmp.eq.s32.totalorder %v4331_v2, 2 }
 0x2df   : > { %vm2182_vm11 = vcmp.eq.s32.totalorder %v4318_v23, 2  ;;  %v4335_v2 = vld [vmem:[%s4509_s15 + $0x3e8] sm:$0xff] }
 0x2e1   : > { %v5821_v3 = vpop.permute.xlu1 %2450  ;;  %v5823_v4 = vpop.permute.xlu0 %2447 }
 0x2e2   : > { %9002 = vst [vmem:[#allocation245_spill] sm:$0xff] %v5821_v3  ;;  %9003 = vst [vmem:[#allocation246_spill] sm:$0xff] %v5823_v4  ;;  %2642 = vperm.xlu1 %4082, %v2307_v56   ;;  %2639 = vperm.xlu0 %4081, %v2306_v18   ;;  %v2311_v56 = vsel %vm2183_vm10, 1, %v8733_v0  ;;  %v2310_v18 = vsel %vm2182_vm11, 1, %v8733_v0  ;;  %v4320_v4 = vld [vmem:[%s4509_s15 + $0x360] sm:$0xff]  ;;  %vm2199_vm10 = vcmp.eq.s32.totalorder %v4333_v44, 2 }
 0x2e3   : > { %vm2184_vm13 = vcmp.eq.s32.totalorder %v4320_v4, 2  ;;  %v4337_v44 = vld [vmem:[%s4509_s15 + $0x3f8] sm:$0xff] }
 0x2e5   : > { %v5829_v29 = vpop.permute.xlu1 %2456  ;;  %v5831_v41 = vpop.permute.xlu0 %2453 }
 0x2e6   : > { %9004 = vst [vmem:[#allocation247_spill] sm:$0xff] %v5829_v29  ;;  %9005 = vst [vmem:[#allocation248_spill] sm:$0xff] %v5831_v41  ;;  %2648 = vperm.xlu1 %4082, %v2309_v49   ;;  %2645 = vperm.xlu0 %4081, %v2308_v26   ;;  %v2313_v49 = vsel %vm2185_vm12, 1, %v8733_v0  ;;  %v2312_v26 = vsel %vm2184_vm13, 1, %v8733_v0  ;;  %v4322_v41 = vld [vmem:[%s4509_s15 + $0x370] sm:$0xff]  ;;  %vm2201_vm12 = vcmp.eq.s32.totalorder %v4335_v2, 2 }
 0x2e7   : > { %vm2186_vm15 = vcmp.eq.s32.totalorder %v4322_v41, 2  ;;  %v4339_v2 = vld [vmem:[%s4509_s15 + $0x8] sm:$0xff] }
 0x2e9   : > { %v5837_v3 = vpop.permute.xlu1 %2462  ;;  %v5839_v23 = vpop.permute.xlu0 %2459 }
 0x2ea   : > { %9006 = vst [vmem:[#allocation249_spill] sm:$0xff] %v5837_v3  ;;  %9007 = vst [vmem:[#allocation250_spill] sm:$0xff] %v5839_v23  ;;  %2654 = vperm.xlu1 %4082, %v2311_v56   ;;  %2651 = vperm.xlu0 %4081, %v2310_v18   ;;  %v2315_v56 = vsel %vm2187_vm14, 1, %v8733_v0  ;;  %v2314_v18 = vsel %vm2186_vm15, 1, %v8733_v0  ;;  %v4324_v23 = vld [vmem:[%s4509_s15 + $0x380] sm:$0xff]  ;;  %vm2203_vm14 = vcmp.eq.s32.totalorder %v4337_v44, 2 }
 0x2eb   : > { %vm2188_vm1 = vcmp.eq.s32.totalorder %v4324_v23, 2  ;;  %v4341_v44 = vld [vmem:[%s4509_s15 + $0x18] sm:$0xff] }
 0x2ed   : > { %v5845_v29 = vpop.permute.xlu1 %2468  ;;  %v5847_v4 = vpop.permute.xlu0 %2465 }
 0x2ee   : > { %9008 = vst [vmem:[#allocation251_spill] sm:$0xff] %v5845_v29  ;;  %9009 = vst [vmem:[#allocation252_spill] sm:$0xff] %v5847_v4  ;;  %2660 = vperm.xlu1 %4082, %v2313_v49   ;;  %2657 = vperm.xlu0 %4081, %v2312_v26   ;;  %v2317_v49 = vsel %vm2189_vm0, 1, %v8733_v0  ;;  %v2316_v26 = vsel %vm2188_vm1, 1, %v8733_v0  ;;  %v4326_v4 = vld [vmem:[%s4509_s15 + $0x390] sm:$0xff]  ;;  %vm2977_vm0 = vcmp.eq.s32.totalorder %v4339_v2, 3 }
 0x2ef   : > { %vm2190_vm3 = vcmp.eq.s32.totalorder %v4326_v4, 2  ;;  %v4343_v2 = vld [vmem:[%s4509_s15 + $0x28] sm:$0xff] }
 0x2f1   : > { %v5853_v3 = vpop.permute.xlu1 %2474  ;;  %v5855_v41 = vpop.permute.xlu0 %2471 }
 0x2f2   : > { %9010 = vst [vmem:[#allocation253_spill] sm:$0xff] %v5853_v3  ;;  %9011 = vst [vmem:[#allocation254_spill] sm:$0xff] %v5855_v41  ;;  %2666 = vperm.xlu1 %4082, %v2315_v56   ;;  %2663 = vperm.xlu0 %4081, %v2314_v18   ;;  %v2319_v56 = vsel %vm2191_vm2, 1, %v8733_v0  ;;  %v2318_v18 = vsel %vm2190_vm3, 1, %v8733_v0  ;;  %v4328_v41 = vld [vmem:[%s4509_s15 + $0x3a0] sm:$0xff]  ;;  %vm2979_vm2 = vcmp.eq.s32.totalorder %v4341_v44, 3 }
 0x2f3   : > { %vm2192_vm5 = vcmp.eq.s32.totalorder %v4328_v41, 2  ;;  %v4345_v44 = vld [vmem:[%s4509_s15 + $0x38] sm:$0xff] }
 0x2f5   : > { %v5861_v29 = vpop.permute.xlu1 %2480  ;;  %v5863_v23 = vpop.permute.xlu0 %2477 }
 0x2f6   : > { %9012 = vst [vmem:[#allocation255_spill] sm:$0xff] %v5861_v29  ;;  %9013 = vst [vmem:[#allocation256_spill] sm:$0xff] %v5863_v23  ;;  %2672 = vperm.xlu1 %4082, %v2317_v49   ;;  %2669 = vperm.xlu0 %4081, %v2316_v26   ;;  %v2321_v49 = vsel %vm2193_vm4, 1, %v8733_v0  ;;  %v2320_v26 = vsel %vm2192_vm5, 1, %v8733_v0  ;;  %v4330_v23 = vld [vmem:[%s4509_s15 + $0x3b0] sm:$0xff]  ;;  %vm2981_vm4 = vcmp.eq.s32.totalorder %v4343_v2, 3 }
 0x2f7   : > { %vm2194_vm7 = vcmp.eq.s32.totalorder %v4330_v23, 2  ;;  %v4347_v2 = vld [vmem:[%s4509_s15 + $0x48] sm:$0xff] }
 0x2f9   : > { %v5869_v3 = vpop.permute.xlu1 %2486  ;;  %v5871_v4 = vpop.permute.xlu0 %2483 }
 0x2fa   : > { %9014 = vst [vmem:[#allocation257_spill] sm:$0xff] %v5869_v3  ;;  %9015 = vst [vmem:[#allocation258_spill] sm:$0xff] %v5871_v4  ;;  %2678 = vperm.xlu1 %4082, %v2319_v56   ;;  %2675 = vperm.xlu0 %4081, %v2318_v18   ;;  %v2323_v56 = vsel %vm2195_vm6, 1, %v8733_v0  ;;  %v2322_v18 = vsel %vm2194_vm7, 1, %v8733_v0  ;;  %v4332_v4 = vld [vmem:[%s4509_s15 + $0x3c0] sm:$0xff]  ;;  %vm2983_vm6 = vcmp.eq.s32.totalorder %v4345_v44, 3 }
 0x2fb   : > { %vm2196_vm9 = vcmp.eq.s32.totalorder %v4332_v4, 2  ;;  %v4349_v44 = vld [vmem:[%s4509_s15 + $0x58] sm:$0xff] }
 0x2fd   : > { %v5877_v29 = vpop.permute.xlu1 %2492  ;;  %v5879_v41 = vpop.permute.xlu0 %2489 }
 0x2fe   : > { %9016 = vst [vmem:[#allocation259_spill] sm:$0xff] %v5877_v29  ;;  %9017 = vst [vmem:[#allocation260_spill] sm:$0xff] %v5879_v41  ;;  %2684 = vperm.xlu1 %4082, %v2321_v49   ;;  %2681 = vperm.xlu0 %4081, %v2320_v26   ;;  %v2325_v49 = vsel %vm2197_vm8, 1, %v8733_v0  ;;  %v2324_v26 = vsel %vm2196_vm9, 1, %v8733_v0  ;;  %v4334_v41 = vld [vmem:[%s4509_s15 + $0x3d0] sm:$0xff]  ;;  %vm2985_vm8 = vcmp.eq.s32.totalorder %v4347_v2, 3 }
 0x2ff   : > { %vm2198_vm11 = vcmp.eq.s32.totalorder %v4334_v41, 2  ;;  %v4351_v2 = vld [vmem:[%s4509_s15 + $0x68] sm:$0xff] }
 0x301   : > { %v5885_v3 = vpop.permute.xlu1 %2498  ;;  %v5887_v23 = vpop.permute.xlu0 %2495 }
 0x302   : > { %9018 = vst [vmem:[#allocation261_spill] sm:$0xff] %v5885_v3  ;;  %9019 = vst [vmem:[#allocation262_spill] sm:$0xff] %v5887_v23  ;;  %2690 = vperm.xlu1 %4082, %v2323_v56   ;;  %2687 = vperm.xlu0 %4081, %v2322_v18   ;;  %v2327_v56 = vsel %vm2199_vm10, 1, %v8733_v0  ;;  %v2326_v18 = vsel %vm2198_vm11, 1, %v8733_v0  ;;  %v4336_v23 = vld [vmem:[%s4509_s15 + $0x3e0] sm:$0xff]  ;;  %vm2987_vm10 = vcmp.eq.s32.totalorder %v4349_v44, 3 }
 0x303   : > { %vm2200_vm13 = vcmp.eq.s32.totalorder %v4336_v23, 2  ;;  %v4353_v44 = vld [vmem:[%s4509_s15 + $0x78] sm:$0xff] }
 0x305   : > { %v5893_v29 = vpop.permute.xlu1 %2504  ;;  %v5895_v4 = vpop.permute.xlu0 %2501 }
 0x306   : > { %9020 = vst [vmem:[#allocation263_spill] sm:$0xff] %v5893_v29  ;;  %9021 = vst [vmem:[#allocation264_spill] sm:$0xff] %v5895_v4  ;;  %2696 = vperm.xlu1 %4082, %v2325_v49   ;;  %2693 = vperm.xlu0 %4081, %v2324_v26   ;;  %v2329_v49 = vsel %vm2201_vm12, 1, %v8733_v0  ;;  %v2328_v26 = vsel %vm2200_vm13, 1, %v8733_v0  ;;  %v4338_v4 = vld [vmem:[%s4509_s15 + $0x3f0] sm:$0xff]  ;;  %vm2989_vm12 = vcmp.eq.s32.totalorder %v4351_v2, 3 }
 0x307   : > { %vm2202_vm15 = vcmp.eq.s32.totalorder %v4338_v4, 2  ;;  %v4355_v2 = vld [vmem:[%s4509_s15 + $0x88] sm:$0xff] }
 0x309   : > { %v5901_v3 = vpop.permute.xlu1 %2510  ;;  %v5903_v41 = vpop.permute.xlu0 %2507 }
 0x30a   : > { %9022 = vst [vmem:[#allocation265_spill] sm:$0xff] %v5901_v3  ;;  %9023 = vst [vmem:[#allocation266_spill] sm:$0xff] %v5903_v41  ;;  %2702 = vperm.xlu1 %4082, %v2327_v56   ;;  %2699 = vperm.xlu0 %4081, %v2326_v18   ;;  %v2331_v56 = vsel %vm2203_vm14, 1, %v8733_v0  ;;  %v2330_v18 = vsel %vm2202_vm15, 1, %v8733_v0  ;;  %v4340_v41 = vld [vmem:[%s4509_s15] sm:$0xff]  ;;  %vm2991_vm14 = vcmp.eq.s32.totalorder %v4353_v44, 3 }
 0x30b   : > { %vm2976_vm1 = vcmp.eq.s32.totalorder %v4340_v41, 3  ;;  %v4357_v44 = vld [vmem:[%s4509_s15 + $0x98] sm:$0xff] }
 0x30d   : > { %v5909_v29 = vpop.permute.xlu1 %2516  ;;  %v5911_v23 = vpop.permute.xlu0 %2513 }
 0x30e   : > { %9024 = vst [vmem:[#allocation267_spill] sm:$0xff] %v5909_v29  ;;  %9025 = vst [vmem:[#allocation268_spill] sm:$0xff] %v5911_v23  ;;  %2708 = vperm.xlu1 %4082, %v2329_v49   ;;  %2705 = vperm.xlu0 %4081, %v2328_v26   ;;  %v3105_v49 = vsel %vm2977_vm0, 1, %v8733_v0  ;;  %v3104_v26 = vsel %vm2976_vm1, 1, %v8733_v0  ;;  %v4342_v23 = vld [vmem:[%s4509_s15 + $0x10] sm:$0xff]  ;;  %vm2993_vm0 = vcmp.eq.s32.totalorder %v4355_v2, 3 }
 0x30f   : > { %vm2978_vm3 = vcmp.eq.s32.totalorder %v4342_v23, 3  ;;  %v4359_v2 = vld [vmem:[%s4509_s15 + $0xa8] sm:$0xff] }
 0x311   : > { %v5917_v3 = vpop.permute.xlu1 %2522  ;;  %v5919_v4 = vpop.permute.xlu0 %2519 }
 0x312   : > { %9026 = vst [vmem:[#allocation269_spill] sm:$0xff] %v5917_v3  ;;  %9027 = vst [vmem:[#allocation270_spill] sm:$0xff] %v5919_v4  ;;  %2714 = vperm.xlu1 %4082, %v2331_v56   ;;  %2711 = vperm.xlu0 %4081, %v2330_v18   ;;  %v3107_v56 = vsel %vm2979_vm2, 1, %v8733_v0  ;;  %v3106_v18 = vsel %vm2978_vm3, 1, %v8733_v0  ;;  %v4344_v4 = vld [vmem:[%s4509_s15 + $0x20] sm:$0xff]  ;;  %vm2995_vm2 = vcmp.eq.s32.totalorder %v4357_v44, 3 }
 0x313   : > { %vm2980_vm5 = vcmp.eq.s32.totalorder %v4344_v4, 3  ;;  %v4361_v44 = vld [vmem:[%s4509_s15 + $0xb8] sm:$0xff] }
 0x315   : > { %v5925_v29 = vpop.permute.xlu1 %2528  ;;  %v5927_v41 = vpop.permute.xlu0 %2525 }
 0x316   : > { %9028 = vst [vmem:[#allocation271_spill] sm:$0xff] %v5925_v29  ;;  %9029 = vst [vmem:[#allocation272_spill] sm:$0xff] %v5927_v41  ;;  %3236 = vperm.xlu1 %4082, %v3105_v49   ;;  %3233 = vperm.xlu0 %4081, %v3104_v26   ;;  %v3109_v49 = vsel %vm2981_vm4, 1, %v8733_v0  ;;  %v3108_v26 = vsel %vm2980_vm5, 1, %v8733_v0  ;;  %v4346_v41 = vld [vmem:[%s4509_s15 + $0x30] sm:$0xff]  ;;  %vm2997_vm4 = vcmp.eq.s32.totalorder %v4359_v2, 3 }
 0x317   : > { %vm2982_vm7 = vcmp.eq.s32.totalorder %v4346_v41, 3  ;;  %v4363_v2 = vld [vmem:[%s4509_s15 + $0xc8] sm:$0xff] }
 0x319   : > { %v5933_v3 = vpop.permute.xlu1 %2534  ;;  %v5935_v23 = vpop.permute.xlu0 %2531 }
 0x31a   : > { %9030 = vst [vmem:[#allocation273_spill] sm:$0xff] %v5933_v3  ;;  %9031 = vst [vmem:[#allocation274_spill] sm:$0xff] %v5935_v23  ;;  %3242 = vperm.xlu1 %4082, %v3107_v56   ;;  %3239 = vperm.xlu0 %4081, %v3106_v18   ;;  %v3111_v56 = vsel %vm2983_vm6, 1, %v8733_v0  ;;  %v3110_v18 = vsel %vm2982_vm7, 1, %v8733_v0  ;;  %v4348_v23 = vld [vmem:[%s4509_s15 + $0x40] sm:$0xff]  ;;  %vm2999_vm6 = vcmp.eq.s32.totalorder %v4361_v44, 3 }
 0x31b   : > { %vm2984_vm9 = vcmp.eq.s32.totalorder %v4348_v23, 3  ;;  %v4365_v44 = vld [vmem:[%s4509_s15 + $0xd8] sm:$0xff] }
 0x31d   : > { %v5941_v29 = vpop.permute.xlu1 %2540  ;;  %v5943_v4 = vpop.permute.xlu0 %2537 }
 0x31e   : > { %9032 = vst [vmem:[#allocation275_spill] sm:$0xff] %v5941_v29  ;;  %9033 = vst [vmem:[#allocation276_spill] sm:$0xff] %v5943_v4  ;;  %3248 = vperm.xlu1 %4082, %v3109_v49   ;;  %3245 = vperm.xlu0 %4081, %v3108_v26   ;;  %v3113_v49 = vsel %vm2985_vm8, 1, %v8733_v0  ;;  %v3112_v26 = vsel %vm2984_vm9, 1, %v8733_v0  ;;  %v4350_v4 = vld [vmem:[%s4509_s15 + $0x50] sm:$0xff]  ;;  %vm3001_vm8 = vcmp.eq.s32.totalorder %v4363_v2, 3 }
 0x31f   : > { %vm2986_vm11 = vcmp.eq.s32.totalorder %v4350_v4, 3  ;;  %v4367_v2 = vld [vmem:[%s4509_s15 + $0xe8] sm:$0xff] }
 0x321   : > { %v5949_v3 = vpop.permute.xlu1 %2546  ;;  %v5951_v41 = vpop.permute.xlu0 %2543 }
 0x322   : > { %9034 = vst [vmem:[#allocation277_spill] sm:$0xff] %v5949_v3  ;;  %9035 = vst [vmem:[#allocation278_spill] sm:$0xff] %v5951_v41  ;;  %3254 = vperm.xlu1 %4082, %v3111_v56   ;;  %3251 = vperm.xlu0 %4081, %v3110_v18   ;;  %v3115_v56 = vsel %vm2987_vm10, 1, %v8733_v0  ;;  %v3114_v18 = vsel %vm2986_vm11, 1, %v8733_v0  ;;  %v4352_v41 = vld [vmem:[%s4509_s15 + $0x60] sm:$0xff]  ;;  %vm3003_vm10 = vcmp.eq.s32.totalorder %v4365_v44, 3 }
 0x323   : > { %vm2988_vm13 = vcmp.eq.s32.totalorder %v4352_v41, 3  ;;  %v4369_v44 = vld [vmem:[%s4509_s15 + $0xf8] sm:$0xff] }
 0x325   : > { %v5957_v29 = vpop.permute.xlu1 %2552  ;;  %v5959_v23 = vpop.permute.xlu0 %2549 }
 0x326   : > { %9036 = vst [vmem:[#allocation279_spill] sm:$0xff] %v5957_v29  ;;  %9037 = vst [vmem:[#allocation280_spill] sm:$0xff] %v5959_v23  ;;  %3260 = vperm.xlu1 %4082, %v3113_v49   ;;  %3257 = vperm.xlu0 %4081, %v3112_v26   ;;  %v3117_v49 = vsel %vm2989_vm12, 1, %v8733_v0  ;;  %v3116_v26 = vsel %vm2988_vm13, 1, %v8733_v0  ;;  %v4354_v23 = vld [vmem:[%s4509_s15 + $0x70] sm:$0xff]  ;;  %vm3005_vm12 = vcmp.eq.s32.totalorder %v4367_v2, 3 }
 0x327   : > { %vm2990_vm15 = vcmp.eq.s32.totalorder %v4354_v23, 3  ;;  %v4371_v2 = vld [vmem:[%s4509_s15 + $0x108] sm:$0xff] }
 0x329   : > { %v5965_v3 = vpop.permute.xlu1 %2558  ;;  %v5967_v4 = vpop.permute.xlu0 %2555 }
 0x32a   : > { %9038 = vst [vmem:[#allocation281_spill] sm:$0xff] %v5965_v3  ;;  %9039 = vst [vmem:[#allocation282_spill] sm:$0xff] %v5967_v4  ;;  %3266 = vperm.xlu1 %4082, %v3115_v56   ;;  %3263 = vperm.xlu0 %4081, %v3114_v18   ;;  %v3119_v56 = vsel %vm2991_vm14, 1, %v8733_v0  ;;  %v3118_v18 = vsel %vm2990_vm15, 1, %v8733_v0  ;;  %v4356_v4 = vld [vmem:[%s4509_s15 + $0x80] sm:$0xff]  ;;  %vm3007_vm14 = vcmp.eq.s32.totalorder %v4369_v44, 3 }
 0x32b   : > { %vm2992_vm1 = vcmp.eq.s32.totalorder %v4356_v4, 3 }
 0x32d   : > { %v5973_v29 = vpop.permute.xlu1 %2564  ;;  %v5975_v41 = vpop.permute.xlu0 %2561 }
 0x32e   : > { %9040 = vst [vmem:[#allocation283_spill] sm:$0xff] %v5973_v29  ;;  %9041 = vst [vmem:[#allocation284_spill] sm:$0xff] %v5975_v41  ;;  %3272 = vperm.xlu1 %4082, %v3117_v49   ;;  %3269 = vperm.xlu0 %4081, %v3116_v26   ;;  %v3121_v49 = vsel %vm2993_vm0, 1, %v8733_v0  ;;  %v3120_v26 = vsel %vm2992_vm1, 1, %v8733_v0  ;;  %v4358_v41 = vld [vmem:[%s4509_s15 + $0x90] sm:$0xff]  ;;  %vm3009_vm0 = vcmp.eq.s32.totalorder %v4371_v2, 3 }
 0x32f   : > { %vm2994_vm3 = vcmp.eq.s32.totalorder %v4358_v41, 3 }
 0x331   : > { %v5981_v3 = vpop.permute.xlu1 %2570  ;;  %v5983_v23 = vpop.permute.xlu0 %2567 }
 0x332   : > { %9042 = vst [vmem:[#allocation285_spill] sm:$0xff] %v5981_v3  ;;  %9043 = vst [vmem:[#allocation286_spill] sm:$0xff] %v5983_v23  ;;  %3278 = vperm.xlu1 %4082, %v3119_v56   ;;  %3275 = vperm.xlu0 %4081, %v3118_v18   ;;  %v3123_v56 = vsel %vm2995_vm2, 1, %v8733_v0  ;;  %v3122_v18 = vsel %vm2994_vm3, 1, %v8733_v0  ;;  %v4360_v23 = vld [vmem:[%s4509_s15 + $0xa0] sm:$0xff] }
 0x333   : > { %vm2996_vm5 = vcmp.eq.s32.totalorder %v4360_v23, 3 }
 0x335   : > { %v5989_v29 = vpop.permute.xlu1 %2576  ;;  %v5991_v4 = vpop.permute.xlu0 %2573 }
 0x336   : > { %9044 = vst [vmem:[#allocation287_spill] sm:$0xff] %v5989_v29  ;;  %9045 = vst [vmem:[#allocation288_spill] sm:$0xff] %v5991_v4  ;;  %3284 = vperm.xlu1 %4082, %v3121_v49   ;;  %3281 = vperm.xlu0 %4081, %v3120_v26   ;;  %v3125_v49 = vsel %vm2997_vm4, 1, %v8733_v0  ;;  %v3124_v26 = vsel %vm2996_vm5, 1, %v8733_v0  ;;  %v4362_v4 = vld [vmem:[%s4509_s15 + $0xb0] sm:$0xff] }
 0x337   : > { %vm2998_vm7 = vcmp.eq.s32.totalorder %v4362_v4, 3 }
 0x339   : > { %v5997_v3 = vpop.permute.xlu1 %2582  ;;  %v5999_v41 = vpop.permute.xlu0 %2579 }
 0x33a   : > { %9046 = vst [vmem:[#allocation289_spill] sm:$0xff] %v5997_v3  ;;  %9047 = vst [vmem:[#allocation290_spill] sm:$0xff] %v5999_v41  ;;  %3290 = vperm.xlu1 %4082, %v3123_v56   ;;  %3287 = vperm.xlu0 %4081, %v3122_v18   ;;  %v3127_v56 = vsel %vm2999_vm6, 1, %v8733_v0  ;;  %v3126_v18 = vsel %vm2998_vm7, 1, %v8733_v0  ;;  %v4364_v41 = vld [vmem:[%s4509_s15 + $0xc0] sm:$0xff]  ;;  %vm3014_vm7 = vcmp.eq.s32.totalorder %v4378_v38, 3 }
 0x33b   : > { %vm3000_vm9 = vcmp.eq.s32.totalorder %v4364_v41, 3  ;;  %v6083_v38 = vld [vmem:[%s8430_s1] sm:$0xf] }
 0x33d   : > { %v6005_v29 = vpop.permute.xlu1 %2588  ;;  %v6007_v23 = vpop.permute.xlu0 %2585 }
 0x33e   : > { %9048 = vst [vmem:[#allocation291_spill] sm:$0xff] %v6005_v29  ;;  %9049 = vst [vmem:[#allocation292_spill] sm:$0xff] %v6007_v23  ;;  %3296 = vperm.xlu1 %4082, %v3125_v49   ;;  %3293 = vperm.xlu0 %4081, %v3124_v26   ;;  %v3129_v49 = vsel %vm3001_vm8, 1, %v8733_v0  ;;  %v3128_v26 = vsel %vm3000_vm9, 1, %v8733_v0  ;;  %v4366_v23 = vld [vmem:[%s4509_s15 + $0xd0] sm:$0xff] }
 0x33f   : > { %vm3002_vm11 = vcmp.eq.s32.totalorder %v4366_v23, 3 }
 0x341   : > { %v6013_v3 = vpop.permute.xlu1 %2594  ;;  %v6015_v4 = vpop.permute.xlu0 %2591 }
 0x342   : > { %9050 = vst [vmem:[#allocation293_spill] sm:$0xff] %v6013_v3  ;;  %9051 = vst [vmem:[#allocation294_spill] sm:$0xff] %v6015_v4  ;;  %3302 = vperm.xlu1 %4082, %v3127_v56   ;;  %3299 = vperm.xlu0 %4081, %v3126_v18   ;;  %v3131_v56 = vsel %vm3003_vm10, 1, %v8733_v0  ;;  %v3130_v18 = vsel %vm3002_vm11, 1, %v8733_v0  ;;  %v4368_v4 = vld [vmem:[%s4509_s15 + $0xe0] sm:$0xff] }
 0x343   : > { %vm3004_vm13 = vcmp.eq.s32.totalorder %v4368_v4, 3 }
 0x345   : > { %v6021_v29 = vpop.permute.xlu1 %2600  ;;  %v6023_v41 = vpop.permute.xlu0 %2597 }
 0x346   : > { %9052 = vst [vmem:[#allocation295_spill] sm:$0xff] %v6021_v29  ;;  %9053 = vst [vmem:[#allocation296_spill] sm:$0xff] %v6023_v41  ;;  %3308 = vperm.xlu1 %4082, %v3129_v49   ;;  %3305 = vperm.xlu0 %4081, %v3128_v26   ;;  %v3133_v49 = vsel %vm3005_vm12, 1, %v8733_v0  ;;  %v3132_v26 = vsel %vm3004_vm13, 1, %v8733_v0  ;;  %v4370_v41 = vld [vmem:[%s4509_s15 + $0xf0] sm:$0xff]  ;;  %vm918_vm12 = vcmp.eq.s32.totalorder %v4645_v9, 1 }
 0x347   : > { %vm3006_vm15 = vcmp.eq.s32.totalorder %v4370_v41, 3  ;;  %v3137_v41 = vsel %vm3009_vm0, 1, %v8733_v0  ;;  %vm916_vm13 = vcmp.eq.s32.totalorder %v4647_v10, 1  ;;  %v4383_v9 = vld [vmem:[%s4509_s15 + $0x168] sm:$0xff] }
 0x348   : > { %vm3021_vm0 = vcmp.eq.s32.totalorder %v4383_v9, 3 }
 0x349   : > { %v6029_v3 = vpop.permute.xlu1 %2606  ;;  %v6031_v23 = vpop.permute.xlu0 %2603 }
 0x34a   : > { %9054 = vst [vmem:[#allocation297_spill] sm:$0xff] %v6029_v3  ;;  %9055 = vst [vmem:[#allocation298_spill] sm:$0xff] %v6031_v23  ;;  %3314 = vperm.xlu1 %4082, %v3131_v56   ;;  %3311 = vperm.xlu0 %4081, %v3130_v18   ;;  %v3135_v56 = vsel %vm3007_vm14, 1, %v8733_v0  ;;  %v3134_v18 = vsel %vm3006_vm15, 1, %v8733_v0  ;;  %v4372_v23 = vld [vmem:[%s4509_s15 + $0x100] sm:$0xff]  ;;  %vm919_vm14 = vcmp.eq.s32.totalorder %v4653_v15, 1 }
 0x34b   : > { %vm3008_vm1 = vcmp.eq.s32.totalorder %v4372_v23, 3  ;;  %vm917_vm15 = vcmp.eq.s32.totalorder %v4655_v16, 1 }
 0x34d   : > { %v6037_v29 = vpop.permute.xlu1 %2612  ;;  %v6039_v4 = vpop.permute.xlu0 %2609 }
 0x34e   : > { %9056 = vst [vmem:[#allocation299_spill] sm:$0xff] %v6037_v29  ;;  %9057 = vst [vmem:[#allocation300_spill] sm:$0xff] %v6039_v4  ;;  %3320 = vperm.xlu1 %4082, %v3133_v49   ;;  %3317 = vperm.xlu0 %4081, %v3132_v26   ;;  %v3136_v49 = vsel %vm3008_vm1, 1, %v8733_v0  ;;  %v4373_v26 = vld [vmem:[%s4509_s15 + $0x118] sm:$0xff]  ;;  %v4374_v4 = vld [vmem:[%s4509_s15 + $0x110] sm:$0xff] }
 0x34f   : > { %vm3011_vm2 = vcmp.eq.s32.totalorder %v4373_v26, 3  ;;  %vm3010_vm3 = vcmp.eq.s32.totalorder %v4374_v4, 3 }
 0x350   : > { %v3139_v23 = vsel %vm3011_vm2, 1, %v8733_v0  ;;  %vm921_vm2 = vcmp.eq.s32.totalorder %v4661_v21, 1  ;;  %v3149_v21 = vsel %vm3021_vm0, 1, %v8733_v0  ;;  %vm933_vm0 = vcmp.eq.s32.totalorder %v4709_v57, 1 }
 0x351   : > { %v6045_v3 = vpop.permute.xlu1 %2618  ;;  %v6047_v44 = vpop.permute.xlu0 %2615 }
 0x352   : > { %9058 = vst [vmem:[#allocation301_spill] sm:$0xff] %v6045_v3  ;;  %9059 = vst [vmem:[#allocation302_spill] sm:$0xff] %v6047_v44  ;;  %3326 = vperm.xlu1 %4082, %v3135_v56   ;;  %3323 = vperm.xlu0 %4081, %v3134_v18   ;;  %v3138_v56 = vsel %vm3010_vm3, 1, %v8733_v0  ;;  %v1044_v18 = vlaneseq  ;;  %v4375_v44 = vld [vmem:[%s4509_s15 + $0x128] sm:$0xff]  ;;  %v4376_v3 = vld [vmem:[%s4509_s15 + $0x120] sm:$0xff]  ;;  %vm920_vm3 = vcmp.eq.s32.totalorder %v4663_v22, 1 }
 0x353   : > { %vm3013_vm4 = vcmp.eq.s32.totalorder %v4375_v44, 3  ;;  %vm3012_vm5 = vcmp.eq.s32.totalorder %v4376_v3, 3 }
 0x355   : > { %v6053_v29 = vpop.permute.xlu1 %2624  ;;  %v6055_v2 = vpop.permute.xlu0 %2621 }
 0x356   : > { %9060 = vst [vmem:[#allocation303_spill] sm:$0xff] %v6053_v29  ;;  %9061 = vst [vmem:[#allocation304_spill] sm:$0xff] %v6055_v2  ;;  %3332 = vperm.xlu1 %4082, %v3137_v41   ;;  %3329 = vperm.xlu0 %4081, %v3136_v49   ;;  %v3141_v41 = vsel %vm3013_vm4, 1, %v8733_v0  ;;  %v3140_v49 = vsel %vm3012_vm5, 1, %v8733_v0  ;;  %v6067_v2 = vshrl.u32 %v1044_v18, 7  ;;  %v4377_v29 = vld [vmem:[%s4509_s15 + $0x138] sm:$0xff] }
 0x357   : > { %vm3015_vm6 = vcmp.eq.s32.totalorder %v4377_v29, 3  ;;  %v4379_v18 = vld [vmem:[%s4509_s15 + $0x148] sm:$0xff]  ;;  %vm923_vm4 = vcmp.eq.s32.totalorder %v4669_v27, 1  ;;  %vm922_vm5 = vcmp.eq.s32.totalorder %v4671_v28, 1  ;;  %v4385_v28 = vld [vmem:[%s4509_s15 + $0x178] sm:$0xff] }
 0x358   : > { %vm3017_vm8 = vcmp.eq.s32.totalorder %v4379_v18, 3  ;;  %v4382_v18 = vld [vmem:[%s4509_s15 + $0x150] sm:$0xff] }
 0x359   : > { %v6061_v26 = vpop.permute.xlu1 %2630  ;;  %v6063_v4 = vpop.permute.xlu0 %2627  ;;  %vm3018_vm11 = vcmp.eq.s32.totalorder %v4382_v18, 3 }
 0x35a   : > { %9062 = vst [vmem:[#allocation305_spill] sm:$0xff] %v6061_v26  ;;  %9063 = vst [vmem:[#allocation306_spill] sm:$0xff] %v6063_v4  ;;  %3338 = vperm.xlu1 %4082, %v3139_v23   ;;  %3335 = vperm.xlu0 %4081, %v3138_v56   ;;  %v3143_v23 = vsel %vm3015_vm6, 1, %v8733_v0  ;;  %v3142_v56 = vsel %vm3014_vm7, 1, %v8733_v0  ;;  %v1046_v4 = vsub.s32 0, %v6067_v2  ;;  %v4380_v26 = vld [vmem:[%s4509_s15 + $0x140] sm:$0xff] }
 0x35b   : > { %vm3016_vm9 = vcmp.eq.s32.totalorder %v4380_v26, 3  ;;  %v4381_v26 = vld [vmem:[%s4509_s15 + $0x158] sm:$0xff]  ;;  %vm925_vm6 = vcmp.eq.s32.totalorder %v4677_v33, 1  ;;  %vm924_vm7 = vcmp.eq.s32.totalorder %v4679_v34, 1  ;;  %v4386_v33 = vld [vmem:[%s4509_s15 + $0x170] sm:$0xff] }
 0x35c   : > { %vm3019_vm10 = vcmp.eq.s32.totalorder %v4381_v26, 3  ;;  %v4384_v26 = vld [vmem:[%s4509_s15 + $0x160] sm:$0xff] }
 0x35d   : > { %v6071_v44 = vpop.permute.xlu1 %2636  ;;  %v6073_v3 = vpop.permute.xlu0 %2633  ;;  %vm3020_vm1 = vcmp.eq.s32.totalorder %v4384_v26, 3 }
 0x35e   : > { %9064 = vst [vmem:[#allocation307_spill] sm:$0xff] %v6071_v44  ;;  %9065 = vst [vmem:[#allocation308_spill] sm:$0xff] %v6073_v3  ;;  %3344 = vperm.xlu1 %4082, %v3141_v41   ;;  %3341 = vperm.xlu0 %4081, %v3140_v49   ;;  %v3145_v49 = vsel %vm3017_vm8, 1, %v8733_v0  ;;  %v3144_v3 = vsel %vm3016_vm9, 1, %v8733_v0  ;;  %v6092_v44 = vrot.slane %v6083_v38, %v1046_v4  ;;  %v3147_v4 = vsel %vm3019_vm10, 1, %v8733_v0 }
 0x35f   : > { %vm927_vm8 = vcmp.eq.s32.totalorder %v4685_v39, 1  ;;  %v3148_v22 = vsel %vm3020_vm1, 1, %v8733_v0  ;;  %vm3023_vm9 = vcmp.eq.s32.totalorder %v4385_v28, 3  ;;  %vm3022_vm10 = vcmp.eq.s32.totalorder %v4386_v33, 3 }
 0x360   : > { %9068 = vst [vmem:[#allocation311_spill] sm:$0xff] %v6092_v44  ;;  %v6112_v18 = vsel %vm916_vm13, %v6092_v44, 0.0  ;;  %v6115_v10 = vsel %vm919_vm14, %v6092_v44, 0.0  ;;  %v6139_v27 = vsel %vm920_vm3, %v6092_v44, 0.0  ;;  %v6150_v9 = vsel %vm925_vm6, %v6092_v44, 0.0 }
 0x361   : > { %v6085_v29 = vpop.permute.xlu1 %2642  ;;  %v6087_v41 = vpop.permute.xlu0 %2639  ;;  %vm928_vm13 = vcmp.eq.s32.totalorder %v4695_v46, 1  ;;  %vm931_vm14 = vcmp.eq.s32.totalorder %v4701_v51, 1  ;;  %v4388_v46 = vld [vmem:[%s4509_s15 + $0x180] sm:$0xff]  ;;  %vm932_vm3 = vcmp.eq.s32.totalorder %v4711_v58, 1  ;;  %vm937_vm6 = vcmp.eq.s32.totalorder %v4725_v6, 1  ;;  %v4390_v6 = vld [vmem:[%s4509_s15 + $0x190] sm:$0xff] }
 0x362   : > { %9066 = vst [vmem:[#allocation309_spill] sm:$0xff] %v6085_v29  ;;  %9067 = vst [vmem:[#allocation310_spill] sm:$0xff] %v6087_v41  ;;  %3350 = vperm.xlu1 %4082, %v3143_v23   ;;  %3347 = vperm.xlu0 %4081, %v3142_v56   ;;  %v3146_v23 = vsel %vm3018_vm11, 1, %v8733_v0  ;;  %v6107_v56 = vsel %vm918_vm12, %v6092_v44, 0.0  ;;  %vm926_vm11 = vcmp.eq.s32.totalorder %v4687_v40, 1  ;;  %vm929_vm12 = vcmp.eq.s32.totalorder %v4693_v45, 1 }
 0x363   : > { %v9075_v40 = vmov 0   ;;  %v6176_v39 = vsel %vm926_vm11, %v6092_v44, 0.0  ;;  %v4387_v45 = vld [vmem:[%s4509_s15 + $0x188] sm:$0xff]  ;;  %v6208_v58 = vsel %vm933_vm0, %v6092_v44, 0.0  ;;  %vm938_vm11 = vcmp.eq.s32.totalorder %v4735_v17, 1 }
 0x364   : > { %v3151_v34 = vsel %vm3023_vm9, 1, %v9075_v40  ;;  %vm3025_vm1 = vcmp.eq.s32.totalorder %v4387_v45, 3  ;;  %vm3026_vm9 = vcmp.eq.s32.totalorder %v4390_v6, 3  ;;  %vm945_vm0 = vcmp.eq.s32.totalorder %v4757_v42, 1 }
 0x365   : > { %v6097_v29 = vpop.permute.xlu1 %2648  ;;  %v6099_v41 = vpop.permute.xlu0 %2645  ;;  %v3153_v51 = vsel %vm3025_vm1, 1, %v9075_v40  ;;  %v3154_v17 = vsel %vm3026_vm9, 1, %v9075_v40 }
 0x366   : > { %9069 = vst [vmem:[#allocation312_spill] sm:$0xff] %v6097_v29  ;;  %9070 = vst [vmem:[#allocation313_spill] sm:$0xff] %v6099_v41  ;;  %3356 = vperm.xlu1 %4082, %v3145_v49   ;;  %3353 = vperm.xlu0 %4081, %v3144_v3   ;;  %v6124_v3 = vsel %vm917_vm15, %v6092_v44, 0.0  ;;  %v6136_v49 = vsel %vm921_vm2, %v6092_v44, 0.0  ;;  %vm930_vm15 = vcmp.eq.s32.totalorder %v4703_v52, 1  ;;  %vm3024_vm2 = vcmp.eq.s32.totalorder %v4388_v46, 3 }
 0x367   : > { %v6201_v41 = vsel %vm930_vm15, %v6092_v44, 0.0  ;;  %v3152_v52 = vsel %vm3024_vm2, 1, %v9075_v40  ;;  %vm942_vm15 = vcmp.eq.s32.totalorder %v4751_v35, 1  ;;  %v9098_v29 = vld [vmem:[#allocation5_spill] sm:$0xff] }
 0x369   : > { %v6119_v15 = vpop.permute.xlu1 %2654  ;;  %v6121_v16 = vpop.permute.xlu0 %2651 }
 0x36a   : > { %9071 = vst [vmem:[#allocation314_spill] sm:$0xff] %v6119_v15  ;;  %9072 = vst [vmem:[#allocation315_spill] sm:$0xff] %v6121_v16  ;;  %3362 = vperm.xlu1 %4082, %v3147_v4   ;;  %3359 = vperm.xlu0 %4081, %v3146_v23   ;;  %v6144_v4 = vsel %vm923_vm4, %v6092_v44, 0.0  ;;  %v6147_v23 = vsel %vm922_vm5, %v6092_v44, 0.0  ;;  %v6160_v16 = vsel %vm924_vm7, %v6092_v44, 0.0  ;;  %v6165_v15 = vsel %vm927_vm8, %v6092_v44, 0.0 }
 0x36b   : > { %vm935_vm4 = vcmp.eq.s32.totalorder %v4717_v63, 1  ;;  %vm934_vm5 = vcmp.eq.s32.totalorder %v4719_v1, 1  ;;  %vm936_vm7 = vcmp.eq.s32.totalorder %v4727_v7, 1  ;;  %v6216_v63 = vsel %vm932_vm3, %v6092_v44, 0.0 }
 0x36c   : > { %v6219_v1 = vsel %vm935_vm4, %v6092_v44, 0.0  ;;  %v6224_v57 = vsel %vm934_vm5, %v6092_v44, 0.0  ;;  %v6227_v7 = vsel %vm937_vm6, %v6092_v44, 0.0  ;;  %v6236_v46 = vsel %vm936_vm7, %v6092_v44, 0.0 }
 0x36d   : > { %v6153_v26 = vpop.permute.xlu1 %2660  ;;  %v6155_v0 = vpop.permute.xlu0 %2657  ;;  %vm944_vm3 = vcmp.eq.s32.totalorder %v4759_v43, 1  ;;  %vm947_vm4 = vcmp.eq.s32.totalorder %v4765_v50, 1  ;;  %vm946_vm5 = vcmp.eq.s32.totalorder %v4767_v53, 1  ;;  %vm949_vm6 = vcmp.eq.s32.totalorder %v4773_v60, 1  ;;  %v4393_v50 = vld [vmem:[%s4509_s15 + $0x1b8] sm:$0xff]  ;;  %v4394_v53 = vld [vmem:[%s4509_s15 + $0x1b0] sm:$0xff] }
 0x36e   : > { %9073 = vst [vmem:[#allocation316_spill] sm:$0xff] %v6153_v26  ;;  %9074 = vst [vmem:[#allocation317_spill] sm:$0xff] %v6155_v0  ;;  %3368 = vperm.xlu1 %4082, %v3149_v21   ;;  %3365 = vperm.xlu0 %4081, %v3148_v22   ;;  %v3150_v0 = vsel %vm3022_vm10, 1, %v9075_v40  ;;  %v6182_v21 = vsel %vm929_vm12, %v6092_v44, 0.0  ;;  %v6185_v22 = vsel %vm928_vm13, %v6092_v44, 0.0  ;;  %v6196_v26 = vsel %vm931_vm14, %v6092_v44, 0.0 }
 0x36f   : > { %vm939_vm10 = vcmp.eq.s32.totalorder %v4733_v14, 1  ;;  %vm941_vm12 = vcmp.eq.s32.totalorder %v4741_v24, 1  ;;  %vm940_vm13 = vcmp.eq.s32.totalorder %v4743_v25, 1  ;;  %vm943_vm14 = vcmp.eq.s32.totalorder %v4749_v32, 1  ;;  %v4391_v25 = vld [vmem:[%s4509_s15 + $0x1a8] sm:$0xff]  ;;  %v4392_v32 = vld [vmem:[%s4509_s15 + $0x1a0] sm:$0xff] }
 0x370   : > { %v6251_v24 = vsel %vm938_vm11, %v6092_v44, 0.0  ;;  %vm3029_vm1 = vcmp.eq.s32.totalorder %v4391_v25, 3  ;;  %vm3028_vm2 = vcmp.eq.s32.totalorder %v4392_v32, 3  ;;  %vm948_vm7 = vcmp.eq.s32.totalorder %v4775_v61, 1 }
 0x371   : > { %v6189_v28 = vpop.permute.xlu1 %2666  ;;  %v6191_v33 = vpop.permute.xlu0 %2663  ;;  %v3157_v35 = vsel %vm3029_vm1, 1, %v9075_v40  ;;  %v3156_v43 = vsel %vm3028_vm2, 1, %v9075_v40  ;;  %v6288_v42 = vsel %vm944_vm3, %v6092_v44, 0.0  ;;  %vm3031_vm9 = vcmp.eq.s32.totalorder %v4393_v50, 3 }
 0x372   : > { %9076 = vst [vmem:[#allocation318_spill] sm:$0xff] %v6189_v28  ;;  %9077 = vst [vmem:[#allocation319_spill] sm:$0xff] %v6191_v33  ;;  %3374 = vperm.xlu1 %4082, %v3151_v34   ;;  %3371 = vperm.xlu0 %4081, %v3150_v0   ;;  %v4389_v0 = vld [vmem:[%s4509_s15 + $0x198] sm:$0xff]  ;;  %v6272_v33 = vsel %vm942_vm15, %v6092_v44, 0.0  ;;  %v6277_v28 = vsel %vm945_vm0, %v6092_v44, 0.0  ;;  %vm950_vm11 = vcmp.eq.s32.totalorder %v4783_v8, 1 }
 0x373   : > { %vm3027_vm8 = vcmp.eq.s32.totalorder %v4389_v0, 3  ;;  %v6262_v0 = vsel %vm943_vm14, %v6092_v44, 0.0  ;;  %vm955_vm14 = vcmp.eq.s32.totalorder %v4797_v31, 1  ;;  %vm954_vm15 = vcmp.eq.s32.totalorder %v4799_v36, 1  ;;  %v4395_v31 = vld [vmem:[%s4509_s15 + $0x1c8] sm:$0xff] }
 0x374   : > { %v3155_v14 = vsel %vm3027_vm8, 1, %v9075_v40  ;;  %vm951_vm8 = vcmp.eq.s32.totalorder %v4781_v5, 1  ;;  %v3159_v60 = vsel %vm3031_vm9, 1, %v9075_v40  ;;  %vm3033_vm0 = vcmp.eq.s32.totalorder %v4395_v31, 3 }
 0x375   : > { %v6231_v34 = vpop.permute.xlu1 %2672  ;;  %v6233_v45 = vpop.permute.xlu0 %2669  ;;  %v6320_v8 = vsel %vm951_vm8, %v6092_v44, 0.0  ;;  %v6339_v36 = vsel %vm955_vm14, %v6092_v44, 0.0  ;;  %vm957_vm2 = vcmp.eq.s32.totalorder %v4805_v47, 1  ;;  %vm956_vm3 = vcmp.eq.s32.totalorder %v4807_v48, 1 }
 0x376   : > { %9078 = vst [vmem:[#allocation320_spill] sm:$0xff] %v6231_v34  ;;  %9079 = vst [vmem:[#allocation321_spill] sm:$0xff] %v6233_v45  ;;  %3380 = vperm.xlu1 %4082, %v3153_v51   ;;  %3377 = vperm.xlu0 %4081, %v3152_v52   ;;  %v6248_v45 = vsel %vm939_vm10, %v6092_v44, 0.0  ;;  %v6256_v51 = vsel %vm941_vm12, %v6092_v44, 0.0  ;;  %v6259_v52 = vsel %vm940_vm13, %v6092_v44, 0.0  ;;  %vm3030_vm10 = vcmp.eq.s32.totalorder %v4394_v53, 3 }
 0x377   : > { %vm953_vm12 = vcmp.eq.s32.totalorder %v4789_v19, 1  ;;  %vm952_vm13 = vcmp.eq.s32.totalorder %v4791_v20, 1  ;;  %v3158_v61 = vsel %vm3030_vm10, 1, %v9075_v40  ;;  %v6328_v19 = vsel %vm950_vm11, %v6092_v44, 0.0 }
 0x378   : > { %v6331_v20 = vsel %vm953_vm12, %v6092_v44, 0.0  ;;  %v6336_v5 = vsel %vm952_vm13, %v6092_v44, 0.0  ;;  %v6348_v53 = vsel %vm954_vm15, %v6092_v44, 0.0  ;;  %vm963_vm8 = vcmp.eq.s32.totalorder %v4829_v30, 1 }
 0x379   : > { %v6265_v6 = vpop.permute.xlu1 %2678  ;;  %v6267_v34 = vpop.permute.xlu0 %2675  ;;  %v3161_v47 = vsel %vm3033_vm0, 1, %v9075_v40  ;;  %vm962_vm11 = vcmp.eq.s32.totalorder %v4831_v37, 1  ;;  %vm965_vm12 = vcmp.eq.s32.totalorder %v4837_v54, 1  ;;  %vm964_vm13 = vcmp.eq.s32.totalorder %v4839_v55, 1  ;;  %v9092_v37 = vld [vmem:[#allocation2_spill] sm:$0xff]  ;;  %v4399_v54 = vld [vmem:[%s4509_s15 + $0x1e8] sm:$0xff] }
 0x37a   : > { %9080 = vst [vmem:[#allocation322_spill] sm:$0xff] %v6265_v6  ;;  %9081 = vst [vmem:[#allocation323_spill] sm:$0xff] %v6267_v34  ;;  %3386 = vperm.xlu1 %4082, %v3155_v14   ;;  %3383 = vperm.xlu0 %4081, %v3154_v17   ;;  %v6294_v14 = vsel %vm947_vm4, %v6092_v44, 0.0  ;;  %v6297_v17 = vsel %vm946_vm5, %v6092_v44, 0.0  ;;  %v6308_v34 = vsel %vm949_vm6, %v6092_v44, 0.0  ;;  %v6313_v6 = vsel %vm948_vm7, %v6092_v44, 0.0 }
 0x37b   : > { %vm959_vm4 = vcmp.eq.s32.totalorder %v4813_v59, 1  ;;  %vm958_vm5 = vcmp.eq.s32.totalorder %v4815_v62, 1  ;;  %vm961_vm6 = vcmp.eq.s32.totalorder %v4821_v12, 1  ;;  %vm960_vm7 = vcmp.eq.s32.totalorder %v4823_v13, 1  ;;  %v4397_v62 = vld [vmem:[%s4509_s15 + $0x1d8] sm:$0xff]  ;;  %v4398_v12 = vld [vmem:[%s4509_s15 + $0x1d0] sm:$0xff] }
 0x37c   : > { %v6363_v59 = vsel %vm956_vm3, %v6092_v44, 0.0  ;;  %vm3035_vm9 = vcmp.eq.s32.totalorder %v4397_v62, 3  ;;  %vm3034_vm10 = vcmp.eq.s32.totalorder %v4398_v12, 3  ;;  %v6374_v31 = vsel %vm961_vm6, %v6092_v44, 0.0  ;;  %v4400_v55 = vld [vmem:[%s4509_s15 + $0x1e0] sm:$0xff]  ;;  %v9097_v62 = vld [vmem:[#allocation4_spill] sm:$0xff] }
 0x37d   : > { %v6301_v25 = vpop.permute.xlu1 %2684  ;;  %v6303_v32 = vpop.permute.xlu0 %2681  ;;  %9087 = vst [vmem:[#allocation329_spill] sm:$0xff] %v6374_v31  ;;  %vm967_vm14 = vcmp.eq.s32.totalorder %v4845_v11, 1  ;;  %vm966_vm15 = vcmp.eq.s32.totalorder %v9092_v37, 1  ;;  %v3163_v13 = vsel %vm3035_vm9, 1, %v9075_v40  ;;  %v6400_v30 = vsel %vm962_vm11, %v6092_v44, 0.0  ;;  %v4403_v31 = vld [vmem:[%s4509_s15 + $0x208] sm:$0xff] }
 0x37e   : > { %9082 = vst [vmem:[#allocation324_spill] sm:$0xff] %v6301_v25  ;;  %9083 = vst [vmem:[#allocation325_spill] sm:$0xff] %v6303_v32  ;;  %3392 = vperm.xlu1 %4082, %v3157_v35   ;;  %3389 = vperm.xlu0 %4081, %v3156_v43   ;;  %v4396_v35 = vld [vmem:[%s4509_s15 + $0x1c0] sm:$0xff]  ;;  %v6384_v32 = vsel %vm960_vm7, %v6092_v44, 0.0  ;;  %v6389_v25 = vsel %vm963_vm8, %v6092_v44, 0.0  ;;  %vm968_vm3 = vcmp.eq.s32.totalorder %v9097_v62, 1 }
 0x37f   : > { %vm3032_vm1 = vcmp.eq.s32.totalorder %v4396_v35, 3  ;;  %9090 = vst [vmem:[#allocation332_spill] sm:$0xff] %v6384_v32  ;;  %9091 = vst [vmem:[#allocation333_spill] sm:$0xff] %v6389_v25  ;;  %v6420_v25 = vsel %vm967_vm14, %v6092_v44, 0.0  ;;  %v9104_v62 = vld [vmem:[#allocation7_spill] sm:$0xff]  ;;  %v1946_v11 = vsub.s32 1, %v6067_v2 }
 0x380   : > { %v3160_v48 = vsel %vm3032_vm1, 1, %v9075_v40  ;;  %9093 = vst [vmem:[#allocation2_spill] sm:$0xff] %v6400_v30  ;;  %vm3037_vm1 = vcmp.eq.s32.totalorder %v4399_v54, 3  ;;  %9101 = vst [vmem:[#allocation335_spill] sm:$0xff] %v6420_v25  ;;  %vm973_vm6 = vcmp.eq.s32.totalorder %v9104_v62, 1  ;;  %v9110_v54 = vld [vmem:[#allocation8_spill] sm:$0xff] }
 0x381   : > { %v6343_v43 = vpop.permute.xlu1 %2690  ;;  %v6345_v50 = vpop.permute.xlu0 %2687  ;;  %v6451_v62 = vsel %vm973_vm6, %v6092_v44, 0.0  ;;  %vm972_vm9 = vcmp.eq.s32.totalorder %v9110_v54, 1  ;;  %v6464_v54 = vrot.slane %v6083_v38, %v1946_v11  ;;  %v9118_v32 = vld [vmem:[#allocation79_spill] sm:$0xff] }
 0x382   : > { %9084 = vst [vmem:[#allocation326_spill] sm:$0xff] %v6343_v43  ;;  %9085 = vst [vmem:[#allocation327_spill] sm:$0xff] %v6345_v50  ;;  %3398 = vperm.xlu1 %4082, %v3159_v60   ;;  %3395 = vperm.xlu0 %4081, %v3158_v61   ;;  %v6360_v50 = vsel %vm957_vm2, %v6092_v44, 0.0  ;;  %v6368_v60 = vsel %vm959_vm4, %v6092_v44, 0.0  ;;  %v6371_v61 = vsel %vm958_vm5, %v6092_v44, 0.0  ;;  %vm3036_vm2 = vcmp.eq.s32.totalorder %v4400_v55, 3 }
 0x383   : > { %9086 = vst [vmem:[#allocation328_spill] sm:$0xff] %v6371_v61  ;;  %vm971_vm4 = vcmp.eq.s32.totalorder %v9098_v29, 1  ;;  %v3164_v37 = vsel %vm3036_vm2, 1, %v9075_v40  ;;  %9109 = vst [vmem:[#allocation339_spill] sm:$0xff] %v6451_v62  ;;  %v2846_v55 = vsub.s32 2, %v6067_v2  ;;  %v6471_v25 = vsel %vm972_vm9, %v6092_v44, 0.0 }
 0x384   : > { %vm1817_vm14 = vcmp.eq.s32.totalorder %v9118_v32, 1  ;;  %v4404_v61 = vld [vmem:[%s4509_s15 + $0x200] sm:$0xff] }
 0x385   : > { %v6377_v35 = vpop.permute.xlu1 %2696  ;;  %v6379_v43 = vpop.permute.xlu0 %2693  ;;  %v9127_v32 = vld [vmem:[#allocation82_spill] sm:$0xff] }
 0x386   : > { %9088 = vst [vmem:[#allocation330_spill] sm:$0xff] %v6377_v35  ;;  %9089 = vst [vmem:[#allocation331_spill] sm:$0xff] %v6379_v43  ;;  %3404 = vperm.xlu1 %4082, %v3161_v47   ;;  %3401 = vperm.xlu0 %4081, %v3160_v48   ;;  %v3162_v43 = vsel %vm3034_vm10, 1, %v9075_v40  ;;  %v9094_v35 = vld [vmem:[#allocation3_spill] sm:$0xff]  ;;  %v6406_v47 = vsel %vm965_vm12, %v6092_v44, 0.0  ;;  %v6409_v48 = vsel %vm964_vm13, %v6092_v44, 0.0 }
 0x387   : > { %vm969_vm0 = vcmp.eq.s32.totalorder %v9094_v35, 1  ;;  %9095 = vst [vmem:[#allocation3_spill] sm:$0xff] %v6406_v47  ;;  %9096 = vst [vmem:[#allocation334_spill] sm:$0xff] %v6409_v48  ;;  %v6425_v47 = vsel %vm966_vm15, %v6092_v44, 0.0  ;;  %v9103_v48 = vld [vmem:[#allocation6_spill] sm:$0xff]  ;;  %vm3041_vm15 = vcmp.eq.s32.totalorder %v4403_v31, 3 }
 0x388   : > { %9102 = vst [vmem:[#allocation336_spill] sm:$0xff] %v6425_v47  ;;  %vm970_vm5 = vcmp.eq.s32.totalorder %v9103_v48, 1  ;;  %v6432_v29 = vsel %vm969_vm0, %v6092_v44, 0.0  ;;  %v6443_v48 = vsel %vm971_vm4, %v6092_v44, 0.0  ;;  %v9114_v47 = vld [vmem:[#allocation10_spill] sm:$0xff]  ;;  %vm3040_vm0 = vcmp.eq.s32.totalorder %v4404_v61, 3 }
 0x389   : > { %v6413_v12 = vpop.permute.xlu1 %2702  ;;  %v6415_v30 = vpop.permute.xlu0 %2699  ;;  %9105 = vst [vmem:[#allocation6_spill] sm:$0xff] %v6432_v29  ;;  %9107 = vst [vmem:[#allocation337_spill] sm:$0xff] %v6443_v48  ;;  %v6448_v35 = vsel %vm970_vm5, %v6092_v44, 0.0  ;;  %v9113_v48 = vld [vmem:[#allocation9_spill] sm:$0xff]  ;;  %vm974_vm11 = vcmp.eq.s32.totalorder %v9114_v47, 1 }
 0x38a   : > { %9099 = vst [vmem:[#allocation4_spill] sm:$0xff] %v6413_v12  ;;  %9100 = vst [vmem:[#allocation5_spill] sm:$0xff] %v6415_v30  ;;  %3410 = vperm.xlu1 %4082, %v3163_v13   ;;  %3407 = vperm.xlu0 %4081, %v3162_v43   ;;  %v3165_v30 = vsel %vm3037_vm1, 1, %v9075_v40  ;;  %v6440_v12 = vsel %vm968_vm3, %v6092_v44, 0.0  ;;  %v4401_v43 = vld [vmem:[%s4509_s15 + $0x1f8] sm:$0xff]  ;;  %v4402_v13 = vld [vmem:[%s4509_s15 + $0x1f0] sm:$0xff] }
 0x38b   : > { %9106 = vst [vmem:[#allocation7_spill] sm:$0xff] %v6440_v12  ;;  %vm3039_vm7 = vcmp.eq.s32.totalorder %v4401_v43, 3  ;;  %vm3038_vm8 = vcmp.eq.s32.totalorder %v4402_v13, 3  ;;  %9108 = vst [vmem:[#allocation338_spill] sm:$0xff] %v6448_v35  ;;  %vm975_vm10 = vcmp.eq.s32.totalorder %v9113_v48, 1  ;;  %v9115_v13 = vld [vmem:[#allocation11_spill] sm:$0xff] }
 0x38c   : > { %vm977_vm12 = vcmp.eq.s32.totalorder %v9115_v13, 1  ;;  %v9116_v35 = vld [vmem:[#allocation12_spill] sm:$0xff]  ;;  %v3167_v62 = vsel %vm3039_vm7, 1, %v9075_v40  ;;  %9117 = vst [vmem:[#allocation9_spill] sm:$0xff] %v6471_v25  ;;  %v6484_v11 = vsel %vm974_vm11, %v6092_v44, 0.0  ;;  %vm1818_vm7 = vcmp.eq.s32.totalorder %v9127_v32, 1 }
 0x38d   : > { %v6455_v29 = vpop.permute.xlu1 %2708  ;;  %v6457_v12 = vpop.permute.xlu0 %2705  ;;  %vm976_vm13 = vcmp.eq.s32.totalorder %v9116_v35, 1  ;;  %9119 = vst [vmem:[#allocation10_spill] sm:$0xff] %v6484_v11  ;;  %v6497_v48 = vsel %vm977_vm12, %v6092_v44, 0.0  ;;  %v9125_v11 = vld [vmem:[#allocation208_spill] sm:$0xff]  ;;  %v3169_v35 = vsel %vm3041_vm15, 1, %v9075_v40  ;;  %v9128_v31 = vld [vmem:[#allocation209_spill] sm:$0xff] }
 0x38e   : > { %9111 = vst [vmem:[#allocation8_spill] sm:$0xff] %v6455_v29  ;;  %9112 = vst [vmem:[#allocation340_spill] sm:$0xff] %v6457_v12  ;;  %3416 = vperm.xlu1 %4082, %v3165_v30   ;;  %3413 = vperm.xlu0 %4081, %v3164_v37   ;;  %v3166_v29 = vsel %vm3038_vm8, 1, %v9075_v40  ;;  %v3746_v12 = vsub.s32 3, %v6067_v2  ;;  %v6479_v30 = vsel %vm975_vm10, %v6092_v44, 0.0  ;;  %v9120_v2 = vld [vmem:[#allocation80_spill] sm:$0xff]  ;;  %v6488_v37 = vrot.slane %v6083_v38, %v2846_v55 }
 0x38f   : > { %vm1816_vm1 = vcmp.eq.s32.totalorder %v9120_v2, 1  ;;  %v6502_v47 = vsel %vm976_vm13, %v6092_v44, 0.0  ;;  %v9124_v2 = vld [vmem:[#allocation207_spill] sm:$0xff]  ;;  %vm2716_vm3 = vcmp.eq.s32.totalorder %v9125_v11, 1  ;;  %v1949_v55 = vsel %vm1817_vm14, %v6464_v54, %v6124_v3 }
 0x390   : > { %9123 = vst [vmem:[#allocation79_spill] sm:$0xff] %v6502_v47  ;;  %vm2717_vm2 = vcmp.eq.s32.totalorder %v9124_v2, 1  ;;  %v6511_v13 = vrot.slane %v6083_v38, %v3746_v12  ;;  %v1948_v11 = vsel %vm1816_vm1, %v6464_v54, %v6112_v18  ;;  %v9126_v2 = vld [vmem:[#allocation81_spill] sm:$0xff]  ;;  %vm3876_vm8 = vcmask 818176   ;;  %v9129_v12 = vld [vmem:[#allocation210_spill] sm:$0xff] }
 0x391   : > { %v6490_v43 = vpop.permute.xlu1 %2714  ;;  %v6492_v25 = vpop.permute.xlu0 %2711  ;;  %vm1819_vm4 = vcmp.eq.s32.totalorder %v9126_v2, 1  ;;  %v2849_v38 = vsel %vm2717_vm2, %v6488_v37, %v1949_v55  ;;  %v2848_v3 = vsel %vm2716_vm3, %v6488_v37, %v1948_v11  ;;  %vm2719_vm9 = vcmp.eq.s32.totalorder %v9128_v31, 1 }
 0x392   : > { %9121 = vst [vmem:[#allocation11_spill] sm:$0xff] %v6490_v43  ;;  %9122 = vst [vmem:[#allocation12_spill] sm:$0xff] %v6492_v25  ;;  %3422 = vperm.xlu1 %4082, %v3167_v62   ;;  %3419 = vperm.xlu0 %4081, %v3166_v29   ;;  %v3168_v25 = vsel %vm3040_vm0, 1, %v9075_v40  ;;  %v4405_v29 = vld [vmem:[%s4509_s15 + $0x218] sm:$0xff]  ;;  %v4406_v62 = vld [vmem:[%s4509_s15 + $0x210] sm:$0xff]  ;;  %vm2718_vm10 = vcmp.eq.s32.totalorder %v9129_v12, 1  ;;  %v1951_v47 = vsel %vm1819_vm4, %v6464_v54, %v6115_v10 }
 0x393   : > { %vm3043_vm5 = vcmp.eq.s32.totalorder %v4405_v29, 3  ;;  %vm3042_vm6 = vcmp.eq.s32.totalorder %v4406_v62, 3  ;;  %v4408_v29 = vld [vmem:[%s4509_s15 + $0x220] sm:$0xff]  ;;  %v9130_v62 = vld [vmem:[#allocation83_spill] sm:$0xff]  ;;  %v2851_v10 = vsel %vm2719_vm9, %v6488_v37, %v1951_v47 }
 0x394   : > { %v3171_v43 = vsel %vm3043_vm5, 1, %v9075_v40  ;;  %v3170_v44 = vsel %vm3042_vm6, 1, %v9075_v40  ;;  %vm3044_vm14 = vcmp.eq.s32.totalorder %v4408_v29, 3  ;;  %vm1821_vm15 = vcmp.eq.s32.totalorder %v9130_v62, 1 }
 0x395   : > { %v3237_v18 = vpop.permute.xlu1 %3236  ;;  %v3234_v61 = vpop.permute.xlu0 %3233  ;;  %v3172_v12 = vsel %vm3044_vm14, 1, %v9075_v40 }
 0x396   : > { %vm3617_vm11 = vcmp.eq.s32.totalorder %v3237_v18, 1  ;;  %vm3616_vm12 = vcmp.eq.s32.totalorder %v3234_v61, 1  ;;  %3428 = vperm.xlu1 %4082, %v3169_v35   ;;  %3425 = vperm.xlu0 %4081, %v3168_v25   ;;  %v1950_v25 = vsel %vm1818_vm7, %v6464_v54, %v6107_v56  ;;  %v4407_v35 = vld [vmem:[%s4509_s15 + $0x228] sm:$0xff]  ;;  %v9133_v18 = vld [vmem:[#allocation212_spill] sm:$0xff] }
 0x397   : > { %v3749_v55 = vsel %vm3617_vm11, %v6511_v13, %v2849_v38  ;;  %v3748_v11 = vsel %vm3616_vm12, %v6511_v13, %v2848_v3  ;;  %vm3045_vm13 = vcmp.eq.s32.totalorder %v4407_v35, 3  ;;  %v9131_v38 = vld [vmem:[#allocation84_spill] sm:$0xff]  ;;  %v2850_v56 = vsel %vm2718_vm10, %v6488_v37, %v1950_v25  ;;  %v9132_v3 = vld [vmem:[#allocation211_spill] sm:$0xff]  ;;  %v9134_v25 = vld [vmem:[#allocation85_spill] sm:$0xff] }
 0x398   : > { %3878 = vst.msk [vmem:[%s6530_s20 + $0x8] sm:$0xff] %vm3876_vm8, %v3749_v55  ;;  %3877 = vst.msk [vmem:[%s6530_s20] sm:$0xff] %vm3876_vm8, %v3748_v11  ;;  %vm1820_vm0 = vcmp.eq.s32.totalorder %v9131_v38, 1  ;;  %vm2721_vm1 = vcmp.eq.s32.totalorder %v9132_v3, 1  ;;  %vm2720_vm2 = vcmp.eq.s32.totalorder %v9133_v18, 1  ;;  %v3173_v31 = vsel %vm3045_vm13, 1, %v9075_v40 }
 0x399   : > { %v3243_v2 = vpop.permute.xlu1 %3242  ;;  %v3240_v32 = vpop.permute.xlu0 %3239  ;;  %v1953_v55 = vsel %vm1821_vm15, %v6464_v54, %v6136_v49  ;;  %v4410_v11 = vld [vmem:[%s4509_s15 + $0x230] sm:$0xff]  ;;  %vm1823_vm7 = vcmp.eq.s32.totalorder %v9134_v25, 1  ;;  %v9135_v35 = vld [vmem:[#allocation86_spill] sm:$0xff]  ;;  %v9136_v38 = vld [vmem:[#allocation213_spill] sm:$0xff] }
 0x39a   : > { %vm3619_vm3 = vcmp.eq.s32.totalorder %v3243_v2, 1  ;;  %vm3618_vm4 = vcmp.eq.s32.totalorder %v3240_v32, 1  ;;  %3434 = vperm.xlu1 %4082, %v3171_v43   ;;  %3431 = vperm.xlu0 %4081, %v3170_v44   ;;  %v1952_v44 = vsel %vm1820_vm0, %v6464_v54, %v6139_v27  ;;  %v4409_v43 = vld [vmem:[%s4509_s15 + $0x238] sm:$0xff]  ;;  %vm3046_vm6 = vcmp.eq.s32.totalorder %v4410_v11, 3  ;;  %v9140_v11 = vld [vmem:[#allocation215_spill] sm:$0xff]  ;;  %v9141_v25 = vld [vmem:[#allocation216_spill] sm:$0xff] }
 0x39b   : > { %v3751_v47 = vsel %vm3619_vm3, %v6511_v13, %v2851_v10  ;;  %v3750_v61 = vsel %vm3618_vm4, %v6511_v13, %v2850_v56  ;;  %vm3047_vm5 = vcmp.eq.s32.totalorder %v4409_v43, 3  ;;  %vm1822_vm9 = vcmp.eq.s32.totalorder %v9135_v35, 1  ;;  %v9137_v10 = vld [vmem:[#allocation214_spill] sm:$0xff] }
 0x39c   : > { %3880 = vst.msk [vmem:[%s6530_s20 + $0x18] sm:$0xff] %vm3876_vm8, %v3751_v47  ;;  %3879 = vst.msk [vmem:[%s6530_s20 + $0x10] sm:$0xff] %vm3876_vm8, %v3750_v61  ;;  %v2853_v49 = vsel %vm2721_vm1, %v6488_v37, %v1953_v55  ;;  %v2852_v27 = vsel %vm2720_vm2, %v6488_v37, %v1952_v44  ;;  %vm2723_vm10 = vcmp.eq.s32.totalorder %v9136_v38, 1  ;;  %vm2722_vm11 = vcmp.eq.s32.totalorder %v9137_v10, 1  ;;  %v4411_v61 = vld [vmem:[%s4509_s15 + $0x248] sm:$0xff]  ;;  %v9139_v55 = vld [vmem:[#allocation88_spill] sm:$0xff] }
 0x39d   : > { %v3249_v29 = vpop.permute.xlu1 %3248  ;;  %v3246_v62 = vpop.permute.xlu0 %3245  ;;  %v3175_v32 = vsel %vm3047_vm5, 1, %v9075_v40  ;;  %v3174_v3 = vsel %vm3046_vm6, 1, %v9075_v40  ;;  %v1955_v18 = vsel %vm1823_vm7, %v6464_v54, %v6144_v4  ;;  %v1954_v47 = vsel %vm1822_vm9, %v6464_v54, %v6147_v23  ;;  %v4413_v10 = vld [vmem:[%s4509_s15 + $0x258] sm:$0xff] }
 0x39e   : > { %vm3621_vm12 = vcmp.eq.s32.totalorder %v3249_v29, 1  ;;  %vm3620_vm13 = vcmp.eq.s32.totalorder %v3246_v62, 1  ;;  %3440 = vperm.xlu1 %4082, %v3173_v31   ;;  %3437 = vperm.xlu0 %4081, %v3172_v12   ;;  %vm3049_vm14 = vcmp.eq.s32.totalorder %v4411_v61, 3  ;;  %v4412_v31 = vld [vmem:[%s4509_s15 + $0x240] sm:$0xff]  ;;  %v9138_v12 = vld [vmem:[#allocation87_spill] sm:$0xff]  ;;  %vm1824_vm1 = vcmp.eq.s32.totalorder %v9139_v55, 1 }
 0x39f   : > { %v3753_v56 = vsel %vm3621_vm12, %v6511_v13, %v2853_v49  ;;  %v3752_v2 = vsel %vm3620_vm13, %v6511_v13, %v2852_v27  ;;  %vm3048_vm15 = vcmp.eq.s32.totalorder %v4412_v31, 3  ;;  %vm1825_vm0 = vcmp.eq.s32.totalorder %v9138_v12, 1  ;;  %v9145_v61 = vld [vmem:[#allocation218_spill] sm:$0xff] }
 0x3a0   : > { %3882 = vst.msk [vmem:[%s6530_s20 + $0x28] sm:$0xff] %vm3876_vm8, %v3753_v56  ;;  %3881 = vst.msk [vmem:[%s6530_s20 + $0x20] sm:$0xff] %vm3876_vm8, %v3752_v2  ;;  %v2855_v4 = vsel %vm2723_vm10, %v6488_v37, %v1955_v18  ;;  %v2854_v23 = vsel %vm2722_vm11, %v6488_v37, %v1954_v47  ;;  %vm2725_vm2 = vcmp.eq.s32.totalorder %v9140_v11, 1  ;;  %vm2724_vm3 = vcmp.eq.s32.totalorder %v9141_v25, 1  ;;  %v4414_v56 = vld [vmem:[%s4509_s15 + $0x250] sm:$0xff]  ;;  %v9142_v2 = vld [vmem:[#allocation89_spill] sm:$0xff] }
 0x3a1   : > { %v3255_v44 = vpop.permute.xlu1 %3254  ;;  %v3252_v43 = vpop.permute.xlu0 %3251  ;;  %v3177_v27 = vsel %vm3049_vm14, 1, %v9075_v40  ;;  %v3176_v29 = vsel %vm3048_vm15, 1, %v9075_v40  ;;  %v1957_v62 = vsel %vm1825_vm0, %v6464_v54, %v6150_v9  ;;  %v1956_v38 = vsel %vm1824_vm1, %v6464_v54, %v6160_v16  ;;  %v9144_v47 = vld [vmem:[#allocation217_spill] sm:$0xff]  ;;  %v4416_v11 = vld [vmem:[%s4509_s15 + $0x260] sm:$0xff]  ;;  %v9146_v25 = vld [vmem:[#allocation91_spill] sm:$0xff] }
 0x3a2   : > { %vm3623_vm4 = vcmp.eq.s32.totalorder %v3255_v44, 1  ;;  %vm3622_vm5 = vcmp.eq.s32.totalorder %v3252_v43, 1  ;;  %3446 = vperm.xlu1 %4082, %v3175_v32   ;;  %3443 = vperm.xlu0 %4081, %v3174_v3   ;;  %vm3051_vm6 = vcmp.eq.s32.totalorder %v4413_v10, 3  ;;  %vm3050_vm7 = vcmp.eq.s32.totalorder %v4414_v56, 3  ;;  %v9143_v32 = vld [vmem:[#allocation90_spill] sm:$0xff]  ;;  %v4415_v43 = vld [vmem:[%s4509_s15 + $0x268] sm:$0xff] }
 0x3a3   : > { %v3755_v35 = vsel %vm3623_vm4, %v6511_v13, %v2855_v4  ;;  %v3754_v49 = vsel %vm3622_vm5, %v6511_v13, %v2854_v23  ;;  %vm1827_vm9 = vcmp.eq.s32.totalorder %v9142_v2, 1  ;;  %vm1826_vm10 = vcmp.eq.s32.totalorder %v9143_v32, 1 }
 0x3a4   : > { %3884 = vst.msk [vmem:[%s6530_s20 + $0x38] sm:$0xff] %vm3876_vm8, %v3755_v35  ;;  %3883 = vst.msk [vmem:[%s6530_s20 + $0x30] sm:$0xff] %vm3876_vm8, %v3754_v49  ;;  %v2857_v9 = vsel %vm2725_vm2, %v6488_v37, %v1957_v62  ;;  %v2856_v16 = vsel %vm2724_vm3, %v6488_v37, %v1956_v38  ;;  %vm2727_vm11 = vcmp.eq.s32.totalorder %v9144_v47, 1  ;;  %vm2726_vm12 = vcmp.eq.s32.totalorder %v9145_v61, 1  ;;  %v9147_v35 = vld [vmem:[#allocation92_spill] sm:$0xff]  ;;  %v9151_v47 = vld [vmem:[#allocation94_spill] sm:$0xff] }
 0x3a5   : > { %v3261_v3 = vpop.permute.xlu1 %3260  ;;  %v3258_v18 = vpop.permute.xlu0 %3257  ;;  %v3179_v55 = vsel %vm3051_vm6, 1, %v9075_v40  ;;  %v3178_v4 = vsel %vm3050_vm7, 1, %v9075_v40  ;;  %v1959_v23 = vsel %vm1827_vm9, %v6464_v54, %v6165_v15  ;;  %v1958_v44 = vsel %vm1826_vm10, %v6464_v54, %v6176_v39  ;;  %v9149_v62 = vld [vmem:[#allocation220_spill] sm:$0xff] }
 0x3a6   : > { %vm3625_vm13 = vcmp.eq.s32.totalorder %v3261_v3, 1  ;;  %vm3624_vm14 = vcmp.eq.s32.totalorder %v3258_v18, 1  ;;  %3452 = vperm.xlu1 %4082, %v3177_v27   ;;  %3449 = vperm.xlu0 %4081, %v3176_v29   ;;  %vm3053_vm15 = vcmp.eq.s32.totalorder %v4415_v43, 3  ;;  %vm3052_vm0 = vcmp.eq.s32.totalorder %v4416_v11, 3  ;;  %v9148_v29 = vld [vmem:[#allocation219_spill] sm:$0xff]  ;;  %v4418_v3 = vld [vmem:[%s4509_s15 + $0x270] sm:$0xff] }
 0x3a7   : > { %v3757_v31 = vsel %vm3625_vm13, %v6511_v13, %v2857_v9  ;;  %v3756_v12 = vsel %vm3624_vm14, %v6511_v13, %v2856_v16  ;;  %vm1829_vm1 = vcmp.eq.s32.totalorder %v9146_v25, 1  ;;  %vm1828_vm2 = vcmp.eq.s32.totalorder %v9147_v35, 1  ;;  %v4417_v16 = vld [vmem:[%s4509_s15 + $0x278] sm:$0xff]  ;;  %v4419_v35 = vld [vmem:[%s4509_s15 + $0x288] sm:$0xff] }
 0x3a8   : > { %3886 = vst.msk [vmem:[%s6530_s20 + $0x48] sm:$0xff] %vm3876_vm8, %v3757_v31  ;;  %3885 = vst.msk [vmem:[%s6530_s20 + $0x40] sm:$0xff] %vm3876_vm8, %v3756_v12  ;;  %v2859_v15 = vsel %vm2727_vm11, %v6488_v37, %v1959_v23  ;;  %v2858_v39 = vsel %vm2726_vm12, %v6488_v37, %v1958_v44  ;;  %vm2729_vm3 = vcmp.eq.s32.totalorder %v9148_v29, 1  ;;  %vm2728_vm4 = vcmp.eq.s32.totalorder %v9149_v62, 1  ;;  %v9150_v18 = vld [vmem:[#allocation93_spill] sm:$0xff]  ;;  %v9156_v62 = vld [vmem:[#allocation223_spill] sm:$0xff] }
 0x3a9   : > { %v3267_v49 = vpop.permute.xlu1 %3266  ;;  %v3264_v27 = vpop.permute.xlu0 %3263  ;;  %v3181_v56 = vsel %vm3053_vm15, 1, %v9075_v40  ;;  %v3180_v2 = vsel %vm3052_vm0, 1, %v9075_v40  ;;  %v1961_v32 = vsel %vm1829_vm1, %v6464_v54, %v6182_v21  ;;  %v1960_v9 = vsel %vm1828_vm2, %v6464_v54, %v6185_v22  ;;  %v9152_v12 = vld [vmem:[#allocation221_spill] sm:$0xff] }
 0x3aa   : > { %vm3627_vm5 = vcmp.eq.s32.totalorder %v3267_v49, 1  ;;  %vm3626_vm6 = vcmp.eq.s32.totalorder %v3264_v27, 1  ;;  %3458 = vperm.xlu1 %4082, %v3179_v55   ;;  %3455 = vperm.xlu0 %4081, %v3178_v4   ;;  %vm3055_vm7 = vcmp.eq.s32.totalorder %v4417_v16, 3  ;;  %vm3054_vm9 = vcmp.eq.s32.totalorder %v4418_v3, 3  ;;  %v9153_v55 = vld [vmem:[#allocation222_spill] sm:$0xff]  ;;  %v9155_v49 = vld [vmem:[#allocation96_spill] sm:$0xff] }
 0x3ab   : > { %v3759_v38 = vsel %vm3627_vm5, %v6511_v13, %v2859_v15  ;;  %v3758_v10 = vsel %vm3626_vm6, %v6511_v13, %v2858_v39  ;;  %vm1831_vm10 = vcmp.eq.s32.totalorder %v9150_v18, 1  ;;  %vm1830_vm11 = vcmp.eq.s32.totalorder %v9151_v47, 1  ;;  %v4420_v15 = vld [vmem:[%s4509_s15 + $0x280] sm:$0xff]  ;;  %v9154_v39 = vld [vmem:[#allocation95_spill] sm:$0xff]  ;;  %v4421_v3 = vld [vmem:[%s4509_s15 + $0x298] sm:$0xff] }
 0x3ac   : > { %3888 = vst.msk [vmem:[%s6530_s20 + $0x58] sm:$0xff] %vm3876_vm8, %v3759_v38  ;;  %3887 = vst.msk [vmem:[%s6530_s20 + $0x50] sm:$0xff] %vm3876_vm8, %v3758_v10  ;;  %v2861_v21 = vsel %vm2729_vm3, %v6488_v37, %v1961_v32  ;;  %v2860_v22 = vsel %vm2728_vm4, %v6488_v37, %v1960_v9  ;;  %vm2731_vm12 = vcmp.eq.s32.totalorder %v9152_v12, 1  ;;  %vm2730_vm13 = vcmp.eq.s32.totalorder %v9153_v55, 1  ;;  %v9157_v38 = vld [vmem:[#allocation224_spill] sm:$0xff]  ;;  %v9158_v47 = vld [vmem:[#allocation97_spill] sm:$0xff] }
 0x3ad   : > { %v3273_v61 = vpop.permute.xlu1 %3272  ;;  %v3270_v31 = vpop.permute.xlu0 %3269  ;;  %v3183_v44 = vsel %vm3055_vm7, 1, %v9075_v40  ;;  %v3182_v43 = vsel %vm3054_vm9, 1, %v9075_v40  ;;  %v1963_v11 = vsel %vm1831_vm10, %v6464_v54, %v6196_v26  ;;  %v1962_v25 = vsel %vm1830_vm11, %v6464_v54, %v6201_v41  ;;  %v4422_v18 = vld [vmem:[%s4509_s15 + $0x290] sm:$0xff]  ;;  %v9161_v12 = vld [vmem:[#allocation226_spill] sm:$0xff] }
 0x3ae   : > { %vm3629_vm14 = vcmp.eq.s32.totalorder %v3273_v61, 1  ;;  %vm3628_vm15 = vcmp.eq.s32.totalorder %v3270_v31, 1  ;;  %3464 = vperm.xlu1 %4082, %v3181_v56   ;;  %3461 = vperm.xlu0 %4081, %v3180_v2   ;;  %vm3057_vm0 = vcmp.eq.s32.totalorder %v4419_v35, 3  ;;  %vm3056_vm1 = vcmp.eq.s32.totalorder %v4420_v15, 3  ;;  %v9160_v31 = vld [vmem:[#allocation225_spill] sm:$0xff]  ;;  %v4424_v35 = vld [vmem:[%s4509_s15 + $0x2a0] sm:$0xff] }
 0x3af   : > { %v3761_v4 = vsel %vm3629_vm14, %v6511_v13, %v2861_v21  ;;  %v3760_v23 = vsel %vm3628_vm15, %v6511_v13, %v2860_v22  ;;  %vm1833_vm2 = vcmp.eq.s32.totalorder %v9154_v39, 1  ;;  %vm1832_vm3 = vcmp.eq.s32.totalorder %v9155_v49, 1  ;;  %v9159_v21 = vld [vmem:[#allocation98_spill] sm:$0xff]  ;;  %v9162_v15 = vld [vmem:[#allocation99_spill] sm:$0xff]  ;;  %v9163_v39 = vld [vmem:[#allocation100_spill] sm:$0xff] }
 0x3b0   : > { %3890 = vst.msk [vmem:[%s6530_s20 + $0x68] sm:$0xff] %vm3876_vm8, %v3761_v4  ;;  %3889 = vst.msk [vmem:[%s6530_s20 + $0x60] sm:$0xff] %vm3876_vm8, %v3760_v23  ;;  %v2863_v26 = vsel %vm2731_vm12, %v6488_v37, %v1963_v11  ;;  %v2862_v41 = vsel %vm2730_vm13, %v6488_v37, %v1962_v25  ;;  %vm2733_vm4 = vcmp.eq.s32.totalorder %v9156_v62, 1  ;;  %vm2732_vm5 = vcmp.eq.s32.totalorder %v9157_v38, 1  ;;  %v4423_v25 = vld [vmem:[%s4509_s15 + $0x2a8] sm:$0xff] }
 0x3b1   : > { %v3279_v27 = vpop.permute.xlu1 %3278  ;;  %v3276_v29 = vpop.permute.xlu0 %3275  ;;  %v3185_v2 = vsel %vm3057_vm0, 1, %v9075_v40  ;;  %v3184_v32 = vsel %vm3056_vm1, 1, %v9075_v40  ;;  %v1965_v9 = vsel %vm1833_vm2, %v6464_v54, %v6208_v58  ;;  %v1964_v16 = vsel %vm1832_vm3, %v6464_v54, %v6216_v63 }
 0x3b2   : > { %vm3631_vm6 = vcmp.eq.s32.totalorder %v3279_v27, 1  ;;  %vm3630_vm7 = vcmp.eq.s32.totalorder %v3276_v29, 1  ;;  %3470 = vperm.xlu1 %4082, %v3183_v44   ;;  %3467 = vperm.xlu0 %4081, %v3182_v43   ;;  %vm3059_vm9 = vcmp.eq.s32.totalorder %v4421_v3, 3  ;;  %vm3058_vm10 = vcmp.eq.s32.totalorder %v4422_v18, 3  ;;  %v9165_v27 = vld [vmem:[#allocation228_spill] sm:$0xff]  ;;  %v9167_v3 = vld [vmem:[#allocation102_spill] sm:$0xff] }
 0x3b3   : > { %v3763_v10 = vsel %vm3631_vm6, %v6511_v13, %v2863_v26  ;;  %v3762_v56 = vsel %vm3630_vm7, %v6511_v13, %v2862_v41  ;;  %vm1835_vm11 = vcmp.eq.s32.totalorder %v9158_v47, 1  ;;  %vm1834_vm12 = vcmp.eq.s32.totalorder %v9159_v21, 1  ;;  %v9164_v41 = vld [vmem:[#allocation227_spill] sm:$0xff]  ;;  %v9168_v21 = vld [vmem:[#allocation229_spill] sm:$0xff] }
 0x3b4   : > { %3892 = vst.msk [vmem:[%s6530_s20 + $0x78] sm:$0xff] %vm3876_vm8, %v3763_v10  ;;  %3891 = vst.msk [vmem:[%s6530_s20 + $0x70] sm:$0xff] %vm3876_vm8, %v3762_v56  ;;  %v2865_v58 = vsel %vm2733_vm4, %v6488_v37, %v1965_v9  ;;  %v2864_v63 = vsel %vm2732_vm5, %v6488_v37, %v1964_v16  ;;  %vm2735_vm13 = vcmp.eq.s32.totalorder %v9160_v31, 1  ;;  %vm2734_vm14 = vcmp.eq.s32.totalorder %v9161_v12, 1  ;;  %v4426_v9 = vld [vmem:[%s4509_s15 + $0x2b0] sm:$0xff]  ;;  %v9166_v16 = vld [vmem:[#allocation101_spill] sm:$0xff] }
 0x3b5   : > { %v3285_v22 = vpop.permute.xlu1 %3284  ;;  %v3282_v61 = vpop.permute.xlu0 %3281  ;;  %v3187_v23 = vsel %vm3059_vm9, 1, %v9075_v40  ;;  %v3186_v44 = vsel %vm3058_vm10, 1, %v9075_v40  ;;  %v1967_v43 = vsel %vm1835_vm11, %v6464_v54, %v6219_v1  ;;  %v1966_v11 = vsel %vm1834_vm12, %v6464_v54, %v6224_v57 }
 0x3b6   : > { %vm3633_vm15 = vcmp.eq.s32.totalorder %v3285_v22, 1  ;;  %vm3632_vm0 = vcmp.eq.s32.totalorder %v3282_v61, 1  ;;  %3476 = vperm.xlu1 %4082, %v3185_v2   ;;  %3473 = vperm.xlu0 %4081, %v3184_v32   ;;  %vm3061_vm1 = vcmp.eq.s32.totalorder %v4423_v25, 3  ;;  %vm3060_vm2 = vcmp.eq.s32.totalorder %v4424_v35, 3  ;;  %v4425_v32 = vld [vmem:[%s4509_s15 + $0x2b8] sm:$0xff]  ;;  %v9172_v35 = vld [vmem:[#allocation231_spill] sm:$0xff] }
 0x3b7   : > { %v3765_v55 = vsel %vm3633_vm15, %v6511_v13, %v2865_v58  ;;  %v3764_v4 = vsel %vm3632_vm0, %v6511_v13, %v2864_v63  ;;  %vm1837_vm3 = vcmp.eq.s32.totalorder %v9162_v15, 1  ;;  %vm1836_vm4 = vcmp.eq.s32.totalorder %v9163_v39, 1  ;;  %v9169_v58 = vld [vmem:[#allocation230_spill] sm:$0xff]  ;;  %v9173_v15 = vld [vmem:[#allocation232_spill] sm:$0xff] }
 0x3b8   : > { %3894 = vst.msk [vmem:[%s6530_s20 + $0x88] sm:$0xff] %vm3876_vm8, %v3765_v55  ;;  %3893 = vst.msk [vmem:[%s6530_s20 + $0x80] sm:$0xff] %vm3876_vm8, %v3764_v4  ;;  %v2867_v1 = vsel %vm2735_vm13, %v6488_v37, %v1967_v43  ;;  %v2866_v57 = vsel %vm2734_vm14, %v6488_v37, %v1966_v11  ;;  %vm2737_vm5 = vcmp.eq.s32.totalorder %v9164_v41, 1  ;;  %vm2736_vm6 = vcmp.eq.s32.totalorder %v9165_v27, 1  ;;  %v4427_v4 = vld [vmem:[%s4509_s15 + $0x2c8] sm:$0xff]  ;;  %v9171_v43 = vld [vmem:[#allocation104_spill] sm:$0xff] }
 0x3b9   : > { %v3291_v49 = vpop.permute.xlu1 %3290  ;;  %v3288_v26 = vpop.permute.xlu0 %3287  ;;  %v3189_v38 = vsel %vm3061_vm1, 1, %v9075_v40  ;;  %v3188_v10 = vsel %vm3060_vm2, 1, %v9075_v40  ;;  %v1969_v56 = vsel %vm1837_vm3, %v6464_v54, %v6227_v7  ;;  %v1968_v2 = vsel %vm1836_vm4, %v6464_v54, %v6236_v46  ;;  %v4429_v27 = vld [vmem:[%s4509_s15 + $0x2d8] sm:$0xff] }
 0x3ba   : > { %vm3635_vm7 = vcmp.eq.s32.totalorder %v3291_v49, 1  ;;  %vm3634_vm9 = vcmp.eq.s32.totalorder %v3288_v26, 1  ;;  %3482 = vperm.xlu1 %4082, %v3187_v23   ;;  %3479 = vperm.xlu0 %4081, %v3186_v44   ;;  %vm3063_vm10 = vcmp.eq.s32.totalorder %v4425_v32, 3  ;;  %vm3062_vm11 = vcmp.eq.s32.totalorder %v4426_v9, 3  ;;  %v4428_v23 = vld [vmem:[%s4509_s15 + $0x2c0] sm:$0xff]  ;;  %v9170_v44 = vld [vmem:[#allocation103_spill] sm:$0xff] }
 0x3bb   : > { %v3767_v29 = vsel %vm3635_vm7, %v6511_v13, %v2867_v1  ;;  %v3766_v62 = vsel %vm3634_vm9, %v6511_v13, %v2866_v57  ;;  %vm1839_vm12 = vcmp.eq.s32.totalorder %v9166_v16, 1  ;;  %vm1838_vm13 = vcmp.eq.s32.totalorder %v9167_v3, 1  ;;  %v9177_v32 = vld [vmem:[#allocation234_spill] sm:$0xff] }
 0x3bc   : > { %3896 = vst.msk [vmem:[%s6530_s20 + $0x98] sm:$0xff] %vm3876_vm8, %v3767_v29  ;;  %3895 = vst.msk [vmem:[%s6530_s20 + $0x90] sm:$0xff] %vm3876_vm8, %v3766_v62  ;;  %v2869_v7 = vsel %vm2737_vm5, %v6488_v37, %v1969_v56  ;;  %v2868_v46 = vsel %vm2736_vm6, %v6488_v37, %v1968_v2  ;;  %vm2739_vm14 = vcmp.eq.s32.totalorder %v9168_v21, 1  ;;  %vm2738_vm15 = vcmp.eq.s32.totalorder %v9169_v58, 1  ;;  %v4430_v29 = vld [vmem:[%s4509_s15 + $0x2d0] sm:$0xff]  ;;  %v9174_v62 = vld [vmem:[#allocation105_spill] sm:$0xff] }
 0x3bd   : > { %v3297_v18 = vpop.permute.xlu1 %3296  ;;  %v3294_v47 = vpop.permute.xlu0 %3293  ;;  %v3191_v61 = vsel %vm3063_vm10, 1, %v9075_v40  ;;  %v3190_v31 = vsel %vm3062_vm11, 1, %v9075_v40  ;;  %v1971_v12 = vsel %vm1839_vm12, %v6464_v54, %v6248_v45  ;;  %v1970_v55 = vsel %vm1838_vm13, %v6464_v54, %v6251_v24  ;;  %v9176_v2 = vld [vmem:[#allocation233_spill] sm:$0xff]  ;;  %v4432_v21 = vld [vmem:[%s4509_s15 + $0x2e0] sm:$0xff]  ;;  %v9178_v58 = vld [vmem:[#allocation107_spill] sm:$0xff] }
 0x3be   : > { %vm3637_vm0 = vcmp.eq.s32.totalorder %v3297_v18, 1  ;;  %vm3636_vm1 = vcmp.eq.s32.totalorder %v3294_v47, 1  ;;  %3488 = vperm.xlu1 %4082, %v3189_v38   ;;  %3485 = vperm.xlu0 %4081, %v3188_v10   ;;  %vm3065_vm2 = vcmp.eq.s32.totalorder %v4427_v4, 3  ;;  %vm3064_vm3 = vcmp.eq.s32.totalorder %v4428_v23, 3  ;;  %v9175_v38 = vld [vmem:[#allocation106_spill] sm:$0xff]  ;;  %v4431_v47 = vld [vmem:[%s4509_s15 + $0x2e8] sm:$0xff] }
 0x3bf   : > { %v3769_v63 = vsel %vm3637_vm0, %v6511_v13, %v2869_v7  ;;  %v3768_v22 = vsel %vm3636_vm1, %v6511_v13, %v2868_v46  ;;  %vm1841_vm4 = vcmp.eq.s32.totalorder %v9170_v44, 1  ;;  %vm1840_vm5 = vcmp.eq.s32.totalorder %v9171_v43, 1 }
 0x3c0   : > { %3898 = vst.msk [vmem:[%s6530_s20 + $0xa8] sm:$0xff] %vm3876_vm8, %v3769_v63  ;;  %3897 = vst.msk [vmem:[%s6530_s20 + $0xa0] sm:$0xff] %vm3876_vm8, %v3768_v22  ;;  %v2871_v45 = vsel %vm2739_vm14, %v6488_v37, %v1971_v12  ;;  %v2870_v24 = vsel %vm2738_vm15, %v6488_v37, %v1970_v55  ;;  %vm2741_vm6 = vcmp.eq.s32.totalorder %v9172_v35, 1  ;;  %vm2740_vm7 = vcmp.eq.s32.totalorder %v9173_v15, 1  ;;  %v9179_v63 = vld [vmem:[#allocation108_spill] sm:$0xff]  ;;  %v9183_v35 = vld [vmem:[#allocation110_spill] sm:$0xff] }
 0x3c1   : > { %v3303_v11 = vpop.permute.xlu1 %3302  ;;  %v3300_v25 = vpop.permute.xlu0 %3299  ;;  %v3193_v57 = vsel %vm3065_vm2, 1, %v9075_v40  ;;  %v3192_v49 = vsel %vm3064_vm3, 1, %v9075_v40  ;;  %v1973_v26 = vsel %vm1841_vm4, %v6464_v54, %v6256_v51  ;;  %v1972_v41 = vsel %vm1840_vm5, %v6464_v54, %v6259_v52  ;;  %v9181_v12 = vld [vmem:[#allocation236_spill] sm:$0xff] }
 0x3c2   : > { %vm3639_vm9 = vcmp.eq.s32.totalorder %v3303_v11, 1  ;;  %vm3638_vm10 = vcmp.eq.s32.totalorder %v3300_v25, 1  ;;  %3494 = vperm.xlu1 %4082, %v3191_v61   ;;  %3491 = vperm.xlu0 %4081, %v3190_v31   ;;  %vm3067_vm11 = vcmp.eq.s32.totalorder %v4429_v27, 3  ;;  %vm3066_vm12 = vcmp.eq.s32.totalorder %v4430_v29, 3  ;;  %v9180_v31 = vld [vmem:[#allocation235_spill] sm:$0xff]  ;;  %v4434_v11 = vld [vmem:[%s4509_s15 + $0x2f0] sm:$0xff] }
 0x3c3   : > { %v3771_v39 = vsel %vm3639_vm9, %v6511_v13, %v2871_v45  ;;  %v3770_v1 = vsel %vm3638_vm10, %v6511_v13, %v2870_v24  ;;  %vm1843_vm13 = vcmp.eq.s32.totalorder %v9174_v62, 1  ;;  %vm1842_vm14 = vcmp.eq.s32.totalorder %v9175_v38, 1  ;;  %v4433_v24 = vld [vmem:[%s4509_s15 + $0x2f8] sm:$0xff]  ;;  %v4435_v38 = vld [vmem:[%s4509_s15 + $0x308] sm:$0xff] }
 0x3c4   : > { %3900 = vst.msk [vmem:[%s6530_s20 + $0xb8] sm:$0xff] %vm3876_vm8, %v3771_v39  ;;  %3899 = vst.msk [vmem:[%s6530_s20 + $0xb0] sm:$0xff] %vm3876_vm8, %v3770_v1  ;;  %v2873_v51 = vsel %vm2741_vm6, %v6488_v37, %v1973_v26  ;;  %v2872_v52 = vsel %vm2740_vm7, %v6488_v37, %v1972_v41  ;;  %vm2743_vm15 = vcmp.eq.s32.totalorder %v9176_v2, 1  ;;  %vm2742_vm0 = vcmp.eq.s32.totalorder %v9177_v32, 1  ;;  %v9182_v25 = vld [vmem:[#allocation109_spill] sm:$0xff]  ;;  %v9188_v32 = vld [vmem:[#allocation239_spill] sm:$0xff] }
 0x3c5   : > { %v3309_v10 = vpop.permute.xlu1 %3308  ;;  %v3306_v56 = vpop.permute.xlu0 %3305  ;;  %v3195_v3 = vsel %vm3067_vm11, 1, %v9075_v40  ;;  %v3194_v7 = vsel %vm3066_vm12, 1, %v9075_v40  ;;  %v1975_v46 = vsel %vm1843_vm13, %v6464_v54, %v6262_v0  ;;  %v1974_v18 = vsel %vm1842_vm14, %v6464_v54, %v6272_v33  ;;  %v9184_v1 = vld [vmem:[#allocation237_spill] sm:$0xff] }
 0x3c6   : > { %vm3641_vm1 = vcmp.eq.s32.totalorder %v3309_v10, 1  ;;  %vm3640_vm2 = vcmp.eq.s32.totalorder %v3306_v56, 1  ;;  %3500 = vperm.xlu1 %4082, %v3193_v57   ;;  %3497 = vperm.xlu0 %4081, %v3192_v49   ;;  %vm3069_vm3 = vcmp.eq.s32.totalorder %v4431_v47, 3  ;;  %vm3068_vm4 = vcmp.eq.s32.totalorder %v4432_v21, 3  ;;  %v9185_v57 = vld [vmem:[#allocation238_spill] sm:$0xff]  ;;  %v9187_v10 = vld [vmem:[#allocation112_spill] sm:$0xff] }
 0x3c7   : > { %v3773_v9 = vsel %vm3641_vm1, %v6511_v13, %v2873_v51  ;;  %v3772_v16 = vsel %vm3640_vm2, %v6511_v13, %v2872_v52  ;;  %vm1845_vm5 = vcmp.eq.s32.totalorder %v9178_v58, 1  ;;  %vm1844_vm6 = vcmp.eq.s32.totalorder %v9179_v63, 1  ;;  %v4436_v51 = vld [vmem:[%s4509_s15 + $0x300] sm:$0xff]  ;;  %v9186_v52 = vld [vmem:[#allocation111_spill] sm:$0xff]  ;;  %v4437_v21 = vld [vmem:[%s4509_s15 + $0x318] sm:$0xff] }
 0x3c8   : > { %3902 = vst.msk [vmem:[%s6530_s20 + $0xc8] sm:$0xff] %vm3876_vm8, %v3773_v9  ;;  %3901 = vst.msk [vmem:[%s6530_s20 + $0xc0] sm:$0xff] %vm3876_vm8, %v3772_v16  ;;  %v2875_v0 = vsel %vm2743_vm15, %v6488_v37, %v1975_v46  ;;  %v2874_v33 = vsel %vm2742_vm0, %v6488_v37, %v1974_v18  ;;  %vm2745_vm7 = vcmp.eq.s32.totalorder %v9180_v31, 1  ;;  %vm2744_vm9 = vcmp.eq.s32.totalorder %v9181_v12, 1  ;;  %v9189_v9 = vld [vmem:[#allocation240_spill] sm:$0xff]  ;;  %v9190_v63 = vld [vmem:[#allocation113_spill] sm:$0xff] }
 0x3c9   : > { %v3315_v22 = vpop.permute.xlu1 %3314  ;;  %v3312_v61 = vpop.permute.xlu0 %3311  ;;  %v3197_v23 = vsel %vm3069_vm3, 1, %v9075_v40  ;;  %v3196_v44 = vsel %vm3068_vm4, 1, %v9075_v40  ;;  %v1977_v43 = vsel %vm1845_vm5, %v6464_v54, %v6277_v28  ;;  %v1976_v45 = vsel %vm1844_vm6, %v6464_v54, %v6288_v42  ;;  %v4438_v58 = vld [vmem:[%s4509_s15 + $0x310] sm:$0xff]  ;;  %v9193_v31 = vld [vmem:[#allocation242_spill] sm:$0xff] }
 0x3ca   : > { %vm3643_vm10 = vcmp.eq.s32.totalorder %v3315_v22, 1  ;;  %vm3642_vm11 = vcmp.eq.s32.totalorder %v3312_v61, 1  ;;  %3506 = vperm.xlu1 %4082, %v3195_v3   ;;  %3503 = vperm.xlu0 %4081, %v3194_v7   ;;  %vm3071_vm12 = vcmp.eq.s32.totalorder %v4433_v24, 3  ;;  %vm3070_vm13 = vcmp.eq.s32.totalorder %v4434_v11, 3  ;;  %v9192_v61 = vld [vmem:[#allocation241_spill] sm:$0xff]  ;;  %v4440_v24 = vld [vmem:[%s4509_s15 + $0x320] sm:$0xff] }
 0x3cb   : > { %v3775_v55 = vsel %vm3643_vm10, %v6511_v13, %v2875_v0  ;;  %v3774_v4 = vsel %vm3642_vm11, %v6511_v13, %v2874_v33  ;;  %vm1847_vm14 = vcmp.eq.s32.totalorder %v9182_v25, 1  ;;  %vm1846_vm15 = vcmp.eq.s32.totalorder %v9183_v35, 1  ;;  %v9191_v0 = vld [vmem:[#allocation114_spill] sm:$0xff]  ;;  %v9194_v11 = vld [vmem:[#allocation115_spill] sm:$0xff]  ;;  %v9195_v25 = vld [vmem:[#allocation116_spill] sm:$0xff] }
 0x3cc   : > { %3904 = vst.msk [vmem:[%s6530_s20 + $0xd8] sm:$0xff] %vm3876_vm8, %v3775_v55  ;;  %3903 = vst.msk [vmem:[%s6530_s20 + $0xd0] sm:$0xff] %vm3876_vm8, %v3774_v4  ;;  %v2877_v28 = vsel %vm2745_vm7, %v6488_v37, %v1977_v43  ;;  %v2876_v42 = vsel %vm2744_vm9, %v6488_v37, %v1976_v45  ;;  %vm2747_vm0 = vcmp.eq.s32.totalorder %v9184_v1, 1  ;;  %vm2746_vm1 = vcmp.eq.s32.totalorder %v9185_v57, 1  ;;  %v4439_v45 = vld [vmem:[%s4509_s15 + $0x328] sm:$0xff] }
 0x3cd   : > { %v3321_v15 = vpop.permute.xlu1 %3320  ;;  %v3318_v39 = vpop.permute.xlu0 %3317  ;;  %v3199_v41 = vsel %vm3071_vm12, 1, %v9075_v40  ;;  %v3198_v27 = vsel %vm3070_vm13, 1, %v9075_v40  ;;  %v1979_v29 = vsel %vm1847_vm14, %v6464_v54, %v6294_v14  ;;  %v1978_v62 = vsel %vm1846_vm15, %v6464_v54, %v6297_v17 }
 0x3ce   : > { %vm3645_vm2 = vcmp.eq.s32.totalorder %v3321_v15, 1  ;;  %vm3644_vm3 = vcmp.eq.s32.totalorder %v3318_v39, 1  ;;  %3512 = vperm.xlu1 %4082, %v3197_v23   ;;  %3509 = vperm.xlu0 %4081, %v3196_v44   ;;  %vm3073_vm4 = vcmp.eq.s32.totalorder %v4435_v38, 3  ;;  %vm3072_vm5 = vcmp.eq.s32.totalorder %v4436_v51, 3  ;;  %v9197_v15 = vld [vmem:[#allocation244_spill] sm:$0xff]  ;;  %v9199_v38 = vld [vmem:[#allocation118_spill] sm:$0xff] }
 0x3cf   : > { %v3777_v49 = vsel %vm3645_vm2, %v6511_v13, %v2877_v28  ;;  %v3776_v26 = vsel %vm3644_vm3, %v6511_v13, %v2876_v42  ;;  %vm1849_vm6 = vcmp.eq.s32.totalorder %v9186_v52, 1  ;;  %vm1848_vm7 = vcmp.eq.s32.totalorder %v9187_v10, 1  ;;  %v9196_v42 = vld [vmem:[#allocation243_spill] sm:$0xff]  ;;  %v9200_v10 = vld [vmem:[#allocation245_spill] sm:$0xff] }
 0x3d0   : > { %3906 = vst.msk [vmem:[%s6530_s20 + $0xe8] sm:$0xff] %vm3876_vm8, %v3777_v49  ;;  %3905 = vst.msk [vmem:[%s6530_s20 + $0xe0] sm:$0xff] %vm3876_vm8, %v3776_v26  ;;  %v2879_v14 = vsel %vm2747_vm0, %v6488_v37, %v1979_v29  ;;  %v2878_v17 = vsel %vm2746_vm1, %v6488_v37, %v1978_v62  ;;  %vm2749_vm9 = vcmp.eq.s32.totalorder %v9188_v32, 1  ;;  %vm2748_vm10 = vcmp.eq.s32.totalorder %v9189_v9, 1  ;;  %v4442_v29 = vld [vmem:[%s4509_s15 + $0x330] sm:$0xff]  ;;  %v9198_v62 = vld [vmem:[#allocation117_spill] sm:$0xff] }
 0x3d1   : > { %v3327_v56 = vpop.permute.xlu1 %3326  ;;  %v3324_v2 = vpop.permute.xlu0 %3323  ;;  %v3201_v7 = vsel %vm3073_vm4, 1, %v9075_v40  ;;  %v3200_v46 = vsel %vm3072_vm5, 1, %v9075_v40  ;;  %v1981_v18 = vsel %vm1849_vm6, %v6464_v54, %v6308_v34  ;;  %v1980_v47 = vsel %vm1848_vm7, %v6464_v54, %v6313_v6 }
 0x3d2   : > { %vm3647_vm11 = vcmp.eq.s32.totalorder %v3327_v56, 1  ;;  %vm3646_vm12 = vcmp.eq.s32.totalorder %v3324_v2, 1  ;;  %3518 = vperm.xlu1 %4082, %v3199_v41   ;;  %3515 = vperm.xlu0 %4081, %v3198_v27   ;;  %vm3075_vm13 = vcmp.eq.s32.totalorder %v4437_v21, 3  ;;  %vm3074_vm14 = vcmp.eq.s32.totalorder %v4438_v58, 3  ;;  %v4441_v27 = vld [vmem:[%s4509_s15 + $0x338] sm:$0xff]  ;;  %v9204_v58 = vld [vmem:[#allocation247_spill] sm:$0xff] }
 0x3d3   : > { %v3779_v16 = vsel %vm3647_vm11, %v6511_v13, %v2879_v14  ;;  %v3778_v3 = vsel %vm3646_vm12, %v6511_v13, %v2878_v17  ;;  %vm1851_vm15 = vcmp.eq.s32.totalorder %v9190_v63, 1  ;;  %vm1850_vm0 = vcmp.eq.s32.totalorder %v9191_v0, 1  ;;  %v9201_v14 = vld [vmem:[#allocation246_spill] sm:$0xff]  ;;  %v9205_v63 = vld [vmem:[#allocation248_spill] sm:$0xff] }
 0x3d4   : > { %3908 = vst.msk [vmem:[%s6530_s20 + $0xf8] sm:$0xff] %vm3876_vm8, %v3779_v16  ;;  %3907 = vst.msk [vmem:[%s6530_s20 + $0xf0] sm:$0xff] %vm3876_vm8, %v3778_v3  ;;  %v2881_v34 = vsel %vm2749_vm9, %v6488_v37, %v1981_v18  ;;  %v2880_v6 = vsel %vm2748_vm10, %v6488_v37, %v1980_v47  ;;  %vm2751_vm1 = vcmp.eq.s32.totalorder %v9192_v61, 1  ;;  %vm2750_vm2 = vcmp.eq.s32.totalorder %v9193_v31, 1  ;;  %v4443_v3 = vld [vmem:[%s4509_s15 + $0x348] sm:$0xff]  ;;  %v9203_v18 = vld [vmem:[#allocation120_spill] sm:$0xff] }
 0x3d5   : > { %v3333_v33 = vpop.permute.xlu1 %3332  ;;  %v3330_v22 = vpop.permute.xlu0 %3329  ;;  %v3203_v4 = vsel %vm3075_vm13, 1, %v9075_v40  ;;  %v3202_v23 = vsel %vm3074_vm14, 1, %v9075_v40  ;;  %v1983_v44 = vsel %vm1851_vm15, %v6464_v54, %v6320_v8  ;;  %v1982_v43 = vsel %vm1850_vm0, %v6464_v54, %v6328_v19  ;;  %v4445_v31 = vld [vmem:[%s4509_s15 + $0x358] sm:$0xff] }
 0x3d6   : > { %vm3649_vm3 = vcmp.eq.s32.totalorder %v3333_v33, 1  ;;  %vm3648_vm4 = vcmp.eq.s32.totalorder %v3330_v22, 1  ;;  %3524 = vperm.xlu1 %4082, %v3201_v7   ;;  %3521 = vperm.xlu0 %4081, %v3200_v46   ;;  %vm3077_vm5 = vcmp.eq.s32.totalorder %v4439_v45, 3  ;;  %vm3076_vm6 = vcmp.eq.s32.totalorder %v4440_v24, 3  ;;  %v4444_v7 = vld [vmem:[%s4509_s15 + $0x340] sm:$0xff]  ;;  %v9202_v46 = vld [vmem:[#allocation119_spill] sm:$0xff] }
 0x3d7   : > { %v3781_v12 = vsel %vm3649_vm3, %v6511_v13, %v2881_v34  ;;  %v3780_v55 = vsel %vm3648_vm4, %v6511_v13, %v2880_v6  ;;  %vm1853_vm7 = vcmp.eq.s32.totalorder %v9194_v11, 1  ;;  %vm1852_vm9 = vcmp.eq.s32.totalorder %v9195_v25, 1  ;;  %v9209_v45 = vld [vmem:[#allocation250_spill] sm:$0xff] }
 0x3d8   : > { %3910 = vst.msk [vmem:[%s6530_s20 + $0x108] sm:$0xff] %vm3876_vm8, %v3781_v12  ;;  %3909 = vst.msk [vmem:[%s6530_s20 + $0x100] sm:$0xff] %vm3876_vm8, %v3780_v55  ;;  %v2883_v8 = vsel %vm2751_vm1, %v6488_v37, %v1983_v44  ;;  %v2882_v19 = vsel %vm2750_vm2, %v6488_v37, %v1982_v43  ;;  %vm2753_vm10 = vcmp.eq.s32.totalorder %v9196_v42, 1  ;;  %vm2752_vm11 = vcmp.eq.s32.totalorder %v9197_v15, 1  ;;  %v4446_v12 = vld [vmem:[%s4509_s15 + $0x350] sm:$0xff]  ;;  %v9206_v55 = vld [vmem:[#allocation121_spill] sm:$0xff] }
 0x3d9   : > { %v3339_v35 = vpop.permute.xlu1 %3338  ;;  %v3336_v28 = vpop.permute.xlu0 %3335  ;;  %v3205_v57 = vsel %vm3077_vm5, 1, %v9075_v40  ;;  %v3204_v49 = vsel %vm3076_vm6, 1, %v9075_v40  ;;  %v1985_v26 = vsel %vm1853_vm7, %v6464_v54, %v6331_v20  ;;  %v1984_v41 = vsel %vm1852_vm9, %v6464_v54, %v6336_v5  ;;  %v9208_v43 = vld [vmem:[#allocation249_spill] sm:$0xff]  ;;  %v4447_v42 = vld [vmem:[%s4509_s15 + $0x368] sm:$0xff]  ;;  %v4448_v15 = vld [vmem:[%s4509_s15 + $0x360] sm:$0xff] }
 0x3da   : > { %vm3651_vm12 = vcmp.eq.s32.totalorder %v3339_v35, 1  ;;  %vm3650_vm13 = vcmp.eq.s32.totalorder %v3336_v28, 1  ;;  %3530 = vperm.xlu1 %4082, %v3203_v4   ;;  %3527 = vperm.xlu0 %4081, %v3202_v23   ;;  %vm3079_vm14 = vcmp.eq.s32.totalorder %v4441_v27, 3  ;;  %vm3078_vm15 = vcmp.eq.s32.totalorder %v4442_v29, 3  ;;  %v9207_v4 = vld [vmem:[#allocation122_spill] sm:$0xff]  ;;  %v9210_v35 = vld [vmem:[#allocation328_spill] sm:$0xff] }
 0x3db   : > { %v3783_v39 = vsel %vm3651_vm12, %v6511_v13, %v2883_v8  ;;  %v3782_v1 = vsel %vm3650_vm13, %v6511_v13, %v2882_v19  ;;  %vm1855_vm0 = vcmp.eq.s32.totalorder %v9198_v62, 1  ;;  %vm1854_vm1 = vcmp.eq.s32.totalorder %v9199_v38, 1  ;;  %v9214_v27 = vld [vmem:[#allocation252_spill] sm:$0xff] }
 0x3dc   : > { %3912 = vst.msk [vmem:[%s6530_s20 + $0x118] sm:$0xff] %vm3876_vm8, %v3783_v39  ;;  %3911 = vst.msk [vmem:[%s6530_s20 + $0x110] sm:$0xff] %vm3876_vm8, %v3782_v1  ;;  %v2885_v20 = vsel %vm2753_vm10, %v6488_v37, %v1985_v26  ;;  %v2884_v5 = vsel %vm2752_vm11, %v6488_v37, %v1984_v41  ;;  %vm2755_vm2 = vcmp.eq.s32.totalorder %v9200_v10, 1  ;;  %vm2754_vm3 = vcmp.eq.s32.totalorder %v9201_v14, 1  ;;  %v9211_v39 = vld [vmem:[#allocation123_spill] sm:$0xff]  ;;  %v9212_v1 = vld [vmem:[#allocation124_spill] sm:$0xff] }
 0x3dd   : > { %v3345_v51 = vpop.permute.xlu1 %3344  ;;  %v3342_v52 = vpop.permute.xlu0 %3341  ;;  %v3207_v2 = vsel %vm3079_vm14, 1, %v9075_v40  ;;  %v3206_v32 = vsel %vm3078_vm15, 1, %v9075_v40  ;;  %v1987_v9 = vsel %vm1855_vm0, %v6464_v54, %v6339_v36  ;;  %v1986_v16 = vsel %vm1854_vm1, %v6464_v54, %v6348_v53  ;;  %v9213_v41 = vld [vmem:[#allocation251_spill] sm:$0xff]  ;;  %v4449_v14 = vld [vmem:[%s4509_s15 + $0x378] sm:$0xff] }
 0x3de   : > { %vm3653_vm4 = vcmp.eq.s32.totalorder %v3345_v51, 1  ;;  %vm3652_vm5 = vcmp.eq.s32.totalorder %v3342_v52, 1  ;;  %3536 = vperm.xlu1 %4082, %v3205_v57   ;;  %3533 = vperm.xlu0 %4081, %v3204_v49   ;;  %vm3081_vm6 = vcmp.eq.s32.totalorder %v4443_v3, 3  ;;  %vm3080_vm7 = vcmp.eq.s32.totalorder %v4444_v7, 3  ;;  %v9216_v52 = vld [vmem:[#allocation332_spill] sm:$0xff]  ;;  %v9219_v7 = vld [vmem:[#allocation253_spill] sm:$0xff] }
 0x3df   : > { %v3785_v17 = vsel %vm3653_vm4, %v6511_v13, %v2885_v20  ;;  %v3784_v56 = vsel %vm3652_vm5, %v6511_v13, %v2884_v5  ;;  %vm1857_vm9 = vcmp.eq.s32.totalorder %v9202_v46, 1  ;;  %vm1856_vm10 = vcmp.eq.s32.totalorder %v9203_v18, 1  ;;  %v9215_v5 = vld [vmem:[#allocation329_spill] sm:$0xff]  ;;  %v9220_v46 = vld [vmem:[#allocation254_spill] sm:$0xff] }
 0x3e0   : > { %3914 = vst.msk [vmem:[%s6530_s20 + $0x128] sm:$0xff] %vm3876_vm8, %v3785_v17  ;;  %3913 = vst.msk [vmem:[%s6530_s20 + $0x120] sm:$0xff] %vm3876_vm8, %v3784_v56  ;;  %v2887_v36 = vsel %vm2755_vm2, %v6488_v37, %v1987_v9  ;;  %v2886_v53 = vsel %vm2754_vm3, %v6488_v37, %v1986_v16  ;;  %vm2757_vm11 = vcmp.eq.s32.totalorder %v9204_v58, 1  ;;  %vm2756_vm12 = vcmp.eq.s32.totalorder %v9205_v63, 1  ;;  %v4450_v17 = vld [vmem:[%s4509_s15 + $0x370] sm:$0xff]  ;;  %v9217_v56 = vld [vmem:[#allocation125_spill] sm:$0xff] }
 0x3e1   : > { %v3351_v47 = vpop.permute.xlu1 %3350  ;;  %v3348_v21 = vpop.permute.xlu0 %3347  ;;  %v3209_v6 = vsel %vm3081_vm6, 1, %v9075_v40  ;;  %v3208_v33 = vsel %vm3080_vm7, 1, %v9075_v40  ;;  %v1989_v22 = vsel %vm1857_vm9, %v6464_v54, %v6360_v50  ;;  %v1988_v61 = vsel %vm1856_vm10, %v6464_v54, %v6363_v59  ;;  %v9222_v63 = vld [vmem:[#allocation2_spill] sm:$0xff] }
 0x3e2   : > { %vm3655_vm13 = vcmp.eq.s32.totalorder %v3351_v47, 1  ;;  %vm3654_vm14 = vcmp.eq.s32.totalorder %v3348_v21, 1  ;;  %3542 = vperm.xlu1 %4082, %v3207_v2   ;;  %3539 = vperm.xlu0 %4081, %v3206_v32   ;;  %vm3083_vm15 = vcmp.eq.s32.totalorder %v4445_v31, 3  ;;  %vm3082_vm0 = vcmp.eq.s32.totalorder %v4446_v12, 3  ;;  %v9218_v2 = vld [vmem:[#allocation126_spill] sm:$0xff]  ;;  %v9221_v21 = vld [vmem:[#allocation333_spill] sm:$0xff] }
 0x3e3   : > { %v3787_v0 = vsel %vm3655_vm13, %v6511_v13, %v2887_v36  ;;  %v3786_v34 = vsel %vm3654_vm14, %v6511_v13, %v2886_v53  ;;  %vm1859_vm1 = vcmp.eq.s32.totalorder %v9206_v55, 1  ;;  %vm1858_vm2 = vcmp.eq.s32.totalorder %v9207_v4, 1  ;;  %v9225_v4 = vld [vmem:[#allocation255_spill] sm:$0xff] }
 0x3e4   : > { %3916 = vst.msk [vmem:[%s6530_s20 + $0x138] sm:$0xff] %vm3876_vm8, %v3787_v0  ;;  %3915 = vst.msk [vmem:[%s6530_s20 + $0x130] sm:$0xff] %vm3876_vm8, %v3786_v34  ;;  %v2889_v50 = vsel %vm2757_vm11, %v6488_v37, %v1989_v22  ;;  %v2888_v59 = vsel %vm2756_vm12, %v6488_v37, %v1988_v61  ;;  %vm2759_vm3 = vcmp.eq.s32.totalorder %v9208_v43, 1  ;;  %vm2758_vm4 = vcmp.eq.s32.totalorder %v9209_v45, 1  ;;  %v4451_v34 = vld [vmem:[%s4509_s15 + $0x388] sm:$0xff]  ;;  %v9224_v22 = vld [vmem:[#allocation128_spill] sm:$0xff] }
 0x3e5   : > { %v3357_v23 = vpop.permute.xlu1 %3356  ;;  %v3354_v44 = vpop.permute.xlu0 %3353  ;;  %v3211_v25 = vsel %vm3083_vm15, 1, %v9075_v40  ;;  %v3210_v8 = vsel %vm3082_vm0, 1, %v9075_v40  ;;  %v1991_v19 = vsel %vm1859_vm1, %v6464_v54, %v6368_v60  ;;  %v1990_v28 = vsel %vm1858_vm2, %v6464_v54, %v9210_v35  ;;  %v9227_v45 = vld [vmem:[#allocation3_spill] sm:$0xff]  ;;  %v9229_v35 = vld [vmem:[#allocation129_spill] sm:$0xff] }
 0x3e6   : > { %vm3657_vm5 = vcmp.eq.s32.totalorder %v3357_v23, 1  ;;  %vm3656_vm6 = vcmp.eq.s32.totalorder %v3354_v44, 1  ;;  %3548 = vperm.xlu1 %4082, %v3209_v6   ;;  %3545 = vperm.xlu0 %4081, %v3208_v33   ;;  %vm3085_vm7 = vcmp.eq.s32.totalorder %v4447_v42, 3  ;;  %vm3084_vm9 = vcmp.eq.s32.totalorder %v4448_v15, 3  ;;  %v4452_v6 = vld [vmem:[%s4509_s15 + $0x380] sm:$0xff]  ;;  %v9223_v33 = vld [vmem:[#allocation127_spill] sm:$0xff] }
 0x3e7   : > { %v3789_v24 = vsel %vm3657_vm5, %v6511_v13, %v2889_v50  ;;  %v3788_v11 = vsel %vm3656_vm6, %v6511_v13, %v2888_v59  ;;  %vm1861_vm10 = vcmp.eq.s32.totalorder %v9211_v39, 1  ;;  %vm1860_vm11 = vcmp.eq.s32.totalorder %v9212_v1, 1  ;;  %v9226_v50 = vld [vmem:[#allocation256_spill] sm:$0xff] }
 0x3e8   : > { %3918 = vst.msk [vmem:[%s6530_s20 + $0x148] sm:$0xff] %vm3876_vm8, %v3789_v24  ;;  %3917 = vst.msk [vmem:[%s6530_s20 + $0x140] sm:$0xff] %vm3876_vm8, %v3788_v11  ;;  %v2891_v60 = vsel %vm2759_vm3, %v6488_v37, %v1991_v19  ;;  %v2890_v57 = vsel %vm2758_vm4, %v6488_v37, %v1990_v28  ;;  %vm2761_vm12 = vcmp.eq.s32.totalorder %v9213_v41, 1  ;;  %vm2760_vm13 = vcmp.eq.s32.totalorder %v9214_v27, 1  ;;  %v9228_v11 = vld [vmem:[#allocation334_spill] sm:$0xff]  ;;  %v4454_v19 = vld [vmem:[%s4509_s15 + $0x390] sm:$0xff] }
 0x3e9   : > { %v3363_v49 = vpop.permute.xlu1 %3362  ;;  %v3360_v26 = vpop.permute.xlu0 %3359  ;;  %v3213_v38 = vsel %vm3085_vm7, 1, %v9075_v40  ;;  %v3212_v20 = vsel %vm3084_vm9, 1, %v9075_v40  ;;  %v1993_v51 = vsel %vm1861_vm10, %v6464_v54, %v9215_v5  ;;  %v1992_v10 = vsel %vm1860_vm11, %v6464_v54, %v9216_v52  ;;  %v9230_v28 = vld [vmem:[#allocation130_spill] sm:$0xff]  ;;  %v4455_v5 = vld [vmem:[%s4509_s15 + $0x3a8] sm:$0xff] }
 0x3ea   : > { %vm3659_vm14 = vcmp.eq.s32.totalorder %v3363_v49, 1  ;;  %vm3658_vm15 = vcmp.eq.s32.totalorder %v3360_v26, 1  ;;  %3554 = vperm.xlu1 %4082, %v3211_v25   ;;  %3551 = vperm.xlu0 %4081, %v3210_v8   ;;  %vm3087_vm0 = vcmp.eq.s32.totalorder %v4449_v14, 3  ;;  %vm3086_vm1 = vcmp.eq.s32.totalorder %v4450_v17, 3  ;;  %v4453_v8 = vld [vmem:[%s4509_s15 + $0x398] sm:$0xff]  ;;  %v9235_v52 = vld [vmem:[#allocation131_spill] sm:$0xff] }
 0x3eb   : > { %v3791_v29 = vsel %vm3659_vm14, %v6511_v13, %v2891_v60  ;;  %v3790_v62 = vsel %vm3658_vm15, %v6511_v13, %v2890_v57  ;;  %vm1863_vm2 = vcmp.eq.s32.totalorder %v9217_v56, 1  ;;  %vm1862_vm3 = vcmp.eq.s32.totalorder %v9218_v2, 1  ;;  %v9231_v60 = vld [vmem:[#allocation257_spill] sm:$0xff]  ;;  %v9232_v57 = vld [vmem:[#allocation258_spill] sm:$0xff] }
 0x3ec   : > { %3920 = vst.msk [vmem:[%s6530_s20 + $0x158] sm:$0xff] %vm3876_vm8, %v3791_v29  ;;  %3919 = vst.msk [vmem:[%s6530_s20 + $0x150] sm:$0xff] %vm3876_vm8, %v3790_v62  ;;  %v2893_v32 = vsel %vm2761_vm12, %v6488_v37, %v1993_v51  ;;  %v2892_v9 = vsel %vm2760_vm13, %v6488_v37, %v1992_v10  ;;  %vm2763_vm4 = vcmp.eq.s32.totalorder %v9219_v7, 1  ;;  %vm2762_vm5 = vcmp.eq.s32.totalorder %v9220_v46, 1  ;;  %v9233_v29 = vld [vmem:[#allocation335_spill] sm:$0xff]  ;;  %v4456_v51 = vld [vmem:[%s4509_s15 + $0x3a0] sm:$0xff] }
 0x3ed   : > { %v3369_v16 = vpop.permute.xlu1 %3368  ;;  %v3366_v3 = vpop.permute.xlu0 %3365  ;;  %v3215_v53 = vsel %vm3087_vm0, 1, %v9075_v40  ;;  %v3214_v47 = vsel %vm3086_vm1, 1, %v9075_v40  ;;  %v1995_v58 = vsel %vm1863_vm2, %v6464_v54, %v9221_v21  ;;  %v1994_v0 = vsel %vm1862_vm3, %v6464_v54, %v9222_v63  ;;  %v9236_v10 = vld [vmem:[#allocation132_spill] sm:$0xff]  ;;  %v4457_v21 = vld [vmem:[%s4509_s15 + $0x3b8] sm:$0xff] }
 0x3ee   : > { %vm3661_vm6 = vcmp.eq.s32.totalorder %v3369_v16, 1  ;;  %vm3660_vm7 = vcmp.eq.s32.totalorder %v3366_v3, 1  ;;  %3560 = vperm.xlu1 %4082, %v3213_v38   ;;  %3557 = vperm.xlu0 %4081, %v3212_v20   ;;  %vm3089_vm9 = vcmp.eq.s32.totalorder %v4451_v34, 3  ;;  %vm3088_vm10 = vcmp.eq.s32.totalorder %v4452_v6, 3  ;;  %v9234_v38 = vld [vmem:[#allocation336_spill] sm:$0xff]  ;;  %v9241_v63 = vld [vmem:[#allocation133_spill] sm:$0xff] }
 0x3ef   : > { %v3793_v18 = vsel %vm3661_vm6, %v6511_v13, %v2893_v32  ;;  %v3792_v36 = vsel %vm3660_vm7, %v6511_v13, %v2892_v9  ;;  %vm1865_vm11 = vcmp.eq.s32.totalorder %v9223_v33, 1  ;;  %vm1864_vm12 = vcmp.eq.s32.totalorder %v9224_v22, 1  ;;  %v9237_v32 = vld [vmem:[#allocation259_spill] sm:$0xff]  ;;  %v9238_v9 = vld [vmem:[#allocation260_spill] sm:$0xff] }
 0x3f0   : > { %3922 = vst.msk [vmem:[%s6530_s20 + $0x168] sm:$0xff] %vm3876_vm8, %v3793_v18  ;;  %3921 = vst.msk [vmem:[%s6530_s20 + $0x160] sm:$0xff] %vm3876_vm8, %v3792_v36  ;;  %v2895_v61 = vsel %vm2763_vm4, %v6488_v37, %v1995_v58  ;;  %v2894_v31 = vsel %vm2762_vm5, %v6488_v37, %v1994_v0  ;;  %vm2765_vm13 = vcmp.eq.s32.totalorder %v9225_v4, 1  ;;  %vm2764_vm14 = vcmp.eq.s32.totalorder %v9226_v50, 1  ;;  %v9239_v18 = vld [vmem:[#allocation6_spill] sm:$0xff]  ;;  %v4458_v58 = vld [vmem:[%s4509_s15 + $0x3b0] sm:$0xff] }
 0x3f1   : > { %v3375_v12 = vpop.permute.xlu1 %3374  ;;  %v3372_v55 = vpop.permute.xlu0 %3371  ;;  %v3217_v44 = vsel %vm3089_vm9, 1, %v9075_v40  ;;  %v3216_v43 = vsel %vm3088_vm10, 1, %v9075_v40  ;;  %v1997_v24 = vsel %vm1865_vm11, %v6464_v54, %v9227_v45  ;;  %v1996_v25 = vsel %vm1864_vm12, %v6464_v54, %v9228_v11  ;;  %v9242_v0 = vld [vmem:[#allocation134_spill] sm:$0xff]  ;;  %v4459_v45 = vld [vmem:[%s4509_s15 + $0x3c8] sm:$0xff] }
 0x3f2   : > { %vm3663_vm15 = vcmp.eq.s32.totalorder %v3375_v12, 1  ;;  %vm3662_vm0 = vcmp.eq.s32.totalorder %v3372_v55, 1  ;;  %3566 = vperm.xlu1 %4082, %v3215_v53   ;;  %3563 = vperm.xlu0 %4081, %v3214_v47   ;;  %vm3091_vm1 = vcmp.eq.s32.totalorder %v4453_v8, 3  ;;  %vm3090_vm2 = vcmp.eq.s32.totalorder %v4454_v19, 3  ;;  %v9240_v53 = vld [vmem:[#allocation7_spill] sm:$0xff] }
 0x3f3   : > { %v3795_v59 = vsel %vm3663_vm15, %v6511_v13, %v2895_v61  ;;  %v3794_v23 = vsel %vm3662_vm0, %v6511_v13, %v2894_v31  ;;  %vm1867_vm3 = vcmp.eq.s32.totalorder %v9229_v35, 1  ;;  %vm1866_vm4 = vcmp.eq.s32.totalorder %v9230_v28, 1  ;;  %v9243_v61 = vld [vmem:[#allocation261_spill] sm:$0xff]  ;;  %v9244_v31 = vld [vmem:[#allocation262_spill] sm:$0xff]  ;;  %v9247_v11 = vld [vmem:[#allocation135_spill] sm:$0xff] }
 0x3f4   : > { %3924 = vst.msk [vmem:[%s6530_s20 + $0x178] sm:$0xff] %vm3876_vm8, %v3795_v59  ;;  %3923 = vst.msk [vmem:[%s6530_s20 + $0x170] sm:$0xff] %vm3876_vm8, %v3794_v23  ;;  %v2897_v42 = vsel %vm2765_vm13, %v6488_v37, %v1997_v24  ;;  %v2896_v15 = vsel %vm2764_vm14, %v6488_v37, %v1996_v25  ;;  %vm2767_vm5 = vcmp.eq.s32.totalorder %v9231_v60, 1  ;;  %vm2766_vm6 = vcmp.eq.s32.totalorder %v9232_v57, 1  ;;  %v9245_v59 = vld [vmem:[#allocation337_spill] sm:$0xff]  ;;  %v4460_v24 = vld [vmem:[%s4509_s15 + $0x3c0] sm:$0xff] }
 0x3f5   : > { %v3381_v39 = vpop.permute.xlu1 %3380  ;;  %v3378_v1 = vpop.permute.xlu0 %3377  ;;  %v3219_v41 = vsel %vm3091_vm1, 1, %v9075_v40  ;;  %v3218_v27 = vsel %vm3090_vm2, 1, %v9075_v40  ;;  %v1999_v62 = vsel %vm1867_vm3, %v6464_v54, %v9233_v29  ;;  %v1998_v20 = vsel %vm1866_vm4, %v6464_v54, %v9234_v38  ;;  %v9248_v25 = vld [vmem:[#allocation136_spill] sm:$0xff]  ;;  %v4461_v29 = vld [vmem:[%s4509_s15 + $0x3d8] sm:$0xff] }
 0x3f6   : > { %vm3665_vm7 = vcmp.eq.s32.totalorder %v3381_v39, 1  ;;  %vm3664_vm9 = vcmp.eq.s32.totalorder %v3378_v1, 1  ;;  %3572 = vperm.xlu1 %4082, %v3217_v44   ;;  %3569 = vperm.xlu0 %4081, %v3216_v43   ;;  %vm3093_vm10 = vcmp.eq.s32.totalorder %v4455_v5, 3  ;;  %vm3092_vm11 = vcmp.eq.s32.totalorder %v4456_v51, 3  ;;  %v9246_v44 = vld [vmem:[#allocation338_spill] sm:$0xff]  ;;  %v9253_v38 = vld [vmem:[#allocation13_spill] sm:$0xff] }
 0x3f7   : > { %v3797_v49 = vsel %vm3665_vm7, %v6511_v13, %v2897_v42  ;;  %v3796_v26 = vsel %vm3664_vm9, %v6511_v13, %v2896_v15  ;;  %vm1869_vm12 = vcmp.eq.s32.totalorder %v9235_v52, 1  ;;  %vm1868_vm13 = vcmp.eq.s32.totalorder %v9236_v10, 1  ;;  %v9249_v42 = vld [vmem:[#allocation263_spill] sm:$0xff]  ;;  %v9250_v15 = vld [vmem:[#allocation264_spill] sm:$0xff]  ;;  %v9255_v5 = vld [vmem:[#allocation137_spill] sm:$0xff] }
 0x3f8   : > { %3926 = vst.msk [vmem:[%s6530_s20 + $0x188] sm:$0xff] %vm3876_vm8, %v3797_v49  ;;  %3925 = vst.msk [vmem:[%s6530_s20 + $0x180] sm:$0xff] %vm3876_vm8, %v3796_v26  ;;  %v2899_v14 = vsel %vm2767_vm5, %v6488_v37, %v1999_v62  ;;  %v2898_v17 = vsel %vm2766_vm6, %v6488_v37, %v1998_v20  ;;  %vm2769_vm14 = vcmp.eq.s32.totalorder %v9237_v32, 1  ;;  %vm2768_vm15 = vcmp.eq.s32.totalorder %v9238_v9, 1  ;;  %v9251_v49 = vld [vmem:[#allocation339_spill] sm:$0xff]  ;;  %v4462_v62 = vld [vmem:[%s4509_s15 + $0x3d0] sm:$0xff] }
 0x3f9   : > { %v3387_v56 = vpop.permute.xlu1 %3386  ;;  %v3384_v2 = vpop.permute.xlu0 %3383  ;;  %v3221_v7 = vsel %vm3093_vm10, 1, %v9075_v40  ;;  %v3220_v46 = vsel %vm3092_vm11, 1, %v9075_v40  ;;  %v2001_v36 = vsel %vm1869_vm12, %v6464_v54, %v9239_v18  ;;  %v2000_v47 = vsel %vm1868_vm13, %v6464_v54, %v9240_v53  ;;  %v9254_v20 = vld [vmem:[#allocation14_spill] sm:$0xff] }
 0x3fa   : > { %vm3667_vm0 = vcmp.eq.s32.totalorder %v3387_v56, 1  ;;  %vm3666_vm1 = vcmp.eq.s32.totalorder %v3384_v2, 1  ;;  %3578 = vperm.xlu1 %4082, %v3219_v41   ;;  %3575 = vperm.xlu0 %4081, %v3218_v27   ;;  %vm3095_vm2 = vcmp.eq.s32.totalorder %v4457_v21, 3  ;;  %vm3094_vm3 = vcmp.eq.s32.totalorder %v4458_v58, 3  ;;  %v9252_v41 = vld [vmem:[#allocation9_spill] sm:$0xff]  ;;  %v9256_v51 = vld [vmem:[#allocation138_spill] sm:$0xff] }
 0x3fb   : > { %v3799_v16 = vsel %vm3667_vm0, %v6511_v13, %v2899_v14  ;;  %v3798_v3 = vsel %vm3666_vm1, %v6511_v13, %v2898_v17  ;;  %vm1871_vm4 = vcmp.eq.s32.totalorder %v9241_v63, 1  ;;  %vm1870_vm5 = vcmp.eq.s32.totalorder %v9242_v0, 1  ;;  %v9257_v56 = vld [vmem:[#allocation265_spill] sm:$0xff]  ;;  %v9258_v2 = vld [vmem:[#allocation266_spill] sm:$0xff]  ;;  %v9261_v21 = vld [vmem:[#allocation140_spill] sm:$0xff] }
 0x3fc   : > { %3928 = vst.msk [vmem:[%s6530_s20 + $0x198] sm:$0xff] %vm3876_vm8, %v3799_v16  ;;  %3927 = vst.msk [vmem:[%s6530_s20 + $0x190] sm:$0xff] %vm3876_vm8, %v3798_v3  ;;  %v2901_v34 = vsel %vm2769_vm14, %v6488_v37, %v2001_v36  ;;  %v2900_v6 = vsel %vm2768_vm15, %v6488_v37, %v2000_v47  ;;  %vm2771_vm6 = vcmp.eq.s32.totalorder %v9243_v61, 1  ;;  %vm2770_vm7 = vcmp.eq.s32.totalorder %v9244_v31, 1  ;;  %v4463_v36 = vld [vmem:[%s4509_s15 + $0x3e8] sm:$0xff]  ;;  %v4464_v53 = vld [vmem:[%s4509_s15 + $0x3e0] sm:$0xff] }
 0x3fd   : > { %v3393_v33 = vpop.permute.xlu1 %3392  ;;  %v3390_v22 = vpop.permute.xlu0 %3389  ;;  %v3223_v4 = vsel %vm3095_vm2, 1, %v9075_v40  ;;  %v3222_v50 = vsel %vm3094_vm3, 1, %v9075_v40  ;;  %v2003_v23 = vsel %vm1871_vm4, %v6464_v54, %v9245_v59  ;;  %v2002_v43 = vsel %vm1870_vm5, %v6464_v54, %v9246_v44  ;;  %v9260_v47 = vld [vmem:[#allocation139_spill] sm:$0xff]  ;;  %v4466_v59 = vld [vmem:[%s4509_s15 + $0x3f0] sm:$0xff]  ;;  %v9266_v44 = vld [vmem:[#allocation142_spill] sm:$0xff] }
 0x3fe   : > { %vm3669_vm9 = vcmp.eq.s32.totalorder %v3393_v33, 1  ;;  %vm3668_vm10 = vcmp.eq.s32.totalorder %v3390_v22, 1  ;;  %3584 = vperm.xlu1 %4082, %v3221_v7   ;;  %3581 = vperm.xlu0 %4081, %v3220_v46   ;;  %vm3097_vm11 = vcmp.eq.s32.totalorder %v4459_v45, 3  ;;  %vm3096_vm12 = vcmp.eq.s32.totalorder %v4460_v24, 3  ;;  %v9259_v46 = vld [vmem:[#allocation10_spill] sm:$0xff] }
 0x3ff   : > { %v3801_v12 = vsel %vm3669_vm9, %v6511_v13, %v2901_v34  ;;  %v3800_v55 = vsel %vm3668_vm10, %v6511_v13, %v2900_v6  ;;  %vm1873_vm13 = vcmp.eq.s32.totalorder %v9247_v11, 1  ;;  %vm1872_vm14 = vcmp.eq.s32.totalorder %v9248_v25, 1  ;;  %v9262_v34 = vld [vmem:[#allocation267_spill] sm:$0xff]  ;;  %v9263_v6 = vld [vmem:[#allocation268_spill] sm:$0xff]  ;;  %v9267_v11 = vld [vmem:[#allocation269_spill] sm:$0xff] }
 0x400   : > { %3930 = vst.msk [vmem:[%s6530_s20 + $0x1a8] sm:$0xff] %vm3876_vm8, %v3801_v12  ;;  %3929 = vst.msk [vmem:[%s6530_s20 + $0x1a0] sm:$0xff] %vm3876_vm8, %v3800_v55  ;;  %v2903_v8 = vsel %vm2771_vm6, %v6488_v37, %v2003_v23  ;;  %v2902_v19 = vsel %vm2770_vm7, %v6488_v37, %v2002_v43  ;;  %vm2773_vm15 = vcmp.eq.s32.totalorder %v9249_v42, 1  ;;  %vm2772_vm0 = vcmp.eq.s32.totalorder %v9250_v15, 1  ;;  %v9264_v55 = vld [vmem:[#allocation79_spill] sm:$0xff]  ;;  %v9265_v23 = vld [vmem:[#allocation141_spill] sm:$0xff] }
 0x401   : > { %v3399_v35 = vpop.permute.xlu1 %3398  ;;  %v3396_v28 = vpop.permute.xlu0 %3395  ;;  %v3225_v60 = vsel %vm3097_vm11, 1, %v9075_v40  ;;  %v3224_v57 = vsel %vm3096_vm12, 1, %v9075_v40  ;;  %v2005_v26 = vsel %vm1873_vm13, %v6464_v54, %v9251_v49  ;;  %v2004_v27 = vsel %vm1872_vm14, %v6464_v54, %v9252_v41  ;;  %v9268_v25 = vld [vmem:[#allocation270_spill] sm:$0xff]  ;;  %v9269_v42 = vld [vmem:[#allocation311_spill] sm:$0xff] }
 0x402   : > { %vm3671_vm1 = vcmp.eq.s32.totalorder %v3399_v35, 1  ;;  %vm3670_vm2 = vcmp.eq.s32.totalorder %v3396_v28, 1  ;;  %3590 = vperm.xlu1 %4082, %v3223_v4   ;;  %3587 = vperm.xlu0 %4081, %v3222_v50   ;;  %vm3099_vm3 = vcmp.eq.s32.totalorder %v4461_v29, 3  ;;  %vm3098_vm4 = vcmp.eq.s32.totalorder %v4462_v62, 3  ;;  %v4465_v50 = vld [vmem:[%s4509_s15 + $0x3f8] sm:$0xff]  ;;  %v9272_v49 = vld [vmem:[#allocation143_spill] sm:$0xff] }
 0x403   : > { %v3803_v39 = vsel %vm3671_vm1, %v6511_v13, %v2903_v8  ;;  %v3802_v1 = vsel %vm3670_vm2, %v6511_v13, %v2902_v19  ;;  %vm979_vm5 = vcmp.eq.s32.totalorder %v9253_v38, 1  ;;  %vm978_vm6 = vcmp.eq.s32.totalorder %v9254_v20, 1  ;;  %v9274_v38 = vld [vmem:[#allocation271_spill] sm:$0xff]  ;;  %v9275_v20 = vld [vmem:[#allocation272_spill] sm:$0xff] }
 0x404   : > { %3932 = vst.msk [vmem:[%s6530_s20 + $0x1b8] sm:$0xff] %vm3876_vm8, %v3803_v39  ;;  %3931 = vst.msk [vmem:[%s6530_s20 + $0x1b0] sm:$0xff] %vm3876_vm8, %v3802_v1  ;;  %vm1875_vm7 = vcmp.eq.s32.totalorder %v9255_v5, 1  ;;  %vm1874_vm9 = vcmp.eq.s32.totalorder %v9256_v51, 1  ;;  %v2905_v52 = vsel %vm2773_vm15, %v6488_v37, %v2005_v26  ;;  %v2904_v10 = vsel %vm2772_vm0, %v6488_v37, %v2004_v27  ;;  %v9270_v1 = vld [vmem:[#allocation15_spill] sm:$0xff]  ;;  %v9273_v26 = vld [vmem:[#allocation144_spill] sm:$0xff] }
 0x405   : > { %v3405_v14 = vpop.permute.xlu1 %3404  ;;  %v3402_v17 = vpop.permute.xlu0 %3401  ;;  %vm2775_vm10 = vcmp.eq.s32.totalorder %v9257_v56, 1  ;;  %vm2774_vm11 = vcmp.eq.s32.totalorder %v9258_v2, 1  ;;  %v3227_v16 = vsel %vm3099_vm3, 1, %v9075_v40  ;;  %v3226_v3 = vsel %vm3098_vm4, 1, %v9075_v40 }
 0x406   : > { %vm3673_vm12 = vcmp.eq.s32.totalorder %v3405_v14, 1  ;;  %vm3672_vm13 = vcmp.eq.s32.totalorder %v3402_v17, 1  ;;  %3596 = vperm.xlu1 %4082, %v3225_v60   ;;  %3593 = vperm.xlu0 %4081, %v3224_v57   ;;  %v2007_v7 = vsel %vm1875_vm7, %v6464_v54, %v6479_v30  ;;  %v2006_v18 = vsel %vm1874_vm9, %v6464_v54, %v9259_v46  ;;  %v9271_v60 = vld [vmem:[#allocation16_spill] sm:$0xff]  ;;  %v9276_v14 = vld [vmem:[#allocation17_spill] sm:$0xff]  ;;  %v9277_v17 = vld [vmem:[#allocation18_spill] sm:$0xff] }
 0x407   : > { %v3805_v32 = vsel %vm3673_vm12, %v6511_v13, %v2905_v52  ;;  %v3804_v9 = vsel %vm3672_vm13, %v6511_v13, %v2904_v10  ;;  %vm3101_vm14 = vcmp.eq.s32.totalorder %v4463_v36, 3  ;;  %vm3100_vm15 = vcmp.eq.s32.totalorder %v4464_v53, 3  ;;  %v9281_v36 = vld [vmem:[#allocation274_spill] sm:$0xff] }
 0x408   : > { %3934 = vst.msk [vmem:[%s6530_s20 + $0x1c8] sm:$0xff] %vm3876_vm8, %v3805_v32  ;;  %3933 = vst.msk [vmem:[%s6530_s20 + $0x1c0] sm:$0xff] %vm3876_vm8, %v3804_v9  ;;  %vm1877_vm0 = vcmp.eq.s32.totalorder %v9260_v47, 1  ;;  %vm1876_vm1 = vcmp.eq.s32.totalorder %v9261_v21, 1  ;;  %v2907_v30 = vsel %vm2775_vm10, %v6488_v37, %v2007_v7  ;;  %v2906_v58 = vsel %vm2774_vm11, %v6488_v37, %v2006_v18  ;;  %v9278_v32 = vld [vmem:[#allocation145_spill] sm:$0xff]  ;;  %v9279_v9 = vld [vmem:[#allocation146_spill] sm:$0xff] }
 0x409   : > { %v3411_v63 = vpop.permute.xlu1 %3410  ;;  %v3408_v0 = vpop.permute.xlu0 %3407  ;;  %vm2777_vm2 = vcmp.eq.s32.totalorder %v9262_v34, 1  ;;  %vm2776_vm3 = vcmp.eq.s32.totalorder %v9263_v6, 1  ;;  %v3229_v61 = vsel %vm3101_vm14, 1, %v9075_v40  ;;  %v3228_v31 = vsel %vm3100_vm15, 1, %v9075_v40  ;;  %v9280_v18 = vld [vmem:[#allocation273_spill] sm:$0xff]  ;;  %v9284_v6 = vld [vmem:[#allocation147_spill] sm:$0xff] }
 0x40a   : > { %vm3675_vm4 = vcmp.eq.s32.totalorder %v3411_v63, 1  ;;  %vm3674_vm7 = vcmp.eq.s32.totalorder %v3408_v0, 1  ;;  %3602 = vperm.xlu1 %4082, %v3227_v16   ;;  %3599 = vperm.xlu0 %4081, %v3226_v3   ;;  %v2009_v12 = vsel %vm1877_vm0, %v6464_v54, %v6497_v48  ;;  %v2008_v4 = vsel %vm1876_vm1, %v6464_v54, %v9264_v55  ;;  %v9283_v63 = vld [vmem:[#allocation20_spill] sm:$0xff]  ;;  %v9286_v55 = vld [vmem:[#allocation275_spill] sm:$0xff] }
 0x40b   : > { %v3807_v33 = vsel %vm3675_vm4, %v6511_v13, %v2907_v30  ;;  %v3806_v22 = vsel %vm3674_vm7, %v6511_v13, %v2906_v58  ;;  %vm3103_vm9 = vcmp.eq.s32.totalorder %v4465_v50, 3  ;;  %vm3102_vm10 = vcmp.eq.s32.totalorder %v4466_v59, 3  ;;  %v9282_v58 = vld [vmem:[#allocation19_spill] sm:$0xff] }
 0x40c   : > { %3936 = vst.msk [vmem:[%s6530_s20 + $0x1d8] sm:$0xff] %vm3876_vm8, %v3807_v33  ;;  %3935 = vst.msk [vmem:[%s6530_s20 + $0x1d0] sm:$0xff] %vm3876_vm8, %v3806_v22  ;;  %vm1879_vm11 = vcmp.eq.s32.totalorder %v9265_v23, 1  ;;  %vm1878_vm12 = vcmp.eq.s32.totalorder %v9266_v44, 1  ;;  %v2909_v48 = vsel %vm2777_vm2, %v6488_v37, %v2009_v12  ;;  %v2908_v43 = vsel %vm2776_vm3, %v6488_v37, %v2008_v4  ;;  %v9285_v33 = vld [vmem:[#allocation148_spill] sm:$0xff] }
 0x40d   : > { %v3417_v45 = vpop.permute.xlu1 %3416  ;;  %v3414_v24 = vpop.permute.xlu0 %3413  ;;  %vm2779_vm13 = vcmp.eq.s32.totalorder %v9267_v11, 1  ;;  %vm2778_vm14 = vcmp.eq.s32.totalorder %v9268_v25, 1  ;;  %v3231_v35 = vsel %vm3103_vm9, 1, %v9075_v40  ;;  %v3230_v28 = vsel %vm3102_vm10, 1, %v9075_v40  ;;  %v9287_v4 = vld [vmem:[#allocation276_spill] sm:$0xff]  ;;  %v9290_v11 = vld [vmem:[#allocation149_spill] sm:$0xff] }
 0x40e   : > { %vm3677_vm15 = vcmp.eq.s32.totalorder %v3417_v45, 1  ;;  %vm3676_vm0 = vcmp.eq.s32.totalorder %v3414_v24, 1  ;;  %3608 = vperm.xlu1 %4082, %v3229_v61   ;;  %3605 = vperm.xlu0 %4081, %v3228_v31   ;;  %v1111_v15 = vsel %vm979_vm5, %v9269_v42, 0.0  ;;  %v1110_v39 = vsel %vm978_vm6, %v9269_v42, 0.0  ;;  %v9291_v25 = vld [vmem:[#allocation150_spill] sm:$0xff] }
 0x40f   : > { %v3809_v8 = vsel %vm3677_vm15, %v6511_v13, %v2909_v48  ;;  %v3808_v19 = vsel %vm3676_vm0, %v6511_v13, %v2908_v43  ;;  %vm981_vm1 = vcmp.eq.s32.totalorder %v9270_v1, 1  ;;  %vm980_vm2 = vcmp.eq.s32.totalorder %v9271_v60, 1  ;;  %v9288_v48 = vld [vmem:[#allocation21_spill] sm:$0xff]  ;;  %v9289_v43 = vld [vmem:[#allocation22_spill] sm:$0xff] }
 0x410   : > { %3938 = vst.msk [vmem:[%s6530_s20 + $0x1e8] sm:$0xff] %vm3876_vm8, %v3809_v8  ;;  %3937 = vst.msk [vmem:[%s6530_s20 + $0x1e0] sm:$0xff] %vm3876_vm8, %v3808_v19  ;;  %v2011_v40 = vsel %vm1879_vm11, %v6464_v54, %v1111_v15  ;;  %v2010_v57 = vsel %vm1878_vm12, %v6464_v54, %v1110_v39  ;;  %vm1881_vm5 = vcmp.eq.s32.totalorder %v9272_v49, 1  ;;  %vm1880_vm6 = vcmp.eq.s32.totalorder %v9273_v26, 1  ;;  %v9292_v15 = vld [vmem:[#allocation277_spill] sm:$0xff]  ;;  %v9293_v39 = vld [vmem:[#allocation278_spill] sm:$0xff] }
 0x411   : > { %v3423_v41 = vpop.permute.xlu1 %3422  ;;  %v3420_v27 = vpop.permute.xlu0 %3419  ;;  %v2911_v29 = vsel %vm2779_vm13, %v6488_v37, %v2011_v40  ;;  %v2910_v62 = vsel %vm2778_vm14, %v6488_v37, %v2010_v57  ;;  %vm2781_vm7 = vcmp.eq.s32.totalorder %v9274_v38, 1  ;;  %vm2780_vm9 = vcmp.eq.s32.totalorder %v9275_v20, 1  ;;  %v9294_v49 = vld [vmem:[#allocation23_spill] sm:$0xff]  ;;  %v9295_v26 = vld [vmem:[#allocation24_spill] sm:$0xff] }
 0x412   : > { %vm3679_vm3 = vcmp.eq.s32.totalorder %v3423_v41, 1  ;;  %vm3678_vm4 = vcmp.eq.s32.totalorder %v3420_v27, 1  ;;  %3614 = vperm.xlu1 %4082, %v3231_v35   ;;  %3611 = vperm.xlu0 %4081, %v3230_v28   ;;  %v1113_v52 = vsel %vm981_vm1, %v9269_v42, 0.0  ;;  %v1112_v10 = vsel %vm980_vm2, %v9269_v42, 0.0 }
 0x413   : > { %v3811_v5 = vsel %vm3679_vm3, %v6511_v13, %v2911_v29  ;;  %v3810_v51 = vsel %vm3678_vm4, %v6511_v13, %v2910_v62  ;;  %vm983_vm10 = vcmp.eq.s32.totalorder %v9276_v14, 1  ;;  %vm982_vm11 = vcmp.eq.s32.totalorder %v9277_v17, 1  ;;  %v9296_v29 = vld [vmem:[#allocation151_spill] sm:$0xff]  ;;  %v9297_v62 = vld [vmem:[#allocation152_spill] sm:$0xff] }
 0x414   : > { %3940 = vst.msk [vmem:[%s6530_s20 + $0x1f8] sm:$0xff] %vm3876_vm8, %v3811_v5  ;;  %3939 = vst.msk [vmem:[%s6530_s20 + $0x1f0] sm:$0xff] %vm3876_vm8, %v3810_v51  ;;  %v2013_v56 = vsel %vm1881_vm5, %v6464_v54, %v1113_v52  ;;  %v2012_v2 = vsel %vm1880_vm6, %v6464_v54, %v1112_v10  ;;  %vm1883_vm12 = vcmp.eq.s32.totalorder %v9278_v32, 1  ;;  %vm1882_vm13 = vcmp.eq.s32.totalorder %v9279_v9, 1  ;;  %v9298_v52 = vld [vmem:[#allocation279_spill] sm:$0xff]  ;;  %v9299_v10 = vld [vmem:[#allocation280_spill] sm:$0xff] }
 0x415   : > { %v3429_v16 = vpop.permute.xlu1 %3428  ;;  %v3426_v3 = vpop.permute.xlu0 %3425  ;;  %v2913_v7 = vsel %vm2781_vm7, %v6488_v37, %v2013_v56  ;;  %v2912_v46 = vsel %vm2780_vm9, %v6488_v37, %v2012_v2  ;;  %vm2783_vm0 = vcmp.eq.s32.totalorder %v9280_v18, 1  ;;  %vm2782_vm1 = vcmp.eq.s32.totalorder %v9281_v36, 1  ;;  %v9300_v32 = vld [vmem:[#allocation25_spill] sm:$0xff]  ;;  %v9301_v9 = vld [vmem:[#allocation26_spill] sm:$0xff] }
 0x416   : > { %vm3681_vm14 = vcmp.eq.s32.totalorder %v3429_v16, 1  ;;  %vm3680_vm15 = vcmp.eq.s32.totalorder %v3426_v3, 1  ;;  %v1115_v21 = vsel %vm983_vm10, %v9269_v42, 0.0  ;;  %v1114_v30 = vsel %vm982_vm11, %v9269_v42, 0.0 }
 0x417   : > { %v3813_v53 = vsel %vm3681_vm14, %v6511_v13, %v2913_v7  ;;  %v3812_v47 = vsel %vm3680_vm15, %v6511_v13, %v2912_v46  ;;  %vm985_vm2 = vcmp.eq.s32.totalorder %v9282_v58, 1  ;;  %vm984_vm5 = vcmp.eq.s32.totalorder %v9283_v63, 1  ;;  %v9302_v7 = vld [vmem:[#allocation153_spill] sm:$0xff]  ;;  %v9303_v46 = vld [vmem:[#allocation154_spill] sm:$0xff] }
 0x418   : > { %3942 = vst.msk [vmem:[%s6530_s20 + $0x208] sm:$0xff] %vm3876_vm8, %v3813_v53  ;;  %3941 = vst.msk [vmem:[%s6530_s20 + $0x200] sm:$0xff] %vm3876_vm8, %v3812_v47  ;;  %v2015_v0 = vsel %vm1883_vm12, %v6464_v54, %v1115_v21  ;;  %v2014_v34 = vsel %vm1882_vm13, %v6464_v54, %v1114_v30  ;;  %vm1885_vm6 = vcmp.eq.s32.totalorder %v9284_v6, 1  ;;  %vm1884_vm3 = vcmp.eq.s32.totalorder %v9285_v33, 1  ;;  %v9304_v21 = vld [vmem:[#allocation281_spill] sm:$0xff]  ;;  %v9305_v30 = vld [vmem:[#allocation282_spill] sm:$0xff] }
 0x419   : > { %v3435_v22 = vpop.permute.xlu1 %3434  ;;  %v3432_v61 = vpop.permute.xlu0 %3431  ;;  %v2915_v31 = vsel %vm2783_vm0, %v6488_v37, %v2015_v0  ;;  %v2914_v12 = vsel %vm2782_vm1, %v6488_v37, %v2014_v34  ;;  %vm2785_vm9 = vcmp.eq.s32.totalorder %v9286_v55, 1  ;;  %vm2784_vm10 = vcmp.eq.s32.totalorder %v9287_v4, 1  ;;  %v9306_v6 = vld [vmem:[#allocation27_spill] sm:$0xff]  ;;  %v9307_v33 = vld [vmem:[#allocation28_spill] sm:$0xff] }
 0x41a   : > { %vm3683_vm4 = vcmp.eq.s32.totalorder %v3435_v22, 1  ;;  %vm3682_vm7 = vcmp.eq.s32.totalorder %v3432_v61, 1  ;;  %v1117_v23 = vsel %vm985_vm2, %v9269_v42, 0.0  ;;  %v1116_v44 = vsel %vm984_vm5, %v9269_v42, 0.0 }
 0x41b   : > { %v3815_v50 = vsel %vm3683_vm4, %v6511_v13, %v2915_v31  ;;  %v3814_v59 = vsel %vm3682_vm7, %v6511_v13, %v2914_v12  ;;  %vm987_vm11 = vcmp.eq.s32.totalorder %v9288_v48, 1  ;;  %vm986_vm12 = vcmp.eq.s32.totalorder %v9289_v43, 1  ;;  %v9308_v31 = vld [vmem:[#allocation155_spill] sm:$0xff]  ;;  %v9309_v12 = vld [vmem:[#allocation156_spill] sm:$0xff] }
 0x41c   : > { %3944 = vst.msk [vmem:[%s6530_s20 + $0x218] sm:$0xff] %vm3876_vm8, %v3815_v50  ;;  %3943 = vst.msk [vmem:[%s6530_s20 + $0x210] sm:$0xff] %vm3876_vm8, %v3814_v59  ;;  %v2017_v45 = vsel %vm1885_vm6, %v6464_v54, %v1117_v23  ;;  %v2016_v24 = vsel %vm1884_vm3, %v6464_v54, %v1116_v44  ;;  %vm1887_vm13 = vcmp.eq.s32.totalorder %v9290_v11, 1  ;;  %vm1886_vm14 = vcmp.eq.s32.totalorder %v9291_v25, 1  ;;  %v9310_v23 = vld [vmem:[#allocation283_spill] sm:$0xff]  ;;  %v9311_v44 = vld [vmem:[#allocation284_spill] sm:$0xff] }
 0x41d   : > { %v3441_v8 = vpop.permute.xlu1 %3440  ;;  %v3438_v19 = vpop.permute.xlu0 %3437  ;;  %v2917_v35 = vsel %vm2785_vm9, %v6488_v37, %v2017_v45  ;;  %v2916_v28 = vsel %vm2784_vm10, %v6488_v37, %v2016_v24  ;;  %vm2787_vm1 = vcmp.eq.s32.totalorder %v9292_v15, 1  ;;  %vm2786_vm2 = vcmp.eq.s32.totalorder %v9293_v39, 1  ;;  %v9312_v11 = vld [vmem:[#allocation29_spill] sm:$0xff]  ;;  %v9313_v25 = vld [vmem:[#allocation30_spill] sm:$0xff] }
 0x41e   : > { %vm3685_vm15 = vcmp.eq.s32.totalorder %v3441_v8, 1  ;;  %vm3684_vm0 = vcmp.eq.s32.totalorder %v3438_v19, 1  ;;  %v1119_v40 = vsel %vm987_vm11, %v9269_v42, 0.0  ;;  %v1118_v57 = vsel %vm986_vm12, %v9269_v42, 0.0 }
 0x41f   : > { %v3817_v1 = vsel %vm3685_vm15, %v6511_v13, %v2917_v35  ;;  %v3816_v60 = vsel %vm3684_vm0, %v6511_v13, %v2916_v28  ;;  %vm989_vm5 = vcmp.eq.s32.totalorder %v9294_v49, 1  ;;  %vm988_vm6 = vcmp.eq.s32.totalorder %v9295_v26, 1  ;;  %v9314_v35 = vld [vmem:[#allocation157_spill] sm:$0xff]  ;;  %v9315_v28 = vld [vmem:[#allocation158_spill] sm:$0xff] }
 0x420   : > { %3946 = vst.msk [vmem:[%s6530_s20 + $0x228] sm:$0xff] %vm3876_vm8, %v3817_v1  ;;  %3945 = vst.msk [vmem:[%s6530_s20 + $0x220] sm:$0xff] %vm3876_vm8, %v3816_v60  ;;  %v2019_v41 = vsel %vm1887_vm13, %v6464_v54, %v1119_v40  ;;  %v2018_v27 = vsel %vm1886_vm14, %v6464_v54, %v1118_v57  ;;  %vm1889_vm3 = vcmp.eq.s32.totalorder %v9296_v29, 1  ;;  %vm1888_vm4 = vcmp.eq.s32.totalorder %v9297_v62, 1  ;;  %v9316_v40 = vld [vmem:[#allocation285_spill] sm:$0xff]  ;;  %v9317_v57 = vld [vmem:[#allocation286_spill] sm:$0xff] }
 0x421   : > { %v3447_v38 = vpop.permute.xlu1 %3446  ;;  %v3444_v20 = vpop.permute.xlu0 %3443  ;;  %v2919_v5 = vsel %vm2787_vm1, %v6488_v37, %v2019_v41  ;;  %v2918_v51 = vsel %vm2786_vm2, %v6488_v37, %v2018_v27  ;;  %vm2789_vm10 = vcmp.eq.s32.totalorder %v9298_v52, 1  ;;  %vm2788_vm11 = vcmp.eq.s32.totalorder %v9299_v10, 1  ;;  %v9318_v29 = vld [vmem:[#allocation31_spill] sm:$0xff]  ;;  %v9319_v62 = vld [vmem:[#allocation32_spill] sm:$0xff] }
 0x422   : > { %vm3687_vm7 = vcmp.eq.s32.totalorder %v3447_v38, 1  ;;  %vm3686_vm9 = vcmp.eq.s32.totalorder %v3444_v20, 1  ;;  %v1121_v56 = vsel %vm989_vm5, %v9269_v42, 0.0  ;;  %v1120_v2 = vsel %vm988_vm6, %v9269_v42, 0.0 }
 0x423   : > { %v3819_v14 = vsel %vm3687_vm7, %v6511_v13, %v2919_v5  ;;  %v3818_v17 = vsel %vm3686_vm9, %v6511_v13, %v2918_v51  ;;  %vm991_vm12 = vcmp.eq.s32.totalorder %v9300_v32, 1  ;;  %vm990_vm13 = vcmp.eq.s32.totalorder %v9301_v9, 1  ;;  %v9320_v5 = vld [vmem:[#allocation159_spill] sm:$0xff]  ;;  %v9321_v51 = vld [vmem:[#allocation160_spill] sm:$0xff] }
 0x424   : > { %3948 = vst.msk [vmem:[%s6530_s20 + $0x238] sm:$0xff] %vm3876_vm8, %v3819_v14  ;;  %3947 = vst.msk [vmem:[%s6530_s20 + $0x230] sm:$0xff] %vm3876_vm8, %v3818_v17  ;;  %v2021_v16 = vsel %vm1889_vm3, %v6464_v54, %v1121_v56  ;;  %v2020_v3 = vsel %vm1888_vm4, %v6464_v54, %v1120_v2  ;;  %vm1891_vm14 = vcmp.eq.s32.totalorder %v9302_v7, 1  ;;  %vm1890_vm15 = vcmp.eq.s32.totalorder %v9303_v46, 1  ;;  %v9322_v56 = vld [vmem:[#allocation287_spill] sm:$0xff]  ;;  %v9323_v2 = vld [vmem:[#allocation288_spill] sm:$0xff] }
 0x425   : > { %v3453_v18 = vpop.permute.xlu1 %3452  ;;  %v3450_v36 = vpop.permute.xlu0 %3449  ;;  %v2921_v53 = vsel %vm2789_vm10, %v6488_v37, %v2021_v16  ;;  %v2920_v47 = vsel %vm2788_vm11, %v6488_v37, %v2020_v3  ;;  %vm2791_vm2 = vcmp.eq.s32.totalorder %v9304_v21, 1  ;;  %vm2790_vm5 = vcmp.eq.s32.totalorder %v9305_v30, 1  ;;  %v9324_v7 = vld [vmem:[#allocation33_spill] sm:$0xff]  ;;  %v9325_v46 = vld [vmem:[#allocation34_spill] sm:$0xff] }
 0x426   : > { %vm3689_vm0 = vcmp.eq.s32.totalorder %v3453_v18, 1  ;;  %vm3688_vm1 = vcmp.eq.s32.totalorder %v3450_v36, 1  ;;  %v1123_v0 = vsel %vm991_vm12, %v9269_v42, 0.0  ;;  %v1122_v34 = vsel %vm990_vm13, %v9269_v42, 0.0 }
 0x427   : > { %v3821_v58 = vsel %vm3689_vm0, %v6511_v13, %v2921_v53  ;;  %v3820_v63 = vsel %vm3688_vm1, %v6511_v13, %v2920_v47  ;;  %vm993_vm6 = vcmp.eq.s32.totalorder %v9306_v6, 1  ;;  %vm992_vm3 = vcmp.eq.s32.totalorder %v9307_v33, 1  ;;  %v9326_v53 = vld [vmem:[#allocation161_spill] sm:$0xff]  ;;  %v9327_v47 = vld [vmem:[#allocation162_spill] sm:$0xff] }
 0x428   : > { %3950 = vst.msk [vmem:[%s6530_s20 + $0x248] sm:$0xff] %vm3876_vm8, %v3821_v58  ;;  %3949 = vst.msk [vmem:[%s6530_s20 + $0x240] sm:$0xff] %vm3876_vm8, %v3820_v63  ;;  %v2023_v22 = vsel %vm1891_vm14, %v6464_v54, %v1123_v0  ;;  %v2022_v61 = vsel %vm1890_vm15, %v6464_v54, %v1122_v34  ;;  %vm1893_vm4 = vcmp.eq.s32.totalorder %v9308_v31, 1  ;;  %vm1892_vm7 = vcmp.eq.s32.totalorder %v9309_v12, 1  ;;  %v9328_v0 = vld [vmem:[#allocation289_spill] sm:$0xff]  ;;  %v9329_v34 = vld [vmem:[#allocation290_spill] sm:$0xff] }
 0x429   : > { %v3459_v55 = vpop.permute.xlu1 %3458  ;;  %v3456_v4 = vpop.permute.xlu0 %3455  ;;  %v2923_v50 = vsel %vm2791_vm2, %v6488_v37, %v2023_v22  ;;  %v2922_v59 = vsel %vm2790_vm5, %v6488_v37, %v2022_v61  ;;  %vm2793_vm11 = vcmp.eq.s32.totalorder %v9310_v23, 1  ;;  %vm2792_vm12 = vcmp.eq.s32.totalorder %v9311_v44, 1  ;;  %v9330_v31 = vld [vmem:[#allocation35_spill] sm:$0xff]  ;;  %v9331_v12 = vld [vmem:[#allocation36_spill] sm:$0xff] }
 0x42a   : > { %vm3691_vm9 = vcmp.eq.s32.totalorder %v3459_v55, 1  ;;  %vm3690_vm10 = vcmp.eq.s32.totalorder %v3456_v4, 1  ;;  %v1125_v45 = vsel %vm993_vm6, %v9269_v42, 0.0  ;;  %v1124_v24 = vsel %vm992_vm3, %v9269_v42, 0.0 }
 0x42b   : > { %v3823_v48 = vsel %vm3691_vm9, %v6511_v13, %v2923_v50  ;;  %v3822_v43 = vsel %vm3690_vm10, %v6511_v13, %v2922_v59  ;;  %vm995_vm13 = vcmp.eq.s32.totalorder %v9312_v11, 1  ;;  %vm994_vm14 = vcmp.eq.s32.totalorder %v9313_v25, 1  ;;  %v9332_v50 = vld [vmem:[#allocation163_spill] sm:$0xff]  ;;  %v9333_v59 = vld [vmem:[#allocation164_spill] sm:$0xff] }
 0x42c   : > { %3952 = vst.msk [vmem:[%s6530_s20 + $0x258] sm:$0xff] %vm3876_vm8, %v3823_v48  ;;  %3951 = vst.msk [vmem:[%s6530_s20 + $0x250] sm:$0xff] %vm3876_vm8, %v3822_v43  ;;  %v2025_v8 = vsel %vm1893_vm4, %v6464_v54, %v1125_v45  ;;  %v2024_v19 = vsel %vm1892_vm7, %v6464_v54, %v1124_v24  ;;  %vm1895_vm15 = vcmp.eq.s32.totalorder %v9314_v35, 1  ;;  %vm1894_vm0 = vcmp.eq.s32.totalorder %v9315_v28, 1  ;;  %v9334_v45 = vld [vmem:[#allocation291_spill] sm:$0xff]  ;;  %v9335_v24 = vld [vmem:[#allocation292_spill] sm:$0xff] }
 0x42d   : > { %v3465_v15 = vpop.permute.xlu1 %3464  ;;  %v3462_v39 = vpop.permute.xlu0 %3461  ;;  %v2925_v1 = vsel %vm2793_vm11, %v6488_v37, %v2025_v8  ;;  %v2924_v60 = vsel %vm2792_vm12, %v6488_v37, %v2024_v19  ;;  %vm2795_vm5 = vcmp.eq.s32.totalorder %v9316_v40, 1  ;;  %vm2794_vm6 = vcmp.eq.s32.totalorder %v9317_v57, 1  ;;  %v9336_v35 = vld [vmem:[#allocation37_spill] sm:$0xff]  ;;  %v9337_v28 = vld [vmem:[#allocation38_spill] sm:$0xff] }
 0x42e   : > { %vm3693_vm1 = vcmp.eq.s32.totalorder %v3465_v15, 1  ;;  %vm3692_vm2 = vcmp.eq.s32.totalorder %v3462_v39, 1  ;;  %v1127_v41 = vsel %vm995_vm13, %v9269_v42, 0.0  ;;  %v1126_v27 = vsel %vm994_vm14, %v9269_v42, 0.0 }
 0x42f   : > { %v3825_v49 = vsel %vm3693_vm1, %v6511_v13, %v2925_v1  ;;  %v3824_v26 = vsel %vm3692_vm2, %v6511_v13, %v2924_v60  ;;  %vm997_vm3 = vcmp.eq.s32.totalorder %v9318_v29, 1  ;;  %vm996_vm4 = vcmp.eq.s32.totalorder %v9319_v62, 1  ;;  %v9338_v1 = vld [vmem:[#allocation165_spill] sm:$0xff]  ;;  %v9339_v60 = vld [vmem:[#allocation166_spill] sm:$0xff] }
 0x430   : > { %3954 = vst.msk [vmem:[%s6530_s20 + $0x268] sm:$0xff] %vm3876_vm8, %v3825_v49  ;;  %3953 = vst.msk [vmem:[%s6530_s20 + $0x260] sm:$0xff] %vm3876_vm8, %v3824_v26  ;;  %v2027_v38 = vsel %vm1895_vm15, %v6464_v54, %v1127_v41  ;;  %v2026_v20 = vsel %vm1894_vm0, %v6464_v54, %v1126_v27  ;;  %vm1897_vm7 = vcmp.eq.s32.totalorder %v9320_v5, 1  ;;  %vm1896_vm9 = vcmp.eq.s32.totalorder %v9321_v51, 1  ;;  %v9340_v41 = vld [vmem:[#allocation293_spill] sm:$0xff]  ;;  %v9341_v27 = vld [vmem:[#allocation294_spill] sm:$0xff] }
 0x431   : > { %v3471_v52 = vpop.permute.xlu1 %3470  ;;  %v3468_v10 = vpop.permute.xlu0 %3467  ;;  %v2927_v14 = vsel %vm2795_vm5, %v6488_v37, %v2027_v38  ;;  %v2926_v17 = vsel %vm2794_vm6, %v6488_v37, %v2026_v20  ;;  %vm2797_vm12 = vcmp.eq.s32.totalorder %v9322_v56, 1  ;;  %vm2796_vm13 = vcmp.eq.s32.totalorder %v9323_v2, 1  ;;  %v9342_v5 = vld [vmem:[#allocation39_spill] sm:$0xff]  ;;  %v9343_v51 = vld [vmem:[#allocation40_spill] sm:$0xff] }
 0x432   : > { %vm3695_vm10 = vcmp.eq.s32.totalorder %v3471_v52, 1  ;;  %vm3694_vm11 = vcmp.eq.s32.totalorder %v3468_v10, 1  ;;  %v1129_v16 = vsel %vm997_vm3, %v9269_v42, 0.0  ;;  %v1128_v3 = vsel %vm996_vm4, %v9269_v42, 0.0 }
 0x433   : > { %v3827_v32 = vsel %vm3695_vm10, %v6511_v13, %v2927_v14  ;;  %v3826_v9 = vsel %vm3694_vm11, %v6511_v13, %v2926_v17  ;;  %vm999_vm14 = vcmp.eq.s32.totalorder %v9324_v7, 1  ;;  %vm998_vm15 = vcmp.eq.s32.totalorder %v9325_v46, 1  ;;  %v9344_v14 = vld [vmem:[#allocation167_spill] sm:$0xff]  ;;  %v9345_v17 = vld [vmem:[#allocation168_spill] sm:$0xff] }
 0x434   : > { %3956 = vst.msk [vmem:[%s6530_s20 + $0x278] sm:$0xff] %vm3876_vm8, %v3827_v32  ;;  %3955 = vst.msk [vmem:[%s6530_s20 + $0x270] sm:$0xff] %vm3876_vm8, %v3826_v9  ;;  %v2029_v18 = vsel %vm1897_vm7, %v6464_v54, %v1129_v16  ;;  %v2028_v36 = vsel %vm1896_vm9, %v6464_v54, %v1128_v3  ;;  %vm1899_vm0 = vcmp.eq.s32.totalorder %v9326_v53, 1  ;;  %vm1898_vm1 = vcmp.eq.s32.totalorder %v9327_v47, 1  ;;  %v9346_v16 = vld [vmem:[#allocation295_spill] sm:$0xff]  ;;  %v9347_v3 = vld [vmem:[#allocation296_spill] sm:$0xff] }
 0x435   : > { %v3477_v21 = vpop.permute.xlu1 %3476  ;;  %v3474_v30 = vpop.permute.xlu0 %3473  ;;  %v2929_v58 = vsel %vm2797_vm12, %v6488_v37, %v2029_v18  ;;  %v2928_v63 = vsel %vm2796_vm13, %v6488_v37, %v2028_v36  ;;  %vm2799_vm6 = vcmp.eq.s32.totalorder %v9328_v0, 1  ;;  %vm2798_vm3 = vcmp.eq.s32.totalorder %v9329_v34, 1  ;;  %v9348_v53 = vld [vmem:[#allocation41_spill] sm:$0xff]  ;;  %v9349_v47 = vld [vmem:[#allocation42_spill] sm:$0xff] }
 0x436   : > { %vm3697_vm2 = vcmp.eq.s32.totalorder %v3477_v21, 1  ;;  %vm3696_vm5 = vcmp.eq.s32.totalorder %v3474_v30, 1  ;;  %v1131_v22 = vsel %vm999_vm14, %v9269_v42, 0.0  ;;  %v1130_v61 = vsel %vm998_vm15, %v9269_v42, 0.0 }
 0x437   : > { %v3829_v6 = vsel %vm3697_vm2, %v6511_v13, %v2929_v58  ;;  %v3828_v33 = vsel %vm3696_vm5, %v6511_v13, %v2928_v63  ;;  %vm1001_vm4 = vcmp.eq.s32.totalorder %v9330_v31, 1  ;;  %vm1000_vm7 = vcmp.eq.s32.totalorder %v9331_v12, 1  ;;  %v9350_v58 = vld [vmem:[#allocation169_spill] sm:$0xff]  ;;  %v9351_v63 = vld [vmem:[#allocation170_spill] sm:$0xff] }
 0x438   : > { %3958 = vst.msk [vmem:[%s6530_s20 + $0x288] sm:$0xff] %vm3876_vm8, %v3829_v6  ;;  %3957 = vst.msk [vmem:[%s6530_s20 + $0x280] sm:$0xff] %vm3876_vm8, %v3828_v33  ;;  %v2031_v55 = vsel %vm1899_vm0, %v6464_v54, %v1131_v22  ;;  %v2030_v4 = vsel %vm1898_vm1, %v6464_v54, %v1130_v61  ;;  %vm1901_vm9 = vcmp.eq.s32.totalorder %v9332_v50, 1  ;;  %vm1900_vm10 = vcmp.eq.s32.totalorder %v9333_v59, 1  ;;  %v9352_v22 = vld [vmem:[#allocation297_spill] sm:$0xff]  ;;  %v9353_v61 = vld [vmem:[#allocation298_spill] sm:$0xff] }
 0x439   : > { %v3483_v23 = vpop.permute.xlu1 %3482  ;;  %v3480_v44 = vpop.permute.xlu0 %3479  ;;  %v2931_v48 = vsel %vm2799_vm6, %v6488_v37, %v2031_v55  ;;  %v2930_v43 = vsel %vm2798_vm3, %v6488_v37, %v2030_v4  ;;  %vm2801_vm13 = vcmp.eq.s32.totalorder %v9334_v45, 1  ;;  %vm2800_vm14 = vcmp.eq.s32.totalorder %v9335_v24, 1  ;;  %v9354_v50 = vld [vmem:[#allocation43_spill] sm:$0xff]  ;;  %v9355_v59 = vld [vmem:[#allocation44_spill] sm:$0xff] }
 0x43a   : > { %vm3699_vm11 = vcmp.eq.s32.totalorder %v3483_v23, 1  ;;  %vm3698_vm12 = vcmp.eq.s32.totalorder %v3480_v44, 1  ;;  %v1133_v8 = vsel %vm1001_vm4, %v9269_v42, 0.0  ;;  %v1132_v19 = vsel %vm1000_vm7, %v9269_v42, 0.0 }
 0x43b   : > { %v3831_v11 = vsel %vm3699_vm11, %v6511_v13, %v2931_v48  ;;  %v3830_v25 = vsel %vm3698_vm12, %v6511_v13, %v2930_v43  ;;  %vm1003_vm15 = vcmp.eq.s32.totalorder %v9336_v35, 1  ;;  %vm1002_vm0 = vcmp.eq.s32.totalorder %v9337_v28, 1  ;;  %v9356_v48 = vld [vmem:[#allocation171_spill] sm:$0xff]  ;;  %v9357_v43 = vld [vmem:[#allocation172_spill] sm:$0xff] }
 0x43c   : > { %3960 = vst.msk [vmem:[%s6530_s20 + $0x298] sm:$0xff] %vm3876_vm8, %v3831_v11  ;;  %3959 = vst.msk [vmem:[%s6530_s20 + $0x290] sm:$0xff] %vm3876_vm8, %v3830_v25  ;;  %v2033_v15 = vsel %vm1901_vm9, %v6464_v54, %v1133_v8  ;;  %v2032_v39 = vsel %vm1900_vm10, %v6464_v54, %v1132_v19  ;;  %vm1903_vm1 = vcmp.eq.s32.totalorder %v9338_v1, 1  ;;  %vm1902_vm2 = vcmp.eq.s32.totalorder %v9339_v60, 1  ;;  %v9358_v8 = vld [vmem:[#allocation299_spill] sm:$0xff]  ;;  %v9359_v19 = vld [vmem:[#allocation300_spill] sm:$0xff] }
 0x43d   : > { %v3489_v40 = vpop.permute.xlu1 %3488  ;;  %v3486_v57 = vpop.permute.xlu0 %3485  ;;  %v2933_v49 = vsel %vm2801_vm13, %v6488_v37, %v2033_v15  ;;  %v2932_v26 = vsel %vm2800_vm14, %v6488_v37, %v2032_v39  ;;  %vm2803_vm3 = vcmp.eq.s32.totalorder %v9340_v41, 1  ;;  %vm2802_vm4 = vcmp.eq.s32.totalorder %v9341_v27, 1  ;;  %v9360_v1 = vld [vmem:[#allocation45_spill] sm:$0xff]  ;;  %v9361_v60 = vld [vmem:[#allocation46_spill] sm:$0xff] }
 0x43e   : > { %vm3701_vm5 = vcmp.eq.s32.totalorder %v3489_v40, 1  ;;  %vm3700_vm6 = vcmp.eq.s32.totalorder %v3486_v57, 1  ;;  %v1135_v38 = vsel %vm1003_vm15, %v9269_v42, 0.0  ;;  %v1134_v20 = vsel %vm1002_vm0, %v9269_v42, 0.0 }
 0x43f   : > { %v3833_v29 = vsel %vm3701_vm5, %v6511_v13, %v2933_v49  ;;  %v3832_v62 = vsel %vm3700_vm6, %v6511_v13, %v2932_v26  ;;  %vm1005_vm7 = vcmp.eq.s32.totalorder %v9342_v5, 1  ;;  %vm1004_vm9 = vcmp.eq.s32.totalorder %v9343_v51, 1  ;;  %v9362_v49 = vld [vmem:[#allocation173_spill] sm:$0xff]  ;;  %v9363_v26 = vld [vmem:[#allocation174_spill] sm:$0xff] }
 0x440   : > { %3962 = vst.msk [vmem:[%s6530_s20 + $0x2a8] sm:$0xff] %vm3876_vm8, %v3833_v29  ;;  %3961 = vst.msk [vmem:[%s6530_s20 + $0x2a0] sm:$0xff] %vm3876_vm8, %v3832_v62  ;;  %v2035_v52 = vsel %vm1903_vm1, %v6464_v54, %v1135_v38  ;;  %v2034_v10 = vsel %vm1902_vm2, %v6464_v54, %v1134_v20  ;;  %vm1905_vm10 = vcmp.eq.s32.totalorder %v9344_v14, 1  ;;  %vm1904_vm11 = vcmp.eq.s32.totalorder %v9345_v17, 1  ;;  %v9364_v38 = vld [vmem:[#allocation301_spill] sm:$0xff]  ;;  %v9365_v20 = vld [vmem:[#allocation302_spill] sm:$0xff] }
 0x441   : > { %v3495_v56 = vpop.permute.xlu1 %3494  ;;  %v3492_v2 = vpop.permute.xlu0 %3491  ;;  %v2935_v32 = vsel %vm2803_vm3, %v6488_v37, %v2035_v52  ;;  %v2934_v9 = vsel %vm2802_vm4, %v6488_v37, %v2034_v10  ;;  %vm2805_vm14 = vcmp.eq.s32.totalorder %v9346_v16, 1  ;;  %vm2804_vm15 = vcmp.eq.s32.totalorder %v9347_v3, 1  ;;  %v9366_v14 = vld [vmem:[#allocation47_spill] sm:$0xff]  ;;  %v9367_v17 = vld [vmem:[#allocation48_spill] sm:$0xff] }
 0x442   : > { %vm3703_vm12 = vcmp.eq.s32.totalorder %v3495_v56, 1  ;;  %vm3702_vm13 = vcmp.eq.s32.totalorder %v3492_v2, 1  ;;  %v1137_v18 = vsel %vm1005_vm7, %v9269_v42, 0.0  ;;  %v1136_v36 = vsel %vm1004_vm9, %v9269_v42, 0.0 }
 0x443   : > { %v3835_v7 = vsel %vm3703_vm12, %v6511_v13, %v2935_v32  ;;  %v3834_v46 = vsel %vm3702_vm13, %v6511_v13, %v2934_v9  ;;  %vm1007_vm0 = vcmp.eq.s32.totalorder %v9348_v53, 1  ;;  %vm1006_vm1 = vcmp.eq.s32.totalorder %v9349_v47, 1  ;;  %v9368_v32 = vld [vmem:[#allocation175_spill] sm:$0xff]  ;;  %v9369_v9 = vld [vmem:[#allocation176_spill] sm:$0xff] }
 0x444   : > { %3964 = vst.msk [vmem:[%s6530_s20 + $0x2b8] sm:$0xff] %vm3876_vm8, %v3835_v7  ;;  %3963 = vst.msk [vmem:[%s6530_s20 + $0x2b0] sm:$0xff] %vm3876_vm8, %v3834_v46  ;;  %v2037_v21 = vsel %vm1905_vm10, %v6464_v54, %v1137_v18  ;;  %v2036_v30 = vsel %vm1904_vm11, %v6464_v54, %v1136_v36  ;;  %vm1907_vm2 = vcmp.eq.s32.totalorder %v9350_v58, 1  ;;  %vm1906_vm5 = vcmp.eq.s32.totalorder %v9351_v63, 1  ;;  %v9370_v18 = vld [vmem:[#allocation303_spill] sm:$0xff]  ;;  %v9371_v36 = vld [vmem:[#allocation304_spill] sm:$0xff] }
 0x445   : > { %v3501_v0 = vpop.permute.xlu1 %3500  ;;  %v3498_v34 = vpop.permute.xlu0 %3497  ;;  %v2937_v6 = vsel %vm2805_vm14, %v6488_v37, %v2037_v21  ;;  %v2936_v33 = vsel %vm2804_vm15, %v6488_v37, %v2036_v30  ;;  %vm2807_vm4 = vcmp.eq.s32.totalorder %v9352_v22, 1  ;;  %vm2806_vm7 = vcmp.eq.s32.totalorder %v9353_v61, 1  ;;  %v9372_v58 = vld [vmem:[#allocation49_spill] sm:$0xff]  ;;  %v9373_v63 = vld [vmem:[#allocation50_spill] sm:$0xff] }
 0x446   : > { %vm3705_vm6 = vcmp.eq.s32.totalorder %v3501_v0, 1  ;;  %vm3704_vm3 = vcmp.eq.s32.totalorder %v3498_v34, 1  ;;  %v1139_v55 = vsel %vm1007_vm0, %v9269_v42, 0.0  ;;  %v1138_v4 = vsel %vm1006_vm1, %v9269_v42, 0.0 }
 0x447   : > { %v3837_v31 = vsel %vm3705_vm6, %v6511_v13, %v2937_v6  ;;  %v3836_v12 = vsel %vm3704_vm3, %v6511_v13, %v2936_v33  ;;  %vm1009_vm9 = vcmp.eq.s32.totalorder %v9354_v50, 1  ;;  %vm1008_vm10 = vcmp.eq.s32.totalorder %v9355_v59, 1  ;;  %v9374_v6 = vld [vmem:[#allocation177_spill] sm:$0xff]  ;;  %v9375_v33 = vld [vmem:[#allocation178_spill] sm:$0xff] }
 0x448   : > { %3966 = vst.msk [vmem:[%s6530_s20 + $0x2c8] sm:$0xff] %vm3876_vm8, %v3837_v31  ;;  %3965 = vst.msk [vmem:[%s6530_s20 + $0x2c0] sm:$0xff] %vm3876_vm8, %v3836_v12  ;;  %v2039_v23 = vsel %vm1907_vm2, %v6464_v54, %v1139_v55  ;;  %v2038_v44 = vsel %vm1906_vm5, %v6464_v54, %v1138_v4  ;;  %vm1909_vm11 = vcmp.eq.s32.totalorder %v9356_v48, 1  ;;  %vm1908_vm12 = vcmp.eq.s32.totalorder %v9357_v43, 1  ;;  %v9376_v55 = vld [vmem:[#allocation305_spill] sm:$0xff]  ;;  %v9377_v4 = vld [vmem:[#allocation306_spill] sm:$0xff] }
 0x449   : > { %v3507_v45 = vpop.permute.xlu1 %3506  ;;  %v3504_v24 = vpop.permute.xlu0 %3503  ;;  %v2939_v11 = vsel %vm2807_vm4, %v6488_v37, %v2039_v23  ;;  %v2938_v25 = vsel %vm2806_vm7, %v6488_v37, %v2038_v44  ;;  %vm2809_vm15 = vcmp.eq.s32.totalorder %v9358_v8, 1  ;;  %vm2808_vm0 = vcmp.eq.s32.totalorder %v9359_v19, 1  ;;  %v9378_v48 = vld [vmem:[#allocation51_spill] sm:$0xff]  ;;  %v9379_v43 = vld [vmem:[#allocation52_spill] sm:$0xff] }
 0x44a   : > { %vm3707_vm13 = vcmp.eq.s32.totalorder %v3507_v45, 1  ;;  %vm3706_vm14 = vcmp.eq.s32.totalorder %v3504_v24, 1  ;;  %v1141_v15 = vsel %vm1009_vm9, %v9269_v42, 0.0  ;;  %v1140_v39 = vsel %vm1008_vm10, %v9269_v42, 0.0 }
 0x44b   : > { %v3839_v35 = vsel %vm3707_vm13, %v6511_v13, %v2939_v11  ;;  %v3838_v28 = vsel %vm3706_vm14, %v6511_v13, %v2938_v25  ;;  %vm1011_vm1 = vcmp.eq.s32.totalorder %v9360_v1, 1  ;;  %vm1010_vm2 = vcmp.eq.s32.totalorder %v9361_v60, 1  ;;  %v9380_v11 = vld [vmem:[#allocation179_spill] sm:$0xff]  ;;  %v9381_v25 = vld [vmem:[#allocation180_spill] sm:$0xff] }
 0x44c   : > { %3968 = vst.msk [vmem:[%s6530_s20 + $0x2d8] sm:$0xff] %vm3876_vm8, %v3839_v35  ;;  %3967 = vst.msk [vmem:[%s6530_s20 + $0x2d0] sm:$0xff] %vm3876_vm8, %v3838_v28  ;;  %v2041_v40 = vsel %vm1909_vm11, %v6464_v54, %v1141_v15  ;;  %v2040_v57 = vsel %vm1908_vm12, %v6464_v54, %v1140_v39  ;;  %vm1911_vm5 = vcmp.eq.s32.totalorder %v9362_v49, 1  ;;  %vm1910_vm6 = vcmp.eq.s32.totalorder %v9363_v26, 1  ;;  %v9382_v15 = vld [vmem:[#allocation307_spill] sm:$0xff]  ;;  %v9383_v39 = vld [vmem:[#allocation308_spill] sm:$0xff] }
 0x44d   : > { %v3513_v41 = vpop.permute.xlu1 %3512  ;;  %v3510_v27 = vpop.permute.xlu0 %3509  ;;  %v2941_v29 = vsel %vm2809_vm15, %v6488_v37, %v2041_v40  ;;  %v2940_v62 = vsel %vm2808_vm0, %v6488_v37, %v2040_v57  ;;  %vm2811_vm7 = vcmp.eq.s32.totalorder %v9364_v38, 1  ;;  %vm2810_vm9 = vcmp.eq.s32.totalorder %v9365_v20, 1  ;;  %v9384_v49 = vld [vmem:[#allocation53_spill] sm:$0xff]  ;;  %v9385_v26 = vld [vmem:[#allocation54_spill] sm:$0xff] }
 0x44e   : > { %vm3709_vm3 = vcmp.eq.s32.totalorder %v3513_v41, 1  ;;  %vm3708_vm4 = vcmp.eq.s32.totalorder %v3510_v27, 1  ;;  %v1143_v52 = vsel %vm1011_vm1, %v9269_v42, 0.0  ;;  %v1142_v10 = vsel %vm1010_vm2, %v9269_v42, 0.0 }
 0x44f   : > { %v3841_v5 = vsel %vm3709_vm3, %v6511_v13, %v2941_v29  ;;  %v3840_v51 = vsel %vm3708_vm4, %v6511_v13, %v2940_v62  ;;  %vm1013_vm10 = vcmp.eq.s32.totalorder %v9366_v14, 1  ;;  %vm1012_vm11 = vcmp.eq.s32.totalorder %v9367_v17, 1  ;;  %v9386_v29 = vld [vmem:[#allocation181_spill] sm:$0xff]  ;;  %v9387_v62 = vld [vmem:[#allocation182_spill] sm:$0xff] }
 0x450   : > { %3970 = vst.msk [vmem:[%s6530_s20 + $0x2e8] sm:$0xff] %vm3876_vm8, %v3841_v5  ;;  %3969 = vst.msk [vmem:[%s6530_s20 + $0x2e0] sm:$0xff] %vm3876_vm8, %v3840_v51  ;;  %v2043_v56 = vsel %vm1911_vm5, %v6464_v54, %v1143_v52  ;;  %v2042_v2 = vsel %vm1910_vm6, %v6464_v54, %v1142_v10  ;;  %vm1913_vm12 = vcmp.eq.s32.totalorder %v9368_v32, 1  ;;  %vm1912_vm13 = vcmp.eq.s32.totalorder %v9369_v9, 1  ;;  %v9388_v52 = vld [vmem:[#allocation309_spill] sm:$0xff]  ;;  %v9389_v10 = vld [vmem:[#allocation310_spill] sm:$0xff] }
 0x451   : > { %v3519_v16 = vpop.permute.xlu1 %3518  ;;  %v3516_v3 = vpop.permute.xlu0 %3515  ;;  %v2943_v7 = vsel %vm2811_vm7, %v6488_v37, %v2043_v56  ;;  %v2942_v46 = vsel %vm2810_vm9, %v6488_v37, %v2042_v2  ;;  %vm2813_vm0 = vcmp.eq.s32.totalorder %v9370_v18, 1  ;;  %vm2812_vm1 = vcmp.eq.s32.totalorder %v9371_v36, 1  ;;  %v9390_v32 = vld [vmem:[#allocation55_spill] sm:$0xff]  ;;  %v9391_v9 = vld [vmem:[#allocation56_spill] sm:$0xff] }
 0x452   : > { %vm3711_vm14 = vcmp.eq.s32.totalorder %v3519_v16, 1  ;;  %vm3710_vm15 = vcmp.eq.s32.totalorder %v3516_v3, 1  ;;  %v1145_v21 = vsel %vm1013_vm10, %v9269_v42, 0.0  ;;  %v1144_v30 = vsel %vm1012_vm11, %v9269_v42, 0.0 }
 0x453   : > { %v3843_v53 = vsel %vm3711_vm14, %v6511_v13, %v2943_v7  ;;  %v3842_v47 = vsel %vm3710_vm15, %v6511_v13, %v2942_v46  ;;  %vm1015_vm2 = vcmp.eq.s32.totalorder %v9372_v58, 1  ;;  %vm1014_vm5 = vcmp.eq.s32.totalorder %v9373_v63, 1  ;;  %v9392_v7 = vld [vmem:[#allocation183_spill] sm:$0xff]  ;;  %v9393_v46 = vld [vmem:[#allocation184_spill] sm:$0xff] }
 0x454   : > { %3972 = vst.msk [vmem:[%s6530_s20 + $0x2f8] sm:$0xff] %vm3876_vm8, %v3843_v53  ;;  %3971 = vst.msk [vmem:[%s6530_s20 + $0x2f0] sm:$0xff] %vm3876_vm8, %v3842_v47  ;;  %v2045_v0 = vsel %vm1913_vm12, %v6464_v54, %v1145_v21  ;;  %v2044_v34 = vsel %vm1912_vm13, %v6464_v54, %v1144_v30  ;;  %vm1915_vm6 = vcmp.eq.s32.totalorder %v9374_v6, 1  ;;  %vm1914_vm3 = vcmp.eq.s32.totalorder %v9375_v33, 1  ;;  %v9394_v21 = vld [vmem:[#allocation312_spill] sm:$0xff]  ;;  %v9395_v30 = vld [vmem:[#allocation313_spill] sm:$0xff] }
 0x455   : > { %v3525_v22 = vpop.permute.xlu1 %3524  ;;  %v3522_v61 = vpop.permute.xlu0 %3521  ;;  %v2945_v31 = vsel %vm2813_vm0, %v6488_v37, %v2045_v0  ;;  %v2944_v12 = vsel %vm2812_vm1, %v6488_v37, %v2044_v34  ;;  %vm2815_vm9 = vcmp.eq.s32.totalorder %v9376_v55, 1  ;;  %vm2814_vm10 = vcmp.eq.s32.totalorder %v9377_v4, 1  ;;  %v9396_v6 = vld [vmem:[#allocation57_spill] sm:$0xff]  ;;  %v9397_v33 = vld [vmem:[#allocation58_spill] sm:$0xff] }
 0x456   : > { %vm3713_vm4 = vcmp.eq.s32.totalorder %v3525_v22, 1  ;;  %vm3712_vm7 = vcmp.eq.s32.totalorder %v3522_v61, 1  ;;  %v1147_v23 = vsel %vm1015_vm2, %v9269_v42, 0.0  ;;  %v1146_v44 = vsel %vm1014_vm5, %v9269_v42, 0.0 }
 0x457   : > { %v3845_v50 = vsel %vm3713_vm4, %v6511_v13, %v2945_v31  ;;  %v3844_v59 = vsel %vm3712_vm7, %v6511_v13, %v2944_v12  ;;  %vm1017_vm11 = vcmp.eq.s32.totalorder %v9378_v48, 1  ;;  %vm1016_vm12 = vcmp.eq.s32.totalorder %v9379_v43, 1  ;;  %v9398_v31 = vld [vmem:[#allocation185_spill] sm:$0xff]  ;;  %v9399_v12 = vld [vmem:[#allocation186_spill] sm:$0xff] }
 0x458   : > { %3974 = vst.msk [vmem:[%s6530_s20 + $0x308] sm:$0xff] %vm3876_vm8, %v3845_v50  ;;  %3973 = vst.msk [vmem:[%s6530_s20 + $0x300] sm:$0xff] %vm3876_vm8, %v3844_v59  ;;  %v2047_v45 = vsel %vm1915_vm6, %v6464_v54, %v1147_v23  ;;  %v2046_v24 = vsel %vm1914_vm3, %v6464_v54, %v1146_v44  ;;  %vm1917_vm13 = vcmp.eq.s32.totalorder %v9380_v11, 1  ;;  %vm1916_vm14 = vcmp.eq.s32.totalorder %v9381_v25, 1  ;;  %v9400_v23 = vld [vmem:[#allocation314_spill] sm:$0xff]  ;;  %v9401_v44 = vld [vmem:[#allocation315_spill] sm:$0xff] }
 0x459   : > { %v3531_v8 = vpop.permute.xlu1 %3530  ;;  %v3528_v19 = vpop.permute.xlu0 %3527  ;;  %v2947_v35 = vsel %vm2815_vm9, %v6488_v37, %v2047_v45  ;;  %v2946_v28 = vsel %vm2814_vm10, %v6488_v37, %v2046_v24  ;;  %vm2817_vm1 = vcmp.eq.s32.totalorder %v9382_v15, 1  ;;  %vm2816_vm2 = vcmp.eq.s32.totalorder %v9383_v39, 1  ;;  %v9402_v11 = vld [vmem:[#allocation59_spill] sm:$0xff]  ;;  %v9403_v25 = vld [vmem:[#allocation60_spill] sm:$0xff] }
 0x45a   : > { %vm3715_vm15 = vcmp.eq.s32.totalorder %v3531_v8, 1  ;;  %vm3714_vm0 = vcmp.eq.s32.totalorder %v3528_v19, 1  ;;  %v1149_v40 = vsel %vm1017_vm11, %v9269_v42, 0.0  ;;  %v1148_v57 = vsel %vm1016_vm12, %v9269_v42, 0.0 }
 0x45b   : > { %v3847_v1 = vsel %vm3715_vm15, %v6511_v13, %v2947_v35  ;;  %v3846_v60 = vsel %vm3714_vm0, %v6511_v13, %v2946_v28  ;;  %vm1019_vm5 = vcmp.eq.s32.totalorder %v9384_v49, 1  ;;  %vm1018_vm6 = vcmp.eq.s32.totalorder %v9385_v26, 1  ;;  %v9404_v35 = vld [vmem:[#allocation187_spill] sm:$0xff]  ;;  %v9405_v28 = vld [vmem:[#allocation188_spill] sm:$0xff] }
 0x45c   : > { %3976 = vst.msk [vmem:[%s6530_s20 + $0x318] sm:$0xff] %vm3876_vm8, %v3847_v1  ;;  %3975 = vst.msk [vmem:[%s6530_s20 + $0x310] sm:$0xff] %vm3876_vm8, %v3846_v60  ;;  %v2049_v41 = vsel %vm1917_vm13, %v6464_v54, %v1149_v40  ;;  %v2048_v27 = vsel %vm1916_vm14, %v6464_v54, %v1148_v57  ;;  %vm1919_vm3 = vcmp.eq.s32.totalorder %v9386_v29, 1  ;;  %vm1918_vm4 = vcmp.eq.s32.totalorder %v9387_v62, 1  ;;  %v9406_v40 = vld [vmem:[#allocation316_spill] sm:$0xff]  ;;  %v9407_v57 = vld [vmem:[#allocation317_spill] sm:$0xff] }
 0x45d   : > { %v3537_v38 = vpop.permute.xlu1 %3536  ;;  %v3534_v20 = vpop.permute.xlu0 %3533  ;;  %v2949_v5 = vsel %vm2817_vm1, %v6488_v37, %v2049_v41  ;;  %v2948_v51 = vsel %vm2816_vm2, %v6488_v37, %v2048_v27  ;;  %vm2819_vm10 = vcmp.eq.s32.totalorder %v9388_v52, 1  ;;  %vm2818_vm11 = vcmp.eq.s32.totalorder %v9389_v10, 1  ;;  %v9408_v29 = vld [vmem:[#allocation61_spill] sm:$0xff]  ;;  %v9409_v62 = vld [vmem:[#allocation62_spill] sm:$0xff] }
 0x45e   : > { %vm3717_vm7 = vcmp.eq.s32.totalorder %v3537_v38, 1  ;;  %vm3716_vm9 = vcmp.eq.s32.totalorder %v3534_v20, 1  ;;  %v1151_v56 = vsel %vm1019_vm5, %v9269_v42, 0.0  ;;  %v1150_v2 = vsel %vm1018_vm6, %v9269_v42, 0.0 }
 0x45f   : > { %v3849_v14 = vsel %vm3717_vm7, %v6511_v13, %v2949_v5  ;;  %v3848_v17 = vsel %vm3716_vm9, %v6511_v13, %v2948_v51  ;;  %vm1021_vm12 = vcmp.eq.s32.totalorder %v9390_v32, 1  ;;  %vm1020_vm13 = vcmp.eq.s32.totalorder %v9391_v9, 1  ;;  %v9410_v5 = vld [vmem:[#allocation189_spill] sm:$0xff]  ;;  %v9411_v51 = vld [vmem:[#allocation190_spill] sm:$0xff] }
 0x460   : > { %3978 = vst.msk [vmem:[%s6530_s20 + $0x328] sm:$0xff] %vm3876_vm8, %v3849_v14  ;;  %3977 = vst.msk [vmem:[%s6530_s20 + $0x320] sm:$0xff] %vm3876_vm8, %v3848_v17  ;;  %v2051_v16 = vsel %vm1919_vm3, %v6464_v54, %v1151_v56  ;;  %v2050_v3 = vsel %vm1918_vm4, %v6464_v54, %v1150_v2  ;;  %vm1921_vm14 = vcmp.eq.s32.totalorder %v9392_v7, 1  ;;  %vm1920_vm15 = vcmp.eq.s32.totalorder %v9393_v46, 1  ;;  %v9412_v56 = vld [vmem:[#allocation318_spill] sm:$0xff]  ;;  %v9413_v2 = vld [vmem:[#allocation319_spill] sm:$0xff] }
 0x461   : > { %v3543_v18 = vpop.permute.xlu1 %3542  ;;  %v3540_v36 = vpop.permute.xlu0 %3539  ;;  %v2951_v53 = vsel %vm2819_vm10, %v6488_v37, %v2051_v16  ;;  %v2950_v47 = vsel %vm2818_vm11, %v6488_v37, %v2050_v3  ;;  %vm2821_vm2 = vcmp.eq.s32.totalorder %v9394_v21, 1  ;;  %vm2820_vm5 = vcmp.eq.s32.totalorder %v9395_v30, 1  ;;  %v9414_v7 = vld [vmem:[#allocation63_spill] sm:$0xff]  ;;  %v9415_v46 = vld [vmem:[#allocation64_spill] sm:$0xff] }
 0x462   : > { %vm3719_vm0 = vcmp.eq.s32.totalorder %v3543_v18, 1  ;;  %vm3718_vm1 = vcmp.eq.s32.totalorder %v3540_v36, 1  ;;  %v1153_v0 = vsel %vm1021_vm12, %v9269_v42, 0.0  ;;  %v1152_v34 = vsel %vm1020_vm13, %v9269_v42, 0.0 }
 0x463   : > { %v3851_v58 = vsel %vm3719_vm0, %v6511_v13, %v2951_v53  ;;  %v3850_v63 = vsel %vm3718_vm1, %v6511_v13, %v2950_v47  ;;  %vm1023_vm6 = vcmp.eq.s32.totalorder %v9396_v6, 1  ;;  %vm1022_vm3 = vcmp.eq.s32.totalorder %v9397_v33, 1  ;;  %v9416_v53 = vld [vmem:[#allocation191_spill] sm:$0xff]  ;;  %v9417_v47 = vld [vmem:[#allocation192_spill] sm:$0xff] }
 0x464   : > { %3980 = vst.msk [vmem:[%s6530_s20 + $0x338] sm:$0xff] %vm3876_vm8, %v3851_v58  ;;  %3979 = vst.msk [vmem:[%s6530_s20 + $0x330] sm:$0xff] %vm3876_vm8, %v3850_v63  ;;  %v2053_v22 = vsel %vm1921_vm14, %v6464_v54, %v1153_v0  ;;  %v2052_v61 = vsel %vm1920_vm15, %v6464_v54, %v1152_v34  ;;  %vm1923_vm4 = vcmp.eq.s32.totalorder %v9398_v31, 1  ;;  %vm1922_vm7 = vcmp.eq.s32.totalorder %v9399_v12, 1  ;;  %v9418_v0 = vld [vmem:[#allocation320_spill] sm:$0xff]  ;;  %v9419_v34 = vld [vmem:[#allocation321_spill] sm:$0xff] }
 0x465   : > { %v3549_v55 = vpop.permute.xlu1 %3548  ;;  %v3546_v4 = vpop.permute.xlu0 %3545  ;;  %v2953_v50 = vsel %vm2821_vm2, %v6488_v37, %v2053_v22  ;;  %v2952_v59 = vsel %vm2820_vm5, %v6488_v37, %v2052_v61  ;;  %vm2823_vm11 = vcmp.eq.s32.totalorder %v9400_v23, 1  ;;  %vm2822_vm12 = vcmp.eq.s32.totalorder %v9401_v44, 1  ;;  %v9420_v31 = vld [vmem:[#allocation65_spill] sm:$0xff]  ;;  %v9421_v12 = vld [vmem:[#allocation66_spill] sm:$0xff] }
 0x466   : > { %vm3721_vm9 = vcmp.eq.s32.totalorder %v3549_v55, 1  ;;  %vm3720_vm10 = vcmp.eq.s32.totalorder %v3546_v4, 1  ;;  %v1155_v45 = vsel %vm1023_vm6, %v9269_v42, 0.0  ;;  %v1154_v24 = vsel %vm1022_vm3, %v9269_v42, 0.0 }
 0x467   : > { %v3853_v48 = vsel %vm3721_vm9, %v6511_v13, %v2953_v50  ;;  %v3852_v43 = vsel %vm3720_vm10, %v6511_v13, %v2952_v59  ;;  %vm1025_vm13 = vcmp.eq.s32.totalorder %v9402_v11, 1  ;;  %vm1024_vm14 = vcmp.eq.s32.totalorder %v9403_v25, 1  ;;  %v9422_v50 = vld [vmem:[#allocation193_spill] sm:$0xff]  ;;  %v9423_v59 = vld [vmem:[#allocation194_spill] sm:$0xff] }
 0x468   : > { %3982 = vst.msk [vmem:[%s6530_s20 + $0x348] sm:$0xff] %vm3876_vm8, %v3853_v48  ;;  %3981 = vst.msk [vmem:[%s6530_s20 + $0x340] sm:$0xff] %vm3876_vm8, %v3852_v43  ;;  %v2055_v8 = vsel %vm1923_vm4, %v6464_v54, %v1155_v45  ;;  %v2054_v19 = vsel %vm1922_vm7, %v6464_v54, %v1154_v24  ;;  %vm1925_vm15 = vcmp.eq.s32.totalorder %v9404_v35, 1  ;;  %vm1924_vm0 = vcmp.eq.s32.totalorder %v9405_v28, 1  ;;  %v9424_v45 = vld [vmem:[#allocation322_spill] sm:$0xff]  ;;  %v9425_v24 = vld [vmem:[#allocation323_spill] sm:$0xff] }
 0x469   : > { %v3555_v15 = vpop.permute.xlu1 %3554  ;;  %v3552_v39 = vpop.permute.xlu0 %3551  ;;  %v2955_v1 = vsel %vm2823_vm11, %v6488_v37, %v2055_v8  ;;  %v2954_v60 = vsel %vm2822_vm12, %v6488_v37, %v2054_v19  ;;  %vm2825_vm5 = vcmp.eq.s32.totalorder %v9406_v40, 1  ;;  %vm2824_vm6 = vcmp.eq.s32.totalorder %v9407_v57, 1  ;;  %v9426_v35 = vld [vmem:[#allocation67_spill] sm:$0xff]  ;;  %v9427_v28 = vld [vmem:[#allocation68_spill] sm:$0xff] }
 0x46a   : > { %vm3723_vm1 = vcmp.eq.s32.totalorder %v3555_v15, 1  ;;  %vm3722_vm2 = vcmp.eq.s32.totalorder %v3552_v39, 1  ;;  %v1157_v41 = vsel %vm1025_vm13, %v9269_v42, 0.0  ;;  %v1156_v27 = vsel %vm1024_vm14, %v9269_v42, 0.0 }
 0x46b   : > { %v3855_v49 = vsel %vm3723_vm1, %v6511_v13, %v2955_v1  ;;  %v3854_v26 = vsel %vm3722_vm2, %v6511_v13, %v2954_v60  ;;  %vm1027_vm3 = vcmp.eq.s32.totalorder %v9408_v29, 1  ;;  %vm1026_vm4 = vcmp.eq.s32.totalorder %v9409_v62, 1  ;;  %v9428_v1 = vld [vmem:[#allocation195_spill] sm:$0xff]  ;;  %v9429_v60 = vld [vmem:[#allocation196_spill] sm:$0xff] }
 0x46c   : > { %3984 = vst.msk [vmem:[%s6530_s20 + $0x358] sm:$0xff] %vm3876_vm8, %v3855_v49  ;;  %3983 = vst.msk [vmem:[%s6530_s20 + $0x350] sm:$0xff] %vm3876_vm8, %v3854_v26  ;;  %v2057_v38 = vsel %vm1925_vm15, %v6464_v54, %v1157_v41  ;;  %v2056_v20 = vsel %vm1924_vm0, %v6464_v54, %v1156_v27  ;;  %vm1927_vm7 = vcmp.eq.s32.totalorder %v9410_v5, 1  ;;  %vm1926_vm9 = vcmp.eq.s32.totalorder %v9411_v51, 1  ;;  %v9430_v41 = vld [vmem:[#allocation324_spill] sm:$0xff]  ;;  %v9431_v27 = vld [vmem:[#allocation325_spill] sm:$0xff] }
 0x46d   : > { %v3561_v52 = vpop.permute.xlu1 %3560  ;;  %v3558_v10 = vpop.permute.xlu0 %3557  ;;  %v2957_v14 = vsel %vm2825_vm5, %v6488_v37, %v2057_v38  ;;  %v2956_v17 = vsel %vm2824_vm6, %v6488_v37, %v2056_v20  ;;  %vm2827_vm12 = vcmp.eq.s32.totalorder %v9412_v56, 1  ;;  %vm2826_vm13 = vcmp.eq.s32.totalorder %v9413_v2, 1  ;;  %v9432_v5 = vld [vmem:[#allocation69_spill] sm:$0xff]  ;;  %v9433_v51 = vld [vmem:[#allocation70_spill] sm:$0xff] }
 0x46e   : > { %vm3725_vm10 = vcmp.eq.s32.totalorder %v3561_v52, 1  ;;  %vm3724_vm11 = vcmp.eq.s32.totalorder %v3558_v10, 1  ;;  %v1159_v16 = vsel %vm1027_vm3, %v9269_v42, 0.0  ;;  %v1158_v3 = vsel %vm1026_vm4, %v9269_v42, 0.0 }
 0x46f   : > { %v3857_v32 = vsel %vm3725_vm10, %v6511_v13, %v2957_v14  ;;  %v3856_v9 = vsel %vm3724_vm11, %v6511_v13, %v2956_v17  ;;  %vm1029_vm14 = vcmp.eq.s32.totalorder %v9414_v7, 1  ;;  %vm1028_vm15 = vcmp.eq.s32.totalorder %v9415_v46, 1  ;;  %v9434_v14 = vld [vmem:[#allocation197_spill] sm:$0xff]  ;;  %v9435_v17 = vld [vmem:[#allocation198_spill] sm:$0xff] }
 0x470   : > { %3986 = vst.msk [vmem:[%s6530_s20 + $0x368] sm:$0xff] %vm3876_vm8, %v3857_v32  ;;  %3985 = vst.msk [vmem:[%s6530_s20 + $0x360] sm:$0xff] %vm3876_vm8, %v3856_v9  ;;  %v2059_v18 = vsel %vm1927_vm7, %v6464_v54, %v1159_v16  ;;  %v2058_v36 = vsel %vm1926_vm9, %v6464_v54, %v1158_v3  ;;  %vm1929_vm0 = vcmp.eq.s32.totalorder %v9416_v53, 1  ;;  %vm1928_vm1 = vcmp.eq.s32.totalorder %v9417_v47, 1  ;;  %v9436_v16 = vld [vmem:[#allocation326_spill] sm:$0xff]  ;;  %v9437_v3 = vld [vmem:[#allocation327_spill] sm:$0xff] }
 0x471   : > { %v3567_v21 = vpop.permute.xlu1 %3566  ;;  %v3564_v30 = vpop.permute.xlu0 %3563  ;;  %v2959_v58 = vsel %vm2827_vm12, %v6488_v37, %v2059_v18  ;;  %v2958_v63 = vsel %vm2826_vm13, %v6488_v37, %v2058_v36  ;;  %vm2829_vm6 = vcmp.eq.s32.totalorder %v9418_v0, 1  ;;  %vm2828_vm3 = vcmp.eq.s32.totalorder %v9419_v34, 1  ;;  %v9438_v53 = vld [vmem:[#allocation71_spill] sm:$0xff]  ;;  %v9439_v47 = vld [vmem:[#allocation72_spill] sm:$0xff] }
 0x472   : > { %vm3727_vm2 = vcmp.eq.s32.totalorder %v3567_v21, 1  ;;  %vm3726_vm5 = vcmp.eq.s32.totalorder %v3564_v30, 1  ;;  %v1161_v22 = vsel %vm1029_vm14, %v9269_v42, 0.0  ;;  %v1160_v61 = vsel %vm1028_vm15, %v9269_v42, 0.0 }
 0x473   : > { %v3859_v6 = vsel %vm3727_vm2, %v6511_v13, %v2959_v58  ;;  %v3858_v33 = vsel %vm3726_vm5, %v6511_v13, %v2958_v63  ;;  %vm1031_vm4 = vcmp.eq.s32.totalorder %v9420_v31, 1  ;;  %vm1030_vm7 = vcmp.eq.s32.totalorder %v9421_v12, 1  ;;  %v9440_v58 = vld [vmem:[#allocation199_spill] sm:$0xff]  ;;  %v9441_v63 = vld [vmem:[#allocation200_spill] sm:$0xff] }
 0x474   : > { %3988 = vst.msk [vmem:[%s6530_s20 + $0x378] sm:$0xff] %vm3876_vm8, %v3859_v6  ;;  %3987 = vst.msk [vmem:[%s6530_s20 + $0x370] sm:$0xff] %vm3876_vm8, %v3858_v33  ;;  %v2061_v55 = vsel %vm1929_vm0, %v6464_v54, %v1161_v22  ;;  %v2060_v4 = vsel %vm1928_vm1, %v6464_v54, %v1160_v61  ;;  %vm1931_vm9 = vcmp.eq.s32.totalorder %v9422_v50, 1  ;;  %vm1930_vm10 = vcmp.eq.s32.totalorder %v9423_v59, 1  ;;  %v9442_v22 = vld [vmem:[#allocation330_spill] sm:$0xff]  ;;  %v9443_v61 = vld [vmem:[#allocation331_spill] sm:$0xff] }
 0x475   : > { %v3573_v23 = vpop.permute.xlu1 %3572  ;;  %v3570_v44 = vpop.permute.xlu0 %3569  ;;  %v2961_v48 = vsel %vm2829_vm6, %v6488_v37, %v2061_v55  ;;  %v2960_v43 = vsel %vm2828_vm3, %v6488_v37, %v2060_v4  ;;  %vm2831_vm13 = vcmp.eq.s32.totalorder %v9424_v45, 1  ;;  %vm2830_vm14 = vcmp.eq.s32.totalorder %v9425_v24, 1  ;;  %v9444_v50 = vld [vmem:[#allocation73_spill] sm:$0xff]  ;;  %v9445_v59 = vld [vmem:[#allocation74_spill] sm:$0xff] }
 0x476   : > { %vm3729_vm11 = vcmp.eq.s32.totalorder %v3573_v23, 1  ;;  %vm3728_vm12 = vcmp.eq.s32.totalorder %v3570_v44, 1  ;;  %v1163_v8 = vsel %vm1031_vm4, %v9269_v42, 0.0  ;;  %v1162_v19 = vsel %vm1030_vm7, %v9269_v42, 0.0 }
 0x477   : > { %v3861_v11 = vsel %vm3729_vm11, %v6511_v13, %v2961_v48  ;;  %v3860_v25 = vsel %vm3728_vm12, %v6511_v13, %v2960_v43  ;;  %vm1033_vm15 = vcmp.eq.s32.totalorder %v9426_v35, 1  ;;  %vm1032_vm0 = vcmp.eq.s32.totalorder %v9427_v28, 1  ;;  %v9446_v48 = vld [vmem:[#allocation201_spill] sm:$0xff]  ;;  %v9447_v43 = vld [vmem:[#allocation202_spill] sm:$0xff] }
 0x478   : > { %3990 = vst.msk [vmem:[%s6530_s20 + $0x388] sm:$0xff] %vm3876_vm8, %v3861_v11  ;;  %3989 = vst.msk [vmem:[%s6530_s20 + $0x380] sm:$0xff] %vm3876_vm8, %v3860_v25  ;;  %v2063_v15 = vsel %vm1931_vm9, %v6464_v54, %v1163_v8  ;;  %v2062_v39 = vsel %vm1930_vm10, %v6464_v54, %v1162_v19  ;;  %vm1933_vm1 = vcmp.eq.s32.totalorder %v9428_v1, 1  ;;  %vm1932_vm2 = vcmp.eq.s32.totalorder %v9429_v60, 1  ;;  %v9448_v8 = vld [vmem:[#allocation4_spill] sm:$0xff]  ;;  %v9449_v19 = vld [vmem:[#allocation5_spill] sm:$0xff] }
 0x479   : > { %v3579_v40 = vpop.permute.xlu1 %3578  ;;  %v3576_v57 = vpop.permute.xlu0 %3575  ;;  %v2963_v49 = vsel %vm2831_vm13, %v6488_v37, %v2063_v15  ;;  %v2962_v26 = vsel %vm2830_vm14, %v6488_v37, %v2062_v39  ;;  %vm2833_vm3 = vcmp.eq.s32.totalorder %v9430_v41, 1  ;;  %vm2832_vm4 = vcmp.eq.s32.totalorder %v9431_v27, 1  ;;  %v9450_v1 = vld [vmem:[#allocation75_spill] sm:$0xff]  ;;  %v9451_v60 = vld [vmem:[#allocation76_spill] sm:$0xff] }
 0x47a   : > { %vm3731_vm5 = vcmp.eq.s32.totalorder %v3579_v40, 1  ;;  %vm3730_vm6 = vcmp.eq.s32.totalorder %v3576_v57, 1  ;;  %v1165_v38 = vsel %vm1033_vm15, %v9269_v42, 0.0  ;;  %v1164_v20 = vsel %vm1032_vm0, %v9269_v42, 0.0 }
 0x47b   : > { %v3863_v29 = vsel %vm3731_vm5, %v6511_v13, %v2963_v49  ;;  %v3862_v62 = vsel %vm3730_vm6, %v6511_v13, %v2962_v26  ;;  %vm1035_vm7 = vcmp.eq.s32.totalorder %v9432_v5, 1  ;;  %vm1034_vm9 = vcmp.eq.s32.totalorder %v9433_v51, 1  ;;  %v9452_v49 = vld [vmem:[#allocation203_spill] sm:$0xff]  ;;  %v9453_v26 = vld [vmem:[#allocation204_spill] sm:$0xff] }
 0x47c   : > { %3992 = vst.msk [vmem:[%s6530_s20 + $0x398] sm:$0xff] %vm3876_vm8, %v3863_v29  ;;  %3991 = vst.msk [vmem:[%s6530_s20 + $0x390] sm:$0xff] %vm3876_vm8, %v3862_v62  ;;  %v2065_v52 = vsel %vm1933_vm1, %v6464_v54, %v1165_v38  ;;  %v2064_v10 = vsel %vm1932_vm2, %v6464_v54, %v1164_v20  ;;  %vm1935_vm10 = vcmp.eq.s32.totalorder %v9434_v14, 1  ;;  %vm1934_vm11 = vcmp.eq.s32.totalorder %v9435_v17, 1  ;;  %v9454_v38 = vld [vmem:[#allocation8_spill] sm:$0xff]  ;;  %v9456_v14 = vld [vmem:[#allocation77_spill] sm:$0xff] }
 0x47d   : > { %v3585_v56 = vpop.permute.xlu1 %3584  ;;  %v3582_v2 = vpop.permute.xlu0 %3581  ;;  %v2965_v32 = vsel %vm2833_vm3, %v6488_v37, %v2065_v52  ;;  %v2964_v9 = vsel %vm2832_vm4, %v6488_v37, %v2064_v10  ;;  %vm2835_vm14 = vcmp.eq.s32.totalorder %v9436_v16, 1  ;;  %vm2834_vm15 = vcmp.eq.s32.totalorder %v9437_v3, 1  ;;  %v9455_v20 = vld [vmem:[#allocation340_spill] sm:$0xff]  ;;  %v9457_v17 = vld [vmem:[#allocation78_spill] sm:$0xff] }
 0x47e   : > { %vm3733_vm12 = vcmp.eq.s32.totalorder %v3585_v56, 1  ;;  %vm3732_vm13 = vcmp.eq.s32.totalorder %v3582_v2, 1  ;;  %v1167_v18 = vsel %vm1035_vm7, %v9269_v42, 0.0  ;;  %v1166_v36 = vsel %vm1034_vm9, %v9269_v42, 0.0 }
 0x47f   : > { %v3865_v7 = vsel %vm3733_vm12, %v6511_v13, %v2965_v32  ;;  %v3864_v46 = vsel %vm3732_vm13, %v6511_v13, %v2964_v9  ;;  %vm1037_vm0 = vcmp.eq.s32.totalorder %v9438_v53, 1  ;;  %vm1036_vm1 = vcmp.eq.s32.totalorder %v9439_v47, 1  ;;  %v9458_v32 = vld [vmem:[#allocation205_spill] sm:$0xff]  ;;  %v9459_v9 = vld [vmem:[#allocation206_spill] sm:$0xff] }
 0x480   : > { %3994 = vst.msk [vmem:[%s6530_s20 + $0x3a8] sm:$0xff] %vm3876_vm8, %v3865_v7  ;;  %3993 = vst.msk [vmem:[%s6530_s20 + $0x3a0] sm:$0xff] %vm3876_vm8, %v3864_v46  ;;  %v2067_v21 = vsel %vm1935_vm10, %v6464_v54, %v1167_v18  ;;  %v2066_v30 = vsel %vm1934_vm11, %v6464_v54, %v1166_v36  ;;  %vm1937_vm2 = vcmp.eq.s32.totalorder %v9440_v58, 1  ;;  %vm1936_vm5 = vcmp.eq.s32.totalorder %v9441_v63, 1  ;;  %v9460_v18 = vld [vmem:[#allocation11_spill] sm:$0xff]  ;;  %v9461_v36 = vld [vmem:[#allocation12_spill] sm:$0xff] }
 0x481   : > { %v3591_v0 = vpop.permute.xlu1 %3590  ;;  %v3588_v34 = vpop.permute.xlu0 %3587  ;;  %v2967_v6 = vsel %vm2835_vm14, %v6488_v37, %v2067_v21  ;;  %v2966_v33 = vsel %vm2834_vm15, %v6488_v37, %v2066_v30  ;;  %vm2837_vm4 = vcmp.eq.s32.totalorder %v9442_v22, 1  ;;  %vm2836_vm7 = vcmp.eq.s32.totalorder %v9443_v61, 1 }
 0x482   : > { %vm3735_vm6 = vcmp.eq.s32.totalorder %v3591_v0, 1  ;;  %vm3734_vm3 = vcmp.eq.s32.totalorder %v3588_v34, 1  ;;  %v1169_v55 = vsel %vm1037_vm0, %v9269_v42, 0.0  ;;  %v1168_v4 = vsel %vm1036_vm1, %v9269_v42, 0.0 }
 0x483   : > { %v3867_v31 = vsel %vm3735_vm6, %v6511_v13, %v2967_v6  ;;  %v3866_v12 = vsel %vm3734_vm3, %v6511_v13, %v2966_v33  ;;  %vm1039_vm9 = vcmp.eq.s32.totalorder %v9444_v50, 1  ;;  %vm1038_vm10 = vcmp.eq.s32.totalorder %v9445_v59, 1 }
 0x484   : > { %3996 = vst.msk [vmem:[%s6530_s20 + $0x3b8] sm:$0xff] %vm3876_vm8, %v3867_v31  ;;  %3995 = vst.msk [vmem:[%s6530_s20 + $0x3b0] sm:$0xff] %vm3876_vm8, %v3866_v12  ;;  %v2069_v23 = vsel %vm1937_vm2, %v6464_v54, %v1169_v55  ;;  %v2068_v44 = vsel %vm1936_vm5, %v6464_v54, %v1168_v4  ;;  %vm1939_vm11 = vcmp.eq.s32.totalorder %v9446_v48, 1  ;;  %vm1938_vm12 = vcmp.eq.s32.totalorder %v9447_v43, 1 }
 0x485   : > { %v3597_v45 = vpop.permute.xlu1 %3596  ;;  %v3594_v24 = vpop.permute.xlu0 %3593  ;;  %v2969_v11 = vsel %vm2837_vm4, %v6488_v37, %v2069_v23  ;;  %v2968_v25 = vsel %vm2836_vm7, %v6488_v37, %v2068_v44  ;;  %vm2839_vm15 = vcmp.eq.s32.totalorder %v9448_v8, 1  ;;  %vm2838_vm0 = vcmp.eq.s32.totalorder %v9449_v19, 1 }
 0x486   : > { %vm3737_vm13 = vcmp.eq.s32.totalorder %v3597_v45, 1  ;;  %vm3736_vm14 = vcmp.eq.s32.totalorder %v3594_v24, 1  ;;  %v1171_v15 = vsel %vm1039_vm9, %v9269_v42, 0.0  ;;  %v1170_v39 = vsel %vm1038_vm10, %v9269_v42, 0.0 }
 0x487   : > { %v3869_v35 = vsel %vm3737_vm13, %v6511_v13, %v2969_v11  ;;  %v3868_v28 = vsel %vm3736_vm14, %v6511_v13, %v2968_v25  ;;  %vm1041_vm1 = vcmp.eq.s32.totalorder %v9450_v1, 1  ;;  %vm1040_vm2 = vcmp.eq.s32.totalorder %v9451_v60, 1 }
 0x488   : > { %3998 = vst.msk [vmem:[%s6530_s20 + $0x3c8] sm:$0xff] %vm3876_vm8, %v3869_v35  ;;  %3997 = vst.msk [vmem:[%s6530_s20 + $0x3c0] sm:$0xff] %vm3876_vm8, %v3868_v28  ;;  %v2071_v40 = vsel %vm1939_vm11, %v6464_v54, %v1171_v15  ;;  %v2070_v57 = vsel %vm1938_vm12, %v6464_v54, %v1170_v39  ;;  %vm1941_vm5 = vcmp.eq.s32.totalorder %v9452_v49, 1  ;;  %vm1940_vm6 = vcmp.eq.s32.totalorder %v9453_v26, 1 }
 0x489   : > { %v3603_v41 = vpop.permute.xlu1 %3602  ;;  %v3600_v27 = vpop.permute.xlu0 %3599  ;;  %v2971_v29 = vsel %vm2839_vm15, %v6488_v37, %v2071_v40  ;;  %v2970_v62 = vsel %vm2838_vm0, %v6488_v37, %v2070_v57  ;;  %vm2841_vm7 = vcmp.eq.s32.totalorder %v9454_v38, 1  ;;  %vm2840_vm9 = vcmp.eq.s32.totalorder %v9455_v20, 1 }
 0x48a   : > { %vm3739_vm3 = vcmp.eq.s32.totalorder %v3603_v41, 1  ;;  %vm3738_vm4 = vcmp.eq.s32.totalorder %v3600_v27, 1  ;;  %v1173_v52 = vsel %vm1041_vm1, %v9269_v42, 0.0  ;;  %v1172_v10 = vsel %vm1040_vm2, %v9269_v42, 0.0 }
 0x48b   : > { %v3871_v5 = vsel %vm3739_vm3, %v6511_v13, %v2971_v29  ;;  %v3870_v51 = vsel %vm3738_vm4, %v6511_v13, %v2970_v62  ;;  %vm1043_vm10 = vcmp.eq.s32.totalorder %v9456_v14, 1  ;;  %vm1042_vm11 = vcmp.eq.s32.totalorder %v9457_v17, 1 }
 0x48c   : > { %4000 = vst.msk [vmem:[%s6530_s20 + $0x3d8] sm:$0xff] %vm3876_vm8, %v3871_v5  ;;  %3999 = vst.msk [vmem:[%s6530_s20 + $0x3d0] sm:$0xff] %vm3876_vm8, %v3870_v51  ;;  %v2073_v56 = vsel %vm1941_vm5, %v6464_v54, %v1173_v52  ;;  %v2072_v2 = vsel %vm1940_vm6, %v6464_v54, %v1172_v10  ;;  %vm1943_vm12 = vcmp.eq.s32.totalorder %v9458_v32, 1  ;;  %vm1942_vm13 = vcmp.eq.s32.totalorder %v9459_v9, 1 }
 0x48d   : > { %v3609_v16 = vpop.permute.xlu1 %3608  ;;  %v3606_v3 = vpop.permute.xlu0 %3605  ;;  %v2973_v7 = vsel %vm2841_vm7, %v6488_v37, %v2073_v56  ;;  %v2972_v46 = vsel %vm2840_vm9, %v6488_v37, %v2072_v2  ;;  %vm2843_vm0 = vcmp.eq.s32.totalorder %v9460_v18, 1  ;;  %vm2842_vm1 = vcmp.eq.s32.totalorder %v9461_v36, 1 }
 0x48e   : > { %vm3741_vm14 = vcmp.eq.s32.totalorder %v3609_v16, 1  ;;  %vm3740_vm15 = vcmp.eq.s32.totalorder %v3606_v3, 1  ;;  %v1175_v21 = vsel %vm1043_vm10, %v9269_v42, 0.0  ;;  %v1174_v30 = vsel %vm1042_vm11, %v9269_v42, 0.0 }
 0x48f   : > { %v3873_v53 = vsel %vm3741_vm14, %v6511_v13, %v2973_v7  ;;  %v3872_v47 = vsel %vm3740_vm15, %v6511_v13, %v2972_v46  ;;  %v2075_v58 = vsel %vm1943_vm12, %v6464_v54, %v1175_v21  ;;  %v2074_v63 = vsel %vm1942_vm13, %v6464_v54, %v1174_v30 }
 0x490   : > { %4002 = vst.msk [vmem:[%s6530_s20 + $0x3e8] sm:$0xff] %vm3876_vm8, %v3873_v53  ;;  %4001 = vst.msk [vmem:[%s6530_s20 + $0x3e0] sm:$0xff] %vm3876_vm8, %v3872_v47  ;;  %v2975_v6 = vsel %vm2843_vm0, %v6488_v37, %v2075_v58  ;;  %v2974_v33 = vsel %vm2842_vm1, %v6488_v37, %v2074_v63 }
 0x491   : > { %v3615_v0 = vpop.permute.xlu1 %3614  ;;  %v3612_v34 = vpop.permute.xlu0 %3611 }
 0x492   : > { %vm3743_vm2 = vcmp.eq.s32.totalorder %v3615_v0, 1  ;;  %vm3742_vm5 = vcmp.eq.s32.totalorder %v3612_v34, 1 }
 0x493   : > { %v3875_v42 = vsel %vm3743_vm2, %v6511_v13, %v2975_v6  ;;  %v3874_v22 = vsel %vm3742_vm5, %v6511_v13, %v2974_v33 }
 0x494   : > { %4004 = vst.msk [vmem:[%s6530_s20 + $0x3f8] sm:$0xff] %vm3876_vm8, %v3875_v42  ;;  %4003 = vst.msk [vmem:[%s6530_s20 + $0x3f0] sm:$0xff] %vm3876_vm8, %v3874_v22 }
 0x495 PF: > { %s12_s9 = sadd.s32 1, %s4473_s9  }
 0x496   : > { %p9_p4 = scmp.ge.s32.totalorder %s12_s9, 4  }
 0x498   :  { %11 = sbr.rel (!%p9_p4) target bundleno = 1 (0x1), region = 58 }

</bundles_post_ra>
